<compile_context>
chip_gen: v7x
topology: tpu7x:2x2x1
jax: 0.10.0
libtpu: 0.0.40
codegen_flags: <defaults>
</compile_context>

<pallas_src>
import functools

import jax
import jax.numpy as jnp
from jax.experimental import pallas as pl
from jax.experimental.pallas import tpu as pltpu

_BN_EPS = 1e-5

# Whole-array-in-VMEM spec (no grid, no tiling — every operand fits easily).
_VMEM = pl.BlockSpec(memory_space=pltpu.MemorySpace.VMEM)


# ----------------------------------------------------------------------------
# Pallas kernels
# ----------------------------------------------------------------------------
def _conv_pool_shared_kernel(w_ref, b_ref, p00_ref, p01_ref, p10_ref, p11_ref,
                             o_ref):
    """Block 1 (shared input, 5 models stacked along rows):
       relu(max_parity(W @ P_parity) + b) -> (40, Mp) bf16."""
    w = w_ref[...]                                           # (40, 9) bf16
    acc = jnp.dot(w, p00_ref[...], preferred_element_type=jnp.float32)
    acc = jnp.maximum(acc, jnp.dot(w, p01_ref[...],
                                   preferred_element_type=jnp.float32))
    acc = jnp.maximum(acc, jnp.dot(w, p10_ref[...],
                                   preferred_element_type=jnp.float32))
    acc = jnp.maximum(acc, jnp.dot(w, p11_ref[...],
                                   preferred_element_type=jnp.float32))
    o_ref[...] = jnp.maximum(acc + b_ref[...], 0.0).astype(o_ref.dtype)


def _conv_pool_permodel_kernel(w_ref, b_ref, p00_ref, p01_ref, p10_ref,
                               p11_ref, o_ref, *, n_models):
    """Block 2 (per-model patches): relu(max_parity(W_m @ P_m,parity) + b_m).
    Fully unrolled in-kernel loop over the 5 models (constant indices), i.e.
    the model grid axis is gone; running max fold keeps <=2 results live."""
    for m in range(n_models):
        w = w_ref[m]                                         # (Cout, K) bf16
        acc = jnp.dot(w, p00_ref[m], preferred_element_type=jnp.float32)
        acc = jnp.maximum(acc, jnp.dot(w, p01_ref[m],
                                       preferred_element_type=jnp.float32))
        acc = jnp.maximum(acc, jnp.dot(w, p10_ref[m],
                                       preferred_element_type=jnp.float32))
        acc = jnp.maximum(acc, jnp.dot(w, p11_ref[m],
                                       preferred_element_type=jnp.float32))
        o_ref[m] = jnp.maximum(acc + b_ref[m], 0.0).astype(o_ref.dtype)


def _conv_relu_permodel_kernel(w_ref, b_ref, p_ref, o_ref, *, n_models):
    """Block 3 (no pooling): relu(W_m @ P_m + b_m), unrolled over models."""
    for m in range(n_models):
        y = jnp.dot(w_ref[m], p_ref[m], preferred_element_type=jnp.float32)
        o_ref[m] = jnp.maximum(y + b_ref[m], 0.0).astype(o_ref.dtype)


def _fc_kernel(w_ref, b_ref, x_ref, o_ref):
    """Ensemble-mean FC as ONE GEMM over K-concatenated operands:
       (15, 5*1568) @ (5*1568, N) + b_mean  (1/5 already folded into W)."""
    y = jnp.dot(w_ref[...], x_ref[...], preferred_element_type=jnp.float32)
    o_ref[...] = y + b_ref[...]


# ----------------------------------------------------------------------------
# pallas_call wrappers (no grid: single invocation, everything in VMEM)
# ----------------------------------------------------------------------------
def conv_pool_shared(patches4, w, b):
    """patches4: 4 parity matrices (K, Mp); w: (5*Cout, K) bf16; b: (5*Cout, 1).
    Returns (5*Cout, Mp) bf16."""
    rows = w.shape[0]
    mp = patches4[0].shape[-1]
    return pl.pallas_call(
        _conv_pool_shared_kernel,
        out_shape=jax.ShapeDtypeStruct((rows, mp), jnp.bfloat16),
        in_specs=[_VMEM] * 6,
        out_specs=_VMEM,
    )(w, b, *patches4)


def conv_pool_permodel(patches4, w, b):
    """patches4: 4 x (n_models, K, Mp); w: (n_models, Cout, K) bf16;
    b: (n_models, Cout, 1) f32. Returns (n_models, Cout, Mp) bf16."""
    n_models, cout, _ = w.shape
    mp = patches4[0].shape[-1]
    return pl.pallas_call(
        functools.partial(_conv_pool_permodel_kernel, n_models=n_models),
        out_shape=jax.ShapeDtypeStruct((n_models, cout, mp), jnp.bfloat16),
        in_specs=[_VMEM] * 6,
        out_specs=_VMEM,
    )(w, b, *patches4)


def conv_relu_permodel(patches, w, b):
    """patches: (n_models, K, Mp); w: (n_models, Cout, K) bf16. Returns
    (n_models, Cout, Mp) bf16."""
    n_models, cout, _ = w.shape
    mp = patches.shape[-1]
    return pl.pallas_call(
        functools.partial(_conv_relu_permodel_kernel, n_models=n_models),
        out_shape=jax.ShapeDtypeStruct((n_models, cout, mp), jnp.bfloat16),
        in_specs=[_VMEM] * 3,
        out_specs=_VMEM,
    )(w, b, patches)


def fc_ensemble(x, w, b):
    """x: (5*1568, N) bf16; w: (15, 5*1568) bf16 (pre-scaled by 1/5);
    b: (15, 1) f32 (mean bias). Returns ensemble-mean logits (15, N) f32."""
    nout = w.shape[0]
    nb = x.shape[-1]
    return pl.pallas_call(
        _fc_kernel,
        out_shape=jax.ShapeDtypeStruct((nout, nb), jnp.float32),
        in_specs=[_VMEM] * 3,
        out_specs=_VMEM,
    )(w, b, x)


# ----------------------------------------------------------------------------
# Plain-JAX glue: im2col patch extraction (valid conv, stride 1), batch-minor,
# M padded to a multiple of 128 lanes.
# ----------------------------------------------------------------------------
def _pad_lanes(p, m):
    pad = -m % 128
    if pad:
        p = jnp.pad(p, [(0, 0)] * (p.ndim - 1) + [(0, pad)])
    return p


def im2col_pool(x, k):
    """x: (..., C, H, W, N). Returns the 4 pooling-parity patch matrices
    (..., C*k*k, ceil128(PH*PW*N)) (parity order (dh, dw), M order (ph, pw, n))
    and (PH, PW, M) where the conv output is (H-k+1, W-k+1) and PH, PW are the
    MaxPool2d(2,2) output dims."""
    *lead, c, h, w, n = x.shape
    oh, ow = h - k + 1, w - k + 1
    ph, pw = oh // 2, ow // 2
    m = ph * pw * n
    outs = []
    for dh in range(2):
        for dw in range(2):
            pats = []
            for ki in range(k):
                for kj in range(k):
                    s = x[..., dh + ki: dh + ki + 2 * ph: 2,
                               dw + kj: dw + kj + 2 * pw: 2, :]
                    pats.append(s)                       # (..., C, PH, PW, N)
            p = jnp.stack(pats, axis=-4)                 # (..., C, k*k, PH, PW, N)
            p = p.reshape(*lead, c * k * k, m)
            outs.append(_pad_lanes(p, m))
    return outs, (ph, pw, m)


def im2col(x, k):
    """x: (..., C, H, W, N) -> patches (..., C*k*k, ceil128(OH*OW*N)),
    plus (OH, OW, M). M order is (oh, ow, n)."""
    *lead, c, h, w, n = x.shape
    oh, ow = h - k + 1, w - k + 1
    m = oh * ow * n
    pats = [x[..., ki:ki + oh, kj:kj + ow, :] for ki in range(k) for kj in range(k)]
    p = jnp.stack(pats, axis=-4).reshape(*lead, c * k * k, m)
    return _pad_lanes(p, m), (oh, ow, m)


# ----------------------------------------------------------------------------
# Parameter construction (mimics PyTorch default init) + BN folding + stacking
# ----------------------------------------------------------------------------
def _uniform(key, shape, fan_in):
    bound = 1.0 / (fan_in ** 0.5)
    return jax.random.uniform(key, shape, jnp.float32, -bound, bound)


def init_cnn2_raw(key):
    ks = jax.random.split(key, 8)
    p = {}
    p["w1"] = _uniform(ks[0], (8, 1, 3, 3), 9)
    p["b1"] = _uniform(ks[1], (8,), 9)
    p["w2"] = _uniform(ks[2], (16, 8, 5, 5), 200)
    p["b2"] = _uniform(ks[3], (16,), 200)
    p["w3"] = _uniform(ks[4], (32, 16, 7, 7), 784)
    p["b3"] = _uniform(ks[5], (32,), 784)
    p["wf"] = _uniform(ks[6], (15, 32 * 7 * 7), 32 * 7 * 7)
    p["bf"] = _uniform(ks[7], (15,), 32 * 7 * 7)
    for name, c in (("1", 8), ("2", 16), ("3", 32)):   # BatchNorm (eval) defaults
        p["bn_gamma" + name] = jnp.ones((c,), jnp.float32)
        p["bn_beta" + name] = jnp.zeros((c,), jnp.float32)
        p["bn_mean" + name] = jnp.zeros((c,), jnp.float32)
        p["bn_var" + name] = jnp.ones((c,), jnp.float32)
    return p


def fold_and_stack(raw_list):
    """Fold eval-mode BN into conv weights/bias, flatten to GEMM layout,
    collapse the model axis (row-stack for block 1, K-concat for the FC with
    the 1/n ensemble-mean factor folded in), cast MXU operands to bf16."""
    n_models = len(raw_list)

    def fold_conv(p, idx):
        w, b = p["w" + idx], p["b" + idx]
        scale = p["bn_gamma" + idx] / jnp.sqrt(p["bn_var" + idx] + _BN_EPS)
        w_f = (w * scale[:, None, None, None]).reshape(w.shape[0], -1)
        b_f = (b - p["bn_mean" + idx]) * scale + p["bn_beta" + idx]
        return w_f, b_f

    out = {}
    # block 1: shared input -> stack the 5 (8, 9) weights into one (40, 9) GEMM
    ws, bs = zip(*[fold_conv(p, "1") for p in raw_list])
    out["w1"] = jnp.concatenate(ws, axis=0).astype(jnp.bfloat16)     # (40, 9)
    out["b1"] = jnp.concatenate(bs, axis=0)[:, None]                 # (40, 1) f32
    # blocks 2/3: per-model weights stacked on a leading axis
    for idx in ("2", "3"):
        ws, bs = zip(*[fold_conv(p, idx) for p in raw_list])
        out["w" + idx] = jnp.stack(ws).astype(jnp.bfloat16)          # (5, Cout, K)
        out["b" + idx] = jnp.stack(bs)[..., None]                    # (5, Cout, 1)
    # FC: K-concat across models; fold the ensemble mean (1/5) into W and b.
    wf = jnp.concatenate([p["wf"] for p in raw_list], axis=1)        # (15, 5*1568)
    out["wf"] = (wf * (1.0 / n_models)).astype(jnp.bfloat16)
    out["bf"] = (sum(p["bf"] for p in raw_list) / n_models)[:, None]  # (15, 1) f32
    return out


# ----------------------------------------------------------------------------
# Forward pass (4 single-shot pallas_calls for the whole 5-model ensemble)
# ----------------------------------------------------------------------------
def ensemble_forward(params, x_nchw):
    n_batch = x_nchw.shape[0]
    n_models = params["w2"].shape[0]
    # channel-major, batch-minor layout: (C, H, W, N), bf16 activations
    x = jnp.transpose(x_nchw.astype(jnp.bfloat16), (1, 2, 3, 0))

    # block 1: conv(1->8,k3)+BN+ReLU+maxpool(2,2); shared input, 40-row GEMM
    p4, (ph, pw, m1) = im2col_pool(x, 3)                    # 4 x (9, 2048)
    a = conv_pool_shared(p4, params["w1"], params["b1"])    # (40, 2048) bf16
    a = a.reshape(n_models, 8, -1)[:, :, :m1]
    a = a.reshape(n_models, 8, ph, pw, n_batch)

    # block 2: conv(8->16,k5)+BN+ReLU+maxpool(2,2); in-kernel loop over models
    p4, (ph, pw, m2) = im2col_pool(a, 5)                    # 4 x (5, 200, 384)
    a = conv_pool_permodel(p4, params["w2"], params["b2"])  # (5, 16, 384) bf16
    a = a[:, :, :m2].reshape(n_models, 16, ph, pw, n_batch)

    # block 3: conv(16->32,k7)+BN+ReLU
    p, (oh, ow, m3) = im2col(a, 7)                          # (5, 784, 128)
    a = conv_relu_permodel(p, params["w3"], params["b3"])   # (5, 32, 128) bf16

    # flatten in PyTorch view(-1, 32*7*7) order (c, h, w) — pure reshapes since
    # batch is the minor axis of M; dropout(eval) = identity.
    a = a[:, :, :m3].reshape(n_models * 32 * oh * ow, n_batch)   # (7840, N)

    # fc1 + ensemble mean over the 5 models (one K-concatenated GEMM)
    logits_t = fc_ensemble(a, params["wf"], params["bf"])   # (15, N) f32
    return jnp.transpose(logits_t)                          # (N, 15)


# ----------------------------------------------------------------------------
if __name__ == "__main__":
    key = jax.random.PRNGKey(0)
    k_in, k_models = jax.random.split(key)
    # Input: batch=2, 1 channel, 64x64 (the spatial size that yields the
    # 32*7*7 feature count required by fc1).
    x = jax.random.normal(k_in, (2, 1, 64, 64), jnp.float32)

    raw_params = [init_cnn2_raw(k) for k in jax.random.split(k_models, 5)]
    params = fold_and_stack(raw_params)

    out = jax.jit(ensemble_forward)(params, x)
    out = jax.block_until_ready(out)
    assert out.shape == (2, 15), out.shape
    assert bool(jnp.all(jnp.isfinite(out)))
    print("KERNEL_OK")
</pallas_src>

<mosaic_0001>
module attributes {stable_mosaic.version = 11 : i64} {
  func.func @_conv_pool_shared_kernel(%arg0: memref<40x9xbf16, #tpu.memory_space<vmem>>, %arg1: memref<40x1xf32, #tpu.memory_space<vmem>>, %arg2: memref<9x2048xbf16, #tpu.memory_space<vmem>>, %arg3: memref<9x2048xbf16, #tpu.memory_space<vmem>>, %arg4: memref<9x2048xbf16, #tpu.memory_space<vmem>>, %arg5: memref<9x2048xbf16, #tpu.memory_space<vmem>>, %arg6: memref<40x2048xbf16, #tpu.memory_space<vmem>>) attributes {dimension_semantics = [], scalar_prefetch = 0 : i64, scratch_operands = 0 : i64, tpu.core_type = #tpu.core_type<tc>} {
    %c0 = arith.constant 0 : index
    %c0_0 = arith.constant 0 : index
    %0 = vector.load %arg0[%c0, %c0_0] : memref<40x9xbf16, #tpu.memory_space<vmem>>, vector<40x9xbf16>
    %c0_1 = arith.constant 0 : index
    %c0_2 = arith.constant 0 : index
    %1 = vector.load %arg2[%c0_1, %c0_2] : memref<9x2048xbf16, #tpu.memory_space<vmem>>, vector<9x2048xbf16>
    %cst = arith.constant dense<0.000000e+00> : vector<40x2048xf32>
    %2 = tpu.matmul %0, %1, %cst {dimension_numbers = #tpu.dot_dimension_numbers<[1], [0], [0], [1], [0, 0, 1, 1], [], []>} : vector<40x9xbf16>, vector<9x2048xbf16>, vector<40x2048xf32> -> vector<40x2048xf32>
    %c0_3 = arith.constant 0 : index
    %c0_4 = arith.constant 0 : index
    %3 = vector.load %arg3[%c0_3, %c0_4] : memref<9x2048xbf16, #tpu.memory_space<vmem>>, vector<9x2048xbf16>
    %cst_5 = arith.constant dense<0.000000e+00> : vector<40x2048xf32>
    %4 = tpu.matmul %0, %3, %cst_5 {dimension_numbers = #tpu.dot_dimension_numbers<[1], [0], [0], [1], [0, 0, 1, 1], [], []>} : vector<40x9xbf16>, vector<9x2048xbf16>, vector<40x2048xf32> -> vector<40x2048xf32>
    %5 = arith.maximumf %2, %4 : vector<40x2048xf32>
    %c0_6 = arith.constant 0 : index
    %c0_7 = arith.constant 0 : index
    %6 = vector.load %arg4[%c0_6, %c0_7] : memref<9x2048xbf16, #tpu.memory_space<vmem>>, vector<9x2048xbf16>
    %cst_8 = arith.constant dense<0.000000e+00> : vector<40x2048xf32>
    %7 = tpu.matmul %0, %6, %cst_8 {dimension_numbers = #tpu.dot_dimension_numbers<[1], [0], [0], [1], [0, 0, 1, 1], [], []>} : vector<40x9xbf16>, vector<9x2048xbf16>, vector<40x2048xf32> -> vector<40x2048xf32>
    %8 = arith.maximumf %5, %7 : vector<40x2048xf32>
    %c0_9 = arith.constant 0 : index
    %c0_10 = arith.constant 0 : index
    %9 = vector.load %arg5[%c0_9, %c0_10] : memref<9x2048xbf16, #tpu.memory_space<vmem>>, vector<9x2048xbf16>
    %cst_11 = arith.constant dense<0.000000e+00> : vector<40x2048xf32>
    %10 = tpu.matmul %0, %9, %cst_11 {dimension_numbers = #tpu.dot_dimension_numbers<[1], [0], [0], [1], [0, 0, 1, 1], [], []>} : vector<40x9xbf16>, vector<9x2048xbf16>, vector<40x2048xf32> -> vector<40x2048xf32>
    %11 = arith.maximumf %8, %10 : vector<40x2048xf32>
    %c0_12 = arith.constant 0 : index
    %c0_13 = arith.constant 0 : index
    %12 = vector.load %arg1[%c0_12, %c0_13] : memref<40x1xf32, #tpu.memory_space<vmem>>, vector<40x1xf32>
    %13 = vector.broadcast %12 : vector<40x1xf32> to vector<40x2048xf32>
    %14 = arith.addf %11, %13 : vector<40x2048xf32>
    %cst_14 = arith.constant 0.000000e+00 : f32
    %15 = vector.broadcast %cst_14 : f32 to vector<40x2048xf32>
    %16 = arith.maximumf %14, %15 : vector<40x2048xf32>
    %17 = arith.truncf %16 : vector<40x2048xf32> to vector<40x2048xbf16>
    %c0_15 = arith.constant 0 : index
    %c0_16 = arith.constant 0 : index
    %18 = vector.load %arg6[%c0_15, %c0_16] : memref<40x2048xbf16, #tpu.memory_space<vmem>>, vector<40x2048xbf16>
    tpu.vector_store %arg6[%c0_15, %c0_16], %17 {strides = array<i32>} : memref<40x2048xbf16, #tpu.memory_space<vmem>>, vector<40x2048xbf16>,
    return
  }
}

module attributes {stable_mosaic.version = 11 : i64} {
  func.func @_conv_pool_permodel_kernel(%arg0: memref<5x16x200xbf16, #tpu.memory_space<vmem>>, %arg1: memref<5x16x1xf32, #tpu.memory_space<vmem>>, %arg2: memref<5x200x384xbf16, #tpu.memory_space<vmem>>, %arg3: memref<5x200x384xbf16, #tpu.memory_space<vmem>>, %arg4: memref<5x200x384xbf16, #tpu.memory_space<vmem>>, %arg5: memref<5x200x384xbf16, #tpu.memory_space<vmem>>, %arg6: memref<5x16x384xbf16, #tpu.memory_space<vmem>>) attributes {dimension_semantics = [], scalar_prefetch = 0 : i64, scratch_operands = 0 : i64, tpu.core_type = #tpu.core_type<tc>} {
    %c0 = arith.constant 0 : index
    %c0_0 = arith.constant 0 : index
    %c0_1 = arith.constant 0 : index
    %0 = vector.load %arg0[%c0, %c0_0, %c0_1] : memref<5x16x200xbf16, #tpu.memory_space<vmem>>, vector<1x16x200xbf16>
    %1 = vector.shape_cast %0 : vector<1x16x200xbf16> to vector<16x200xbf16>
    %c0_2 = arith.constant 0 : index
    %c0_3 = arith.constant 0 : index
    %c0_4 = arith.constant 0 : index
    %2 = vector.load %arg2[%c0_2, %c0_3, %c0_4] : memref<5x200x384xbf16, #tpu.memory_space<vmem>>, vector<1x200x384xbf16>
    %3 = vector.shape_cast %2 : vector<1x200x384xbf16> to vector<200x384xbf16>
    %cst = arith.constant dense<0.000000e+00> : vector<16x384xf32>
    %4 = tpu.matmul %1, %3, %cst {dimension_numbers = #tpu.dot_dimension_numbers<[1], [0], [0], [1], [0, 0, 1, 1], [], []>} : vector<16x200xbf16>, vector<200x384xbf16>, vector<16x384xf32> -> vector<16x384xf32>
    %c0_5 = arith.constant 0 : index
    %c0_6 = arith.constant 0 : index
    %c0_7 = arith.constant 0 : index
    %5 = vector.load %arg3[%c0_5, %c0_6, %c0_7] : memref<5x200x384xbf16, #tpu.memory_space<vmem>>, vector<1x200x384xbf16>
    %6 = vector.shape_cast %5 : vector<1x200x384xbf16> to vector<200x384xbf16>
    %cst_8 = arith.constant dense<0.000000e+00> : vector<16x384xf32>
    %7 = tpu.matmul %1, %6, %cst_8 {dimension_numbers = #tpu.dot_dimension_numbers<[1], [0], [0], [1], [0, 0, 1, 1], [], []>} : vector<16x200xbf16>, vector<200x384xbf16>, vector<16x384xf32> -> vector<16x384xf32>
    %8 = arith.maximumf %4, %7 : vector<16x384xf32>
    %c0_9 = arith.constant 0 : index
    %c0_10 = arith.constant 0 : index
    %c0_11 = arith.constant 0 : index
    %9 = vector.load %arg4[%c0_9, %c0_10, %c0_11] : memref<5x200x384xbf16, #tpu.memory_space<vmem>>, vector<1x200x384xbf16>
    %10 = vector.shape_cast %9 : vector<1x200x384xbf16> to vector<200x384xbf16>
    %cst_12 = arith.constant dense<0.000000e+00> : vector<16x384xf32>
    %11 = tpu.matmul %1, %10, %cst_12 {dimension_numbers = #tpu.dot_dimension_numbers<[1], [0], [0], [1], [0, 0, 1, 1], [], []>} : vector<16x200xbf16>, vector<200x384xbf16>, vector<16x384xf32> -> vector<16x384xf32>
    %12 = arith.maximumf %8, %11 : vector<16x384xf32>
    %c0_13 = arith.constant 0 : index
    %c0_14 = arith.constant 0 : index
    %c0_15 = arith.constant 0 : index
    %13 = vector.load %arg5[%c0_13, %c0_14, %c0_15] : memref<5x200x384xbf16, #tpu.memory_space<vmem>>, vector<1x200x384xbf16>
    %14 = vector.shape_cast %13 : vector<1x200x384xbf16> to vector<200x384xbf16>
    %cst_16 = arith.constant dense<0.000000e+00> : vector<16x384xf32>
    %15 = tpu.matmul %1, %14, %cst_16 {dimension_numbers = #tpu.dot_dimension_numbers<[1], [0], [0], [1], [0, 0, 1, 1], [], []>} : vector<16x200xbf16>, vector<200x384xbf16>, vector<16x384xf32> -> vector<16x384xf32>
    %16 = arith.maximumf %12, %15 : vector<16x384xf32>
    %c0_17 = arith.constant 0 : index
    %c0_18 = arith.constant 0 : index
    %c0_19 = arith.constant 0 : index
    %17 = vector.load %arg1[%c0_17, %c0_18, %c0_19] : memref<5x16x1xf32, #tpu.memory_space<vmem>>, vector<1x16x1xf32>
    %18 = vector.shape_cast %17 : vector<1x16x1xf32> to vector<16x1xf32>
    %19 = vector.broadcast %18 : vector<16x1xf32> to vector<16x384xf32>
    %20 = arith.addf %16, %19 : vector<16x384xf32>
    %cst_20 = arith.constant 0.000000e+00 : f32
    %21 = vector.broadcast %cst_20 : f32 to vector<16x384xf32>
    %22 = arith.maximumf %20, %21 : vector<16x384xf32>
    %23 = arith.truncf %22 : vector<16x384xf32> to vector<16x384xbf16>
    %c0_21 = arith.constant 0 : index
    %c0_22 = arith.constant 0 : index
    %c0_23 = arith.constant 0 : index
    %24 = vector.load %arg6[%c0_21, %c0_22, %c0_23] : memref<5x16x384xbf16, #tpu.memory_space<vmem>>, vector<1x16x384xbf16>
    %25 = vector.shape_cast %24 : vector<1x16x384xbf16> to vector<16x384xbf16>
    %26 = vector.shape_cast %23 : vector<16x384xbf16> to vector<1x16x384xbf16>
    tpu.vector_store %arg6[%c0_21, %c0_22, %c0_23], %26 {strides = array<i32>} : memref<5x16x384xbf16, #tpu.memory_space<vmem>>, vector<1x16x384xbf16>,
    %c1 = arith.constant 1 : index
    %c0_24 = arith.constant 0 : index
    %c0_25 = arith.constant 0 : index
    %27 = vector.load %arg0[%c1, %c0_24, %c0_25] : memref<5x16x200xbf16, #tpu.memory_space<vmem>>, vector<1x16x200xbf16>
    %28 = vector.shape_cast %27 : vector<1x16x200xbf16> to vector<16x200xbf16>
    %c1_26 = arith.constant 1 : index
    %c0_27 = arith.constant 0 : index
    %c0_28 = arith.constant 0 : index
    %29 = vector.load %arg2[%c1_26, %c0_27, %c0_28] : memref<5x200x384xbf16, #tpu.memory_space<vmem>>, vector<1x200x384xbf16>
    %30 = vector.shape_cast %29 : vector<1x200x384xbf16> to vector<200x384xbf16>
    %cst_29 = arith.constant dense<0.000000e+00> : vector<16x384xf32>
    %31 = tpu.matmul %28, %30, %cst_29 {dimension_numbers = #tpu.dot_dimension_numbers<[1], [0], [0], [1], [0, 0, 1, 1], [], []>} : vector<16x200xbf16>, vector<200x384xbf16>, vector<16x384xf32> -> vector<16x384xf32>
    %c1_30 = arith.constant 1 : index
    %c0_31 = arith.constant 0 : index
    %c0_32 = arith.constant 0 : index
    %32 = vector.load %arg3[%c1_30, %c0_31, %c0_32] : memref<5x200x384xbf16, #tpu.memory_space<vmem>>, vector<1x200x384xbf16>
    %33 = vector.shape_cast %32 : vector<1x200x384xbf16> to vector<200x384xbf16>
    %cst_33 = arith.constant dense<0.000000e+00> : vector<16x384xf32>
    %34 = tpu.matmul %28, %33, %cst_33 {dimension_numbers = #tpu.dot_dimension_numbers<[1], [0], [0], [1], [0, 0, 1, 1], [], []>} : vector<16x200xbf16>, vector<200x384xbf16>, vector<16x384xf32> -> vector<16x384xf32>
    %35 = arith.maximumf %31, %34 : vector<16x384xf32>
    %c1_34 = arith.constant 1 : index
    %c0_35 = arith.constant 0 : index
    %c0_36 = arith.constant 0 : index
    %36 = vector.load %arg4[%c1_34, %c0_35, %c0_36] : memref<5x200x384xbf16, #tpu.memory_space<vmem>>, vector<1x200x384xbf16>
    %37 = vector.shape_cast %36 : vector<1x200x384xbf16> to vector<200x384xbf16>
    %cst_37 = arith.constant dense<0.000000e+00> : vector<16x384xf32>
    %38 = tpu.matmul %28, %37, %cst_37 {dimension_numbers = #tpu.dot_dimension_numbers<[1], [0], [0], [1], [0, 0, 1, 1], [], []>} : vector<16x200xbf16>, vector<200x384xbf16>, vector<16x384xf32> -> vector<16x384xf32>
    %39 = arith.maximumf %35, %38 : vector<16x384xf32>
    %c1_38 = arith.constant 1 : index
    %c0_39 = arith.constant 0 : index
    %c0_40 = arith.constant 0 : index
    %40 = vector.load %arg5[%c1_38, %c0_39, %c0_40] : memref<5x200x384xbf16, #tpu.memory_space<vmem>>, vector<1x200x384xbf16>
    %41 = vector.shape_cast %40 : vector<1x200x384xbf16> to vector<200x384xbf16>
    %cst_41 = arith.constant dense<0.000000e+00> : vector<16x384xf32>
    %42 = tpu.matmul %28, %41, %cst_41 {dimension_numbers = #tpu.dot_dimension_numbers<[1], [0], [0], [1], [0, 0, 1, 1], [], []>} : vector<16x200xbf16>, vector<200x384xbf16>, vector<16x384xf32> -> vector<16x384xf32>
    %43 = arith.maximumf %39, %42 : vector<16x384xf32>
    %c1_42 = arith.constant 1 : index
    %c0_43 = arith.constant 0 : index
    %c0_44 = arith.constant 0 : index
    %44 = vector.load %arg1[%c1_42, %c0_43, %c0_44] : memref<5x16x1xf32, #tpu.memory_space<vmem>>, vector<1x16x1xf32>
    %45 = vector.shape_cast %44 : vector<1x16x1xf32> to vector<16x1xf32>
    %46 = vector.broadcast %45 : vector<16x1xf32> to vector<16x384xf32>
    %47 = arith.addf %43, %46 : vector<16x384xf32>
    %cst_45 = arith.constant 0.000000e+00 : f32
    %48 = vector.broadcast %cst_45 : f32 to vector<16x384xf32>
    %49 = arith.maximumf %47, %48 : vector<16x384xf32>
    %50 = arith.truncf %49 : vector<16x384xf32> to vector<16x384xbf16>
    %c1_46 = arith.constant 1 : index
    %c0_47 = arith.constant 0 : index
    %c0_48 = arith.constant 0 : index
    %51 = vector.load %arg6[%c1_46, %c0_47, %c0_48] : memref<5x16x384xbf16, #tpu.memory_space<vmem>>, vector<1x16x384xbf16>
    %52 = vector.shape_cast %51 : vector<1x16x384xbf16> to vector<16x384xbf16>
    %53 = vector.shape_cast %50 : vector<16x384xbf16> to vector<1x16x384xbf16>
    tpu.vector_store %arg6[%c1_46, %c0_47, %c0_48], %53 {strides = array<i32>} : memref<5x16x384xbf16, #tpu.memory_space<vmem>>, vector<1x16x384xbf16>,
    %c2 = arith.constant 2 : index
    %c0_49 = arith.constant 0 : index
    %c0_50 = arith.constant 0 : index
    %54 = vector.load %arg0[%c2, %c0_49, %c0_50] : memref<5x16x200xbf16, #tpu.memory_space<vmem>>, vector<1x16x200xbf16>
    %55 = vector.shape_cast %54 : vector<1x16x200xbf16> to vector<16x200xbf16>
    %c2_51 = arith.constant 2 : index
    %c0_52 = arith.constant 0 : index
    %c0_53 = arith.constant 0 : index
    %56 = vector.load %arg2[%c2_51, %c0_52, %c0_53] : memref<5x200x384xbf16, #tpu.memory_space<vmem>>, vector<1x200x384xbf16>
    %57 = vector.shape_cast %56 : vector<1x200x384xbf16> to vector<200x384xbf16>
    %cst_54 = arith.constant dense<0.000000e+00> : vector<16x384xf32>
    %58 = tpu.matmul %55, %57, %cst_54 {dimension_numbers = #tpu.dot_dimension_numbers<[1], [0], [0], [1], [0, 0, 1, 1], [], []>} : vector<16x200xbf16>, vector<200x384xbf16>, vector<16x384xf32> -> vector<16x384xf32>
    %c2_55 = arith.constant 2 : index
    %c0_56 = arith.constant 0 : index
    %c0_57 = arith.constant 0 : index
    %59 = vector.load %arg3[%c2_55, %c0_56, %c0_57] : memref<5x200x384xbf16, #tpu.memory_space<vmem>>, vector<1x200x384xbf16>
    %60 = vector.shape_cast %59 : vector<1x200x384xbf16> to vector<200x384xbf16>
    %cst_58 = arith.constant dense<0.000000e+00> : vector<16x384xf32>
    %61 = tpu.matmul %55, %60, %cst_58 {dimension_numbers = #tpu.dot_dimension_numbers<[1], [0], [0], [1], [0, 0, 1, 1], [], []>} : vector<16x200xbf16>, vector<200x384xbf16>, vector<16x384xf32> -> vector<16x384xf32>
    %62 = arith.maximumf %58, %61 : vector<16x384xf32>
    %c2_59 = arith.constant 2 : index
    %c0_60 = arith.constant 0 : index
    %c0_61 = arith.constant 0 : index
    %63 = vector.load %arg4[%c2_59, %c0_60, %c0_61] : memref<5x200x384xbf16, #tpu.memory_space<vmem>>, vector<1x200x384xbf16>
    %64 = vector.shape_cast %63 : vector<1x200x384xbf16> to vector<200x384xbf16>
    %cst_62 = arith.constant dense<0.000000e+00> : vector<16x384xf32>
    %65 = tpu.matmul %55, %64, %cst_62 {dimension_numbers = #tpu.dot_dimension_numbers<[1], [0], [0], [1], [0, 0, 1, 1], [], []>} : vector<16x200xbf16>, vector<200x384xbf16>, vector<16x384xf32> -> vector<16x384xf32>
    %66 = arith.maximumf %62, %65 : vector<16x384xf32>
    %c2_63 = arith.constant 2 : index
    %c0_64 = arith.constant 0 : index
    %c0_65 = arith.constant 0 : index
    %67 = vector.load %arg5[%c2_63, %c0_64, %c0_65] : memref<5x200x384xbf16, #tpu.memory_space<vmem>>, vector<1x200x384xbf16>
    %68 = vector.shape_cast %67 : vector<1x200x384xbf16> to vector<200x384xbf16>
    %cst_66 = arith.constant dense<0.000000e+00> : vector<16x384xf32>
    %69 = tpu.matmul %55, %68, %cst_66 {dimension_numbers = #tpu.dot_dimension_numbers<[1], [0], [0], [1], [0, 0, 1, 1], [], []>} : vector<16x200xbf16>, vector<200x384xbf16>, vector<16x384xf32> -> vector<16x384xf32>
    %70 = arith.maximumf %66, %69 : vector<16x384xf32>
    %c2_67 = arith.constant 2 : index
    %c0_68 = arith.constant 0 : index
    %c0_69 = arith.constant 0 : index
    %71 = vector.load %arg1[%c2_67, %c0_68, %c0_69] : memref<5x16x1xf32, #tpu.memory_space<vmem>>, vector<1x16x1xf32>
    %72 = vector.shape_cast %71 : vector<1x16x1xf32> to vector<16x1xf32>
    %73 = vector.broadcast %72 : vector<16x1xf32> to vector<16x384xf32>
    %74 = arith.addf %70, %73 : vector<16x384xf32>
    %cst_70 = arith.constant 0.000000e+00 : f32
    %75 = vector.broadcast %cst_70 : f32 to vector<16x384xf32>
    %76 = arith.maximumf %74, %75 : vector<16x384xf32>
    %77 = arith.truncf %76 : vector<16x384xf32> to vector<16x384xbf16>
    %c2_71 = arith.constant 2 : index
    %c0_72 = arith.constant 0 : index
    %c0_73 = arith.constant 0 : index
    %78 = vector.load %arg6[%c2_71, %c0_72, %c0_73] : memref<5x16x384xbf16, #tpu.memory_space<vmem>>, vector<1x16x384xbf16>
    %79 = vector.shape_cast %78 : vector<1x16x384xbf16> to vector<16x384xbf16>
    %80 = vector.shape_cast %77 : vector<16x384xbf16> to vector<1x16x384xbf16>
    tpu.vector_store %arg6[%c2_71, %c0_72, %c0_73], %80 {strides = array<i32>} : memref<5x16x384xbf16, #tpu.memory_space<vmem>>, vector<1x16x384xbf16>,
    %c3 = arith.constant 3 : index
    %c0_74 = arith.constant 0 : index
    %c0_75 = arith.constant 0 : index
    %81 = vector.load %arg0[%c3, %c0_74, %c0_75] : memref<5x16x200xbf16, #tpu.memory_space<vmem>>, vector<1x16x200xbf16>
    %82 = vector.shape_cast %81 : vector<1x16x200xbf16> to vector<16x200xbf16>
    %c3_76 = arith.constant 3 : index
    %c0_77 = arith.constant 0 : index
    %c0_78 = arith.constant 0 : index
    %83 = vector.load %arg2[%c3_76, %c0_77, %c0_78] : memref<5x200x384xbf16, #tpu.memory_space<vmem>>, vector<1x200x384xbf16>
    %84 = vector.shape_cast %83 : vector<1x200x384xbf16> to vector<200x384xbf16>
    %cst_79 = arith.constant dense<0.000000e+00> : vector<16x384xf32>
    %85 = tpu.matmul %82, %84, %cst_79 {dimension_numbers = #tpu.dot_dimension_numbers<[1], [0], [0], [1], [0, 0, 1, 1], [], []>} : vector<16x200xbf16>, vector<200x384xbf16>, vector<16x384xf32> -> vector<16x384xf32>
    %c3_80 = arith.constant 3 : index
    %c0_81 = arith.constant 0 : index
    %c0_82 = arith.constant 0 : index
    %86 = vector.load %arg3[%c3_80, %c0_81, %c0_82] : memref<5x200x384xbf16, #tpu.memory_space<vmem>>, vector<1x200x384xbf16>
    %87 = vector.shape_cast %86 : vector<1x200x384xbf16> to vector<200x384xbf16>
    %cst_83 = arith.constant dense<0.000000e+00> : vector<16x384xf32>
    %88 = tpu.matmul %82, %87, %cst_83 {dimension_numbers = #tpu.dot_dimension_numbers<[1], [0], [0], [1], [0, 0, 1, 1], [], []>} : vector<16x200xbf16>, vector<200x384xbf16>, vector<16x384xf32> -> vector<16x384xf32>
    %89 = arith.maximumf %85, %88 : vector<16x384xf32>
    %c3_84 = arith.constant 3 : index
    %c0_85 = arith.constant 0 : index
    %c0_86 = arith.constant 0 : index
    %90 = vector.load %arg4[%c3_84, %c0_85, %c0_86] : memref<5x200x384xbf16, #tpu.memory_space<vmem>>, vector<1x200x384xbf16>
    %91 = vector.shape_cast %90 : vector<1x200x384xbf16> to vector<200x384xbf16>
    %cst_87 = arith.constant dense<0.000000e+00> : vector<16x384xf32>
    %92 = tpu.matmul %82, %91, %cst_87 {dimension_numbers = #tpu.dot_dimension_numbers<[1], [0], [0], [1], [0, 0, 1, 1], [], []>} : vector<16x200xbf16>, vector<200x384xbf16>, vector<16x384xf32> -> vector<16x384xf32>
    %93 = arith.maximumf %89, %92 : vector<16x384xf32>
    %c3_88 = arith.constant 3 : index
    %c0_89 = arith.constant 0 : index
    %c0_90 = arith.constant 0 : index
    %94 = vector.load %arg5[%c3_88, %c0_89, %c0_90] : memref<5x200x384xbf16, #tpu.memory_space<vmem>>, vector<1x200x384xbf16>
    %95 = vector.shape_cast %94 : vector<1x200x384xbf16> to vector<200x384xbf16>
    %cst_91 = arith.constant dense<0.000000e+00> : vector<16x384xf32>
    %96 = tpu.matmul %82, %95, %cst_91 {dimension_numbers = #tpu.dot_dimension_numbers<[1], [0], [0], [1], [0, 0, 1, 1], [], []>} : vector<16x200xbf16>, vector<200x384xbf16>, vector<16x384xf32> -> vector<16x384xf32>
    %97 = arith.maximumf %93, %96 : vector<16x384xf32>
    %c3_92 = arith.constant 3 : index
    %c0_93 = arith.constant 0 : index
    %c0_94 = arith.constant 0 : index
    %98 = vector.load %arg1[%c3_92, %c0_93, %c0_94] : memref<5x16x1xf32, #tpu.memory_space<vmem>>, vector<1x16x1xf32>
    %99 = vector.shape_cast %98 : vector<1x16x1xf32> to vector<16x1xf32>
    %100 = vector.broadcast %99 : vector<16x1xf32> to vector<16x384xf32>
    %101 = arith.addf %97, %100 : vector<16x384xf32>
    %cst_95 = arith.constant 0.000000e+00 : f32
    %102 = vector.broadcast %cst_95 : f32 to vector<16x384xf32>
    %103 = arith.maximumf %101, %102 : vector<16x384xf32>
    %104 = arith.truncf %103 : vector<16x384xf32> to vector<16x384xbf16>
    %c3_96 = arith.constant 3 : index
    %c0_97 = arith.constant 0 : index
    %c0_98 = arith.constant 0 : index
    %105 = vector.load %arg6[%c3_96, %c0_97, %c0_98] : memref<5x16x384xbf16, #tpu.memory_space<vmem>>, vector<1x16x384xbf16>
    %106 = vector.shape_cast %105 : vector<1x16x384xbf16> to vector<16x384xbf16>
    %107 = vector.shape_cast %104 : vector<16x384xbf16> to vector<1x16x384xbf16>
    tpu.vector_store %arg6[%c3_96, %c0_97, %c0_98], %107 {strides = array<i32>} : memref<5x16x384xbf16, #tpu.memory_space<vmem>>, vector<1x16x384xbf16>,
    %c4 = arith.constant 4 : index
    %c0_99 = arith.constant 0 : index
    %c0_100 = arith.constant 0 : index
    %108 = vector.load %arg0[%c4, %c0_99, %c0_100] : memref<5x16x200xbf16, #tpu.memory_space<vmem>>, vector<1x16x200xbf16>
    %109 = vector.shape_cast %108 : vector<1x16x200xbf16> to vector<16x200xbf16>
    %c4_101 = arith.constant 4 : index
    %c0_102 = arith.constant 0 : index
    %c0_103 = arith.constant 0 : index
    %110 = vector.load %arg2[%c4_101, %c0_102, %c0_103] : memref<5x200x384xbf16, #tpu.memory_space<vmem>>, vector<1x200x384xbf16>
    %111 = vector.shape_cast %110 : vector<1x200x384xbf16> to vector<200x384xbf16>
    %cst_104 = arith.constant dense<0.000000e+00> : vector<16x384xf32>
    %112 = tpu.matmul %109, %111, %cst_104 {dimension_numbers = #tpu.dot_dimension_numbers<[1], [0], [0], [1], [0, 0, 1, 1], [], []>} : vector<16x200xbf16>, vector<200x384xbf16>, vector<16x384xf32> -> vector<16x384xf32>
    %c4_105 = arith.constant 4 : index
    %c0_106 = arith.constant 0 : index
    %c0_107 = arith.constant 0 : index
    %113 = vector.load %arg3[%c4_105, %c0_106, %c0_107] : memref<5x200x384xbf16, #tpu.memory_space<vmem>>, vector<1x200x384xbf16>
    %114 = vector.shape_cast %113 : vector<1x200x384xbf16> to vector<200x384xbf16>
    %cst_108 = arith.constant dense<0.000000e+00> : vector<16x384xf32>
    %115 = tpu.matmul %109, %114, %cst_108 {dimension_numbers = #tpu.dot_dimension_numbers<[1], [0], [0], [1], [0, 0, 1, 1], [], []>} : vector<16x200xbf16>, vector<200x384xbf16>, vector<16x384xf32> -> vector<16x384xf32>
    %116 = arith.maximumf %112, %115 : vector<16x384xf32>
    %c4_109 = arith.constant 4 : index
    %c0_110 = arith.constant 0 : index
    %c0_111 = arith.constant 0 : index
    %117 = vector.load %arg4[%c4_109, %c0_110, %c0_111] : memref<5x200x384xbf16, #tpu.memory_space<vmem>>, vector<1x200x384xbf16>
    %118 = vector.shape_cast %117 : vector<1x200x384xbf16> to vector<200x384xbf16>
    %cst_112 = arith.constant dense<0.000000e+00> : vector<16x384xf32>
    %119 = tpu.matmul %109, %118, %cst_112 {dimension_numbers = #tpu.dot_dimension_numbers<[1], [0], [0], [1], [0, 0, 1, 1], [], []>} : vector<16x200xbf16>, vector<200x384xbf16>, vector<16x384xf32> -> vector<16x384xf32>
    %120 = arith.maximumf %116, %119 : vector<16x384xf32>
    %c4_113 = arith.constant 4 : index
    %c0_114 = arith.constant 0 : index
    %c0_115 = arith.constant 0 : index
    %121 = vector.load %arg5[%c4_113, %c0_114, %c0_115] : memref<5x200x384xbf16, #tpu.memory_space<vmem>>, vector<1x200x384xbf16>
    %122 = vector.shape_cast %121 : vector<1x200x384xbf16> to vector<200x384xbf16>
    %cst_116 = arith.constant dense<0.000000e+00> : vector<16x384xf32>
    %123 = tpu.matmul %109, %122, %cst_116 {dimension_numbers = #tpu.dot_dimension_numbers<[1], [0], [0], [1], [0, 0, 1, 1], [], []>} : vector<16x200xbf16>, vector<200x384xbf16>, vector<16x384xf32> -> vector<16x384xf32>
    %124 = arith.maximumf %120, %123 : vector<16x384xf32>
    %c4_117 = arith.constant 4 : index
    %c0_118 = arith.constant 0 : index
    %c0_119 = arith.constant 0 : index
    %125 = vector.load %arg1[%c4_117, %c0_118, %c0_119] : memref<5x16x1xf32, #tpu.memory_space<vmem>>, vector<1x16x1xf32>
    %126 = vector.shape_cast %125 : vector<1x16x1xf32> to vector<16x1xf32>
    %127 = vector.broadcast %126 : vector<16x1xf32> to vector<16x384xf32>
    %128 = arith.addf %124, %127 : vector<16x384xf32>
    %cst_120 = arith.constant 0.000000e+00 : f32
    %129 = vector.broadcast %cst_120 : f32 to vector<16x384xf32>
    %130 = arith.maximumf %128, %129 : vector<16x384xf32>
    %131 = arith.truncf %130 : vector<16x384xf32> to vector<16x384xbf16>
    %c4_121 = arith.constant 4 : index
    %c0_122 = arith.constant 0 : index
    %c0_123 = arith.constant 0 : index
    %132 = vector.load %arg6[%c4_121, %c0_122, %c0_123] : memref<5x16x384xbf16, #tpu.memory_space<vmem>>, vector<1x16x384xbf16>
    %133 = vector.shape_cast %132 : vector<1x16x384xbf16> to vector<16x384xbf16>
    %134 = vector.shape_cast %131 : vector<16x384xbf16> to vector<1x16x384xbf16>
    tpu.vector_store %arg6[%c4_121, %c0_122, %c0_123], %134 {strides = array<i32>} : memref<5x16x384xbf16, #tpu.memory_space<vmem>>, vector<1x16x384xbf16>,
    return
  }
}

module attributes {stable_mosaic.version = 11 : i64} {
  func.func @_conv_relu_permodel_kernel(%arg0: memref<5x32x784xbf16, #tpu.memory_space<vmem>>, %arg1: memref<5x32x1xf32, #tpu.memory_space<vmem>>, %arg2: memref<5x784x128xbf16, #tpu.memory_space<vmem>>, %arg3: memref<5x32x128xbf16, #tpu.memory_space<vmem>>) attributes {dimension_semantics = [], scalar_prefetch = 0 : i64, scratch_operands = 0 : i64, tpu.core_type = #tpu.core_type<tc>} {
    %c0 = arith.constant 0 : index
    %c0_0 = arith.constant 0 : index
    %c0_1 = arith.constant 0 : index
    %0 = vector.load %arg0[%c0, %c0_0, %c0_1] : memref<5x32x784xbf16, #tpu.memory_space<vmem>>, vector<1x32x784xbf16>
    %1 = vector.shape_cast %0 : vector<1x32x784xbf16> to vector<32x784xbf16>
    %c0_2 = arith.constant 0 : index
    %c0_3 = arith.constant 0 : index
    %c0_4 = arith.constant 0 : index
    %2 = vector.load %arg2[%c0_2, %c0_3, %c0_4] : memref<5x784x128xbf16, #tpu.memory_space<vmem>>, vector<1x784x128xbf16>
    %3 = vector.shape_cast %2 : vector<1x784x128xbf16> to vector<784x128xbf16>
    %cst = arith.constant dense<0.000000e+00> : vector<32x128xf32>
    %4 = tpu.matmul %1, %3, %cst {dimension_numbers = #tpu.dot_dimension_numbers<[1], [0], [0], [1], [0, 0, 1, 1], [], []>} : vector<32x784xbf16>, vector<784x128xbf16>, vector<32x128xf32> -> vector<32x128xf32>
    %c0_5 = arith.constant 0 : index
    %c0_6 = arith.constant 0 : index
    %c0_7 = arith.constant 0 : index
    %5 = vector.load %arg1[%c0_5, %c0_6, %c0_7] : memref<5x32x1xf32, #tpu.memory_space<vmem>>, vector<1x32x1xf32>
    %6 = vector.shape_cast %5 : vector<1x32x1xf32> to vector<32x1xf32>
    %7 = vector.broadcast %6 : vector<32x1xf32> to vector<32x128xf32>
    %8 = arith.addf %4, %7 : vector<32x128xf32>
    %cst_8 = arith.constant 0.000000e+00 : f32
    %9 = vector.broadcast %cst_8 : f32 to vector<32x128xf32>
    %10 = arith.maximumf %8, %9 : vector<32x128xf32>
    %11 = arith.truncf %10 : vector<32x128xf32> to vector<32x128xbf16>
    %c0_9 = arith.constant 0 : index
    %c0_10 = arith.constant 0 : index
    %c0_11 = arith.constant 0 : index
    %12 = vector.load %arg3[%c0_9, %c0_10, %c0_11] : memref<5x32x128xbf16, #tpu.memory_space<vmem>>, vector<1x32x128xbf16>
    %13 = vector.shape_cast %12 : vector<1x32x128xbf16> to vector<32x128xbf16>
    %14 = vector.shape_cast %11 : vector<32x128xbf16> to vector<1x32x128xbf16>
    tpu.vector_store %arg3[%c0_9, %c0_10, %c0_11], %14 {strides = array<i32>} : memref<5x32x128xbf16, #tpu.memory_space<vmem>>, vector<1x32x128xbf16>,
    %c1 = arith.constant 1 : index
    %c0_12 = arith.constant 0 : index
    %c0_13 = arith.constant 0 : index
    %15 = vector.load %arg0[%c1, %c0_12, %c0_13] : memref<5x32x784xbf16, #tpu.memory_space<vmem>>, vector<1x32x784xbf16>
    %16 = vector.shape_cast %15 : vector<1x32x784xbf16> to vector<32x784xbf16>
    %c1_14 = arith.constant 1 : index
    %c0_15 = arith.constant 0 : index
    %c0_16 = arith.constant 0 : index
    %17 = vector.load %arg2[%c1_14, %c0_15, %c0_16] : memref<5x784x128xbf16, #tpu.memory_space<vmem>>, vector<1x784x128xbf16>
    %18 = vector.shape_cast %17 : vector<1x784x128xbf16> to vector<784x128xbf16>
    %cst_17 = arith.constant dense<0.000000e+00> : vector<32x128xf32>
    %19 = tpu.matmul %16, %18, %cst_17 {dimension_numbers = #tpu.dot_dimension_numbers<[1], [0], [0], [1], [0, 0, 1, 1], [], []>} : vector<32x784xbf16>, vector<784x128xbf16>, vector<32x128xf32> -> vector<32x128xf32>
    %c1_18 = arith.constant 1 : index
    %c0_19 = arith.constant 0 : index
    %c0_20 = arith.constant 0 : index
    %20 = vector.load %arg1[%c1_18, %c0_19, %c0_20] : memref<5x32x1xf32, #tpu.memory_space<vmem>>, vector<1x32x1xf32>
    %21 = vector.shape_cast %20 : vector<1x32x1xf32> to vector<32x1xf32>
    %22 = vector.broadcast %21 : vector<32x1xf32> to vector<32x128xf32>
    %23 = arith.addf %19, %22 : vector<32x128xf32>
    %cst_21 = arith.constant 0.000000e+00 : f32
    %24 = vector.broadcast %cst_21 : f32 to vector<32x128xf32>
    %25 = arith.maximumf %23, %24 : vector<32x128xf32>
    %26 = arith.truncf %25 : vector<32x128xf32> to vector<32x128xbf16>
    %c1_22 = arith.constant 1 : index
    %c0_23 = arith.constant 0 : index
    %c0_24 = arith.constant 0 : index
    %27 = vector.load %arg3[%c1_22, %c0_23, %c0_24] : memref<5x32x128xbf16, #tpu.memory_space<vmem>>, vector<1x32x128xbf16>
    %28 = vector.shape_cast %27 : vector<1x32x128xbf16> to vector<32x128xbf16>
    %29 = vector.shape_cast %26 : vector<32x128xbf16> to vector<1x32x128xbf16>
    tpu.vector_store %arg3[%c1_22, %c0_23, %c0_24], %29 {strides = array<i32>} : memref<5x32x128xbf16, #tpu.memory_space<vmem>>, vector<1x32x128xbf16>,
    %c2 = arith.constant 2 : index
    %c0_25 = arith.constant 0 : index
    %c0_26 = arith.constant 0 : index
    %30 = vector.load %arg0[%c2, %c0_25, %c0_26] : memref<5x32x784xbf16, #tpu.memory_space<vmem>>, vector<1x32x784xbf16>
    %31 = vector.shape_cast %30 : vector<1x32x784xbf16> to vector<32x784xbf16>
    %c2_27 = arith.constant 2 : index
    %c0_28 = arith.constant 0 : index
    %c0_29 = arith.constant 0 : index
    %32 = vector.load %arg2[%c2_27, %c0_28, %c0_29] : memref<5x784x128xbf16, #tpu.memory_space<vmem>>, vector<1x784x128xbf16>
    %33 = vector.shape_cast %32 : vector<1x784x128xbf16> to vector<784x128xbf16>
    %cst_30 = arith.constant dense<0.000000e+00> : vector<32x128xf32>
    %34 = tpu.matmul %31, %33, %cst_30 {dimension_numbers = #tpu.dot_dimension_numbers<[1], [0], [0], [1], [0, 0, 1, 1], [], []>} : vector<32x784xbf16>, vector<784x128xbf16>, vector<32x128xf32> -> vector<32x128xf32>
    %c2_31 = arith.constant 2 : index
    %c0_32 = arith.constant 0 : index
    %c0_33 = arith.constant 0 : index
    %35 = vector.load %arg1[%c2_31, %c0_32, %c0_33] : memref<5x32x1xf32, #tpu.memory_space<vmem>>, vector<1x32x1xf32>
    %36 = vector.shape_cast %35 : vector<1x32x1xf32> to vector<32x1xf32>
    %37 = vector.broadcast %36 : vector<32x1xf32> to vector<32x128xf32>
    %38 = arith.addf %34, %37 : vector<32x128xf32>
    %cst_34 = arith.constant 0.000000e+00 : f32
    %39 = vector.broadcast %cst_34 : f32 to vector<32x128xf32>
    %40 = arith.maximumf %38, %39 : vector<32x128xf32>
    %41 = arith.truncf %40 : vector<32x128xf32> to vector<32x128xbf16>
    %c2_35 = arith.constant 2 : index
    %c0_36 = arith.constant 0 : index
    %c0_37 = arith.constant 0 : index
    %42 = vector.load %arg3[%c2_35, %c0_36, %c0_37] : memref<5x32x128xbf16, #tpu.memory_space<vmem>>, vector<1x32x128xbf16>
    %43 = vector.shape_cast %42 : vector<1x32x128xbf16> to vector<32x128xbf16>
    %44 = vector.shape_cast %41 : vector<32x128xbf16> to vector<1x32x128xbf16>
    tpu.vector_store %arg3[%c2_35, %c0_36, %c0_37], %44 {strides = array<i32>} : memref<5x32x128xbf16, #tpu.memory_space<vmem>>, vector<1x32x128xbf16>,
    %c3 = arith.constant 3 : index
    %c0_38 = arith.constant 0 : index
    %c0_39 = arith.constant 0 : index
    %45 = vector.load %arg0[%c3, %c0_38, %c0_39] : memref<5x32x784xbf16, #tpu.memory_space<vmem>>, vector<1x32x784xbf16>
    %46 = vector.shape_cast %45 : vector<1x32x784xbf16> to vector<32x784xbf16>
    %c3_40 = arith.constant 3 : index
    %c0_41 = arith.constant 0 : index
    %c0_42 = arith.constant 0 : index
    %47 = vector.load %arg2[%c3_40, %c0_41, %c0_42] : memref<5x784x128xbf16, #tpu.memory_space<vmem>>, vector<1x784x128xbf16>
    %48 = vector.shape_cast %47 : vector<1x784x128xbf16> to vector<784x128xbf16>
    %cst_43 = arith.constant dense<0.000000e+00> : vector<32x128xf32>
    %49 = tpu.matmul %46, %48, %cst_43 {dimension_numbers = #tpu.dot_dimension_numbers<[1], [0], [0], [1], [0, 0, 1, 1], [], []>} : vector<32x784xbf16>, vector<784x128xbf16>, vector<32x128xf32> -> vector<32x128xf32>
    %c3_44 = arith.constant 3 : index
    %c0_45 = arith.constant 0 : index
    %c0_46 = arith.constant 0 : index
    %50 = vector.load %arg1[%c3_44, %c0_45, %c0_46] : memref<5x32x1xf32, #tpu.memory_space<vmem>>, vector<1x32x1xf32>
    %51 = vector.shape_cast %50 : vector<1x32x1xf32> to vector<32x1xf32>
    %52 = vector.broadcast %51 : vector<32x1xf32> to vector<32x128xf32>
    %53 = arith.addf %49, %52 : vector<32x128xf32>
    %cst_47 = arith.constant 0.000000e+00 : f32
    %54 = vector.broadcast %cst_47 : f32 to vector<32x128xf32>
    %55 = arith.maximumf %53, %54 : vector<32x128xf32>
    %56 = arith.truncf %55 : vector<32x128xf32> to vector<32x128xbf16>
    %c3_48 = arith.constant 3 : index
    %c0_49 = arith.constant 0 : index
    %c0_50 = arith.constant 0 : index
    %57 = vector.load %arg3[%c3_48, %c0_49, %c0_50] : memref<5x32x128xbf16, #tpu.memory_space<vmem>>, vector<1x32x128xbf16>
    %58 = vector.shape_cast %57 : vector<1x32x128xbf16> to vector<32x128xbf16>
    %59 = vector.shape_cast %56 : vector<32x128xbf16> to vector<1x32x128xbf16>
    tpu.vector_store %arg3[%c3_48, %c0_49, %c0_50], %59 {strides = array<i32>} : memref<5x32x128xbf16, #tpu.memory_space<vmem>>, vector<1x32x128xbf16>,
    %c4 = arith.constant 4 : index
    %c0_51 = arith.constant 0 : index
    %c0_52 = arith.constant 0 : index
    %60 = vector.load %arg0[%c4, %c0_51, %c0_52] : memref<5x32x784xbf16, #tpu.memory_space<vmem>>, vector<1x32x784xbf16>
    %61 = vector.shape_cast %60 : vector<1x32x784xbf16> to vector<32x784xbf16>
    %c4_53 = arith.constant 4 : index
    %c0_54 = arith.constant 0 : index
    %c0_55 = arith.constant 0 : index
    %62 = vector.load %arg2[%c4_53, %c0_54, %c0_55] : memref<5x784x128xbf16, #tpu.memory_space<vmem>>, vector<1x784x128xbf16>
    %63 = vector.shape_cast %62 : vector<1x784x128xbf16> to vector<784x128xbf16>
    %cst_56 = arith.constant dense<0.000000e+00> : vector<32x128xf32>
    %64 = tpu.matmul %61, %63, %cst_56 {dimension_numbers = #tpu.dot_dimension_numbers<[1], [0], [0], [1], [0, 0, 1, 1], [], []>} : vector<32x784xbf16>, vector<784x128xbf16>, vector<32x128xf32> -> vector<32x128xf32>
    %c4_57 = arith.constant 4 : index
    %c0_58 = arith.constant 0 : index
    %c0_59 = arith.constant 0 : index
    %65 = vector.load %arg1[%c4_57, %c0_58, %c0_59] : memref<5x32x1xf32, #tpu.memory_space<vmem>>, vector<1x32x1xf32>
    %66 = vector.shape_cast %65 : vector<1x32x1xf32> to vector<32x1xf32>
    %67 = vector.broadcast %66 : vector<32x1xf32> to vector<32x128xf32>
    %68 = arith.addf %64, %67 : vector<32x128xf32>
    %cst_60 = arith.constant 0.000000e+00 : f32
    %69 = vector.broadcast %cst_60 : f32 to vector<32x128xf32>
    %70 = arith.maximumf %68, %69 : vector<32x128xf32>
    %71 = arith.truncf %70 : vector<32x128xf32> to vector<32x128xbf16>
    %c4_61 = arith.constant 4 : index
    %c0_62 = arith.constant 0 : index
    %c0_63 = arith.constant 0 : index
    %72 = vector.load %arg3[%c4_61, %c0_62, %c0_63] : memref<5x32x128xbf16, #tpu.memory_space<vmem>>, vector<1x32x128xbf16>
    %73 = vector.shape_cast %72 : vector<1x32x128xbf16> to vector<32x128xbf16>
    %74 = vector.shape_cast %71 : vector<32x128xbf16> to vector<1x32x128xbf16>
    tpu.vector_store %arg3[%c4_61, %c0_62, %c0_63], %74 {strides = array<i32>} : memref<5x32x128xbf16, #tpu.memory_space<vmem>>, vector<1x32x128xbf16>,
    return
  }
}

module attributes {stable_mosaic.version = 11 : i64} {
  func.func @_fc_kernel(%arg0: memref<15x7840xbf16, #tpu.memory_space<vmem>>, %arg1: memref<15x1xf32, #tpu.memory_space<vmem>>, %arg2: memref<7840x2xbf16, #tpu.memory_space<vmem>>, %arg3: memref<15x2xf32, #tpu.memory_space<vmem>>) attributes {dimension_semantics = [], scalar_prefetch = 0 : i64, scratch_operands = 0 : i64, tpu.core_type = #tpu.core_type<tc>} {
    %c0 = arith.constant 0 : index
    %c0_0 = arith.constant 0 : index
    %0 = vector.load %arg0[%c0, %c0_0] : memref<15x7840xbf16, #tpu.memory_space<vmem>>, vector<15x7840xbf16>
    %c0_1 = arith.constant 0 : index
    %c0_2 = arith.constant 0 : index
    %1 = vector.load %arg2[%c0_1, %c0_2] : memref<7840x2xbf16, #tpu.memory_space<vmem>>, vector<7840x2xbf16>
    %cst = arith.constant dense<0.000000e+00> : vector<15x2xf32>
    %2 = tpu.matmul %0, %1, %cst {dimension_numbers = #tpu.dot_dimension_numbers<[1], [0], [0], [1], [0, 0, 1, 1], [], []>} : vector<15x7840xbf16>, vector<7840x2xbf16>, vector<15x2xf32> -> vector<15x2xf32>
    %c0_3 = arith.constant 0 : index
    %c0_4 = arith.constant 0 : index
    %3 = vector.load %arg1[%c0_3, %c0_4] : memref<15x1xf32, #tpu.memory_space<vmem>>, vector<15x1xf32>
    %4 = vector.broadcast %3 : vector<15x1xf32> to vector<15x2xf32>
    %5 = arith.addf %2, %4 : vector<15x2xf32>
    %c0_5 = arith.constant 0 : index
    %c0_6 = arith.constant 0 : index
    %6 = vector.load %arg3[%c0_5, %c0_6] : memref<15x2xf32, #tpu.memory_space<vmem>>, vector<15x2xf32>
    tpu.vector_store %arg3[%c0_5, %c0_6], %5 {strides = array<i32>} : memref<15x2xf32, #tpu.memory_space<vmem>>, vector<15x2xf32>,
    return
  }
}

</mosaic_0001>

<bundles_post_ra>
// kernel: ensemble_forward.4
= control target key start
LH: loop header
LB: loop body
LE: loop exit
PB: predicated region body
PF: predicated region fallthrough
CT: control target
= control target key end

     0   :  { %vm132_vm0 = vcmask 1043456   ;;  %vm133_vm1 = vcmask 1044480   ;;  %v3503_v2 = vmov 65535   ;;  %v5384_v5 = vmov 0   ;;  %s5377_s2 = inlined_call_operand.vmem [shape: bf16[9,2048], index: 2, kind: input, shape index: {}]   ;;  %s5378_s0 = inlined_call_operand.vmem [shape: bf16[40,9], index: 0, kind: input, shape index: {}]   ;;  %s5379_s3 = inlined_call_operand.vmem [shape: bf16[9,2048], index: 3, kind: input, shape index: {}]   ;;  %s5380_s4 = inlined_call_operand.vmem [shape: bf16[9,2048], index: 4, kind: input, shape index: {}]   ;;  %s5381_s5 = inlined_call_operand.vmem [shape: bf16[9,2048], index: 5, kind: input, shape index: {}]   ;;  %s5382_s1 = inlined_call_operand.vmem [shape: f32[40,1], index: 1, kind: input, shape index: {}]   ;;  %s5383_s6 = inlined_call_operand.vmem [shape: bf16[40,2048], index: 6, kind: output, shape index: {}]  }
   0x1   :  { %v29_v0 = vld [vmem:[%s5377_s2] sm:$0xff]  ;;  %v134_v3 = vsel %vm132_vm0, 4294967295, %v3503_v2  ;;  %v30_v4 = vld [vmem:[%s5377_s2 + $0x8] sm:$0xff]  ;;  %216 = vmatprep.mubr.bf16.mxu0 %v5384_v5  ;;  %277 = vmatprep.mubr.bf16.mxu1 %v5384_v5  ;;  %v31_v12 = vld [vmem:[%s5377_s2 + $0x10] sm:$0xff]  ;;  %vm122_vm2 = vcmask 72704  }
   0x2   :  { %v37_v1 = vld [vmem:[%s5377_s2 + $0x40] sm:$0x11]  ;;  %v3551_v7 = vsel %vm133_vm1, %v134_v3, 0  ;;  %v38_v8 = vld [vmem:[%s5377_s2 + $0x48] sm:$0x11]  ;;  %3495 = vset.pattern.permute.xlu0 %v5384_v5  ;;  %3496 = vset.pattern.permute.xlu1 %v5384_v5  ;;  %v32_v18 = vld [vmem:[%s5377_s2 + $0x18] sm:$0xff] }
   0x3   :  { %v3254_v6 = vcombine.high %v29_v0, %v37_v1  ;;  %v3253_v9 = vcombine.low %v29_v0, %v37_v1  ;;  %v3256_v10 = vcombine.high %v30_v4, %v38_v8  ;;  %v3255_v11 = vcombine.low %v30_v4, %v38_v8  ;;  %v39_v13 = vld [vmem:[%s5377_s2 + $0x50] sm:$0x11]  ;;  %v40_v19 = vld [vmem:[%s5377_s2 + $0x58] sm:$0x11]  ;;  %v3577_v24 = vld [vmem:[%s5378_s0] sm:$0xff]  }
   0x4   :  { %v3257_v16 = vcombine.low %v31_v12, %v39_v13  ;;  %v3258_v17 = vcombine.high %v31_v12, %v39_v13  ;;  %v3259_v22 = vcombine.low %v32_v18, %v40_v19  ;;  %v3260_v23 = vcombine.high %v32_v18, %v40_v19  ;;  %v33_v26 = vld [vmem:[%s5377_s2 + $0x20] sm:$0xff]  ;;  %v34_v30 = vld [vmem:[%s5377_s2 + $0x28] sm:$0xff]  ;;  %v3617_v38 = vld [vmem:[%s5378_s0 + $0x10] ss:$0 sps:$4 sm:$0xff]  }
   0x5   :  { %v140_v14 = vand.u32 %v3254_v6, %v3551_v7  ;;  %v137_v15 = vand.u32 %v3253_v9, %v3551_v7  ;;  %v146_v20 = vand.u32 %v3256_v10, %v3551_v7  ;;  %v143_v21 = vand.u32 %v3255_v11, %v3551_v7  ;;  %v41_v27 = vld [vmem:[%s5377_s2 + $0x60] sm:$0x11]  ;;  %v42_v31 = vld [vmem:[%s5377_s2 + $0x68] sm:$0x11]  ;;  %v35_v39 = vld [vmem:[%s5377_s2 + $0x30] sm:$0xff] }
   0x6   :  { %v152_v25 = vand.u32 %v3258_v17, %v3551_v7  ;;  %v158_v28 = vand.u32 %v3260_v23, %v3551_v7  ;;  %v149_v29 = vand.u32 %v3257_v16, %v3551_v7  ;;  %v155_v32 = vand.u32 %v3259_v22, %v3551_v7  ;;  %v3606_v37 = vld [vmem:[%s5378_s0 + $0x8] sm:$0xff]   ;;  %v43_v40 = vld [vmem:[%s5377_s2 + $0x70] sm:$0x11]  ;;  %v36_v42 = vld [vmem:[%s5377_s2 + $0x38] sm:$0xff] }
   0x7   :  { %184 = vmatprep.subr.bf16.mxu0 %v140_v14  ;;  %245 = vmatprep.subr.bf16.mxu1 %v146_v20  ;;  %v3262_v33 = vcombine.high %v33_v26, %v41_v27  ;;  %v3264_v34 = vcombine.high %v34_v30, %v42_v31  ;;  %v3261_v41 = vcombine.low %v33_v26, %v41_v27  ;;  %v44_v43 = vld [vmem:[%s5377_s2 + $0x78] sm:$0x11]  ;;  %v672_v51 = vld [vmem:[%s5379_s3] sm:$0xff]  ;;  %v673_v54 = vld [vmem:[%s5379_s3 + $0x8] sm:$0xff] }
   0x8   :  { %185 = vmatpush1.bf16.msra.mxu0 %v137_v15  ;;  %246 = vmatpush1.bf16.msra.mxu1 %v143_v21  ;;  %v3263_v44 = vcombine.low %v34_v30, %v42_v31  ;;  %v3266_v45 = vcombine.high %v35_v39, %v43_v40  ;;  %v3268_v46 = vcombine.high %v36_v42, %v44_v43  ;;  %v680_v52 = vld [vmem:[%s5379_s3 + $0x40] sm:$0x11]  ;;  %v681_v55 = vld [vmem:[%s5379_s3 + $0x48] sm:$0x11]  ;;  %v674_v63 = vld [vmem:[%s5379_s3 + $0x10] sm:$0xff] }
   0x9   :  { %306 = vmatprep.subr.bf16.mxu0 %v152_v25  ;;  %367 = vmatprep.subr.bf16.mxu1 %v158_v28  ;;  %v164_v35 = vand.u32 %v3262_v33, %v3551_v7  ;;  %v170_v36 = vand.u32 %v3264_v34, %v3551_v7  ;;  %v161_v47 = vand.u32 %v3261_v41, %v3551_v7  ;;  %v682_v0 = vld [vmem:[%s5379_s3 + $0x50] sm:$0x11]  ;;  %v675_v2 = vld [vmem:[%s5379_s3 + $0x18] sm:$0xff]  ;;  %v676_v13 = vld [vmem:[%s5379_s3 + $0x20] sm:$0xff] }
   0xa   :  { %v167_v48 = vand.u32 %v3263_v44, %v3551_v7  ;;  %v176_v49 = vand.u32 %v3266_v45, %v3551_v7  ;;  %v182_v50 = vand.u32 %v3268_v46, %v3551_v7  ;;  %v3265_v53 = vcombine.low %v35_v39, %v43_v40  ;;  %v683_v3 = vld [vmem:[%s5379_s3 + $0x58] sm:$0x11]  ;;  %v684_v14 = vld [vmem:[%s5379_s3 + $0x60] sm:$0x11]  ;;  %v677_v16 = vld [vmem:[%s5379_s3 + $0x28] sm:$0xff] }
   0xb   :  { %3269 = vmatmul.mubr.msk.bf16.vlgmr.msra.gmra.mrb[0].mxu0 %vm122_vm2, %v3577_v24  ;;  %3272 = vmatmul.mubr.msk.bf16.vlgmr.msra.gmra.mrb[0].mxu1 %vm122_vm2, %v3577_v24  ;;  %v3267_v56 = vcombine.low %v36_v42, %v44_v43  ;;  %v3294_v57 = vcombine.high %v672_v51, %v680_v52  ;;  %v3296_v58 = vcombine.high %v673_v54, %v681_v55  ;;  %v685_v17 = vld [vmem:[%s5379_s3 + $0x68] sm:$0x11]  ;;  %v678_v26 = vld [vmem:[%s5379_s3 + $0x30] sm:$0xff]  ;;  %v687_v30 = vld [vmem:[%s5379_s3 + $0x78] sm:$0x11] }
   0xc   :  { %307 = vmatpush1.bf16.msra.mxu0 %v149_v29  ;;  %368 = vmatpush1.bf16.msra.mxu1 %v155_v32  ;;  %v173_v59 = vand.u32 %v3265_v53, %v3551_v7  ;;  %v3293_v1 = vcombine.low %v672_v51, %v680_v52  ;;  %v3295_v4 = vcombine.low %v673_v54, %v681_v55  ;;  %v686_v27 = vld [vmem:[%s5379_s3 + $0x70] sm:$0x11]  ;;  %v679_v29 = vld [vmem:[%s5379_s3 + $0x38] sm:$0xff]  ;;  %v1368_v40 = vld [vmem:[%s5380_s4] sm:$0xff] }
   0xd   :  { %226 = vmatprep.mubr.bf16.mxu0 %v5384_v5  ;;  %287 = vmatprep.mubr.bf16.mxu1 %v5384_v5  ;;  %v179_v60 = vand.u32 %v3267_v56, %v3551_v7  ;;  %v756_v61 = vand.u32 %v3294_v57, %v3551_v7  ;;  %v762_v62 = vand.u32 %v3296_v58, %v3551_v7  ;;  %v1376_v41 = vld [vmem:[%s5380_s4 + $0x40] sm:$0x11]  ;;  %v1369_v43 = vld [vmem:[%s5380_s4 + $0x8] sm:$0xff]  ;;  %v1370_v52 = vld [vmem:[%s5380_s4 + $0x10] sm:$0xff] }
   0xe   :  { %428 = vmatprep.subr.bf16.mxu0 %v164_v35  ;;  %489 = vmatprep.subr.bf16.mxu1 %v170_v36  ;;  %v3298_v6 = vcombine.high %v674_v63, %v682_v0  ;;  %v3300_v8 = vcombine.high %v675_v2, %v683_v3  ;;  %v753_v9 = vand.u32 %v3293_v1, %v3551_v7  ;;  %v1377_v44 = vld [vmem:[%s5380_s4 + $0x48] sm:$0x11]  ;;  %v1378_v53 = vld [vmem:[%s5380_s4 + $0x50] sm:$0x11]  ;;  %v1371_v55 = vld [vmem:[%s5380_s4 + $0x18] sm:$0xff] }
   0xf   :  { %v759_v10 = vand.u32 %v3295_v4, %v3551_v7  ;;  %v3297_v15 = vcombine.low %v674_v63, %v682_v0  ;;  %v3299_v18 = vcombine.low %v675_v2, %v683_v3  ;;  %v3302_v19 = vcombine.high %v676_v13, %v684_v14  ;;  %v1379_v56 = vld [vmem:[%s5380_s4 + $0x58] sm:$0x11]  ;;  %v1372_v0 = vld [vmem:[%s5380_s4 + $0x20] sm:$0xff]  ;;  %v1373_v3 = vld [vmem:[%s5380_s4 + $0x28] sm:$0xff] }
  0x10   :  { %v768_v11 = vand.u32 %v3298_v6, %v3551_v7  ;;  %v774_v12 = vand.u32 %v3300_v8, %v3551_v7  ;;  %v3304_v20 = vcombine.high %v677_v16, %v685_v17  ;;  %v3301_v28 = vcombine.low %v676_v13, %v684_v14  ;;  %v1380_v1 = vld [vmem:[%s5380_s4 + $0x60] sm:$0x11]  ;;  %v1381_v4 = vld [vmem:[%s5380_s4 + $0x68] sm:$0x11]  ;;  %v3896_v14 = vld [vmem:[%s5380_s4 + $0x30] sm:$0xff] }
  0x11   :  { %v765_v21 = vand.u32 %v3297_v15, %v3551_v7  ;;  %v771_v22 = vand.u32 %v3299_v18, %v3551_v7  ;;  %v780_v23 = vand.u32 %v3302_v19, %v3551_v7  ;;  %v3303_v31 = vcombine.low %v677_v16, %v685_v17  ;;  %v3901_v15 = vld [vmem:[%s5380_s4 + $0x70] sm:$0x11]  ;;  %v3909_v17 = vld [vmem:[%s5380_s4 + $0x38] sm:$0xff] }
  0x12   :  { %v786_v25 = vand.u32 %v3304_v20, %v3551_v7  ;;  %v3306_v32 = vcombine.high %v678_v26, %v686_v27  ;;  %v3308_v33 = vcombine.high %v679_v29, %v687_v30  ;;  %v777_v34 = vand.u32 %v3301_v28, %v3551_v7  ;;  %v3914_v18 = vld [vmem:[%s5380_s4 + $0x78] sm:$0x11] }
  0x13   :  { %3270 = vmatmul.mubr.msk.bf16.gmra.mrb[4].mxu0 %vm122_vm2, %v3606_v37  ;;  %3273 = vmatmul.mubr.msk.bf16.gmra.mrb[4].mxu1 %vm122_vm2, %v3606_v37  ;;  %v783_v35 = vand.u32 %v3303_v31, %v3551_v7  ;;  %v3305_v42 = vcombine.low %v678_v26, %v686_v27  ;;  %v3307_v45 = vcombine.low %v679_v29, %v687_v30 }
  0x14   :  { %236 = vmatprep.mubr.bf16.mxu0 %v5384_v5  ;;  %297 = vmatprep.mubr.bf16.mxu1 %v5384_v5  ;;  %v792_v36 = vand.u32 %v3306_v32, %v3551_v7  ;;  %v798_v39 = vand.u32 %v3308_v33, %v3551_v7  ;;  %v3334_v46 = vcombine.high %v1368_v40, %v1376_v41 }
  0x15   :  { %v3333_v54 = vcombine.low %v1368_v40, %v1376_v41  ;;  %v3335_v57 = vcombine.low %v1369_v43, %v1377_v44  ;;  %v3338_v58 = vcombine.high %v1370_v52, %v1378_v53  ;;  %v3337_v2 = vcombine.low %v1370_v52, %v1378_v53  ;;  %v3982_v53 = vld [vmem:[%s5381_s5] sm:$0xff] }
  0x16   :  { %v3339_v6 = vcombine.low %v1371_v55, %v1379_v56  ;;  %v3342_v8 = vcombine.high %v1372_v0, %v1380_v1  ;;  %v3341_v16 = vcombine.low %v1372_v0, %v1380_v1  ;;  %v3343_v19 = vcombine.low %v1373_v3, %v1381_v4 }
  0x18   :  { %v1473_v28 = vand.u32 %v3341_v16, %v3551_v7  ;;  %v1479_v31 = vand.u32 %v3343_v19, %v3551_v7 }
  0x1b   :  { %3271 = vmatmul.mubr.msk.bf16.gmra.mrb[8].mxu0 %vm122_vm2, %v3617_v38  ;;  %3274 = vmatmul.mubr.msk.bf16.gmra.mrb[8].mxu1 %vm122_vm2, %v3617_v38 }
  0x1c   :  { %338 = vmatprep.mubr.bf16.mxu0 %v5384_v5  ;;  %399 = vmatprep.mubr.bf16.mxu1 %v5384_v5 }
  0x23   :  { %3275 = vmatmul.mubr.msk.bf16.vlgmr.msra.gmra.mrb[12].mxu0 %vm122_vm2, %v3577_v24  ;;  %3278 = vmatmul.mubr.msk.bf16.vlgmr.msra.gmra.mrb[12].mxu1 %vm122_vm2, %v3577_v24 }
  0x24   :  { %429 = vmatpush1.bf16.msra.mxu0 %v161_v47  ;;  %490 = vmatpush1.bf16.msra.mxu1 %v167_v48  ;;  %v3336_v47 = vcombine.high %v1369_v43, %v1377_v44  ;;  %v789_v48 = vand.u32 %v3305_v42, %v3551_v7 }
  0x25   :  { %348 = vmatprep.mubr.bf16.mxu0 %v5384_v5  ;;  %409 = vmatprep.mubr.bf16.mxu1 %v5384_v5 }
  0x26   :  { %550 = vmatprep.subr.bf16.mxu0 %v176_v49  ;;  %611 = vmatprep.subr.bf16.mxu1 %v182_v50  ;;  %v795_v49 = vand.u32 %v3307_v45, %v3551_v7  ;;  %v1452_v50 = vand.u32 %v3334_v46, %v3551_v7  ;;  %v1458_v51 = vand.u32 %v3336_v47, %v3551_v7 }
  0x2b   :  { %3276 = vmatmul.mubr.msk.bf16.gmra.mrb[16].mxu0 %vm122_vm2, %v3606_v37  ;;  %3279 = vmatmul.mubr.msk.bf16.gmra.mrb[16].mxu1 %vm122_vm2, %v3606_v37 }
  0x2c   :  { %358 = vmatprep.mubr.bf16.mxu0 %v5384_v5  ;;  %419 = vmatprep.mubr.bf16.mxu1 %v5384_v5 }
  0x33   :  { %3277 = vmatmul.mubr.msk.bf16.gmra.mrb[20].mxu0 %vm122_vm2, %v3617_v38  ;;  %3280 = vmatmul.mubr.msk.bf16.gmra.mrb[20].mxu1 %vm122_vm2, %v3617_v38 }
  0x34   :  { %460 = vmatprep.mubr.bf16.mxu0 %v5384_v5  ;;  %521 = vmatprep.mubr.bf16.mxu1 %v5384_v5 }
  0x3b   :  { %3281 = vmatmul.mubr.msk.bf16.vlgmr.msra.gmra.mrb[24].mxu0 %vm122_vm2, %v3577_v24  ;;  %3284 = vmatmul.mubr.msk.bf16.vlgmr.msra.gmra.mrb[24].mxu1 %vm122_vm2, %v3577_v24 }
  0x3c   :  { %551 = vmatpush1.bf16.msra.mxu0 %v173_v59  ;;  %612 = vmatpush1.bf16.msra.mxu1 %v179_v60  ;;  %v3340_v59 = vcombine.high %v1371_v55, %v1379_v56  ;;  %v1449_v60 = vand.u32 %v3333_v54, %v3551_v7  ;;  %v3987_v54 = vld [vmem:[%s5381_s5 + $0x40] sm:$0x11]  ;;  %v3345_v55 = vcombine.low %v3896_v14, %v3901_v15  ;;  %v3997_v56 = vld [vmem:[%s5381_s5 + $0x8] sm:$0xff] }
  0x3d   :  { %470 = vmatprep.mubr.bf16.mxu0 %v5384_v5  ;;  %531 = vmatprep.mubr.bf16.mxu1 %v5384_v5 }
  0x3e   :  { %800 = vmatprep.subr.bf16.mxu0 %v756_v61  ;;  %861 = vmatprep.subr.bf16.mxu1 %v762_v62  ;;  %v1455_v61 = vand.u32 %v3335_v57, %v3551_v7  ;;  %v1464_v62 = vand.u32 %v3338_v58, %v3551_v7  ;;  %v1470_v63 = vand.u32 %v3340_v59, %v3551_v7  ;;  %v4002_v57 = vld [vmem:[%s5381_s5 + $0x48] sm:$0x11] }
  0x3f   :  { %v3347_v58 = vcombine.low %v3909_v17, %v3914_v18 }
  0x43   :  { %3282 = vmatmul.mubr.msk.bf16.gmra.mrb[28].mxu0 %vm122_vm2, %v3606_v37  ;;  %3285 = vmatmul.mubr.msk.bf16.gmra.mrb[28].mxu1 %vm122_vm2, %v3606_v37 }
  0x44   :  { %480 = vmatprep.mubr.bf16.mxu0 %v5384_v5  ;;  %541 = vmatprep.mubr.bf16.mxu1 %v5384_v5 }
  0x4b   :  { %3283 = vmatmul.mubr.msk.bf16.gmra.mrb[32].mxu0 %vm122_vm2, %v3617_v38  ;;  %3286 = vmatmul.mubr.msk.bf16.gmra.mrb[32].mxu1 %vm122_vm2, %v3617_v38 }
  0x4c   :  { %582 = vmatprep.mubr.bf16.mxu0 %v5384_v5  ;;  %643 = vmatprep.mubr.bf16.mxu1 %v5384_v5 }
  0x53   :  { %3287 = vmatmul.mubr.msk.bf16.vlgmr.msra.gmra.mrb[36].mxu0 %vm122_vm2, %v3577_v24  ;;  %3290 = vmatmul.mubr.msk.bf16.vlgmr.msra.gmra.mrb[36].mxu1 %vm122_vm2, %v3577_v24 }
  0x54   :  { %801 = vmatpush1.bf16.msra.mxu0 %v753_v9  ;;  %862 = vmatpush1.bf16.msra.mxu1 %v759_v10  ;;  %v3344_v9 = vcombine.high %v1373_v3, %v1381_v4  ;;  %v1461_v10 = vand.u32 %v3337_v2, %v3551_v7  ;;  %v1485_v2 = vand.u32 %v3345_v55, %v3551_v7  ;;  %v4081_v55 = vld [vmem:[%s5381_s5 + $0x10] sm:$0xff] }
  0x55   :  { %592 = vmatprep.mubr.bf16.mxu0 %v5384_v5  ;;  %653 = vmatprep.mubr.bf16.mxu1 %v5384_v5 }
  0x56   :  { %922 = vmatprep.subr.bf16.mxu0 %v768_v11  ;;  %983 = vmatprep.subr.bf16.mxu1 %v774_v12  ;;  %v1467_v11 = vand.u32 %v3339_v6, %v3551_v7  ;;  %v1476_v12 = vand.u32 %v3342_v8, %v3551_v7  ;;  %v1482_v13 = vand.u32 %v3344_v9, %v3551_v7 }
  0x57   :  { %v1491_v6 = vand.u32 %v3347_v58, %v3551_v7  ;;  %v4086_v58 = vld [vmem:[%s5381_s5 + $0x50] sm:$0x11] }
  0x5b   :  { %3288 = vmatmul.mubr.msk.bf16.gmra.mrb[40].mxu0 %vm122_vm2, %v3606_v37  ;;  %3291 = vmatmul.mubr.msk.bf16.gmra.mrb[40].mxu1 %vm122_vm2, %v3606_v37 }
  0x5c   :  { %602 = vmatprep.mubr.bf16.mxu0 %v5384_v5  ;;  %663 = vmatprep.mubr.bf16.mxu1 %v5384_v5 }
  0x63   :  { %3289 = vmatmul.mubr.msk.bf16.gmra.mrb[44].mxu0 %vm122_vm2, %v3617_v38  ;;  %3292 = vmatmul.mubr.msk.bf16.gmra.mrb[44].mxu1 %vm122_vm2, %v3617_v38 }
  0x64   :  { %832 = vmatprep.mubr.bf16.mxu0 %v5384_v5  ;;  %893 = vmatprep.mubr.bf16.mxu1 %v5384_v5 }
  0x6b   :  { %3309 = vmatmul.mubr.msk.bf16.vlgmr.msra.gmra.mrb[48].mxu0 %vm122_vm2, %v3577_v24  ;;  %3312 = vmatmul.mubr.msk.bf16.vlgmr.msra.gmra.mrb[48].mxu1 %vm122_vm2, %v3577_v24 }
  0x6c   :  { %923 = vmatpush1.bf16.msra.mxu0 %v765_v21  ;;  %984 = vmatpush1.bf16.msra.mxu1 %v771_v22  ;;  %v3346_v21 = vcombine.high %v3896_v14, %v3901_v15  ;;  %v2760_v14 = vld [vmem:[%s5382_s1] sm:$0xff] }
  0x6d   :  { %842 = vmatprep.mubr.bf16.mxu0 %v5384_v5  ;;  %903 = vmatprep.mubr.bf16.mxu1 %v5384_v5 }
  0x6e   :  { %1044 = vmatprep.subr.bf16.mxu0 %v780_v23  ;;  %1105 = vmatprep.subr.bf16.mxu1 %v786_v25  ;;  %v3348_v25 = vcombine.high %v3909_v17, %v3914_v18  ;;  %v1488_v33 = vand.u32 %v3346_v21, %v3551_v7  ;;  %v2761_v21 = vld [vmem:[%s5382_s1 + $0x8] sm:$0xff] }
  0x6f   :  { %2767 = vperm.xlu0 %3495, %v2760_v14  }
  0x73   :  { %3310 = vmatmul.mubr.msk.bf16.gmra.mrb[52].mxu0 %vm122_vm2, %v3606_v37  ;;  %3313 = vmatmul.mubr.msk.bf16.gmra.mrb[52].mxu1 %vm122_vm2, %v3606_v37 }
  0x74   :  { %852 = vmatprep.mubr.bf16.mxu0 %v5384_v5  ;;  %913 = vmatprep.mubr.bf16.mxu1 %v5384_v5 }
  0x75   :  { %2772 = vperm.xlu0 %3495, %v2761_v21  }
  0x7b   :  { %3311 = vmatmul.mubr.msk.bf16.gmra.mrb[56].mxu0 %vm122_vm2, %v3617_v38  ;;  %3314 = vmatmul.mubr.msk.bf16.gmra.mrb[56].mxu1 %vm122_vm2, %v3617_v38 }
  0x7c   :  { %954 = vmatprep.mubr.bf16.mxu0 %v5384_v5  ;;  %1015 = vmatprep.mubr.bf16.mxu1 %v5384_v5 }
  0x83   :  { %3315 = vmatmul.mubr.msk.bf16.vlgmr.msra.gmra.mrb[60].mxu0 %vm122_vm2, %v3577_v24  ;;  %3318 = vmatmul.mubr.msk.bf16.vlgmr.msra.gmra.mrb[60].mxu1 %vm122_vm2, %v3577_v24 }
  0x84   :  { %1045 = vmatpush1.bf16.msra.mxu0 %v777_v34  ;;  %1106 = vmatpush1.bf16.msra.mxu1 %v783_v35  ;;  %v1494_v34 = vand.u32 %v3348_v25, %v3551_v7 }
  0x85   :  { %964 = vmatprep.mubr.bf16.mxu0 %v5384_v5  ;;  %1025 = vmatprep.mubr.bf16.mxu1 %v5384_v5 }
  0x86   :  { %1166 = vmatprep.subr.bf16.mxu0 %v792_v36  ;;  %1227 = vmatprep.subr.bf16.mxu1 %v798_v39 }
  0x8b   :  { %3316 = vmatmul.mubr.msk.bf16.gmra.mrb[64].mxu0 %vm122_vm2, %v3606_v37  ;;  %3319 = vmatmul.mubr.msk.bf16.gmra.mrb[64].mxu1 %vm122_vm2, %v3606_v37 }
  0x8c   :  { %974 = vmatprep.mubr.bf16.mxu0 %v5384_v5  ;;  %1035 = vmatprep.mubr.bf16.mxu1 %v5384_v5 }
  0x93   :  { %3317 = vmatmul.mubr.msk.bf16.gmra.mrb[68].mxu0 %vm122_vm2, %v3617_v38  ;;  %3320 = vmatmul.mubr.msk.bf16.gmra.mrb[68].mxu1 %vm122_vm2, %v3617_v38 }
  0x94   :  { %1076 = vmatprep.mubr.bf16.mxu0 %v5384_v5  ;;  %1137 = vmatprep.mubr.bf16.mxu1 %v5384_v5 }
  0x9b   :  { %3321 = vmatmul.mubr.msk.bf16.vlgmr.msra.gmra.mrb[72].mxu0 %vm122_vm2, %v3577_v24  ;;  %3324 = vmatmul.mubr.msk.bf16.vlgmr.msra.gmra.mrb[72].mxu1 %vm122_vm2, %v3577_v24 }
  0x9c   :  { %1167 = vmatpush1.bf16.msra.mxu0 %v789_v48  ;;  %1228 = vmatpush1.bf16.msra.mxu1 %v795_v49 }
  0x9d   :  { %1086 = vmatprep.mubr.bf16.mxu0 %v5384_v5  ;;  %1147 = vmatprep.mubr.bf16.mxu1 %v5384_v5 }
  0x9e   :  { %1496 = vmatprep.subr.bf16.mxu0 %v1452_v50  ;;  %1557 = vmatprep.subr.bf16.mxu1 %v1458_v51 }
  0xa3   :  { %3322 = vmatmul.mubr.msk.bf16.gmra.mrb[76].mxu0 %vm122_vm2, %v3606_v37  ;;  %3325 = vmatmul.mubr.msk.bf16.gmra.mrb[76].mxu1 %vm122_vm2, %v3606_v37 }
  0xa4   :  { %1096 = vmatprep.mubr.bf16.mxu0 %v5384_v5  ;;  %1157 = vmatprep.mubr.bf16.mxu1 %v5384_v5 }
  0xab   :  { %3323 = vmatmul.mubr.msk.bf16.gmra.mrb[80].mxu0 %vm122_vm2, %v3617_v38  ;;  %3326 = vmatmul.mubr.msk.bf16.gmra.mrb[80].mxu1 %vm122_vm2, %v3617_v38 }
  0xac   :  { %1198 = vmatprep.mubr.bf16.mxu0 %v5384_v5  ;;  %1259 = vmatprep.mubr.bf16.mxu1 %v5384_v5 }
  0xb3   :  { %3327 = vmatmul.mubr.msk.bf16.vlgmr.msra.gmra.mrb[84].mxu0 %vm122_vm2, %v3577_v24  ;;  %3330 = vmatmul.mubr.msk.bf16.vlgmr.msra.gmra.mrb[84].mxu1 %vm122_vm2, %v3577_v24 }
  0xb4   :  { %1497 = vmatpush1.bf16.msra.mxu0 %v1449_v60  ;;  %1558 = vmatpush1.bf16.msra.mxu1 %v1455_v61  ;;  %v3374_v60 = vcombine.high %v3982_v53, %v3987_v54 }
  0xb5   :  { %1208 = vmatprep.mubr.bf16.mxu0 %v5384_v5  ;;  %1269 = vmatprep.mubr.bf16.mxu1 %v5384_v5 }
  0xb6   :  { %1618 = vmatprep.subr.bf16.mxu0 %v1464_v62  ;;  %1679 = vmatprep.subr.bf16.mxu1 %v1470_v63  ;;  %v3376_v63 = vcombine.high %v3997_v56, %v4002_v57  ;;  %v2148_v9 = vand.u32 %v3374_v60, %v3551_v7  ;;  %v2763_v60 = vld [vmem:[%s5382_s1 + $0x18] sm:$0xff] }
  0xbb   :  { %3328 = vmatmul.mubr.msk.bf16.gmra.mrb[88].mxu0 %vm122_vm2, %v3606_v37  ;;  %3331 = vmatmul.mubr.msk.bf16.gmra.mrb[88].mxu1 %vm122_vm2, %v3606_v37 }
  0xbc   :  { %1218 = vmatprep.mubr.bf16.mxu0 %v5384_v5  ;;  %1279 = vmatprep.mubr.bf16.mxu1 %v5384_v5 }
  0xc3   :  { %3329 = vmatmul.mubr.msk.bf16.gmra.mrb[92].mxu0 %vm122_vm2, %v3617_v38  ;;  %3332 = vmatmul.mubr.msk.bf16.gmra.mrb[92].mxu1 %vm122_vm2, %v3617_v38 }
  0xc4   :  { %1528 = vmatprep.mubr.bf16.mxu0 %v5384_v5  ;;  %1589 = vmatprep.mubr.bf16.mxu1 %v5384_v5 }
  0xcb   :  { %3349 = vmatmul.mubr.msk.bf16.vlgmr.msra.gmra.mrb[96].mxu0 %vm122_vm2, %v3577_v24  ;;  %3352 = vmatmul.mubr.msk.bf16.vlgmr.msra.gmra.mrb[96].mxu1 %vm122_vm2, %v3577_v24 }
  0xcc   :  { %1619 = vmatpush1.bf16.msra.mxu0 %v1461_v10  ;;  %1680 = vmatpush1.bf16.msra.mxu1 %v1467_v11  ;;  %v2154_v10 = vand.u32 %v3376_v63, %v3551_v7  ;;  %v3373_v63 = vcombine.low %v3982_v53, %v3987_v54  ;;  %v3378_v53 = vcombine.high %v4081_v55, %v4086_v58 }
  0xcd   :  { %1538 = vmatprep.mubr.bf16.mxu0 %v5384_v5  ;;  %1599 = vmatprep.mubr.bf16.mxu1 %v5384_v5 }
  0xce   :  { %1740 = vmatprep.subr.bf16.mxu0 %v1476_v12  ;;  %1801 = vmatprep.subr.bf16.mxu1 %v1482_v13 }
  0xd3   :  { %3350 = vmatmul.mubr.msk.bf16.gmra.mrb[100].mxu0 %vm122_vm2, %v3606_v37  ;;  %3353 = vmatmul.mubr.msk.bf16.gmra.mrb[100].mxu1 %vm122_vm2, %v3606_v37 }
  0xd4   :  { %1548 = vmatprep.mubr.bf16.mxu0 %v5384_v5  ;;  %1609 = vmatprep.mubr.bf16.mxu1 %v5384_v5 }
  0xdb   :  { %3351 = vmatmul.mubr.msk.bf16.gmra.mrb[104].mxu0 %vm122_vm2, %v3617_v38  ;;  %3354 = vmatmul.mubr.msk.bf16.gmra.mrb[104].mxu1 %vm122_vm2, %v3617_v38 }
  0xdc   :  { %1650 = vmatprep.mubr.bf16.mxu0 %v5384_v5  ;;  %1711 = vmatprep.mubr.bf16.mxu1 %v5384_v5 }
  0xde   :  { %v3917_v20 = vpop.f32.mrb[0].mxu0  ;;  %v3921_v22 = vpop.f32.mrb[0].mxu1 }
  0xdf   :  { %5500 = vst [vmem:[#allocation2_spill] sm:$0xff] %v3917_v20  ;;  %v3923_v23 = vpop.f32.mrb[1].mxu0  ;;  %v3927_v26 = vpop.f32.mrb[1].mxu1 }
  0xe0   :  { %5501 = vst [vmem:[#allocation3_spill] sm:$0xff] %v3923_v23  ;;  %v3929_v27 = vpop.f32.mrb[2].mxu0  ;;  %v3932_v29 = vpop.f32.mrb[2].mxu1 }
  0xe1   :  { %v3934_v30 = vpop.f32.mrb[3].mxu0  ;;  %v3937_v32 = vpop.f32.mrb[3].mxu1 }
  0xe3   :  { %3355 = vmatmul.mubr.msk.bf16.vlgmr.msra.gmra.mrb[108].mxu0 %vm122_vm2, %v3577_v24  ;;  %3358 = vmatmul.mubr.msk.bf16.vlgmr.msra.gmra.mrb[108].mxu1 %vm122_vm2, %v3577_v24 }
  0xe4   :  { %1741 = vmatpush1.bf16.msra.mxu0 %v1473_v28  ;;  %1802 = vmatpush1.bf16.msra.mxu1 %v1479_v31 }
  0xe5   :  { %1660 = vmatprep.mubr.bf16.mxu0 %v5384_v5  ;;  %1721 = vmatprep.mubr.bf16.mxu1 %v5384_v5 }
  0xe6   :  { %v3946_v35 = vpop.f32.mrb[4].mxu0  ;;  %1862 = vmatprep.subr.bf16.mxu0 %v1488_v33  ;;  %v3949_v36 = vpop.f32.mrb[4].mxu1  ;;  %1923 = vmatprep.subr.bf16.mxu1 %v1494_v34  ;;  %v2762_v33 = vld [vmem:[%s5382_s1 + $0x10] sm:$0xff] }
  0xe7   :  { %5502 = vst [vmem:[#allocation4_spill] sm:$0xff] %v3946_v35  ;;  %v3951_v39 = vpop.f32.mrb[5].mxu0  ;;  %v3953_v40 = vpop.f32.mrb[5].mxu1  ;;  %2777 = vperm.xlu1 %3496, %v2762_v33  }
  0xe8   :  { %v3955_v41 = vpop.f32.mrb[6].mxu0  ;;  %v3957_v42 = vpop.f32.mrb[6].mxu1 }
  0xe9   :  { %5503 = vst [vmem:[#allocation5_spill] sm:$0xff] %v3957_v42  ;;  %v3959_v43 = vpop.f32.mrb[7].mxu0  ;;  %v3961_v44 = vpop.f32.mrb[7].mxu1 }
  0xea   :  { %5504 = vst [vmem:[#allocation6_spill] sm:$0xff] %v3959_v43  ;;  %5505 = vst [vmem:[#allocation7_spill] sm:$0xff] %v3961_v44 }
  0xeb   :  { %3356 = vmatmul.mubr.msk.bf16.gmra.mrb[112].mxu0 %vm122_vm2, %v3606_v37  ;;  %3359 = vmatmul.mubr.msk.bf16.gmra.mrb[112].mxu1 %vm122_vm2, %v3606_v37 }
  0xec   :  { %1670 = vmatprep.mubr.bf16.mxu0 %v5384_v5  ;;  %1731 = vmatprep.mubr.bf16.mxu1 %v5384_v5 }
  0xed   :  { %2782 = vperm.xlu1 %3496, %v2763_v60  }
  0xee   :  { %v3969_v45 = vpop.f32.mrb[8].mxu0  ;;  %v3971_v46 = vpop.f32.mrb[8].mxu1 }
  0xef   :  { %v3973_v47 = vpop.f32.mrb[9].mxu0  ;;  %v3975_v48 = vpop.f32.mrb[9].mxu1 }
  0xf0   :  { %v242_v49 = vpop.f32.mrb[10].mxu0  ;;  %v303_v50 = vpop.f32.mrb[10].mxu1 }
  0xf1   :  { %v243_v51 = vpop.f32.mrb[11].mxu0  ;;  %v304_v52 = vpop.f32.mrb[11].mxu1 }
  0xf3   :  { %3357 = vmatmul.mubr.msk.bf16.gmra.mrb[116].mxu0 %vm122_vm2, %v3617_v38  ;;  %3360 = vmatmul.mubr.msk.bf16.gmra.mrb[116].mxu1 %vm122_vm2, %v3617_v38 }
  0xf4   :  { %1772 = vmatprep.mubr.bf16.mxu0 %v5384_v5  ;;  %1833 = vmatprep.mubr.bf16.mxu1 %v5384_v5 }
  0xf6   :  { %v4007_v59 = vpop.f32.mrb[12].mxu0  ;;  %v4011_v61 = vpop.f32.mrb[12].mxu1 }
  0xf7   :  { %5506 = vst [vmem:[#allocation8_spill] sm:$0xff] %v4007_v59  ;;  %v4013_v62 = vpop.f32.mrb[13].mxu0  ;;  %v4017_v0 = vpop.f32.mrb[13].mxu1 }
  0xf8   :  { %5507 = vst [vmem:[#allocation9_spill] sm:$0xff] %v4013_v62  ;;  %v4019_v1 = vpop.f32.mrb[14].mxu0  ;;  %v4022_v3 = vpop.f32.mrb[14].mxu1 }
  0xf9   :  { %v4024_v4 = vpop.f32.mrb[15].mxu0  ;;  %v4027_v8 = vpop.f32.mrb[15].mxu1 }
  0xfb   :  { %3361 = vmatmul.mubr.msk.bf16.vlgmr.msra.gmra.mrb[120].mxu0 %vm122_vm2, %v3577_v24  ;;  %3364 = vmatmul.mubr.msk.bf16.vlgmr.msra.gmra.mrb[120].mxu1 %vm122_vm2, %v3577_v24 }
  0xfc   :  { %1863 = vmatpush1.bf16.msra.mxu0 %v1485_v2  ;;  %1924 = vmatpush1.bf16.msra.mxu1 %v1491_v6  ;;  %v4099_v2 = vld [vmem:[%s5381_s5 + $0x18] sm:$0xff] }
  0xfd   :  { %1782 = vmatprep.mubr.bf16.mxu0 %v5384_v5  ;;  %1843 = vmatprep.mubr.bf16.mxu1 %v5384_v5  ;;  %v4104_v6 = vld [vmem:[%s5381_s5 + $0x58] sm:$0x11] }
  0xfe   :  { %v4036_v11 = vpop.f32.mrb[16].mxu0  ;;  %2192 = vmatprep.subr.bf16.mxu0 %v2148_v9  ;;  %v4039_v12 = vpop.f32.mrb[16].mxu1  ;;  %2253 = vmatprep.subr.bf16.mxu1 %v2154_v10  ;;  %v3375_v9 = vcombine.low %v3997_v56, %v4002_v57  ;;  %v3380_v21 = vcombine.high %v4099_v2, %v4104_v6 }
  0xff   :  { %5508 = vst [vmem:[#allocation10_spill] sm:$0xff] %v4036_v11  ;;  %v4041_v13 = vpop.f32.mrb[17].mxu0  ;;  %v4046_v15 = vpop.f32.mrb[17].mxu1 }
 0x100   :  { %5509 = vst [vmem:[#allocation11_spill] sm:$0xff] %v4041_v13  ;;  %v4048_v16 = vpop.f32.mrb[18].mxu0  ;;  %v4050_v17 = vpop.f32.mrb[18].mxu1 }
 0x101   :  { %5510 = vst [vmem:[#allocation12_spill] sm:$0xff] %v4048_v16  ;;  %5511 = vst [vmem:[#allocation13_spill] sm:$0xff] %v4050_v17  ;;  %v4052_v18 = vpop.f32.mrb[19].mxu0  ;;  %v4054_v19 = vpop.f32.mrb[19].mxu1 }
 0x102   :  { %5512 = vst [vmem:[#allocation14_spill] sm:$0xff] %v4052_v18  ;;  %5513 = vst [vmem:[#allocation15_spill] sm:$0xff] %v4054_v19 }
 0x103   :  { %3362 = vmatmul.mubr.msk.bf16.gmra.mrb[124].mxu0 %vm122_vm2, %v3606_v37  ;;  %3365 = vmatmul.mubr.msk.bf16.gmra.mrb[124].mxu1 %vm122_vm2, %v3606_v37 }
 0x104   :  { %1792 = vmatprep.mubr.bf16.mxu0 %v5384_v5  ;;  %1853 = vmatprep.mubr.bf16.mxu1 %v5384_v5 }
 0x106   :  { %v4065_v25 = vpop.f32.mrb[20].mxu0  ;;  %v4067_v28 = vpop.f32.mrb[20].mxu1 }
 0x107   :  { %v4069_v31 = vpop.f32.mrb[21].mxu0  ;;  %v4074_v34 = vpop.f32.mrb[21].mxu1 }
 0x108   :  { %5514 = vst [vmem:[#allocation16_spill] sm:$0xff] %v4069_v31  ;;  %5515 = vst [vmem:[#allocation17_spill] sm:$0xff] %v4074_v34  ;;  %v364_v49 = vpop.f32.mrb[22].mxu0  ;;  %v425_v50 = vpop.f32.mrb[22].mxu1 }
 0x109   :  { %v365_v51 = vpop.f32.mrb[23].mxu0  ;;  %v426_v52 = vpop.f32.mrb[23].mxu1  ;;  %v2145_v50 = vand.u32 %v3373_v63, %v3551_v7  ;;  %v2166_v63 = vand.u32 %v3380_v21, %v3551_v7 }
 0x10a   :  { %v2151_v51 = vand.u32 %v3375_v9, %v3551_v7  ;;  %v2764_v52 = vld [vmem:[%s5382_s1 + $0x20] sm:$0xff]  ;;  %v5524_v9 = vmov 0  }
 0x10b   :  { %3363 = vmatmul.mubr.msk.bf16.gmra.mrb[128].mxu0 %vm122_vm2, %v3617_v38  ;;  %3366 = vmatmul.mubr.msk.bf16.gmra.mrb[128].mxu1 %vm122_vm2, %v3617_v38 }
 0x10c   :  { %1894 = vmatprep.mubr.bf16.mxu0 %v5384_v5  ;;  %1955 = vmatprep.mubr.bf16.mxu1 %v5384_v5  ;;  %v2160_v5 = vand.u32 %v3378_v53, %v3551_v7 }
 0x10d   :  { %2787 = vperm.xlu0 %3495, %v2764_v52  }
 0x10e   :  { %v4109_v10 = vpop.f32.mrb[24].mxu0  ;;  %v4113_v54 = vpop.f32.mrb[24].mxu1 }
 0x10f   :  { %5516 = vst [vmem:[#allocation18_spill] sm:$0xff] %v4109_v10  ;;  %5517 = vst [vmem:[#allocation19_spill] sm:$0xff] %v4113_v54  ;;  %v4115_v14 = vpop.f32.mrb[25].mxu0  ;;  %v4119_v33 = vpop.f32.mrb[25].mxu1 }
 0x110   :  { %5518 = vst [vmem:[#allocation20_spill] sm:$0xff] %v4115_v14  ;;  %5519 = vst [vmem:[#allocation21_spill] sm:$0xff] %v4119_v33  ;;  %v4121_v49 = vpop.f32.mrb[26].mxu0  ;;  %v4124_v56 = vpop.f32.mrb[26].mxu1 }
 0x111   :  { %5520 = vst [vmem:[#allocation22_spill] sm:$0xff] %v4121_v49  ;;  %5521 = vst [vmem:[#allocation23_spill] sm:$0xff] %v4124_v56  ;;  %v4126_v57 = vpop.f32.mrb[27].mxu0  ;;  %v4132_v60 = vpop.f32.mrb[27].mxu1 }
 0x112   :  { %5522 = vst [vmem:[#allocation24_spill] sm:$0xff] %v4126_v57  ;;  %5523 = vst [vmem:[#allocation25_spill] sm:$0xff] %v4132_v60 }
 0x113   :  { %3367 = vmatmul.mubr.msk.bf16.vlgmr.msra.gmra.mrb[132].mxu0 %vm122_vm2, %v3577_v24  ;;  %3370 = vmatmul.mubr.msk.bf16.vlgmr.msra.gmra.mrb[132].mxu1 %vm122_vm2, %v3577_v24 }
 0x114   :  { %2193 = vmatpush1.bf16.msra.mxu0 %v2145_v50  ;;  %2254 = vmatpush1.bf16.msra.mxu1 %v2151_v51 }
 0x115   :  { %1904 = vmatprep.mubr.bf16.mxu0 %v5524_v9  ;;  %1965 = vmatprep.mubr.bf16.mxu1 %v5524_v9 }
 0x116   :  { %v4141_v57 = vpop.f32.mrb[28].mxu0  ;;  %2314 = vmatprep.subr.bf16.mxu0 %v2160_v5  ;;  %v4144_v60 = vpop.f32.mrb[28].mxu1  ;;  %2375 = vmatprep.subr.bf16.mxu1 %v2166_v63 }
 0x117   :  { %5525 = vst [vmem:[#allocation26_spill] sm:$0xff] %v4141_v57  ;;  %5526 = vst [vmem:[#allocation27_spill] sm:$0xff] %v4144_v60  ;;  %v4146_v53 = vpop.f32.mrb[29].mxu0  ;;  %v4148_v52 = vpop.f32.mrb[29].mxu1  ;;  %v4177_v60 = vld [vmem:[%s5381_s5 + $0x20] sm:$0xff] }
 0x118   :  { %5527 = vst [vmem:[#allocation28_spill] sm:$0xff] %v4146_v53  ;;  %5528 = vst [vmem:[#allocation29_spill] sm:$0xff] %v4148_v52  ;;  %v4150_v21 = vpop.f32.mrb[30].mxu0  ;;  %v4152_v56 = vpop.f32.mrb[30].mxu1 }
 0x119   :  { %5529 = vst [vmem:[#allocation30_spill] sm:$0xff] %v4150_v21  ;;  %5530 = vst [vmem:[#allocation31_spill] sm:$0xff] %v4152_v56  ;;  %v4154_v50 = vpop.f32.mrb[31].mxu0  ;;  %v4156_v51 = vpop.f32.mrb[31].mxu1 }
 0x11a   :  { %5531 = vst [vmem:[#allocation32_spill] sm:$0xff] %v4154_v50  ;;  %5532 = vst [vmem:[#allocation33_spill] sm:$0xff] %v4156_v51 }
 0x11b   :  { %3368 = vmatmul.mubr.msk.bf16.gmra.mrb[136].mxu0 %vm122_vm2, %v3606_v37  ;;  %3371 = vmatmul.mubr.msk.bf16.gmra.mrb[136].mxu1 %vm122_vm2, %v3606_v37 }
 0x11c   :  { %1914 = vmatprep.mubr.bf16.mxu0 %v5524_v9  ;;  %1975 = vmatprep.mubr.bf16.mxu1 %v5524_v9 }
 0x11e   :  { %v4164_v5 = vpop.f32.mrb[32].mxu0  ;;  %v4166_v63 = vpop.f32.mrb[32].mxu1 }
 0x11f   :  { %5533 = vst [vmem:[#allocation34_spill] sm:$0xff] %v4164_v5  ;;  %5534 = vst [vmem:[#allocation35_spill] sm:$0xff] %v4166_v63  ;;  %v4168_v21 = vpop.f32.mrb[33].mxu0  ;;  %v4170_v56 = vpop.f32.mrb[33].mxu1  ;;  %v4182_v63 = vld [vmem:[%s5381_s5 + $0x60] sm:$0x11] }
 0x120   :  { %5535 = vst [vmem:[#allocation36_spill] sm:$0xff] %v4168_v21  ;;  %5536 = vst [vmem:[#allocation37_spill] sm:$0xff] %v4170_v56  ;;  %v486_v50 = vpop.f32.mrb[34].mxu0  ;;  %v547_v51 = vpop.f32.mrb[34].mxu1 }
 0x121   :  { %v487_v52 = vpop.f32.mrb[35].mxu0  ;;  %v548_v53 = vpop.f32.mrb[35].mxu1  ;;  %v4197_v50 = vld [vmem:[%s5381_s5 + $0x68] sm:$0x11]  ;;  %v3379_v51 = vcombine.low %v4099_v2, %v4104_v6 }
 0x122   :  { %v3377_v53 = vcombine.low %v4081_v55, %v4086_v58  ;;  %v4192_v52 = vld [vmem:[%s5381_s5 + $0x28] sm:$0xff]  ;;  %v3382_v55 = vcombine.high %v4177_v60, %v4182_v63 }
 0x123   :  { %3369 = vmatmul.mubr.msk.bf16.gmra.mrb[140].mxu0 %vm122_vm2, %v3617_v38  ;;  %3372 = vmatmul.mubr.msk.bf16.gmra.mrb[140].mxu1 %vm122_vm2, %v3617_v38  ;;  %v3384_v5 = vcombine.high %v4192_v52, %v4197_v50  ;;  %v2163_v6 = vand.u32 %v3379_v51, %v3551_v7 }
 0x124   :  { %2224 = vmatprep.mubr.bf16.mxu0 %v5524_v9  ;;  %2285 = vmatprep.mubr.bf16.mxu1 %v5524_v9  ;;  %v2157_v33 = vand.u32 %v3377_v53, %v3551_v7 }
 0x126   :  { %v4202_v56 = vpop.f32.mrb[36].mxu0  ;;  %v4206_v58 = vpop.f32.mrb[36].mxu1 }
 0x127   :  { %5537 = vst [vmem:[#allocation38_spill] sm:$0xff] %v4202_v56  ;;  %5538 = vst [vmem:[#allocation39_spill] sm:$0xff] %v4206_v58  ;;  %v4208_v21 = vpop.f32.mrb[37].mxu0  ;;  %v4212_v57 = vpop.f32.mrb[37].mxu1  ;;  %v2172_v58 = vand.u32 %v3382_v55, %v3551_v7 }
 0x128   :  { %5539 = vst [vmem:[#allocation40_spill] sm:$0xff] %v4208_v21  ;;  %5540 = vst [vmem:[#allocation41_spill] sm:$0xff] %v4212_v57  ;;  %v4214_v49 = vpop.f32.mrb[38].mxu0  ;;  %v4217_v14 = vpop.f32.mrb[38].mxu1  ;;  %v2178_v21 = vand.u32 %v3384_v5, %v3551_v7 }
 0x129   :  { %5541 = vst [vmem:[#allocation42_spill] sm:$0xff] %v4214_v49  ;;  %5542 = vst [vmem:[#allocation43_spill] sm:$0xff] %v4217_v14  ;;  %v4219_v2 = vpop.f32.mrb[39].mxu0  ;;  %v4222_v56 = vpop.f32.mrb[39].mxu1 }
 0x12a   :  { %5543 = vst [vmem:[#allocation44_spill] sm:$0xff] %v4219_v2  ;;  %5544 = vst [vmem:[#allocation45_spill] sm:$0xff] %v4222_v56 }
 0x12b   :  { %3389 = vmatmul.mubr.msk.bf16.vlgmr.msra.gmra.mrb[144].mxu0 %vm122_vm2, %v3577_v24  ;;  %3392 = vmatmul.mubr.msk.bf16.vlgmr.msra.gmra.mrb[144].mxu1 %vm122_vm2, %v3577_v24 }
 0x12c   :  { %2315 = vmatpush1.bf16.msra.mxu0 %v2157_v33  ;;  %2376 = vmatpush1.bf16.msra.mxu1 %v2163_v6 }
 0x12d   :  { %2234 = vmatprep.mubr.bf16.mxu0 %v5524_v9  ;;  %2295 = vmatprep.mubr.bf16.mxu1 %v5524_v9 }
 0x12e   :  { %v4231_v53 = vpop.f32.mrb[40].mxu0  ;;  %2436 = vmatprep.subr.bf16.mxu0 %v2172_v58  ;;  %v4234_v51 = vpop.f32.mrb[40].mxu1  ;;  %2497 = vmatprep.subr.bf16.mxu1 %v2178_v21 }
 0x12f   :  { %5545 = vst [vmem:[#allocation46_spill] sm:$0xff] %v4231_v53  ;;  %5546 = vst [vmem:[#allocation47_spill] sm:$0xff] %v4234_v51  ;;  %v4236_v55 = vpop.f32.mrb[41].mxu0  ;;  %v4238_v56 = vpop.f32.mrb[41].mxu1  ;;  %v4267_v51 = vld [vmem:[%s5381_s5 + $0x30] sm:$0xff] }
 0x130   :  { %5547 = vst [vmem:[#allocation48_spill] sm:$0xff] %v4236_v55  ;;  %5548 = vst [vmem:[#allocation49_spill] sm:$0xff] %v4238_v56  ;;  %v4240_v5 = vpop.f32.mrb[42].mxu0  ;;  %v4242_v2 = vpop.f32.mrb[42].mxu1 }
 0x131   :  { %5549 = vst [vmem:[#allocation50_spill] sm:$0xff] %v4240_v5  ;;  %5550 = vst [vmem:[#allocation51_spill] sm:$0xff] %v4242_v2  ;;  %v4244_v33 = vpop.f32.mrb[43].mxu0  ;;  %v4246_v6 = vpop.f32.mrb[43].mxu1 }
 0x132   :  { %5551 = vst [vmem:[#allocation52_spill] sm:$0xff] %v4244_v33  ;;  %5552 = vst [vmem:[#allocation53_spill] sm:$0xff] %v4246_v6 }
 0x133   :  { %3390 = vmatmul.mubr.msk.bf16.gmra.mrb[148].mxu0 %vm122_vm2, %v3606_v37  ;;  %3393 = vmatmul.mubr.msk.bf16.gmra.mrb[148].mxu1 %vm122_vm2, %v3606_v37 }
 0x134   :  { %2244 = vmatprep.mubr.bf16.mxu0 %v5524_v9  ;;  %2305 = vmatprep.mubr.bf16.mxu1 %v5524_v9 }
 0x136   :  { %v4254_v21 = vpop.f32.mrb[44].mxu0  ;;  %v4256_v58 = vpop.f32.mrb[44].mxu1 }
 0x137   :  { %5553 = vst [vmem:[#allocation54_spill] sm:$0xff] %v4254_v21  ;;  %5554 = vst [vmem:[#allocation55_spill] sm:$0xff] %v4256_v58  ;;  %v4258_v5 = vpop.f32.mrb[45].mxu0  ;;  %v4260_v2 = vpop.f32.mrb[45].mxu1  ;;  %v4272_v58 = vld [vmem:[%s5381_s5 + $0x70] sm:$0x11] }
 0x138   :  { %5555 = vst [vmem:[#allocation56_spill] sm:$0xff] %v4258_v5  ;;  %5556 = vst [vmem:[#allocation57_spill] sm:$0xff] %v4260_v2  ;;  %v608_v33 = vpop.f32.mrb[46].mxu0  ;;  %v669_v6 = vpop.f32.mrb[46].mxu1 }
 0x139   :  { %v609_v56 = vpop.f32.mrb[47].mxu0  ;;  %v670_v55 = vpop.f32.mrb[47].mxu1  ;;  %v4287_v33 = vld [vmem:[%s5381_s5 + $0x78] sm:$0x11] }
 0x13a   :  { %v3381_v56 = vcombine.low %v4177_v60, %v4182_v63  ;;  %v4282_v55 = vld [vmem:[%s5381_s5 + $0x38] sm:$0xff]  ;;  %v3386_v60 = vcombine.high %v4267_v51, %v4272_v58 }
 0x13b   :  { %3391 = vmatmul.mubr.msk.bf16.gmra.mrb[152].mxu0 %vm122_vm2, %v3617_v38  ;;  %3394 = vmatmul.mubr.msk.bf16.gmra.mrb[152].mxu1 %vm122_vm2, %v3617_v38  ;;  %v3383_v38 = vcombine.low %v4192_v52, %v4197_v50  ;;  %v3388_v21 = vcombine.high %v4282_v55, %v4287_v33 }
 0x13c   :  { %2346 = vmatprep.mubr.bf16.mxu0 %v5524_v9  ;;  %2407 = vmatprep.mubr.bf16.mxu1 %v5524_v9  ;;  %v2169_v49 = vand.u32 %v3381_v56, %v3551_v7  ;;  %v2184_v56 = vand.u32 %v3386_v60, %v3551_v7 }
 0x13d   :  { %v2175_v53 = vand.u32 %v3383_v38, %v3551_v7  ;;  %v4337_v38 = vld [vmem:[%s5378_s0] sm:$0xff]  }
 0x13e   :  { %v4292_v6 = vpop.f32.mrb[48].mxu0  ;;  %v4298_v2 = vpop.f32.mrb[48].mxu1 }
 0x13f   :  { %5557 = vst [vmem:[#allocation58_spill] sm:$0xff] %v4292_v6  ;;  %v4300_v5 = vpop.f32.mrb[49].mxu0  ;;  %v4308_v50 = vpop.f32.mrb[49].mxu1  ;;  %v2190_v6 = vand.u32 %v3388_v21, %v3551_v7 }
 0x140   :  { %5558 = vst [vmem:[#allocation59_spill] sm:$0xff] %v4300_v5  ;;  %v4310_v14 = vpop.f32.mrb[50].mxu0  ;;  %v4317_v20 = vpop.f32.mrb[50].mxu1 }
 0x141   :  { %v4319_v57 = vpop.f32.mrb[51].mxu0  ;;  %v4326_v23 = vpop.f32.mrb[51].mxu1 }
 0x143   :  { %3395 = vmatmul.mubr.msk.bf16.vlgmr.msra.gmra.mrb[156].mxu0 %vm122_vm2, %v3577_v24  ;;  %3398 = vmatmul.mubr.msk.bf16.vlgmr.msra.gmra.mrb[156].mxu1 %vm122_vm2, %v4337_v38 }
 0x144   :  { %2437 = vmatpush1.bf16.msra.mxu0 %v2169_v49  ;;  %2498 = vmatpush1.bf16.msra.mxu1 %v2175_v53  ;;  %v4400_v49 = vld [vmem:[%s5378_s0 + $0x10] ss:$0 sps:$4 sm:$0xff]  }
 0x145   :  { %2356 = vmatprep.mubr.bf16.mxu0 %v5524_v9  ;;  %2417 = vmatprep.mubr.bf16.mxu1 %v5524_v9 }
 0x146   :  { %v4342_v60 = vpop.f32.mrb[52].mxu0  ;;  %2558 = vmatprep.subr.bf16.mxu0 %v2184_v56  ;;  %v4347_v21 = vpop.f32.mrb[52].mxu1  ;;  %2619 = vmatprep.subr.bf16.mxu1 %v2190_v6 }
 0x147   :  { %5559 = vst [vmem:[#allocation60_spill] sm:$0xff] %v4342_v60  ;;  %v4349_v63 = vpop.f32.mrb[53].mxu0  ;;  %v4355_v53 = vpop.f32.mrb[53].mxu1 }
 0x148   :  { %5560 = vst [vmem:[#allocation61_spill] sm:$0xff] %v4349_v63  ;;  %v4357_v52 = vpop.f32.mrb[54].mxu0  ;;  %v4363_v60 = vpop.f32.mrb[54].mxu1 }
 0x149   :  { %5561 = vst [vmem:[#allocation62_spill] sm:$0xff] %v4363_v60  ;;  %v4365_v35 = vpop.f32.mrb[55].mxu0  ;;  %v4371_v5 = vpop.f32.mrb[55].mxu1 }
 0x14a   :  { %5562 = vst [vmem:[#allocation63_spill] sm:$0xff] %v4365_v35  ;;  %5563 = vst [vmem:[#allocation64_spill] sm:$0xff] %v4371_v5 }
 0x14b   :  { %3396 = vmatmul.mubr.msk.bf16.gmra.mrb[160].mxu0 %vm122_vm2, %v3606_v37  ;;  %3399 = vmatmul.mubr.msk.bf16.gmra.mrb[160].mxu1 %vm122_vm2, %v3606_v37 }
 0x14c   :  { %2366 = vmatprep.mubr.bf16.mxu0 %v5524_v9  ;;  %2427 = vmatprep.mubr.bf16.mxu1 %v5524_v9 }
 0x14e   :  { %v4381_v24 = vpop.f32.mrb[56].mxu0  ;;  %v4385_v6 = vpop.f32.mrb[56].mxu1 }
 0x14f   :  { %v4387_v56 = vpop.f32.mrb[57].mxu0  ;;  %v4393_v37 = vpop.f32.mrb[57].mxu1 }
 0x150   :  { %5564 = vst [vmem:[#allocation65_spill] sm:$0xff] %v4393_v37  ;;  %v858_v44 = vpop.f32.mrb[58].mxu0  ;;  %v919_v43 = vpop.f32.mrb[58].mxu1 }
 0x151   :  { %v859_v60 = vpop.f32.mrb[59].mxu0  ;;  %v920_v42 = vpop.f32.mrb[59].mxu1  ;;  %v3385_v44 = vcombine.low %v4267_v51, %v4272_v58 }
 0x152   :  { %v3387_v42 = vcombine.low %v4282_v55, %v4287_v33  ;;  %v3502_v33 = vld [vmem:[%s5378_s0 + $0x8] sm:$0xff]  }
 0x153   :  { %3397 = vmatmul.mubr.msk.bf16.gmra.mrb[164].mxu0 %vm122_vm2, %v4400_v49  ;;  %3400 = vmatmul.mubr.msk.bf16.gmra.mrb[164].mxu1 %vm122_vm2, %v4400_v49  ;;  %v2181_v55 = vand.u32 %v3385_v44, %v3551_v7 }
 0x154   :  { %2468 = vmatprep.mubr.bf16.mxu0 %v5524_v9  ;;  %2529 = vmatprep.mubr.bf16.mxu1 %v5524_v9  ;;  %v2187_v63 = vand.u32 %v3387_v42, %v3551_v7 }
 0x156   :  { %v4412_v43 = vpop.f32.mrb[60].mxu0  ;;  %v4416_v35 = vpop.f32.mrb[60].mxu1 }
 0x157   :  { %5565 = vst [vmem:[#allocation66_spill] sm:$0xff] %v4412_v43  ;;  %v4418_v5 = vpop.f32.mrb[61].mxu0  ;;  %v4424_v58 = vpop.f32.mrb[61].mxu1 }
 0x158   :  { %5566 = vst [vmem:[#allocation67_spill] sm:$0xff] %v4418_v5  ;;  %v4426_v37 = vpop.f32.mrb[62].mxu0  ;;  %v4433_v43 = vpop.f32.mrb[62].mxu1 }
 0x159   :  { %v4435_v59 = vpop.f32.mrb[63].mxu0  ;;  %v4442_v62 = vpop.f32.mrb[63].mxu1 }
 0x15b   :  { %3401 = vmatmul.mubr.msk.bf16.vlgmr.msra.gmra.mrb[168].mxu0 %vm122_vm2, %v4337_v38  ;;  %3404 = vmatmul.mubr.msk.bf16.vlgmr.msra.gmra.mrb[168].mxu1 %vm122_vm2, %v4337_v38 }
 0x15c   :  { %2559 = vmatpush1.bf16.msra.mxu0 %v2181_v55  ;;  %2620 = vmatpush1.bf16.msra.mxu1 %v2187_v63 }
 0x15d   :  { %2478 = vmatprep.mubr.bf16.mxu0 %v5524_v9  ;;  %2539 = vmatprep.mubr.bf16.mxu1 %v5524_v9 }
 0x15e   :  { %v4451_v7 = vpop.f32.mrb[64].mxu0  ;;  %v4456_v5 = vpop.f32.mrb[64].mxu1 }
 0x15f   :  { %5567 = vst [vmem:[#allocation68_spill] sm:$0xff] %v4451_v7  ;;  %v4458_v44 = vpop.f32.mrb[65].mxu0  ;;  %v4464_v63 = vpop.f32.mrb[65].mxu1 }
 0x160   :  { %5568 = vst [vmem:[#allocation69_spill] sm:$0xff] %v4458_v44  ;;  %v4466_v60 = vpop.f32.mrb[66].mxu0  ;;  %v4472_v7 = vpop.f32.mrb[66].mxu1 }
 0x161   :  { %5569 = vst [vmem:[#allocation70_spill] sm:$0xff] %v4466_v60  ;;  %5570 = vst [vmem:[#allocation71_spill] sm:$0xff] %v4472_v7  ;;  %v4474_v11 = vpop.f32.mrb[67].mxu0  ;;  %v4480_v44 = vpop.f32.mrb[67].mxu1 }
 0x162   :  { %5571 = vst [vmem:[#allocation72_spill] sm:$0xff] %v4474_v11  ;;  %5572 = vst [vmem:[#allocation73_spill] sm:$0xff] %v4480_v44 }
 0x163   :  { %3402 = vmatmul.mubr.msk.bf16.gmra.mrb[172].mxu0 %vm122_vm2, %v3502_v33  ;;  %3405 = vmatmul.mubr.msk.bf16.gmra.mrb[172].mxu1 %vm122_vm2, %v3502_v33 }
 0x164   :  { %2488 = vmatprep.mubr.bf16.mxu0 %v5524_v9  ;;  %2549 = vmatprep.mubr.bf16.mxu1 %v5524_v9 }
 0x166   :  { %v4491_v51 = vpop.f32.mrb[68].mxu0  ;;  %v4495_v42 = vpop.f32.mrb[68].mxu1 }
 0x167   :  { %5573 = vst [vmem:[#allocation74_spill] sm:$0xff] %v4495_v42  ;;  %v4497_v13 = vpop.f32.mrb[69].mxu0  ;;  %v4503_v11 = vpop.f32.mrb[69].mxu1 }
 0x168   :  { %5574 = vst [vmem:[#allocation75_spill] sm:$0xff] %v4497_v13  ;;  %5575 = vst [vmem:[#allocation76_spill] sm:$0xff] %v4503_v11  ;;  %v980_v18 = vpop.f32.mrb[70].mxu0  ;;  %v1041_v17 = vpop.f32.mrb[70].mxu1 }
 0x169   :  { %v981_v60 = vpop.f32.mrb[71].mxu0  ;;  %v1042_v16 = vpop.f32.mrb[71].mxu1 }
 0x16b   :  { %3403 = vmatmul.mubr.msk.bf16.gmra.mrb[176].mxu0 %vm122_vm2, %v4400_v49  ;;  %3406 = vmatmul.mubr.msk.bf16.gmra.mrb[176].mxu1 %vm122_vm2, %v4400_v49 }
 0x16c   :  { %2590 = vmatprep.mubr.bf16.mxu0 %v5524_v9  ;;  %2651 = vmatprep.mubr.bf16.mxu1 %v5524_v9 }
 0x16e   :  { %v4513_v19 = vpop.f32.mrb[72].mxu0  ;;  %v4517_v44 = vpop.f32.mrb[72].mxu1 }
 0x16f   :  { %5576 = vst [vmem:[#allocation77_spill] sm:$0xff] %v4513_v19  ;;  %5577 = vst [vmem:[#allocation78_spill] sm:$0xff] %v4517_v44  ;;  %v4519_v17 = vpop.f32.mrb[73].mxu0  ;;  %v4525_v55 = vpop.f32.mrb[73].mxu1 }
 0x170   :  { %5578 = vst [vmem:[#allocation79_spill] sm:$0xff] %v4519_v17  ;;  %5580 = vst [vmem:[#allocation80_spill] sm:$0xff] %v4525_v55  ;;  %v4527_v11 = vpop.f32.mrb[74].mxu0  ;;  %v4533_v19 = vpop.f32.mrb[74].mxu1 }
 0x171   :  { %5581 = vst [vmem:[#allocation81_spill] sm:$0xff] %v4527_v11  ;;  %5584 = vst [vmem:[#allocation82_spill] sm:$0xff] %v4533_v19  ;;  %v4535_v10 = vpop.f32.mrb[75].mxu0  ;;  %v4541_v17 = vpop.f32.mrb[75].mxu1 }
 0x172   :  { %5585 = vst [vmem:[#allocation83_spill] sm:$0xff] %v4535_v10  ;;  %5588 = vst [vmem:[#allocation84_spill] sm:$0xff] %v4541_v17 }
 0x173   :  { %3407 = vmatmul.mubr.msk.bf16.vlgmr.msra.gmra.mrb[180].mxu0 %vm122_vm2, %v4337_v38  ;;  %3410 = vmatmul.mubr.msk.bf16.vlgmr.msra.gmra.mrb[180].mxu1 %vm122_vm2, %v4337_v38 }
 0x174   :  { %2600 = vmatprep.mubr.bf16.mxu0 %v5524_v9  ;;  %2661 = vmatprep.mubr.bf16.mxu1 %v5524_v9 }
 0x176   :  { %v4551_v18 = vpop.f32.mrb[76].mxu0  ;;  %v4555_v13 = vpop.f32.mrb[76].mxu1 }
 0x177   :  { %5590 = vst [vmem:[#allocation85_spill] sm:$0xff] %v4551_v18  ;;  %5592 = vst [vmem:[#allocation86_spill] sm:$0xff] %v4555_v13  ;;  %v4557_v10 = vpop.f32.mrb[77].mxu0  ;;  %v4563_v38 = vpop.f32.mrb[77].mxu1 }
 0x178   :  { %5593 = vst [vmem:[#allocation87_spill] sm:$0xff] %v4557_v10  ;;  %5596 = vst [vmem:[#allocation88_spill] sm:$0xff] %v4563_v38  ;;  %v4565_v19 = vpop.f32.mrb[78].mxu0  ;;  %v4571_v18 = vpop.f32.mrb[78].mxu1 }
 0x179   :  { %5597 = vst [vmem:[#allocation89_spill] sm:$0xff] %v4565_v19  ;;  %5600 = vst [vmem:[#allocation90_spill] sm:$0xff] %v4571_v18  ;;  %v4573_v16 = vpop.f32.mrb[79].mxu0  ;;  %v4579_v10 = vpop.f32.mrb[79].mxu1 }
 0x17a   :  { %5601 = vst [vmem:[#allocation91_spill] sm:$0xff] %v4573_v16  ;;  %5604 = vst [vmem:[#allocation92_spill] sm:$0xff] %v4579_v10 }
 0x17b   :  { %3408 = vmatmul.mubr.msk.bf16.gmra.mrb[184].mxu0 %vm122_vm2, %v3502_v33  ;;  %3411 = vmatmul.mubr.msk.bf16.gmra.mrb[184].mxu1 %vm122_vm2, %v3502_v33 }
 0x17c   :  { %2610 = vmatprep.mubr.bf16.mxu0 %v5524_v9  ;;  %2671 = vmatprep.mubr.bf16.mxu1 %v5524_v9 }
 0x17e   :  { %v4587_v7 = vpop.f32.mrb[80].mxu0  ;;  %v4591_v18 = vpop.f32.mrb[80].mxu1 }
 0x17f   :  { %5606 = vst [vmem:[#allocation93_spill] sm:$0xff] %v4587_v7  ;;  %5608 = vst [vmem:[#allocation94_spill] sm:$0xff] %v4591_v18  ;;  %v4593_v44 = vpop.f32.mrb[81].mxu0  ;;  %v4599_v33 = vpop.f32.mrb[81].mxu1 }
 0x180   :  { %5609 = vst [vmem:[#allocation95_spill] sm:$0xff] %v4593_v44  ;;  %5612 = vst [vmem:[#allocation96_spill] sm:$0xff] %v4599_v33  ;;  %v1102_v13 = vpop.f32.mrb[82].mxu0  ;;  %v1163_v19 = vpop.f32.mrb[82].mxu1 }
 0x181   :  { %v1103_v31 = vpop.f32.mrb[83].mxu0  ;;  %v1164_v38 = vpop.f32.mrb[83].mxu1 }
 0x182   :  { %v5656_v38 = vmax.f32 %v3921_v22, %v4298_v2  ;;  %v5662_v2 = vmax.f32 %v3932_v29, %v4317_v20 }
 0x183   :  { %3409 = vmatmul.mubr.msk.bf16.gmra.mrb[188].mxu0 %vm122_vm2, %v4400_v49  ;;  %3412 = vmatmul.mubr.msk.bf16.gmra.mrb[188].mxu1 %vm122_vm2, %v4400_v49 }
 0x186   :  { %v4607_v11 = vpop.f32.mrb[84].mxu0  ;;  %v4611_v44 = vpop.f32.mrb[84].mxu1 }
 0x187   :  { %5614 = vst [vmem:[#allocation97_spill] sm:$0xff] %v4607_v11  ;;  %5616 = vst [vmem:[#allocation98_spill] sm:$0xff] %v4611_v44  ;;  %v4613_v13 = vpop.f32.mrb[85].mxu0  ;;  %v4619_v33 = vpop.f32.mrb[85].mxu1 }
 0x188   :  { %5617 = vst [vmem:[#allocation99_spill] sm:$0xff] %v4613_v13  ;;  %5620 = vst [vmem:[#allocation100_spill] sm:$0xff] %v4619_v33  ;;  %v4621_v9 = vpop.f32.mrb[86].mxu0  ;;  %v4627_v11 = vpop.f32.mrb[86].mxu1  ;;  %v5652_v33 = vld [vmem:[#allocation57_spill] sm:$0xff] }
 0x189   :  { %5621 = vst [vmem:[#allocation101_spill] sm:$0xff] %v4621_v9  ;;  %5624 = vst [vmem:[#allocation102_spill] sm:$0xff] %v4627_v11  ;;  %v4629_v54 = vpop.f32.mrb[87].mxu0  ;;  %v4635_v13 = vpop.f32.mrb[87].mxu1 }
 0x18a   :  { %5625 = vst [vmem:[#allocation103_spill] sm:$0xff] %v4629_v54  ;;  %5628 = vst [vmem:[#allocation104_spill] sm:$0xff] %v4635_v13  ;;  %v5654_v13 = vld [vmem:[#allocation58_spill] sm:$0xff] }
 0x18e   :  { %v4639_v7 = vpop.f32.mrb[88].mxu0  ;;  %v4643_v9 = vpop.f32.mrb[88].mxu1 }
 0x18f   :  { %5630 = vst [vmem:[#allocation105_spill] sm:$0xff] %v4639_v7  ;;  %5632 = vst [vmem:[#allocation106_spill] sm:$0xff] %v4643_v9  ;;  %v4645_v18 = vpop.f32.mrb[89].mxu0  ;;  %v4651_v54 = vpop.f32.mrb[89].mxu1 }
 0x190   :  { %5633 = vst [vmem:[#allocation107_spill] sm:$0xff] %v4645_v18  ;;  %5636 = vst [vmem:[#allocation108_spill] sm:$0xff] %v4651_v54  ;;  %v4653_v44 = vpop.f32.mrb[90].mxu0  ;;  %v4659_v7 = vpop.f32.mrb[90].mxu1  ;;  %v5650_v54 = vld [vmem:[#allocation55_spill] sm:$0xff] }
 0x191   :  { %5637 = vst [vmem:[#allocation109_spill] sm:$0xff] %v4653_v44  ;;  %5640 = vst [vmem:[#allocation110_spill] sm:$0xff] %v4659_v7  ;;  %v4661_v10 = vpop.f32.mrb[91].mxu0  ;;  %v4667_v18 = vpop.f32.mrb[91].mxu1  ;;  %v5658_v7 = vld [vmem:[#allocation59_spill] sm:$0xff] }
 0x192   :  { %5641 = vst [vmem:[#allocation111_spill] sm:$0xff] %v4661_v10  ;;  %5644 = vst [vmem:[#allocation112_spill] sm:$0xff] %v4667_v18 }
 0x196   :  { %v4671_v49 = vpop.f32.mrb[92].mxu0  ;;  %v4675_v44 = vpop.f32.mrb[92].mxu1 }
 0x197   :  { %5646 = vst [vmem:[#allocation113_spill] sm:$0xff] %v4671_v49  ;;  %5648 = vst [vmem:[#allocation114_spill] sm:$0xff] %v4675_v44  ;;  %v4677_v31 = vpop.f32.mrb[93].mxu0  ;;  %v4683_v10 = vpop.f32.mrb[93].mxu1  ;;  %v5653_v49 = vld [vmem:[#allocation2_spill] sm:$0xff] }
 0x198   :  { %5649 = vst [vmem:[#allocation115_spill] sm:$0xff] %v4677_v31  ;;  %v1224_v9 = vpop.f32.mrb[94].mxu0  ;;  %v1285_v11 = vpop.f32.mrb[94].mxu1  ;;  %v5655_v17 = vmax.f32 %v5653_v49, %v5654_v13  ;;  %v5666_v49 = vld [vmem:[#allocation60_spill] sm:$0xff] }
 0x199   :  { %v1225_v16 = vpop.f32.mrb[95].mxu0  ;;  %v1286_v55 = vpop.f32.mrb[95].mxu1  ;;  %v5657_v9 = vld [vmem:[#allocation3_spill] sm:$0xff] }
 0x19a   :  { %v5659_v44 = vmax.f32 %v5657_v9, %v5658_v7  ;;  %v5660_v16 = vmax.f32 %v3927_v26, %v4308_v50  ;;  %v5664_v50 = vmax.f32 %v3937_v32, %v4326_v23 }
 0x19e   :  { %v1530_v60 = vpop.f32.mrb[96].mxu0  ;;  %v1591_v34 = vpop.f32.mrb[96].mxu1 }
 0x19f   :  { %v4690_v42 = vmax.f32 %v5655_v17, %v1530_v60  ;;  %v1532_v19 = vpop.f32.mrb[97].mxu0  ;;  %v4695_v31 = vmax.f32 %v5656_v38, %v1591_v34  ;;  %v1593_v11 = vpop.f32.mrb[97].mxu1  ;;  %v5661_v17 = vmax.f32 %v3929_v27, %v4310_v14  ;;  %v5665_v14 = vld [vmem:[#allocation4_spill] sm:$0xff] }
 0x1a0   :  { %v4700_v18 = vmax.f32 %v5659_v44, %v1532_v19  ;;  %v1534_v55 = vpop.f32.mrb[98].mxu0  ;;  %v4705_v13 = vmax.f32 %v5660_v16, %v1593_v11  ;;  %v1595_v22 = vpop.f32.mrb[98].mxu1  ;;  %v5663_v44 = vmax.f32 %v3934_v30, %v4319_v57  ;;  %v5667_v9 = vmax.f32 %v5665_v14, %v5666_v49  ;;  %v5669_v57 = vld [vmem:[#allocation61_spill] sm:$0xff]  ;;  %v5676_v14 = vld [vmem:[#allocation6_spill] sm:$0xff]  ;;  %v5677_v49 = vld [vmem:[#allocation63_spill] sm:$0xff] }
 0x1a1   :  { %v4710_v60 = vmax.f32 %v5661_v17, %v1534_v55  ;;  %v1536_v34 = vpop.f32.mrb[99].mxu0  ;;  %v4715_v7 = vmax.f32 %v5662_v2, %v1595_v22  ;;  %v1597_v26 = vpop.f32.mrb[99].mxu1  ;;  %v5668_v55 = vmax.f32 %v3949_v36, %v4347_v21  ;;  %v5670_v16 = vmax.f32 %v3951_v39, %v5669_v57 }
 0x1a2   :  { %v4720_v19 = vmax.f32 %v5663_v44, %v1536_v34  ;;  %v4725_v38 = vmax.f32 %v5664_v50, %v1597_v26  ;;  %v5671_v22 = vmax.f32 %v3953_v40, %v4355_v53  ;;  %v5672_v2 = vmax.f32 %v3955_v41, %v4357_v52  ;;  %v5673_v26 = vld [vmem:[#allocation5_spill] sm:$0xff]  ;;  %v5674_v50 = vld [vmem:[#allocation62_spill] sm:$0xff]  ;;  %v5679_v53 = vld [vmem:[#allocation7_spill] sm:$0xff] }
 0x1a3   :  { %v5682_v52 = vmax.f32 %v3969_v45, %v4381_v24 }
 0x1a6   :  { %v1540_v27 = vpop.f32.mrb[100].mxu0  ;;  %v1601_v20 = vpop.f32.mrb[100].mxu1 }
 0x1a7   :  { %v4730_v11 = vmax.f32 %v5667_v9, %v1540_v27  ;;  %v1542_v29 = vpop.f32.mrb[101].mxu0  ;;  %v4735_v30 = vmax.f32 %v5668_v55, %v1601_v20  ;;  %v1603_v23 = vpop.f32.mrb[101].mxu1  ;;  %v5675_v27 = vmax.f32 %v5673_v26, %v5674_v50  ;;  %v5678_v9 = vmax.f32 %v5676_v14, %v5677_v49 }
 0x1a8   :  { %v4740_v17 = vmax.f32 %v5670_v16, %v1542_v29  ;;  %v1544_v32 = vpop.f32.mrb[102].mxu0  ;;  %v4745_v34 = vmax.f32 %v5671_v22, %v1603_v23  ;;  %v1605_v36 = vpop.f32.mrb[102].mxu1  ;;  %v5680_v29 = vld [vmem:[#allocation64_spill] sm:$0xff]  ;;  %v5683_v22 = vmax.f32 %v3971_v46, %v4385_v6  ;;  %v5688_v46 = vld [vmem:[#allocation66_spill] sm:$0xff] }
 0x1a9   :  { %v4750_v44 = vmax.f32 %v5672_v2, %v1544_v32  ;;  %v1546_v21 = vpop.f32.mrb[103].mxu0  ;;  %v4755_v39 = vmax.f32 %v5675_v27, %v1605_v36  ;;  %v1607_v40 = vpop.f32.mrb[103].mxu1  ;;  %v5681_v55 = vmax.f32 %v5679_v53, %v5680_v29  ;;  %v5684_v36 = vmax.f32 %v3973_v47, %v4387_v56  ;;  %v5685_v27 = vld [vmem:[#allocation65_spill] sm:$0xff]  ;;  %v5687_v53 = vld [vmem:[#allocation8_spill] sm:$0xff] }
 0x1aa   :  { %v4760_v20 = vmax.f32 %v5678_v9, %v1546_v21  ;;  %v5686_v14 = vmax.f32 %v3975_v48, %v5685_v27  ;;  %v5689_v6 = vmax.f32 %v5687_v53, %v5688_v46  ;;  %v5690_v56 = vmax.f32 %v4011_v61, %v4416_v35  ;;  %v5692_v48 = vld [vmem:[#allocation67_spill] sm:$0xff]  ;;  %v5700_v46 = vld [vmem:[#allocation68_spill] sm:$0xff] }
 0x1ab   :  { %v4765_v57 = vmax.f32 %v5681_v55, %v1607_v40  ;;  %v5695_v27 = vmax.f32 %v4019_v1, %v4426_v37  ;;  %v5699_v37 = vld [vmem:[#allocation10_spill] sm:$0xff] }
 0x1ae   :  { %v1550_v41 = vpop.f32.mrb[104].mxu0  ;;  %v1611_v23 = vpop.f32.mrb[104].mxu1 }
 0x1af   :  { %v4770_v16 = vmax.f32 %v5682_v52, %v1550_v41  ;;  %v1552_v32 = vpop.f32.mrb[105].mxu0  ;;  %v4775_v2 = vmax.f32 %v5683_v22, %v1611_v23  ;;  %v1613_v26 = vpop.f32.mrb[105].mxu1  ;;  %v5691_v52 = vld [vmem:[#allocation9_spill] sm:$0xff] }
 0x1b0   :  { %v4780_v21 = vmax.f32 %v5684_v36, %v1552_v32  ;;  %v1554_v50 = vpop.f32.mrb[106].mxu0  ;;  %v4785_v45 = vmax.f32 %v5686_v14, %v1613_v26  ;;  %v1615_v24 = vpop.f32.mrb[106].mxu1  ;;  %v5693_v23 = vmax.f32 %v5691_v52, %v5692_v48  ;;  %v5694_v26 = vmax.f32 %v4017_v0, %v4424_v58 }
 0x1b1   :  { %v1555_v49 = vpop.f32.mrb[107].mxu0  ;;  %v1616_v9 = vpop.f32.mrb[107].mxu1  ;;  %v5696_v24 = vmax.f32 %v4022_v3, %v4433_v43  ;;  %v5698_v58 = vmax.f32 %v4027_v8, %v4442_v62 }
 0x1b2   :  { %v5697_v9 = vmax.f32 %v4024_v4, %v4435_v59  ;;  %v5703_v4 = vld [vmem:[#allocation11_spill] sm:$0xff] }
 0x1b6   :  { %v1652_v40 = vpop.f32.mrb[108].mxu0  ;;  %v1713_v55 = vpop.f32.mrb[108].mxu1 }
 0x1b7   :  { %v4790_v29 = vmax.f32 %v5689_v6, %v1652_v40  ;;  %v1654_v47 = vpop.f32.mrb[109].mxu0  ;;  %v4795_v41 = vmax.f32 %v5690_v56, %v1713_v55  ;;  %v1715_v22 = vpop.f32.mrb[109].mxu1  ;;  %v5701_v6 = vmax.f32 %v5699_v37, %v5700_v46  ;;  %v5704_v56 = vld [vmem:[#allocation69_spill] sm:$0xff] }
 0x1b8   :  { %v4800_v32 = vmax.f32 %v5693_v23, %v1654_v47  ;;  %v1656_v36 = vpop.f32.mrb[110].mxu0  ;;  %v4805_v50 = vmax.f32 %v5694_v26, %v1715_v22  ;;  %v1717_v35 = vpop.f32.mrb[110].mxu1  ;;  %v5702_v47 = vmax.f32 %v4039_v12, %v4456_v5  ;;  %v5705_v52 = vmax.f32 %v5703_v4, %v5704_v56  ;;  %v5708_v26 = vld [vmem:[#allocation70_spill] sm:$0xff] }
 0x1b9   :  { %v4810_v14 = vmax.f32 %v5695_v27, %v1656_v36  ;;  %v1658_v61 = vpop.f32.mrb[111].mxu0  ;;  %v4815_v49 = vmax.f32 %v5696_v24, %v1717_v35  ;;  %v1719_v0 = vpop.f32.mrb[111].mxu1  ;;  %v5706_v23 = vmax.f32 %v4046_v15, %v4464_v63  ;;  %v5707_v36 = vld [vmem:[#allocation12_spill] sm:$0xff]  ;;  %v5711_v24 = vld [vmem:[#allocation71_spill] sm:$0xff]  ;;  %v5719_v4 = vmax.f32 %v4065_v25, %v4491_v51 }
 0x1ba   :  { %v4820_v40 = vmax.f32 %v5697_v9, %v1658_v61  ;;  %v4825_v53 = vmax.f32 %v5698_v58, %v1719_v0  ;;  %v5709_v27 = vmax.f32 %v5707_v36, %v5708_v26  ;;  %v5710_v61 = vld [vmem:[#allocation13_spill] sm:$0xff]  ;;  %v5713_v58 = vld [vmem:[#allocation14_spill] sm:$0xff]  ;;  %v5716_v63 = vld [vmem:[#allocation15_spill] sm:$0xff] }
 0x1bb   :  { %v5712_v9 = vmax.f32 %v5710_v61, %v5711_v24  ;;  %v5722_v26 = vld [vmem:[#allocation16_spill] sm:$0xff] }
 0x1be   :  { %v1662_v1 = vpop.f32.mrb[112].mxu0  ;;  %v1723_v3 = vpop.f32.mrb[112].mxu1 }
 0x1bf   :  { %v4830_v55 = vmax.f32 %v5701_v6, %v1662_v1  ;;  %v1664_v43 = vpop.f32.mrb[113].mxu0  ;;  %v4835_v59 = vmax.f32 %v5702_v47, %v1723_v3  ;;  %v1725_v62 = vpop.f32.mrb[113].mxu1  ;;  %v5714_v1 = vld [vmem:[#allocation72_spill] sm:$0xff]  ;;  %v5717_v6 = vld [vmem:[#allocation73_spill] sm:$0xff] }
 0x1c0   :  { %v4840_v48 = vmax.f32 %v5705_v52, %v1664_v43  ;;  %v1666_v8 = vpop.f32.mrb[114].mxu0  ;;  %v4845_v22 = vmax.f32 %v5706_v23, %v1725_v62  ;;  %v1727_v12 = vpop.f32.mrb[114].mxu1  ;;  %v5715_v37 = vmax.f32 %v5713_v58, %v5714_v1  ;;  %v5718_v3 = vmax.f32 %v5716_v63, %v5717_v6  ;;  %v5726_v58 = vld [vmem:[#allocation76_spill] sm:$0xff]  ;;  %v5728_v6 = vld [vmem:[#allocation18_spill] sm:$0xff] }
 0x1c1   :  { %v4850_v35 = vmax.f32 %v5709_v27, %v1666_v8  ;;  %v1668_v5 = vpop.f32.mrb[115].mxu0  ;;  %v4855_v0 = vmax.f32 %v5712_v9, %v1727_v12  ;;  %v1729_v15 = vpop.f32.mrb[115].mxu1  ;;  %v5720_v8 = vld [vmem:[#allocation74_spill] sm:$0xff]  ;;  %v5723_v27 = vld [vmem:[#allocation75_spill] sm:$0xff]  ;;  %v5725_v9 = vld [vmem:[#allocation17_spill] sm:$0xff] }
 0x1c2   :  { %v4860_v46 = vmax.f32 %v5715_v37, %v1668_v5  ;;  %v4865_v43 = vmax.f32 %v5718_v3, %v1729_v15  ;;  %v5721_v23 = vmax.f32 %v4067_v28, %v5720_v8  ;;  %v5724_v12 = vmax.f32 %v5722_v26, %v5723_v27  ;;  %v5729_v28 = vld [vmem:[#allocation77_spill] sm:$0xff]  ;;  %v5733_v8 = vld [vmem:[#allocation78_spill] sm:$0xff]  ;;  %v5736_v27 = vld [vmem:[#allocation20_spill] sm:$0xff] }
 0x1c3   :  { %v5727_v1 = vmax.f32 %v5725_v9, %v5726_v58  ;;  %v5730_v3 = vmax.f32 %v5728_v6, %v5729_v28  ;;  %v5745_v6 = vld [vmem:[#allocation81_spill] sm:$0xff] }
 0x1c6   :  { %v1672_v47 = vpop.f32.mrb[116].mxu0  ;;  %v1733_v52 = vpop.f32.mrb[116].mxu1 }
 0x1c7   :  { %v4870_v56 = vmax.f32 %v5719_v4, %v1672_v47  ;;  %v1674_v62 = vpop.f32.mrb[117].mxu0  ;;  %v4875_v36 = vmax.f32 %v5721_v23, %v1733_v52  ;;  %v1735_v61 = vpop.f32.mrb[117].mxu1 }
 0x1c8   :  { %v4880_v5 = vmax.f32 %v5724_v12, %v1674_v62  ;;  %v1676_v24 = vpop.f32.mrb[118].mxu0  ;;  %v4885_v25 = vmax.f32 %v5727_v1, %v1735_v61  ;;  %v1737_v51 = vpop.f32.mrb[118].mxu1  ;;  %v5732_v62 = vld [vmem:[#allocation19_spill] sm:$0xff]  ;;  %v5740_v1 = vld [vmem:[#allocation21_spill] sm:$0xff] }
 0x1c9   :  { %v1677_v37 = vpop.f32.mrb[119].mxu0  ;;  %v1738_v15 = vpop.f32.mrb[119].mxu1  ;;  %v5734_v23 = vmax.f32 %v5732_v62, %v5733_v8  ;;  %v5737_v12 = vld [vmem:[#allocation79_spill] sm:$0xff]  ;;  %v5741_v51 = vld [vmem:[#allocation80_spill] sm:$0xff] }
 0x1ca   :  { %v5738_v61 = vmax.f32 %v5736_v27, %v5737_v12  ;;  %v5742_v37 = vmax.f32 %v5740_v1, %v5741_v51  ;;  %v5748_v8 = vld [vmem:[#allocation23_spill] sm:$0xff]  ;;  %v5757_v51 = vld [vmem:[#allocation84_spill] sm:$0xff] }
 0x1cb   :  { %v5753_v12 = vld [vmem:[#allocation83_spill] sm:$0xff] }
 0x1ce   :  { %v1774_v63 = vpop.f32.mrb[120].mxu0  ;;  %v1835_v4 = vpop.f32.mrb[120].mxu1 }
 0x1cf   :  { %v4890_v47 = vmax.f32 %v5730_v3, %v1774_v63  ;;  %v1776_v52 = vpop.f32.mrb[121].mxu0  ;;  %v4895_v26 = vmax.f32 %v5734_v23, %v1835_v4  ;;  %v1837_v9 = vpop.f32.mrb[121].mxu1  ;;  %v5744_v63 = vld [vmem:[#allocation22_spill] sm:$0xff] }
 0x1d0   :  { %v4900_v24 = vmax.f32 %v5738_v61, %v1776_v52  ;;  %v1778_v58 = vpop.f32.mrb[122].mxu0  ;;  %v4905_v15 = vmax.f32 %v5742_v37, %v1837_v9  ;;  %v5746_v28 = vmax.f32 %v5744_v63, %v5745_v6  ;;  %v1839_v62 = vpop.f32.mrb[122].mxu1  ;;  %v5749_v23 = vld [vmem:[#allocation82_spill] sm:$0xff]  ;;  %v5752_v52 = vld [vmem:[#allocation24_spill] sm:$0xff]  ;;  %v5756_v9 = vld [vmem:[#allocation25_spill] sm:$0xff] }
 0x1d1   :  { %5731 = vst [vmem:[#allocation55_spill] sm:$0xff] %v4890_v47  ;;  %5735 = vst [vmem:[#allocation57_spill] sm:$0xff] %v4895_v26  ;;  %v1780_v4 = vpop.f32.mrb[123].mxu0  ;;  %v5750_v26 = vmax.f32 %v5748_v8, %v5749_v23  ;;  %v5754_v61 = vmax.f32 %v5752_v52, %v5753_v12  ;;  %v1841_v1 = vpop.f32.mrb[123].mxu1  ;;  %v5758_v37 = vmax.f32 %v5756_v9, %v5757_v51  ;;  %v5760_v63 = vld [vmem:[#allocation26_spill] sm:$0xff]  ;;  %v5761_v6 = vld [vmem:[#allocation85_spill] sm:$0xff] }
 0x1d2   :  { %5739 = vst [vmem:[#allocation2_spill] sm:$0xff] %v4900_v24  ;;  %5743 = vst [vmem:[#allocation58_spill] sm:$0xff] %v4905_v15  ;;  %v4910_v3 = vmax.f32 %v5746_v28, %v1778_v58  ;;  %v5762_v28 = vmax.f32 %v5760_v63, %v5761_v6  ;;  %v5765_v23 = vld [vmem:[#allocation86_spill] sm:$0xff]  ;;  %v5769_v12 = vld [vmem:[#allocation87_spill] sm:$0xff] }
 0x1d3   :  { %v4915_v27 = vmax.f32 %v5750_v26, %v1839_v62  ;;  %v4920_v24 = vmax.f32 %v5754_v61, %v1780_v4  ;;  %v4925_v15 = vmax.f32 %v5758_v37, %v1841_v1  ;;  %v5764_v62 = vld [vmem:[#allocation27_spill] sm:$0xff]  ;;  %v5768_v4 = vld [vmem:[#allocation28_spill] sm:$0xff]  ;;  %v5772_v51 = vld [vmem:[#allocation29_spill] sm:$0xff] }
 0x1d4   :  { %5747 = vst [vmem:[#allocation3_spill] sm:$0xff] %v4910_v3  ;;  %v5770_v61 = vmax.f32 %v5768_v4, %v5769_v12  ;;  %v5773_v37 = vld [vmem:[#allocation88_spill] sm:$0xff]  ;;  %v5777_v6 = vld [vmem:[#allocation89_spill] sm:$0xff]  ;;  %v5785_v12 = vld [vmem:[#allocation91_spill] sm:$0xff] }
 0x1d5   :  { %5751 = vst [vmem:[#allocation59_spill] sm:$0xff] %v4915_v27  ;;  %5755 = vst [vmem:[#allocation4_spill] sm:$0xff] %v4920_v24  ;;  %v5766_v27 = vmax.f32 %v5764_v62, %v5765_v23  ;;  %v5781_v23 = vld [vmem:[#allocation90_spill] sm:$0xff] }
 0x1d6   :  { %5759 = vst [vmem:[#allocation60_spill] sm:$0xff] %v4925_v15  ;;  %v1784_v58 = vpop.f32.mrb[124].mxu0  ;;  %v1845_v8 = vpop.f32.mrb[124].mxu1  ;;  %v5774_v15 = vmax.f32 %v5772_v51, %v5773_v37  ;;  %v5807_v47 = vld [vmem:[#allocation38_spill] sm:$0xff] }
 0x1d7   :  { %v4930_v3 = vmax.f32 %v5762_v28, %v1784_v58  ;;  %v1786_v26 = vpop.f32.mrb[125].mxu0  ;;  %v4935_v52 = vmax.f32 %v5766_v27, %v1845_v8  ;;  %v1847_v1 = vpop.f32.mrb[125].mxu1  ;;  %v5776_v58 = vld [vmem:[#allocation30_spill] sm:$0xff]  ;;  %v5780_v8 = vld [vmem:[#allocation31_spill] sm:$0xff] }
 0x1d8   :  { %v4940_v24 = vmax.f32 %v5770_v61, %v1786_v26  ;;  %v1788_v9 = vpop.f32.mrb[126].mxu0  ;;  %v4945_v63 = vmax.f32 %v5774_v15, %v1847_v1  ;;  %v5778_v28 = vmax.f32 %v5776_v58, %v5777_v6  ;;  %v1849_v62 = vpop.f32.mrb[126].mxu1  ;;  %v5784_v26 = vld [vmem:[#allocation32_spill] sm:$0xff]  ;;  %v5788_v15 = vld [vmem:[#allocation33_spill] sm:$0xff]  ;;  %v5792_v58 = vld [vmem:[#allocation34_spill] sm:$0xff] }
 0x1d9   :  { %5763 = vst [vmem:[#allocation61_spill] sm:$0xff] %v4930_v3  ;;  %5767 = vst [vmem:[#allocation5_spill] sm:$0xff] %v4935_v52  ;;  %v1790_v27 = vpop.f32.mrb[127].mxu0  ;;  %v5782_v52 = vmax.f32 %v5780_v8, %v5781_v23  ;;  %v5786_v61 = vmax.f32 %v5784_v26, %v5785_v12  ;;  %v1851_v51 = vpop.f32.mrb[127].mxu1  ;;  %v5789_v1 = vld [vmem:[#allocation92_spill] sm:$0xff]  ;;  %v5793_v6 = vld [vmem:[#allocation93_spill] sm:$0xff] }
 0x1da   :  { %5771 = vst [vmem:[#allocation62_spill] sm:$0xff] %v4940_v24  ;;  %5775 = vst [vmem:[#allocation6_spill] sm:$0xff] %v4945_v63  ;;  %v4950_v3 = vmax.f32 %v5778_v28, %v1788_v9  ;;  %v5790_v37 = vmax.f32 %v5788_v15, %v5789_v1  ;;  %v5794_v28 = vmax.f32 %v5792_v58, %v5793_v6  ;;  %v5797_v23 = vld [vmem:[#allocation94_spill] sm:$0xff]  ;;  %v5800_v12 = vld [vmem:[#allocation95_spill] sm:$0xff] }
 0x1db   :  { %v4955_v4 = vmax.f32 %v5782_v52, %v1849_v62  ;;  %v4960_v24 = vmax.f32 %v5786_v61, %v1790_v27  ;;  %v5796_v62 = vld [vmem:[#allocation35_spill] sm:$0xff]  ;;  %v5799_v27 = vld [vmem:[#allocation36_spill] sm:$0xff]  ;;  %v5803_v1 = vld [vmem:[#allocation37_spill] sm:$0xff] }
 0x1dc   :  { %5779 = vst [vmem:[#allocation63_spill] sm:$0xff] %v4950_v3  ;;  %v4965_v63 = vmax.f32 %v5790_v37, %v1851_v51  ;;  %v5801_v61 = vmax.f32 %v5799_v27, %v5800_v12  ;;  %v5804_v37 = vld [vmem:[#allocation96_spill] sm:$0xff]  ;;  %v5812_v12 = vld [vmem:[#allocation98_spill] sm:$0xff] }
 0x1dd   :  { %5783 = vst [vmem:[#allocation7_spill] sm:$0xff] %v4955_v4  ;;  %5787 = vst [vmem:[#allocation64_spill] sm:$0xff] %v4960_v24  ;;  %v5798_v4 = vmax.f32 %v5796_v62, %v5797_v23  ;;  %v5808_v62 = vld [vmem:[#allocation97_spill] sm:$0xff] }
 0x1de   :  { %5791 = vst [vmem:[#allocation65_spill] sm:$0xff] %v4965_v63  ;;  %v1794_v9 = vpop.f32.mrb[128].mxu0  ;;  %v1855_v8 = vpop.f32.mrb[128].mxu1  ;;  %v5805_v63 = vmax.f32 %v5803_v1, %v5804_v37  ;;  %v5816_v1 = vld [vmem:[#allocation99_spill] sm:$0xff] }
 0x1df   :  { %v4970_v3 = vmax.f32 %v5794_v28, %v1794_v9  ;;  %v1796_v52 = vpop.f32.mrb[129].mxu0  ;;  %v4975_v26 = vmax.f32 %v5798_v4, %v1855_v8  ;;  %v1857_v51 = vpop.f32.mrb[129].mxu1  ;;  %v5809_v4 = vmax.f32 %v5807_v47, %v5808_v62  ;;  %v5824_v62 = vld [vmem:[#allocation101_spill] sm:$0xff] }
 0x1e0   :  { %v4980_v24 = vmax.f32 %v5801_v61, %v1796_v52  ;;  %v1798_v15 = vpop.f32.mrb[130].mxu0  ;;  %v4985_v58 = vmax.f32 %v5805_v63, %v1857_v51  ;;  %v1859_v9 = vpop.f32.mrb[130].mxu1  ;;  %v5811_v52 = vld [vmem:[#allocation39_spill] sm:$0xff] }
 0x1e1   :  { %5795 = vst [vmem:[#allocation8_spill] sm:$0xff] %v4970_v3  ;;  %v1799_v6 = vpop.f32.mrb[131].mxu0  ;;  %v1860_v28 = vpop.f32.mrb[131].mxu1  ;;  %v5813_v61 = vmax.f32 %v5811_v52, %v5812_v12  ;;  %v5827_v12 = vld [vmem:[#allocation43_spill] sm:$0xff] }
 0x1e2   :  { %5802 = vst [vmem:[#allocation66_spill] sm:$0xff] %v4980_v24  ;;  %5806 = vst [vmem:[#allocation9_spill] sm:$0xff] %v4985_v58  ;;  %v5815_v24 = vld [vmem:[#allocation40_spill] sm:$0xff]  ;;  %v5819_v6 = vld [vmem:[#allocation41_spill] sm:$0xff] }
 0x1e3   :  { %v5817_v63 = vmax.f32 %v5815_v24, %v5816_v1  ;;  %v5820_v28 = vld [vmem:[#allocation100_spill] sm:$0xff]  ;;  %v5832_v1 = vld [vmem:[#allocation103_spill] sm:$0xff] }
 0x1e4   :  { %v5821_v58 = vmax.f32 %v5819_v6, %v5820_v28 }
 0x1e6   :  { %v1896_v3 = vpop.f32.mrb[132].mxu0  ;;  %v1957_v23 = vpop.f32.mrb[132].mxu1 }
 0x1e7   :  { %v4990_v8 = vmax.f32 %v5809_v4, %v1896_v3  ;;  %v1898_v27 = vpop.f32.mrb[133].mxu0  ;;  %v4995_v15 = vmax.f32 %v5813_v61, %v1957_v23  ;;  %v1959_v37 = vpop.f32.mrb[133].mxu1  ;;  %v5823_v3 = vld [vmem:[#allocation42_spill] sm:$0xff] }
 0x1e8   :  { %v5000_v51 = vmax.f32 %v5817_v63, %v1898_v27  ;;  %v1900_v9 = vpop.f32.mrb[134].mxu0  ;;  %v5005_v47 = vmax.f32 %v5821_v58, %v1959_v37  ;;  %v5825_v4 = vmax.f32 %v5823_v3, %v5824_v62  ;;  %v1961_v52 = vpop.f32.mrb[134].mxu1  ;;  %v5828_v61 = vld [vmem:[#allocation102_spill] sm:$0xff]  ;;  %v5831_v27 = vld [vmem:[#allocation44_spill] sm:$0xff]  ;;  %v5835_v58 = vld [vmem:[#allocation45_spill] sm:$0xff] }
 0x1e9   :  { %5810 = vst [vmem:[#allocation67_spill] sm:$0xff] %v4990_v8  ;;  %5814 = vst [vmem:[#allocation10_spill] sm:$0xff] %v4995_v15  ;;  %v1902_v23 = vpop.f32.mrb[135].mxu0  ;;  %v5829_v15 = vmax.f32 %v5827_v12, %v5828_v61  ;;  %v5833_v63 = vmax.f32 %v5831_v27, %v5832_v1  ;;  %v1963_v6 = vpop.f32.mrb[135].mxu1  ;;  %v5836_v37 = vld [vmem:[#allocation104_spill] sm:$0xff]  ;;  %v5839_v3 = vld [vmem:[#allocation46_spill] sm:$0xff] }
 0x1ea   :  { %5818 = vst [vmem:[#allocation68_spill] sm:$0xff] %v5000_v51  ;;  %5822 = vst [vmem:[#allocation11_spill] sm:$0xff] %v5005_v47  ;;  %v5010_v8 = vmax.f32 %v5825_v4, %v1900_v9  ;;  %v5837_v28 = vmax.f32 %v5835_v58, %v5836_v37  ;;  %v5840_v62 = vld [vmem:[#allocation105_spill] sm:$0xff]  ;;  %v5844_v61 = vld [vmem:[#allocation106_spill] sm:$0xff] }
 0x1eb   :  { %v5015_v24 = vmax.f32 %v5829_v15, %v1961_v52  ;;  %v5020_v51 = vmax.f32 %v5833_v63, %v1902_v23  ;;  %v5841_v4 = vmax.f32 %v5839_v3, %v5840_v62  ;;  %v5843_v52 = vld [vmem:[#allocation47_spill] sm:$0xff]  ;;  %v5847_v23 = vld [vmem:[#allocation48_spill] sm:$0xff]  ;;  %v5851_v37 = vld [vmem:[#allocation49_spill] sm:$0xff] }
 0x1ec   :  { %5826 = vst [vmem:[#allocation69_spill] sm:$0xff] %v5010_v8  ;;  %v5025_v47 = vmax.f32 %v5837_v28, %v1963_v6  ;;  %v5848_v1 = vld [vmem:[#allocation107_spill] sm:$0xff]  ;;  %v5852_v28 = vld [vmem:[#allocation108_spill] sm:$0xff]  ;;  %v5856_v62 = vld [vmem:[#allocation109_spill] sm:$0xff] }
 0x1ed   :  { %5830 = vst [vmem:[#allocation12_spill] sm:$0xff] %v5015_v24  ;;  %5834 = vst [vmem:[#allocation70_spill] sm:$0xff] %v5020_v51  ;;  %v5845_v24 = vmax.f32 %v5843_v52, %v5844_v61  ;;  %v5849_v63 = vmax.f32 %v5847_v23, %v5848_v1  ;;  %v5860_v61 = vld [vmem:[#allocation110_spill] sm:$0xff]  ;;  %v5863_v1 = vld [vmem:[#allocation111_spill] sm:$0xff] }
 0x1ee   :  { %5838 = vst [vmem:[#allocation13_spill] sm:$0xff] %v5025_v47  ;;  %v1906_v9 = vpop.f32.mrb[136].mxu0  ;;  %v1967_v12 = vpop.f32.mrb[136].mxu1  ;;  %v5853_v47 = vmax.f32 %v5851_v37, %v5852_v28 }
 0x1ef   :  { %v5030_v8 = vmax.f32 %v5841_v4, %v1906_v9  ;;  %v1908_v15 = vpop.f32.mrb[137].mxu0  ;;  %v5035_v27 = vmax.f32 %v5845_v24, %v1967_v12  ;;  %v1969_v6 = vpop.f32.mrb[137].mxu1  ;;  %v5855_v9 = vld [vmem:[#allocation50_spill] sm:$0xff]  ;;  %v5859_v12 = vld [vmem:[#allocation51_spill] sm:$0xff] }
 0x1f0   :  { %v5040_v51 = vmax.f32 %v5849_v63, %v1908_v15  ;;  %v1910_v58 = vpop.f32.mrb[138].mxu0  ;;  %v5045_v3 = vmax.f32 %v5853_v47, %v1969_v6  ;;  %v5857_v4 = vmax.f32 %v5855_v9, %v5856_v62  ;;  %v1971_v52 = vpop.f32.mrb[138].mxu1  ;;  %v5862_v15 = vld [vmem:[#allocation52_spill] sm:$0xff]  ;;  %v5865_v47 = vld [vmem:[#allocation53_spill] sm:$0xff]  ;;  %v5869_v62 = vld [vmem:[#allocation54_spill] sm:$0xff] }
 0x1f1   :  { %5842 = vst [vmem:[#allocation71_spill] sm:$0xff] %v5030_v8  ;;  %5846 = vst [vmem:[#allocation14_spill] sm:$0xff] %v5035_v27  ;;  %v1912_v24 = vpop.f32.mrb[139].mxu0  ;;  %v5861_v27 = vmax.f32 %v5859_v12, %v5860_v61  ;;  %v5864_v63 = vmax.f32 %v5862_v15, %v5863_v1  ;;  %v1973_v37 = vpop.f32.mrb[139].mxu1  ;;  %v5866_v6 = vld [vmem:[#allocation112_spill] sm:$0xff]  ;;  %v5873_v61 = vld [vmem:[#allocation114_spill] sm:$0xff] }
 0x1f2   :  { %5850 = vst [vmem:[#allocation72_spill] sm:$0xff] %v5040_v51  ;;  %5854 = vst [vmem:[#allocation15_spill] sm:$0xff] %v5045_v3  ;;  %v5050_v8 = vmax.f32 %v5857_v4, %v1910_v58  ;;  %v5867_v28 = vmax.f32 %v5865_v47, %v5866_v6  ;;  %v5067_v9 = vpop.permute.xlu0 %2767  ;;  %v5870_v4 = vld [vmem:[#allocation113_spill] sm:$0xff]  ;;  %v5875_v1 = vld [vmem:[#allocation56_spill] sm:$0xff] }
 0x1f3   :  { %v5055_v23 = vmax.f32 %v5861_v27, %v1971_v52  ;;  %v5060_v51 = vmax.f32 %v5864_v63, %v1912_v24  ;;  %v5874_v24 = vmax.f32 %v5650_v54, %v5873_v61  ;;  %v5876_v63 = vld [vmem:[#allocation115_spill] sm:$0xff] }
 0x1f4   :  { %5858 = vst [vmem:[#allocation73_spill] sm:$0xff] %v5050_v8  ;;  %v5065_v3 = vmax.f32 %v5867_v28, %v1973_v37  ;;  %v5871_v8 = vmax.f32 %v5869_v62, %v5870_v4  ;;  %v5877_v47 = vmax.f32 %v5875_v1, %v5876_v63 }
 0x1f6   :  { %5868 = vst [vmem:[#allocation74_spill] sm:$0xff] %v5065_v3  ;;  %v1916_v58 = vpop.f32.mrb[140].mxu0  ;;  %v1977_v27 = vpop.f32.mrb[140].mxu1  ;;  %v5878_v3 = vmax.f32 %v5652_v33, %v4683_v10 }
 0x1f7   :  { %v5072_v12 = vmax.f32 %v5871_v8, %v1916_v58  ;;  %v1918_v52 = vpop.f32.mrb[141].mxu0  ;;  %v5077_v15 = vmax.f32 %v5874_v24, %v1977_v27  ;;  %v1979_v6 = vpop.f32.mrb[141].mxu1 }
 0x1f8   :  { %v5082_v37 = vmax.f32 %v5877_v47, %v1918_v52  ;;  %v1920_v28 = vpop.f32.mrb[142].mxu0  ;;  %v5087_v62 = vmax.f32 %v5878_v3, %v1979_v6  ;;  %v1981_v8 = vpop.f32.mrb[142].mxu1 }
 0x1f9   :  { %5872 = vst [vmem:[#allocation16_spill] sm:$0xff] %v5072_v12  ;;  %v1921_v58 = vpop.f32.mrb[143].mxu0  ;;  %v1982_v4 = vpop.f32.mrb[143].mxu1 }
 0x1fa   :  { %5879 = vst [vmem:[#allocation75_spill] sm:$0xff] %v5087_v62  ;;  %v5089_v12 = vpop.permute.xlu0 %2772  ;;  %v5091_v27 = vpop.permute.xlu1 %2777 }
 0x1fe   :  { %v2226_v54 = vpop.f32.mrb[144].mxu0  ;;  %v2287_v24 = vpop.f32.mrb[144].mxu1 }
 0x1ff   :  { %v2680_v61 = vmax.f32 %v4690_v42, %v2226_v54  ;;  %v2228_v52 = vpop.f32.mrb[145].mxu0  ;;  %v2682_v1 = vmax.f32 %v4695_v31, %v2287_v24  ;;  %v2289_v47 = vpop.f32.mrb[145].mxu1 }
 0x200   :  { %v2681_v63 = vmax.f32 %v4700_v18, %v2228_v52  ;;  %v2230_v10 = vpop.f32.mrb[146].mxu0  ;;  %v2683_v3 = vmax.f32 %v4705_v13, %v2289_v47  ;;  %v2291_v28 = vpop.f32.mrb[146].mxu1 }
 0x201   :  { %v2790_v33 = vadd.f32 %v5067_v9, %v2680_v61  ;;  %v2696_v6 = vmax.f32 %v4710_v60, %v2230_v10  ;;  %v2232_v8 = vpop.f32.mrb[147].mxu0  ;;  %v2792_v58 = vadd.f32 %v5067_v9, %v2682_v1  ;;  %v2698_v4 = vmax.f32 %v4715_v7, %v2291_v28  ;;  %v2293_v54 = vpop.f32.mrb[147].mxu1 }
 0x202   :  { %v2791_v42 = vadd.f32 %v5067_v9, %v2681_v63  ;;  %v2697_v31 = vmax.f32 %v4720_v19, %v2232_v8  ;;  %v2793_v24 = vadd.f32 %v5067_v9, %v2683_v3  ;;  %v2699_v61 = vmax.f32 %v4725_v38, %v2293_v54  ;;  %v5109_v62 = vpop.permute.xlu1 %2782 }
 0x203   :  { %v2870_v18 = vmax.f32 %v2790_v33, 0.0  ;;  %v2806_v13 = vadd.f32 %v5089_v12, %v2696_v6  ;;  %v2872_v52 = vmax.f32 %v2792_v58, 0.0  ;;  %v2808_v1 = vadd.f32 %v5089_v12, %v2698_v4 }
 0x204   :  { %v2871_v60 = vmax.f32 %v2791_v42, 0.0  ;;  %v2807_v47 = vadd.f32 %v5089_v12, %v2697_v31  ;;  %v2873_v10 = vmax.f32 %v2793_v24, 0.0  ;;  %v2809_v63 = vadd.f32 %v5089_v12, %v2699_v61 }
 0x205   :  { %v2886_v7 = vmax.f32 %v2806_v13, 0.0  ;;  %v2888_v8 = vmax.f32 %v2808_v1, 0.0 }
 0x206   :  { %v3453_v28 = vpack.c.bf16 %v2871_v60, %v2870_v18  ;;  %v2887_v19 = vmax.f32 %v2807_v47, 0.0  ;;  %v2236_v33 = vpop.f32.mrb[148].mxu0  ;;  %v3454_v3 = vpack.c.bf16 %v2873_v10, %v2872_v52  ;;  %v2889_v38 = vmax.f32 %v2809_v63, 0.0  ;;  %v2297_v58 = vpop.f32.mrb[148].mxu1 }
 0x207   :  { %v2712_v6 = vmax.f32 %v4730_v11, %v2236_v33  ;;  %v2238_v42 = vpop.f32.mrb[149].mxu0  ;;  %v2714_v31 = vmax.f32 %v4735_v30, %v2297_v58  ;;  %v2299_v18 = vpop.f32.mrb[149].mxu1 }
 0x208   :  { %3206 = vst [vmem:[%s5383_s6] sm:$0xff] %v3453_v28  ;;  %v3461_v4 = vpack.c.bf16 %v2887_v19, %v2886_v7  ;;  %v2713_v54 = vmax.f32 %v4740_v17, %v2238_v42  ;;  %v2240_v24 = vpop.f32.mrb[150].mxu0  ;;  %3207 = vst [vmem:[%s5383_s6 + $0x8] sm:$0xff] %v3454_v3  ;;  %v3462_v61 = vpack.c.bf16 %v2889_v38, %v2888_v8  ;;  %v2301_v60 = vpop.f32.mrb[150].mxu1 }
 0x209   :  { %v2822_v11 = vadd.f32 %v5091_v27, %v2712_v6  ;;  %v2715_v13 = vmax.f32 %v4745_v34, %v2299_v18  ;;  %v2728_v52 = vmax.f32 %v4750_v44, %v2240_v24  ;;  %v2242_v47 = vpop.f32.mrb[151].mxu0  ;;  %v2824_v30 = vadd.f32 %v5091_v27, %v2714_v31  ;;  %v2303_v63 = vpop.f32.mrb[151].mxu1 }
 0x20a   :  { %3214 = vst [vmem:[%s5383_s6 + $0x40] sm:$0xff] %v3461_v4  ;;  %v2823_v17 = vadd.f32 %v5091_v27, %v2713_v54  ;;  %v2730_v1 = vmax.f32 %v4755_v39, %v2301_v60  ;;  %v2729_v10 = vmax.f32 %v4760_v20, %v2242_v47  ;;  %3215 = vst [vmem:[%s5383_s6 + $0x48] sm:$0xff] %v3462_v61  ;;  %v5139_v31 = vpop.permute.xlu0 %2787 }
 0x20b   :  { %v2902_v34 = vmax.f32 %v2822_v11, 0.0  ;;  %v2825_v44 = vadd.f32 %v5091_v27, %v2715_v13  ;;  %v2731_v7 = vmax.f32 %v4765_v57, %v2303_v63  ;;  %v2838_v28 = vadd.f32 %v5109_v62, %v2728_v52 }
 0x20c   :  { %v2904_v19 = vmax.f32 %v2824_v30, 0.0  ;;  %v2903_v8 = vmax.f32 %v2823_v17, 0.0  ;;  %v2839_v33 = vadd.f32 %v5109_v62, %v2729_v10  ;;  %v2840_v39 = vadd.f32 %v5109_v62, %v2730_v1 }
 0x20d   :  { %v2905_v3 = vmax.f32 %v2825_v44, 0.0  ;;  %v2841_v20 = vadd.f32 %v5109_v62, %v2731_v7  ;;  %v2918_v38 = vmax.f32 %v2838_v28, 0.0 }
 0x20e   :  { %v3469_v6 = vpack.c.bf16 %v2903_v8, %v2902_v34  ;;  %v2919_v58 = vmax.f32 %v2839_v33, 0.0  ;;  %v2920_v42 = vmax.f32 %v2840_v39, 0.0  ;;  %v2246_v4 = vpop.f32.mrb[152].mxu0  ;;  %v2307_v24 = vpop.f32.mrb[152].mxu1 }
 0x20f   :  { %v3470_v54 = vpack.c.bf16 %v2905_v3, %v2904_v19  ;;  %v2921_v57 = vmax.f32 %v2841_v20, 0.0  ;;  %v2744_v18 = vmax.f32 %v4770_v16, %v2246_v4  ;;  %v2248_v61 = vpop.f32.mrb[153].mxu0  ;;  %v2746_v13 = vmax.f32 %v4775_v2, %v2307_v24  ;;  %v2309_v60 = vpop.f32.mrb[153].mxu1 }
 0x210   :  { %3222 = vst [vmem:[%s5383_s6 + $0x80] sm:$0xff] %v3469_v6  ;;  %v3477_v11 = vpack.c.bf16 %v2919_v58, %v2918_v38  ;;  %v2745_v52 = vmax.f32 %v4780_v21, %v2248_v61  ;;  %v2250_v47 = vpop.f32.mrb[154].mxu0  ;;  %v2747_v16 = vmax.f32 %v4785_v45, %v2309_v60  ;;  %v2311_v1 = vpop.f32.mrb[154].mxu1 }
 0x211   :  { %3223 = vst [vmem:[%s5383_s6 + $0x88] sm:$0xff] %v3470_v54  ;;  %v3478_v30 = vpack.c.bf16 %v2921_v57, %v2920_v42  ;;  %v2854_v17 = vadd.f32 %v5139_v31, %v2744_v18  ;;  %v2251_v10 = vpop.f32.mrb[155].mxu0  ;;  %v2856_v21 = vadd.f32 %v5139_v31, %v2746_v13  ;;  %v2312_v63 = vpop.f32.mrb[155].mxu1 }
 0x212   :  { %3230 = vst [vmem:[%s5383_s6 + $0xc0] sm:$0xff] %v3477_v11  ;;  %v2855_v2 = vadd.f32 %v5139_v31, %v2745_v52  ;;  %v2857_v34 = vadd.f32 %v5139_v31, %v2747_v16 }
 0x213   :  { %3231 = vst [vmem:[%s5383_s6 + $0xc8] sm:$0xff] %v3478_v30  ;;  %v2934_v45 = vmax.f32 %v2854_v17, 0.0  ;;  %v2936_v7 = vmax.f32 %v2856_v21, 0.0 }
 0x214   :  { %v2935_v44 = vmax.f32 %v2855_v2, 0.0  ;;  %v2937_v28 = vmax.f32 %v2857_v34, 0.0 }
 0x216   :  { %v3485_v19 = vpack.c.bf16 %v2935_v44, %v2934_v45  ;;  %v2348_v8 = vpop.f32.mrb[156].mxu0  ;;  %v3486_v33 = vpack.c.bf16 %v2937_v28, %v2936_v7  ;;  %v2409_v3 = vpop.f32.mrb[156].mxu1 }
 0x217   :  { %v2684_v39 = vmax.f32 %v4790_v29, %v2348_v8  ;;  %v2350_v20 = vpop.f32.mrb[157].mxu0  ;;  %v2686_v38 = vmax.f32 %v4795_v41, %v2409_v3  ;;  %v2411_v58 = vpop.f32.mrb[157].mxu1 }
 0x218   :  { %3238 = vst [vmem:[%s5383_s6 + $0x100] sm:$0xff] %v3485_v19  ;;  %v2685_v6 = vmax.f32 %v4800_v32, %v2350_v20  ;;  %v2352_v42 = vpop.f32.mrb[158].mxu0  ;;  %3239 = vst [vmem:[%s5383_s6 + $0x108] sm:$0xff] %v3486_v33  ;;  %v2687_v29 = vmax.f32 %v4805_v50, %v2411_v58  ;;  %v2413_v57 = vpop.f32.mrb[158].mxu1 }
 0x219   :  { %v2794_v4 = vadd.f32 %v5067_v9, %v2684_v39  ;;  %v2700_v54 = vmax.f32 %v4810_v14, %v2352_v42  ;;  %v2354_v18 = vpop.f32.mrb[159].mxu0  ;;  %v2796_v24 = vadd.f32 %v5067_v9, %v2686_v38  ;;  %v2702_v32 = vmax.f32 %v4815_v49, %v2413_v57  ;;  %v2415_v11 = vpop.f32.mrb[159].mxu1 }
 0x21a   :  { %v2795_v41 = vadd.f32 %v5067_v9, %v2685_v6  ;;  %v2701_v61 = vmax.f32 %v4820_v40, %v2354_v18  ;;  %v2797_v52 = vadd.f32 %v5067_v9, %v2687_v29  ;;  %v2703_v50 = vmax.f32 %v4825_v53, %v2415_v11 }
 0x21b   :  { %v2874_v13 = vmax.f32 %v2794_v4, 0.0  ;;  %v2810_v60 = vadd.f32 %v5089_v12, %v2700_v54  ;;  %v2876_v47 = vmax.f32 %v2796_v24, 0.0  ;;  %v2812_v30 = vadd.f32 %v5089_v12, %v2702_v32 }
 0x21c   :  { %v2875_v14 = vmax.f32 %v2795_v41, 0.0  ;;  %v2811_v16 = vadd.f32 %v5089_v12, %v2701_v61  ;;  %v2877_v17 = vmax.f32 %v2797_v52, 0.0  ;;  %v2813_v49 = vadd.f32 %v5089_v12, %v2703_v50 }
 0x21d   :  { %v2890_v1 = vmax.f32 %v2810_v60, 0.0  ;;  %v2892_v40 = vmax.f32 %v2812_v30, 0.0 }
 0x21e   :  { %v3455_v10 = vpack.c.bf16 %v2875_v14, %v2874_v13  ;;  %v2891_v2 = vmax.f32 %v2811_v16, 0.0  ;;  %v2358_v21 = vpop.f32.mrb[160].mxu0  ;;  %v3456_v63 = vpack.c.bf16 %v2877_v17, %v2876_v47  ;;  %v2893_v34 = vmax.f32 %v2813_v49, 0.0  ;;  %v2419_v44 = vpop.f32.mrb[160].mxu1 }
 0x21f   :  { %v2716_v45 = vmax.f32 %v4830_v55, %v2358_v21  ;;  %v2360_v53 = vpop.f32.mrb[161].mxu0  ;;  %v2718_v28 = vmax.f32 %v4835_v59, %v2419_v44  ;;  %v2421_v8 = vpop.f32.mrb[161].mxu1 }
 0x220   :  { %3208 = vst [vmem:[%s5383_s6 + $0x10] sm:$0xff] %v3455_v10  ;;  %v3463_v7 = vpack.c.bf16 %v2891_v2, %v2890_v1  ;;  %v2717_v19 = vmax.f32 %v4840_v48, %v2360_v53  ;;  %v2362_v33 = vpop.f32.mrb[162].mxu0  ;;  %3209 = vst [vmem:[%s5383_s6 + $0x18] sm:$0xff] %v3456_v63  ;;  %v3464_v39 = vpack.c.bf16 %v2893_v34, %v2892_v40  ;;  %v2423_v38 = vpop.f32.mrb[162].mxu1 }
 0x221   :  { %v2826_v55 = vadd.f32 %v5091_v27, %v2716_v45  ;;  %v2719_v3 = vmax.f32 %v4845_v22, %v2421_v8  ;;  %v2732_v20 = vmax.f32 %v4850_v35, %v2362_v33  ;;  %v2364_v6 = vpop.f32.mrb[163].mxu0  ;;  %v2828_v59 = vadd.f32 %v5091_v27, %v2718_v28  ;;  %v2425_v4 = vpop.f32.mrb[163].mxu1  ;;  %v5880_v8 = vld [vmem:[#allocation55_spill] sm:$0xff] }
 0x222   :  { %3216 = vst [vmem:[%s5383_s6 + $0x50] sm:$0xff] %v3463_v7  ;;  %v2827_v48 = vadd.f32 %v5091_v27, %v2717_v19  ;;  %v2734_v58 = vmax.f32 %v4855_v0, %v2423_v38  ;;  %v2733_v42 = vmax.f32 %v4860_v46, %v2364_v6  ;;  %3217 = vst [vmem:[%s5383_s6 + $0x58] sm:$0xff] %v3464_v39  ;;  %v5882_v38 = vld [vmem:[#allocation2_spill] sm:$0xff] }
 0x223   :  { %v2906_v22 = vmax.f32 %v2826_v55, 0.0  ;;  %v2829_v35 = vadd.f32 %v5091_v27, %v2719_v3  ;;  %v2842_v29 = vadd.f32 %v5109_v62, %v2732_v20  ;;  %v2735_v54 = vmax.f32 %v4865_v43, %v2425_v4  ;;  %v5881_v3 = vld [vmem:[#allocation57_spill] sm:$0xff] }
 0x224   :  { %v2908_v57 = vmax.f32 %v2828_v59, 0.0  ;;  %v2907_v18 = vmax.f32 %v2827_v48, 0.0  ;;  %v2844_v24 = vadd.f32 %v5109_v62, %v2734_v58  ;;  %v2843_v0 = vadd.f32 %v5109_v62, %v2733_v42  ;;  %v5883_v42 = vld [vmem:[#allocation58_spill] sm:$0xff] }
 0x225   :  { %v2909_v41 = vmax.f32 %v2829_v35, 0.0  ;;  %v2922_v46 = vmax.f32 %v2842_v29, 0.0  ;;  %v2845_v32 = vadd.f32 %v5109_v62, %v2735_v54 }
 0x226   :  { %v3471_v61 = vpack.c.bf16 %v2907_v18, %v2906_v22  ;;  %v2924_v11 = vmax.f32 %v2844_v24, 0.0  ;;  %v2923_v13 = vmax.f32 %v2843_v0, 0.0  ;;  %v2368_v52 = vpop.f32.mrb[164].mxu0  ;;  %v2429_v14 = vpop.f32.mrb[164].mxu1  ;;  %v5884_v22 = vld [vmem:[#allocation3_spill] sm:$0xff] }
 0x227   :  { %v3472_v60 = vpack.c.bf16 %v2909_v41, %v2908_v57  ;;  %v2925_v50 = vmax.f32 %v2845_v32, 0.0  ;;  %v2748_v47 = vmax.f32 %v4870_v56, %v2368_v52  ;;  %v2370_v43 = vpop.f32.mrb[165].mxu0  ;;  %v2750_v16 = vmax.f32 %v4875_v36, %v2429_v14  ;;  %v2431_v1 = vpop.f32.mrb[165].mxu1  ;;  %v5885_v24 = vld [vmem:[#allocation59_spill] sm:$0xff]  ;;  %v5886_v41 = vld [vmem:[#allocation4_spill] sm:$0xff] }
 0x228   :  { %3224 = vst [vmem:[%s5383_s6 + $0x90] sm:$0xff] %v3471_v61  ;;  %v3479_v30 = vpack.c.bf16 %v2923_v13, %v2922_v46  ;;  %v2749_v17 = vmax.f32 %v4880_v5, %v2370_v43  ;;  %v2372_v49 = vpop.f32.mrb[166].mxu0  ;;  %v2751_v40 = vmax.f32 %v4885_v25, %v2431_v1  ;;  %v2433_v2 = vpop.f32.mrb[166].mxu1  ;;  %v5887_v52 = vld [vmem:[#allocation60_spill] sm:$0xff] }
 0x229   :  { %3225 = vst [vmem:[%s5383_s6 + $0x98] sm:$0xff] %v3472_v60  ;;  %v3480_v10 = vpack.c.bf16 %v2925_v50, %v2924_v11  ;;  %v2858_v56 = vadd.f32 %v5139_v31, %v2748_v47  ;;  %v2373_v21 = vpop.f32.mrb[167].mxu0  ;;  %v2860_v36 = vadd.f32 %v5139_v31, %v2750_v16  ;;  %v2434_v63 = vpop.f32.mrb[167].mxu1 }
 0x22a   :  { %3232 = vst [vmem:[%s5383_s6 + $0xd0] sm:$0xff] %v3479_v30  ;;  %v2859_v5 = vadd.f32 %v5139_v31, %v2749_v17  ;;  %v2861_v45 = vadd.f32 %v5139_v31, %v2751_v40  ;;  %v5888_v21 = vld [vmem:[#allocation61_spill] sm:$0xff] }
 0x22b   :  { %3233 = vst [vmem:[%s5383_s6 + $0xd8] sm:$0xff] %v3480_v10  ;;  %v2938_v34 = vmax.f32 %v2858_v56, 0.0  ;;  %v2940_v44 = vmax.f32 %v2860_v36, 0.0 }
 0x22c   :  { %v2939_v25 = vmax.f32 %v2859_v5, 0.0  ;;  %v2941_v53 = vmax.f32 %v2861_v45, 0.0  ;;  %v5889_v45 = vld [vmem:[#allocation5_spill] sm:$0xff] }
 0x22e   :  { %v3487_v7 = vpack.c.bf16 %v2939_v25, %v2938_v34  ;;  %v2470_v28 = vpop.f32.mrb[168].mxu0  ;;  %v3488_v19 = vpack.c.bf16 %v2941_v53, %v2940_v44  ;;  %v2531_v39 = vpop.f32.mrb[168].mxu1  ;;  %v5890_v25 = vld [vmem:[#allocation62_spill] sm:$0xff] }
 0x22f   :  { %v2688_v33 = vmax.f32 %v5880_v8, %v2470_v28  ;;  %v2472_v55 = vpop.f32.mrb[169].mxu0  ;;  %v2690_v20 = vmax.f32 %v5881_v3, %v2531_v39  ;;  %v2533_v59 = vpop.f32.mrb[169].mxu1 }
 0x230   :  { %3240 = vst [vmem:[%s5383_s6 + $0x110] sm:$0xff] %v3487_v7  ;;  %v2689_v6 = vmax.f32 %v5882_v38, %v2472_v55  ;;  %v2474_v48 = vpop.f32.mrb[170].mxu0  ;;  %3241 = vst [vmem:[%s5383_s6 + $0x118] sm:$0xff] %v3488_v19  ;;  %v2691_v4 = vmax.f32 %v5883_v42, %v2533_v59  ;;  %v2535_v29 = vpop.f32.mrb[170].mxu1  ;;  %v5892_v55 = vld [vmem:[#allocation63_spill] sm:$0xff]  ;;  %v5894_v42 = vld [vmem:[#allocation64_spill] sm:$0xff] }
 0x231   :  { %v2798_v58 = vadd.f32 %v5067_v9, %v2688_v33  ;;  %v2704_v35 = vmax.f32 %v5884_v22, %v2474_v48  ;;  %v2476_v54 = vpop.f32.mrb[171].mxu0  ;;  %v2800_v57 = vadd.f32 %v5067_v9, %v2690_v20  ;;  %v2706_v0 = vmax.f32 %v5885_v24, %v2535_v29  ;;  %v2537_v32 = vpop.f32.mrb[171].mxu1  ;;  %v5891_v33 = vld [vmem:[#allocation6_spill] sm:$0xff]  ;;  %v5893_v48 = vld [vmem:[#allocation7_spill] sm:$0xff] }
 0x232   :  { %v2799_v18 = vadd.f32 %v5067_v9, %v2689_v6  ;;  %v2705_v46 = vmax.f32 %v5886_v41, %v2476_v54  ;;  %v2801_v11 = vadd.f32 %v5067_v9, %v2691_v4  ;;  %v2707_v60 = vmax.f32 %v5887_v52, %v2537_v32 }
 0x233   :  { %v2878_v61 = vmax.f32 %v2798_v58, 0.0  ;;  %v2814_v13 = vadd.f32 %v5089_v12, %v2704_v35  ;;  %v2880_v50 = vmax.f32 %v2800_v57, 0.0  ;;  %v2816_v14 = vadd.f32 %v5089_v12, %v2706_v0  ;;  %v5895_v57 = vld [vmem:[#allocation65_spill] sm:$0xff] }
 0x234   :  { %v2879_v47 = vmax.f32 %v2799_v18, 0.0  ;;  %v2815_v43 = vadd.f32 %v5089_v12, %v2705_v46  ;;  %v2881_v30 = vmax.f32 %v2801_v11, 0.0  ;;  %v2817_v17 = vadd.f32 %v5089_v12, %v2707_v60 }
 0x235   :  { %v2894_v16 = vmax.f32 %v2814_v13, 0.0  ;;  %v2896_v49 = vmax.f32 %v2816_v14, 0.0 }
 0x236   :  { %v3457_v1 = vpack.c.bf16 %v2879_v47, %v2878_v61  ;;  %v2895_v10 = vmax.f32 %v2815_v43, 0.0  ;;  %v2480_v56 = vpop.f32.mrb[172].mxu0  ;;  %v3458_v40 = vpack.c.bf16 %v2881_v30, %v2880_v50  ;;  %v2897_v2 = vmax.f32 %v2817_v17, 0.0  ;;  %v2541_v5 = vpop.f32.mrb[172].mxu1  ;;  %v5896_v43 = vld [vmem:[#allocation8_spill] sm:$0xff] }
 0x237   :  { %v2720_v36 = vmax.f32 %v5888_v21, %v2480_v56  ;;  %v2482_v63 = vpop.f32.mrb[173].mxu0  ;;  %v2722_v44 = vmax.f32 %v5889_v45, %v2541_v5  ;;  %v2543_v7 = vpop.f32.mrb[173].mxu1  ;;  %v5898_v5 = vld [vmem:[#allocation9_spill] sm:$0xff] }
 0x238   :  { %3210 = vst [vmem:[%s5383_s6 + $0x20] sm:$0xff] %v3457_v1  ;;  %v3465_v34 = vpack.c.bf16 %v2895_v10, %v2894_v16  ;;  %v2721_v53 = vmax.f32 %v5890_v25, %v2482_v63  ;;  %v2484_v28 = vpop.f32.mrb[174].mxu0  ;;  %3211 = vst [vmem:[%s5383_s6 + $0x28] sm:$0xff] %v3458_v40  ;;  %v3466_v19 = vpack.c.bf16 %v2897_v2, %v2896_v49  ;;  %v2545_v20 = vpop.f32.mrb[174].mxu1  ;;  %v5897_v10 = vld [vmem:[#allocation66_spill] sm:$0xff] }
 0x239   :  { %v2830_v8 = vadd.f32 %v5091_v27, %v2720_v36  ;;  %v2723_v39 = vmax.f32 %v5891_v33, %v2543_v7  ;;  %v2736_v3 = vmax.f32 %v5892_v55, %v2484_v28  ;;  %v2486_v38 = vpop.f32.mrb[175].mxu0  ;;  %v2832_v6 = vadd.f32 %v5091_v27, %v2722_v44  ;;  %v2547_v22 = vpop.f32.mrb[175].mxu1 }
 0x23a   :  { %3218 = vst [vmem:[%s5383_s6 + $0x60] sm:$0xff] %v3465_v34  ;;  %v2831_v59 = vadd.f32 %v5091_v27, %v2721_v53  ;;  %v2738_v58 = vmax.f32 %v5893_v48, %v2545_v20  ;;  %v2737_v4 = vmax.f32 %v5894_v42, %v2486_v38  ;;  %3219 = vst [vmem:[%s5383_s6 + $0x68] sm:$0xff] %v3466_v19 }
 0x23b   :  { %v2910_v35 = vmax.f32 %v2830_v8, 0.0  ;;  %v2833_v29 = vadd.f32 %v5091_v27, %v2723_v39  ;;  %v2846_v54 = vadd.f32 %v5109_v62, %v2736_v3  ;;  %v2739_v18 = vmax.f32 %v5895_v57, %v2547_v22  ;;  %v5899_v3 = vld [vmem:[#allocation67_spill] sm:$0xff]  ;;  %v5903_v57 = vld [vmem:[#allocation69_spill] sm:$0xff] }
 0x23c   :  { %v2912_v24 = vmax.f32 %v2832_v6, 0.0  ;;  %v2911_v0 = vmax.f32 %v2831_v59, 0.0  ;;  %v2848_v41 = vadd.f32 %v5109_v62, %v2738_v58  ;;  %v2847_v46 = vadd.f32 %v5109_v62, %v2737_v4  ;;  %v5900_v59 = vld [vmem:[#allocation10_spill] sm:$0xff]  ;;  %v5901_v58 = vld [vmem:[#allocation68_spill] sm:$0xff] }
 0x23d   :  { %v2913_v32 = vmax.f32 %v2833_v29, 0.0  ;;  %v2926_v61 = vmax.f32 %v2846_v54, 0.0  ;;  %v2849_v11 = vadd.f32 %v5109_v62, %v2739_v18  ;;  %v5902_v29 = vld [vmem:[#allocation11_spill] sm:$0xff] }
 0x23e   :  { %v3473_v13 = vpack.c.bf16 %v2911_v0, %v2910_v35  ;;  %v2928_v52 = vmax.f32 %v2848_v41, 0.0  ;;  %v2927_v60 = vmax.f32 %v2847_v46, 0.0  ;;  %v2490_v50 = vpop.f32.mrb[176].mxu0  ;;  %v2551_v16 = vpop.f32.mrb[176].mxu1 }
 0x23f   :  { %v3474_v47 = vpack.c.bf16 %v2913_v32, %v2912_v24  ;;  %v2929_v14 = vmax.f32 %v2849_v11, 0.0  ;;  %v2752_v30 = vmax.f32 %v5896_v43, %v2490_v50  ;;  %v2492_v17 = vpop.f32.mrb[177].mxu0  ;;  %v2754_v49 = vmax.f32 %v4975_v26, %v2551_v16  ;;  %v2553_v40 = vpop.f32.mrb[177].mxu1  ;;  %v5904_v32 = vld [vmem:[#allocation12_spill] sm:$0xff]  ;;  %v5905_v11 = vld [vmem:[#allocation70_spill] sm:$0xff] }
 0x240   :  { %3226 = vst [vmem:[%s5383_s6 + $0xa0] sm:$0xff] %v3473_v13  ;;  %v3481_v1 = vpack.c.bf16 %v2927_v60, %v2926_v61  ;;  %v2753_v56 = vmax.f32 %v5897_v10, %v2492_v17  ;;  %v2494_v2 = vpop.f32.mrb[178].mxu0  ;;  %v2755_v63 = vmax.f32 %v5898_v5, %v2553_v40  ;;  %v2555_v34 = vpop.f32.mrb[178].mxu1 }
 0x241   :  { %3227 = vst [vmem:[%s5383_s6 + $0xa8] sm:$0xff] %v3474_v47  ;;  %v3482_v21 = vpack.c.bf16 %v2929_v14, %v2928_v52  ;;  %v2862_v36 = vadd.f32 %v5139_v31, %v2752_v30  ;;  %v2495_v45 = vpop.f32.mrb[179].mxu0  ;;  %v2864_v26 = vadd.f32 %v5139_v31, %v2754_v49  ;;  %v2556_v25 = vpop.f32.mrb[179].mxu1  ;;  %v5906_v14 = vld [vmem:[#allocation13_spill] sm:$0xff] }
 0x242   :  { %3234 = vst [vmem:[%s5383_s6 + $0xe0] sm:$0xff] %v3481_v1  ;;  %v2863_v44 = vadd.f32 %v5139_v31, %v2753_v56  ;;  %v2865_v7 = vadd.f32 %v5139_v31, %v2755_v63  ;;  %v5907_v63 = vld [vmem:[#allocation71_spill] sm:$0xff]  ;;  %v5908_v25 = vld [vmem:[#allocation14_spill] sm:$0xff] }
 0x243   :  { %3235 = vst [vmem:[%s5383_s6 + $0xe8] sm:$0xff] %v3482_v21  ;;  %v2942_v53 = vmax.f32 %v2862_v36, 0.0  ;;  %v2944_v28 = vmax.f32 %v2864_v26, 0.0 }
 0x244   :  { %v2943_v19 = vmax.f32 %v2863_v44, 0.0  ;;  %v2945_v8 = vmax.f32 %v2865_v7, 0.0  ;;  %v5909_v7 = vld [vmem:[#allocation72_spill] sm:$0xff] }
 0x246   :  { %v3489_v33 = vpack.c.bf16 %v2943_v19, %v2942_v53  ;;  %v2592_v39 = vpop.f32.mrb[180].mxu0  ;;  %v3490_v55 = vpack.c.bf16 %v2945_v8, %v2944_v28  ;;  %v2653_v38 = vpop.f32.mrb[180].mxu1 }
 0x247   :  { %v2692_v20 = vmax.f32 %v5899_v3, %v2592_v39  ;;  %v2594_v6 = vpop.f32.mrb[181].mxu0  ;;  %v2694_v48 = vmax.f32 %v5900_v59, %v2653_v38  ;;  %v2655_v4 = vpop.f32.mrb[181].mxu1  ;;  %v5910_v39 = vld [vmem:[#allocation15_spill] sm:$0xff]  ;;  %v5911_v3 = vld [vmem:[#allocation73_spill] sm:$0xff] }
 0x248   :  { %3242 = vst [vmem:[%s5383_s6 + $0x120] sm:$0xff] %v3489_v33  ;;  %v2693_v42 = vmax.f32 %v5901_v58, %v2594_v6  ;;  %v2596_v22 = vpop.f32.mrb[182].mxu0  ;;  %3243 = vst [vmem:[%s5383_s6 + $0x128] sm:$0xff] %v3490_v55  ;;  %v2695_v54 = vmax.f32 %v5902_v29, %v2655_v4  ;;  %v2657_v24 = vpop.f32.mrb[182].mxu1 }
 0x249   :  { %v2802_v35 = vadd.f32 %v5067_v9, %v2692_v20  ;;  %v2708_v18 = vmax.f32 %v5903_v57, %v2596_v22  ;;  %v2598_v0 = vpop.f32.mrb[183].mxu0  ;;  %v2804_v41 = vadd.f32 %v5067_v9, %v2694_v48  ;;  %v2710_v61 = vmax.f32 %v5904_v32, %v2657_v24  ;;  %v2659_v52 = vpop.f32.mrb[183].mxu1 }
 0x24a   :  { %v2803_v46 = vadd.f32 %v5067_v9, %v2693_v42  ;;  %v2709_v13 = vmax.f32 %v5905_v11, %v2598_v0  ;;  %v2805_v50 = vadd.f32 %v5067_v9, %v2695_v54  ;;  %v2711_v43 = vmax.f32 %v5906_v14, %v2659_v52  ;;  %v5912_v54 = vld [vmem:[#allocation74_spill] sm:$0xff] }
 0x24b   :  { %v2882_v60 = vmax.f32 %v2802_v35, 0.0  ;;  %v2818_v47 = vadd.f32 %v5089_v12, %v2708_v18  ;;  %v2884_v30 = vmax.f32 %v2804_v41, 0.0  ;;  %v2820_v17 = vadd.f32 %v5089_v12, %v2710_v61 }
 0x24c   :  { %v2883_v16 = vmax.f32 %v2803_v46, 0.0  ;;  %v2819_v1 = vadd.f32 %v5089_v12, %v2709_v13  ;;  %v2885_v49 = vmax.f32 %v2805_v50, 0.0  ;;  %v2821_v56 = vadd.f32 %v5089_v12, %v2711_v43 }
 0x24d   :  { %v2898_v10 = vmax.f32 %v2818_v47, 0.0  ;;  %v2900_v2 = vmax.f32 %v2820_v17, 0.0 }
 0x24e   :  { %v3459_v40 = vpack.c.bf16 %v2883_v16, %v2882_v60  ;;  %v2899_v21 = vmax.f32 %v2819_v1, 0.0  ;;  %v2602_v36 = vpop.f32.mrb[184].mxu0  ;;  %v3460_v5 = vpack.c.bf16 %v2885_v49, %v2884_v30  ;;  %v2901_v9 = vmax.f32 %v2821_v56, 0.0  ;;  %v2663_v45 = vpop.f32.mrb[184].mxu1  ;;  %v5913_v60 = vld [vmem:[#allocation16_spill] sm:$0xff] }
 0x24f   :  { %v2724_v34 = vmax.f32 %v5907_v63, %v2602_v36  ;;  %v2604_v26 = vpop.f32.mrb[185].mxu0  ;;  %v2726_v53 = vmax.f32 %v5908_v25, %v2663_v45  ;;  %v2665_v12 = vpop.f32.mrb[185].mxu1 }
 0x250   :  { %3212 = vst [vmem:[%s5383_s6 + $0x30] sm:$0xff] %v3459_v40  ;;  %v3467_v44 = vpack.c.bf16 %v2899_v21, %v2898_v10  ;;  %v2725_v28 = vmax.f32 %v5909_v7, %v2604_v26  ;;  %v2606_v19 = vpop.f32.mrb[186].mxu0  ;;  %3213 = vst [vmem:[%s5383_s6 + $0x38] sm:$0xff] %v3460_v5  ;;  %v3468_v8 = vpack.c.bf16 %v2901_v9, %v2900_v2  ;;  %v2667_v38 = vpop.f32.mrb[186].mxu1  ;;  %v5914_v10 = vld [vmem:[#allocation75_spill] sm:$0xff] }
 0x251   :  { %v2834_v33 = vadd.f32 %v5091_v27, %v2724_v34  ;;  %v2727_v55 = vmax.f32 %v5910_v39, %v2665_v12  ;;  %v2740_v20 = vmax.f32 %v5911_v3, %v2606_v19  ;;  %v2608_v6 = vpop.f32.mrb[187].mxu0  ;;  %v2836_v59 = vadd.f32 %v5091_v27, %v2726_v53  ;;  %v2669_v4 = vpop.f32.mrb[187].mxu1 }
 0x252   :  { %3220 = vst [vmem:[%s5383_s6 + $0x70] sm:$0xff] %v3467_v44  ;;  %v2835_v48 = vadd.f32 %v5091_v27, %v2725_v28  ;;  %v2742_v58 = vmax.f32 %v5055_v23, %v2667_v38  ;;  %v2741_v42 = vmax.f32 %v5060_v51, %v2608_v6  ;;  %3221 = vst [vmem:[%s5383_s6 + $0x78] sm:$0xff] %v3468_v8 }
 0x253   :  { %v2914_v22 = vmax.f32 %v2834_v33, 0.0  ;;  %v2837_v35 = vadd.f32 %v5091_v27, %v2727_v55  ;;  %v2850_v29 = vadd.f32 %v5109_v62, %v2740_v20  ;;  %v2743_v57 = vmax.f32 %v5912_v54, %v2669_v4 }
 0x254   :  { %v2916_v18 = vmax.f32 %v2836_v59, 0.0  ;;  %v2915_v24 = vmax.f32 %v2835_v48, 0.0  ;;  %v2852_v0 = vadd.f32 %v5109_v62, %v2742_v58  ;;  %v2851_v23 = vadd.f32 %v5109_v62, %v2741_v42 }
 0x255   :  { %v2917_v41 = vmax.f32 %v2837_v35, 0.0  ;;  %v2930_v51 = vmax.f32 %v2850_v29, 0.0  ;;  %v2853_v46 = vadd.f32 %v5109_v62, %v2743_v57 }
 0x256   :  { %v3475_v32 = vpack.c.bf16 %v2915_v24, %v2914_v22  ;;  %v2932_v61 = vmax.f32 %v2852_v0, 0.0  ;;  %v2931_v11 = vmax.f32 %v2851_v23, 0.0  ;;  %v2612_v13 = vpop.f32.mrb[188].mxu0  ;;  %v2673_v47 = vpop.f32.mrb[188].mxu1 }
 0x257   :  { %v3476_v52 = vpack.c.bf16 %v2917_v41, %v2916_v18  ;;  %v2933_v27 = vmax.f32 %v2853_v46, 0.0  ;;  %v2756_v50 = vmax.f32 %v5913_v60, %v2612_v13  ;;  %v2614_v14 = vpop.f32.mrb[189].mxu0  ;;  %v2758_v30 = vmax.f32 %v5077_v15, %v2673_v47  ;;  %v2675_v62 = vpop.f32.mrb[189].mxu1 }
 0x258   :  { %3228 = vst [vmem:[%s5383_s6 + $0xb0] sm:$0xff] %v3475_v32  ;;  %v3483_v43 = vpack.c.bf16 %v2931_v11, %v2930_v51  ;;  %v2757_v16 = vmax.f32 %v5082_v37, %v2614_v14  ;;  %v2616_v17 = vpop.f32.mrb[190].mxu0  ;;  %v2759_v56 = vmax.f32 %v5914_v10, %v2675_v62  ;;  %v2677_v40 = vpop.f32.mrb[190].mxu1 }
 0x259   :  { %3229 = vst [vmem:[%s5383_s6 + $0xb8] sm:$0xff] %v3476_v52  ;;  %v3484_v1 = vpack.c.bf16 %v2933_v27, %v2932_v61  ;;  %v2866_v49 = vadd.f32 %v5139_v31, %v2756_v50  ;;  %v2617_v2 = vpop.f32.mrb[191].mxu0  ;;  %v2868_v15 = vadd.f32 %v5139_v31, %v2758_v30  ;;  %v2678_v21 = vpop.f32.mrb[191].mxu1 }
 0x25a   :  { %3236 = vst [vmem:[%s5383_s6 + $0xf0] sm:$0xff] %v3483_v43  ;;  %v2867_v37 = vadd.f32 %v5139_v31, %v2757_v16  ;;  %v2869_v5 = vadd.f32 %v5139_v31, %v2759_v56 }
 0x25b   :  { %3237 = vst [vmem:[%s5383_s6 + $0xf8] sm:$0xff] %v3484_v1  ;;  %v2946_v36 = vmax.f32 %v2866_v49, 0.0  ;;  %v2948_v9 = vmax.f32 %v2868_v15, 0.0 }
 0x25c   :  { %v2947_v63 = vmax.f32 %v2867_v37, 0.0  ;;  %v2949_v34 = vmax.f32 %v2869_v5, 0.0 }
 0x25e   :  { %v3491_v45 = vpack.c.bf16 %v2947_v63, %v2946_v36  ;;  %v3492_v26 = vpack.c.bf16 %v2949_v34, %v2948_v9 }
 0x260   :  { %3244 = vst [vmem:[%s5383_s6 + $0x130] sm:$0xff] %v3491_v45  ;;  %3245 = vst [vmem:[%s5383_s6 + $0x138] sm:$0xff] %v3492_v26 }

// kernel: ensemble_forward.5
= control target key start
LH: loop header
LB: loop body
LE: loop exit
PB: predicated region body
PF: predicated region fallthrough
CT: control target
= control target key end

     0   :  { %v10082_v0 = vmov 0   ;;  %vm285_vm0 = vcmask 588800   ;;  %vm289_vm1 = vcmask 1043456   ;;  %s13272_s2 = inlined_call_operand.vmem [shape: bf16[5,200,384], index: 2, kind: input, shape index: {}]   ;;  %s13273_s0 = inlined_call_operand.vmem [shape: bf16[5,16,200], index: 0, kind: input, shape index: {}]   ;;  %s13274_s3 = inlined_call_operand.vmem [shape: bf16[5,200,384], index: 3, kind: input, shape index: {}]   ;;  %s13275_s4 = inlined_call_operand.vmem [shape: bf16[5,200,384], index: 4, kind: input, shape index: {}]   ;;  %s13276_s5 = inlined_call_operand.vmem [shape: bf16[5,200,384], index: 5, kind: input, shape index: {}]   ;;  %s13277_s1 = inlined_call_operand.vmem [shape: f32[5,16,1], index: 1, kind: input, shape index: {}]   ;;  %s13278_s6 = inlined_call_operand.vmem [shape: bf16[5,16,384], index: 6, kind: output, shape index: {}]  }
   0x1   :  { %342 = vmatprep.subr.bf16.mxu1 %v10082_v0  ;;  %v9043_v1 = vld [vmem:[%s13272_s2 + $0x4] ss:$12 sps:$4 sm:$0xff]   ;;  %9041 = vset.pattern.permute.xlu0 %v10082_v0  ;;  %v9045_v2 = vld [vmem:[%s13272_s2 + $0x8] ss:$12 sps:$4 sm:$0xff]   ;;  %v9046_v3 = vld [vmem:[%s13272_s2] ss:$12 sps:$4 sm:$0xff]  }
   0x2   :  { %9042 = vset.pattern.permute.xlu1 %v10082_v0  ;;  %299 = vmatprep.subr.bf16.mxu0 %v9043_v1  ;;  %v9047_v4 = vld [vmem:[%s13272_s2 + $0x1c] ss:$12 sps:$4 sm:$0xff]   ;;  %v9049_v5 = vld [vmem:[%s13272_s2 + $0x20] ss:$12 sps:$4 sm:$0xff]   ;;  %v9050_v6 = vld [vmem:[%s13272_s2 + $0x18] ss:$12 sps:$4 sm:$0xff]  }
   0x3   :  { %343 = vmatpush1.bf16.msra.mxu1 %v9045_v2  ;;  %300 = vmatpush1.bf16.msra.mxu0 %v9046_v3  ;;  %v9051_v7 = vld [vmem:[%s13272_s2 + $0x34] ss:$12 sps:$4 sm:$0xff]   ;;  %v9053_v8 = vld [vmem:[%s13272_s2 + $0x38] ss:$12 sps:$4 sm:$0xff]   ;;  %v9054_v9 = vld [vmem:[%s13272_s2 + $0x30] ss:$12 sps:$4 sm:$0xff]  }
   0x4   :  { %344 = vmatprep.subr.bf16.mxu1 %v10082_v0  ;;  %301 = vmatprep.subr.bf16.mxu0 %v9047_v4  ;;  %v9055_v10 = vld [vmem:[%s13272_s2 + $0x4c] ss:$12 sps:$4 sm:$0xff]   ;;  %v9057_v11 = vld [vmem:[%s13272_s2 + $0x50] ss:$12 sps:$4 sm:$0xff]   ;;  %v9058_v12 = vld [vmem:[%s13272_s2 + $0x48] ss:$12 sps:$4 sm:$0xff]  }
   0x5   :  { %v9059_v13 = vld [vmem:[%s13272_s2 + $0x64] ss:$12 sps:$4 sm:$0xff]   ;;  %v9061_v14 = vld [vmem:[%s13272_s2 + $0x68] ss:$12 sps:$4 sm:$0xff]   ;;  %v9062_v15 = vld [vmem:[%s13272_s2 + $0x60] ss:$12 sps:$4 sm:$0xff]  }
   0x6   :  { %v9063_v16 = vld [vmem:[%s13272_s2 + $0x7c] ss:$12 sps:$4 sm:$0xff]   ;;  %v9065_v17 = vld [vmem:[%s13272_s2 + $0x80] ss:$12 sps:$4 sm:$0xff]   ;;  %v9066_v18 = vld [vmem:[%s13272_s2 + $0x78] ss:$12 sps:$4 sm:$0xff]  }
   0x7   :  { %345 = vmatpush1.bf16.msra.mxu1 %v9049_v5  ;;  %302 = vmatpush1.bf16.msra.mxu0 %v9050_v6  ;;  %v9067_v19 = vld [vmem:[%s13272_s2 + $0x94] ss:$12 sps:$4 sm:$0xff]   ;;  %v9069_v20 = vld [vmem:[%s13272_s2 + $0x98] ss:$12 sps:$4 sm:$0xff]   ;;  %v9070_v21 = vld [vmem:[%s13272_s2 + $0x90] ss:$12 sps:$4 sm:$0xff]  }
   0x8   :  { %346 = vmatprep.subr.bf16.mxu1 %v10082_v0  ;;  %303 = vmatprep.subr.bf16.mxu0 %v9051_v7  ;;  %v9071_v22 = vld [vmem:[%s13272_s2 + $0xac] ss:$12 sps:$4 sm:$0xff]   ;;  %v9073_v23 = vld [vmem:[%s13272_s2 + $0xb0] ss:$12 sps:$4 sm:$0xff]   ;;  %v9074_v24 = vld [vmem:[%s13272_s2 + $0xa8] ss:$12 sps:$4 sm:$0xff]  }
   0x9   :  { %v9075_v25 = vld [vmem:[%s13272_s2 + $0xc4] ss:$12 sps:$4 sm:$0xff]   ;;  %v9077_v27 = vld [vmem:[%s13272_s2 + $0xc8] ss:$12 sps:$4 sm:$0xff]   ;;  %v9078_v28 = vld [vmem:[%s13272_s2 + $0xc0] ss:$12 sps:$4 sm:$0xff]  }
   0xa   :  { %v10206_v26 = vld [vmem:[%s13273_s0 + $0x4] ss:$8 sps:$4 sm:$0xff]   ;;  %v9079_v29 = vld [vmem:[%s13272_s2 + $0xdc] ss:$12 sps:$4 sm:$0xff]   ;;  %v9083_v32 = vld [vmem:[%s13272_s2 + $0xf4] ss:$12 sps:$4 sm:$0xff]  }
   0xb   :  { %347 = vmatpush1.bf16.msra.mxu1 %v9053_v8  ;;  %304 = vmatpush1.bf16.msra.mxu0 %v9054_v9  ;;  %v9081_v30 = vld [vmem:[%s13272_s2 + $0xe0] ss:$12 sps:$4 sm:$0xff]   ;;  %v9082_v31 = vld [vmem:[%s13272_s2 + $0xd8] ss:$12 sps:$4 sm:$0xff]   ;;  %v9086_v34 = vld [vmem:[%s13272_s2 + $0xf0] ss:$12 sps:$4 sm:$0xff]  }
   0xc   :  { %348 = vmatprep.subr.bf16.mxu1 %v10082_v0  ;;  %305 = vmatprep.subr.bf16.mxu0 %v9055_v10  ;;  %v9085_v33 = vld [vmem:[%s13272_s2 + $0xf8] ss:$12 sps:$4 sm:$0xff]   ;;  %v9089_v36 = vld [vmem:[%s13272_s2 + $0x110] ss:$12 sps:$4 sm:$0xff]   ;;  %v9090_v38 = vld [vmem:[%s13272_s2 + $0x108] ss:$12 sps:$4 sm:$0xff]  }
   0xd   :  { %7361 = vmatprep.mubr.msk.bf16.mxu1 %vm285_vm0, %v10206_v26  ;;  %7360 = vmatprep.mubr.msk.bf16.mxu0 %vm285_vm0, %v10206_v26  ;;  %v9087_v35 = vld [vmem:[%s13272_s2 + $0x10c] ss:$12 sps:$4 sm:$0xff]   ;;  %v74_v37 = vld [vmem:[%s13272_s2 + $0x120] sm:$0xff]  ;;  %v9092_v39 = vld [vmem:[%s13272_s2 + $0x128] ss:$0 sps:$4 sm:$0xff]  }
   0xe   :  { %v7357_v40 = vcombine.high %v74_v37, %v74_v37  ;;  %v7356_v41 = vcombine.low %v74_v37, %v74_v37  ;;  %v297_v42 = vsel %vm289_vm1, %v9092_v39, 0  ;;  %v9099_v44 = vld [vmem:[%s13274_s3 + $0x4] ss:$12 sps:$4 sm:$0xff]   ;;  %v10265_v45 = vld [vmem:[%s13273_s0] ss:$8 sps:$4 sm:$0xff]  }
   0xf   :  { %349 = vmatpush1.bf16.msra.mxu1 %v9057_v11  ;;  %306 = vmatpush1.bf16.msra.mxu0 %v9058_v12  ;;  %v9100_v46 = vld [vmem:[%s13274_s3 + $0x8] ss:$12 sps:$4 sm:$0xff]   ;;  %v9097_v47 = vld [vmem:[%s13274_s3] ss:$12 sps:$4 sm:$0xff]   ;;  %v9101_v50 = vld [vmem:[%s13274_s3 + $0x18] ss:$12 sps:$4 sm:$0xff]  }
  0x10   :  { %350 = vmatprep.subr.bf16.mxu1 %v10082_v0  ;;  %307 = vmatprep.subr.bf16.mxu0 %v9059_v13  ;;  %v291_v43 = vsel %vm289_vm1, %v7356_v41, 0  ;;  %v9103_v48 = vld [vmem:[%s13274_s3 + $0x1c] ss:$12 sps:$4 sm:$0xff]   ;;  %v9104_v49 = vld [vmem:[%s13274_s3 + $0x20] ss:$12 sps:$4 sm:$0xff]  }
  0x11   :  { %v9107_v51 = vld [vmem:[%s13274_s3 + $0x34] ss:$12 sps:$4 sm:$0xff]   ;;  %v9108_v52 = vld [vmem:[%s13274_s3 + $0x38] ss:$12 sps:$4 sm:$0xff]   ;;  %v9105_v53 = vld [vmem:[%s13274_s3 + $0x30] ss:$12 sps:$4 sm:$0xff]  }
  0x12   :  { %v9111_v54 = vld [vmem:[%s13274_s3 + $0x4c] ss:$12 sps:$4 sm:$0xff]   ;;  %v9112_v55 = vld [vmem:[%s13274_s3 + $0x50] ss:$12 sps:$4 sm:$0xff]   ;;  %v9109_v56 = vld [vmem:[%s13274_s3 + $0x48] ss:$12 sps:$4 sm:$0xff]  }
  0x13   :  { %351 = vmatpush1.bf16.msra.mxu1 %v9061_v14  ;;  %308 = vmatpush1.bf16.msra.mxu0 %v9062_v15  ;;  %v9115_v57 = vld [vmem:[%s13274_s3 + $0x64] ss:$12 sps:$4 sm:$0xff]   ;;  %v9116_v58 = vld [vmem:[%s13274_s3 + $0x68] ss:$12 sps:$4 sm:$0xff]   ;;  %v9113_v59 = vld [vmem:[%s13274_s3 + $0x60] ss:$12 sps:$4 sm:$0xff]  }
  0x14   :  { %352 = vmatprep.subr.bf16.mxu1 %v10082_v0  ;;  %309 = vmatprep.subr.bf16.mxu0 %v9063_v16  ;;  %v9119_v60 = vld [vmem:[%s13274_s3 + $0x7c] ss:$12 sps:$4 sm:$0xff]   ;;  %v9120_v61 = vld [vmem:[%s13274_s3 + $0x80] ss:$12 sps:$4 sm:$0xff]   ;;  %v9117_v62 = vld [vmem:[%s13274_s3 + $0x78] ss:$12 sps:$4 sm:$0xff]  }
  0x15   :  { %v9123_v63 = vld [vmem:[%s13274_s3 + $0x94] ss:$12 sps:$4 sm:$0xff]   ;;  %v9124_v1 = vld [vmem:[%s13274_s3 + $0x98] ss:$12 sps:$4 sm:$0xff]   ;;  %v9121_v2 = vld [vmem:[%s13274_s3 + $0x90] ss:$12 sps:$4 sm:$0xff]  }
  0x16   :  { %v9127_v3 = vld [vmem:[%s13274_s3 + $0xac] ss:$12 sps:$4 sm:$0xff]   ;;  %v9128_v4 = vld [vmem:[%s13274_s3 + $0xb0] ss:$12 sps:$4 sm:$0xff]   ;;  %v9125_v5 = vld [vmem:[%s13274_s3 + $0xa8] ss:$12 sps:$4 sm:$0xff]  }
  0x17   :  { %353 = vmatpush1.bf16.msra.mxu1 %v9065_v17  ;;  %310 = vmatpush1.bf16.msra.mxu0 %v9066_v18  ;;  %v9131_v6 = vld [vmem:[%s13274_s3 + $0xc4] ss:$12 sps:$4 sm:$0xff]   ;;  %v9132_v7 = vld [vmem:[%s13274_s3 + $0xc8] ss:$12 sps:$4 sm:$0xff]   ;;  %v9129_v8 = vld [vmem:[%s13274_s3 + $0xc0] ss:$12 sps:$4 sm:$0xff]  }
  0x18   :  { %354 = vmatprep.subr.bf16.mxu1 %v10082_v0  ;;  %311 = vmatprep.subr.bf16.mxu0 %v9067_v19  ;;  %v9135_v9 = vld [vmem:[%s13274_s3 + $0xdc] ss:$12 sps:$4 sm:$0xff]   ;;  %v9136_v10 = vld [vmem:[%s13274_s3 + $0xe0] ss:$12 sps:$4 sm:$0xff]   ;;  %v9133_v11 = vld [vmem:[%s13274_s3 + $0xd8] ss:$12 sps:$4 sm:$0xff]  }
  0x19   :  { %v9139_v12 = vld [vmem:[%s13274_s3 + $0xf4] ss:$12 sps:$4 sm:$0xff]   ;;  %v9140_v13 = vld [vmem:[%s13274_s3 + $0xf8] ss:$12 sps:$4 sm:$0xff]   ;;  %v9137_v14 = vld [vmem:[%s13274_s3 + $0xf0] ss:$12 sps:$4 sm:$0xff]  }
  0x1a   :  { %v9143_v15 = vld [vmem:[%s13274_s3 + $0x10c] ss:$12 sps:$4 sm:$0xff]   ;;  %v9141_v16 = vld [vmem:[%s13274_s3 + $0x108] ss:$12 sps:$4 sm:$0xff]   ;;  %v431_v17 = vld [vmem:[%s13274_s3 + $0x120] sm:$0xff] }
  0x1b   :  { %355 = vmatpush1.bf16.msra.mxu1 %v9069_v20  ;;  %312 = vmatpush1.bf16.msra.mxu0 %v9070_v21  ;;  %v9144_v18 = vld [vmem:[%s13274_s3 + $0x110] ss:$12 sps:$4 sm:$0xff]   ;;  %v9146_v19 = vld [vmem:[%s13274_s3 + $0x128] ss:$0 sps:$4 sm:$0xff]   ;;  %v7399_v20 = vcombine.high %v431_v17, %v431_v17  ;;  %v7398_v21 = vcombine.low %v431_v17, %v431_v17  ;;  %v9164_v39 = vld [vmem:[%s13275_s4 + $0x60] ss:$12 sps:$4 sm:$0xff]  }
  0x1c   :  { %356 = vmatprep.subr.bf16.mxu1 %v10082_v0  ;;  %313 = vmatprep.subr.bf16.mxu0 %v9071_v22  ;;  %v640_v22 = vsel %vm289_vm1, %v9146_v19, 0  ;;  %v9166_v37 = vld [vmem:[%s13275_s4 + $0x64] ss:$12 sps:$4 sm:$0xff]   ;;  %v9171_v41 = vld [vmem:[%s13275_s4 + $0x80] ss:$12 sps:$4 sm:$0xff]  }
  0x1d   :  { %v1431_v17 = vld [vmem:[%s13277_s1 + $0x8] sm:$0xff] }
  0x1e   :  { %v9215_v19 = vld [vmem:[%s13276_s5 + $0x60] ss:$12 sps:$4 sm:$0xff]  }
  0x1f   :  { %357 = vmatpush1.bf16.msra.mxu1 %v9073_v23  ;;  %314 = vmatpush1.bf16.msra.mxu0 %v9074_v24  ;;  %v634_v23 = vsel %vm289_vm1, %v7398_v21, 0  ;;  %v9150_v24 = vld [vmem:[%s13275_s4 + $0x4] ss:$12 sps:$4 sm:$0xff]   ;;  %v9222_v21 = vld [vmem:[%s13276_s5 + $0x80] ss:$12 sps:$4 sm:$0xff]  }
  0x20   :  { %358 = vmatprep.subr.bf16.mxu1 %v10082_v0  ;;  %315 = vmatprep.subr.bf16.mxu0 %v9075_v25  ;;  %v9151_v25 = vld [vmem:[%s13275_s4 + $0x8] ss:$12 sps:$4 sm:$0xff]  }
  0x23   :  { %359 = vmatpush1.bf16.msra.mxu1 %v9077_v27  ;;  %316 = vmatpush1.bf16.msra.mxu0 %v9078_v28  ;;  %v9148_v27 = vld [vmem:[%s13275_s4] ss:$12 sps:$4 sm:$0xff]   ;;  %v9154_v28 = vld [vmem:[%s13275_s4 + $0x1c] ss:$12 sps:$4 sm:$0xff]  }
  0x24   :  { %360 = vmatprep.subr.bf16.mxu1 %v10082_v0  ;;  %317 = vmatprep.subr.bf16.mxu0 %v9079_v29  ;;  %v9155_v29 = vld [vmem:[%s13275_s4 + $0x20] ss:$12 sps:$4 sm:$0xff]  }
  0x27   :  { %361 = vmatpush1.bf16.msra.mxu1 %v9081_v30  ;;  %318 = vmatpush1.bf16.msra.mxu0 %v9082_v31  ;;  %v9152_v30 = vld [vmem:[%s13275_s4 + $0x18] ss:$12 sps:$4 sm:$0xff]   ;;  %v9158_v31 = vld [vmem:[%s13275_s4 + $0x34] ss:$12 sps:$4 sm:$0xff]  }
  0x28   :  { %362 = vmatprep.subr.bf16.mxu1 %v10082_v0  ;;  %319 = vmatprep.subr.bf16.mxu0 %v9083_v32  ;;  %v9159_v32 = vld [vmem:[%s13275_s4 + $0x38] ss:$12 sps:$4 sm:$0xff]  }
  0x2b   :  { %363 = vmatpush1.bf16.msra.mxu1 %v9085_v33  ;;  %320 = vmatpush1.bf16.msra.mxu0 %v9086_v34  ;;  %v9156_v33 = vld [vmem:[%s13275_s4 + $0x30] ss:$12 sps:$4 sm:$0xff]   ;;  %v9162_v34 = vld [vmem:[%s13275_s4 + $0x4c] ss:$12 sps:$4 sm:$0xff]  }
  0x2c   :  { %364 = vmatprep.subr.bf16.mxu1 %v10082_v0  ;;  %321 = vmatprep.subr.bf16.mxu0 %v9087_v35  ;;  %v9163_v35 = vld [vmem:[%s13275_s4 + $0x50] ss:$12 sps:$4 sm:$0xff]  }
  0x2f   :  { %365 = vmatpush1.bf16.msra.mxu1 %v9089_v36  ;;  %322 = vmatpush1.bf16.msra.mxu0 %v9090_v38  ;;  %v9160_v36 = vld [vmem:[%s13275_s4 + $0x48] ss:$12 sps:$4 sm:$0xff]  }
  0x30   :  { %366 = vmatprep.subr.bf16.mxu1 %v10082_v0  ;;  %7359 = vmatprep.subr.msk.bf16.mxu0 %vm289_vm1, %v7357_v40  ;;  %v9167_v38 = vld [vmem:[%s13275_s4 + $0x68] ss:$12 sps:$4 sm:$0xff]  }
  0x31   :  { %v9170_v40 = vld [vmem:[%s13275_s4 + $0x7c] ss:$12 sps:$4 sm:$0xff]  }
  0x33   :  { %367 = vmatpush1.bf16.msra.mxu1 %v297_v42  ;;  %324 = vmatpush1.bf16.msra.mxu0 %v291_v43  ;;  %v9168_v42 = vld [vmem:[%s13275_s4 + $0x78] ss:$12 sps:$4 sm:$0xff]   ;;  %v9174_v43 = vld [vmem:[%s13275_s4 + $0x94] ss:$12 sps:$4 sm:$0xff]  }
  0x34   :  { %685 = vmatprep.subr.bf16.mxu1 %v10082_v0  ;;  %642 = vmatprep.subr.bf16.mxu0 %v9099_v44  ;;  %v9175_v44 = vld [vmem:[%s13275_s4 + $0x98] ss:$12 sps:$4 sm:$0xff]  }
  0x36   :  { %375 = vmatmul.mubr.bf16.vlgmr.msra.gmra.mrb[0].mxu1 %v10265_v45  ;;  %332 = vmatmul.mubr.bf16.vlgmr.msra.gmra.mrb[0].mxu0 %v10265_v45 }
  0x37   :  { %686 = vmatpush1.bf16.msra.mxu1 %v9100_v46  ;;  %643 = vmatpush1.bf16.msra.mxu0 %v9097_v47  ;;  %v9172_v46 = vld [vmem:[%s13275_s4 + $0x90] ss:$12 sps:$4 sm:$0xff]   ;;  %v9178_v47 = vld [vmem:[%s13275_s4 + $0xac] ss:$12 sps:$4 sm:$0xff]  }
  0x38   :  { %687 = vmatprep.subr.bf16.mxu1 %v10082_v0  ;;  %644 = vmatprep.subr.bf16.mxu0 %v9103_v48  ;;  %v9179_v48 = vld [vmem:[%s13275_s4 + $0xb0] ss:$12 sps:$4 sm:$0xff]  }
  0x39   :  { %7403 = vmatprep.mubr.msk.bf16.mxu1 %vm285_vm0, %v10206_v26  ;;  %7402 = vmatprep.mubr.msk.bf16.mxu0 %vm285_vm0, %v10206_v26 }
  0x3b   :  { %688 = vmatpush1.bf16.msra.mxu1 %v9104_v49  ;;  %645 = vmatpush1.bf16.msra.mxu0 %v9101_v50  ;;  %v9176_v49 = vld [vmem:[%s13275_s4 + $0xa8] ss:$12 sps:$4 sm:$0xff]   ;;  %v9182_v50 = vld [vmem:[%s13275_s4 + $0xc4] ss:$12 sps:$4 sm:$0xff]  }
  0x3c   :  { %689 = vmatprep.subr.bf16.mxu1 %v10082_v0  ;;  %646 = vmatprep.subr.bf16.mxu0 %v9107_v51  ;;  %v9183_v51 = vld [vmem:[%s13275_s4 + $0xc8] ss:$12 sps:$4 sm:$0xff]  }
  0x3f   :  { %690 = vmatpush1.bf16.msra.mxu1 %v9108_v52  ;;  %647 = vmatpush1.bf16.msra.mxu0 %v9105_v53  ;;  %v9180_v52 = vld [vmem:[%s13275_s4 + $0xc0] ss:$12 sps:$4 sm:$0xff]   ;;  %v9186_v53 = vld [vmem:[%s13275_s4 + $0xdc] ss:$12 sps:$4 sm:$0xff]  }
  0x40   :  { %691 = vmatprep.subr.bf16.mxu1 %v10082_v0  ;;  %648 = vmatprep.subr.bf16.mxu0 %v9111_v54  ;;  %v9187_v54 = vld [vmem:[%s13275_s4 + $0xe0] ss:$12 sps:$4 sm:$0xff]  }
  0x43   :  { %692 = vmatpush1.bf16.msra.mxu1 %v9112_v55  ;;  %649 = vmatpush1.bf16.msra.mxu0 %v9109_v56  ;;  %v9184_v55 = vld [vmem:[%s13275_s4 + $0xd8] ss:$12 sps:$4 sm:$0xff]   ;;  %v9190_v56 = vld [vmem:[%s13275_s4 + $0xf4] ss:$12 sps:$4 sm:$0xff]  }
  0x44   :  { %693 = vmatprep.subr.bf16.mxu1 %v10082_v0  ;;  %650 = vmatprep.subr.bf16.mxu0 %v9115_v57  ;;  %v9191_v57 = vld [vmem:[%s13275_s4 + $0xf8] ss:$12 sps:$4 sm:$0xff]  }
  0x47   :  { %694 = vmatpush1.bf16.msra.mxu1 %v9116_v58  ;;  %651 = vmatpush1.bf16.msra.mxu0 %v9113_v59  ;;  %v9188_v58 = vld [vmem:[%s13275_s4 + $0xf0] ss:$12 sps:$4 sm:$0xff]   ;;  %v9194_v59 = vld [vmem:[%s13275_s4 + $0x10c] ss:$12 sps:$4 sm:$0xff]  }
  0x48   :  { %695 = vmatprep.subr.bf16.mxu1 %v10082_v0  ;;  %652 = vmatprep.subr.bf16.mxu0 %v9119_v60  ;;  %v9192_v60 = vld [vmem:[%s13275_s4 + $0x108] ss:$12 sps:$4 sm:$0xff]  }
  0x4b   :  { %696 = vmatpush1.bf16.msra.mxu1 %v9120_v61  ;;  %653 = vmatpush1.bf16.msra.mxu0 %v9117_v62  ;;  %v780_v61 = vld [vmem:[%s13275_s4 + $0x120] sm:$0xff]  ;;  %v9195_v62 = vld [vmem:[%s13275_s4 + $0x110] ss:$12 sps:$4 sm:$0xff]  }
  0x4c   :  { %697 = vmatprep.subr.bf16.mxu1 %v10082_v0  ;;  %654 = vmatprep.subr.bf16.mxu0 %v9123_v63  ;;  %v9197_v63 = vld [vmem:[%s13275_s4 + $0x128] ss:$0 sps:$4 sm:$0xff]  }
  0x4f   :  { %698 = vmatpush1.bf16.msra.mxu1 %v9124_v1  ;;  %655 = vmatpush1.bf16.msra.mxu0 %v9121_v2  ;;  %v7441_v1 = vcombine.high %v780_v61, %v780_v61  ;;  %v7440_v2 = vcombine.low %v780_v61, %v780_v61  ;;  %v9265_v61 = vld [vmem:[%s13272_s2 + $0x17c] ss:$12 sps:$4 sm:$0xff]  }
  0x50   :  { %699 = vmatprep.subr.bf16.mxu1 %v10082_v0  ;;  %656 = vmatprep.subr.bf16.mxu0 %v9127_v3  ;;  %v989_v3 = vsel %vm289_vm1, %v9197_v63, 0  ;;  %v9268_v63 = vld [vmem:[%s13272_s2 + $0x190] ss:$12 sps:$4 sm:$0xff]  }
  0x53   :  { %700 = vmatpush1.bf16.msra.mxu1 %v9128_v4  ;;  %657 = vmatpush1.bf16.msra.mxu0 %v9125_v5  ;;  %v983_v4 = vsel %vm289_vm1, %v7440_v2, 0  ;;  %v9201_v5 = vld [vmem:[%s13276_s5 + $0x4] ss:$12 sps:$4 sm:$0xff]   ;;  %v9266_v2 = vld [vmem:[%s13272_s2 + $0x18c] ss:$12 sps:$4 sm:$0xff]  }
  0x54   :  { %701 = vmatprep.subr.bf16.mxu1 %v10082_v0  ;;  %658 = vmatprep.subr.bf16.mxu0 %v9131_v6  ;;  %v9202_v6 = vld [vmem:[%s13276_s5 + $0x8] ss:$12 sps:$4 sm:$0xff]  }
  0x57   :  { %702 = vmatpush1.bf16.msra.mxu1 %v9132_v7  ;;  %659 = vmatpush1.bf16.msra.mxu0 %v9129_v8  ;;  %v9199_v7 = vld [vmem:[%s13276_s5] ss:$12 sps:$4 sm:$0xff]   ;;  %v9205_v8 = vld [vmem:[%s13276_s5 + $0x1c] ss:$12 sps:$4 sm:$0xff]  }
  0x58   :  { %703 = vmatprep.subr.bf16.mxu1 %v10082_v0  ;;  %660 = vmatprep.subr.bf16.mxu0 %v9135_v9  ;;  %v9206_v9 = vld [vmem:[%s13276_s5 + $0x20] ss:$12 sps:$4 sm:$0xff]  }
  0x5b   :  { %704 = vmatpush1.bf16.msra.mxu1 %v9136_v10  ;;  %661 = vmatpush1.bf16.msra.mxu0 %v9133_v11  ;;  %v9203_v10 = vld [vmem:[%s13276_s5 + $0x18] ss:$12 sps:$4 sm:$0xff]   ;;  %v9209_v11 = vld [vmem:[%s13276_s5 + $0x34] ss:$12 sps:$4 sm:$0xff]  }
  0x5c   :  { %705 = vmatprep.subr.bf16.mxu1 %v10082_v0  ;;  %662 = vmatprep.subr.bf16.mxu0 %v9139_v12  ;;  %v9207_v12 = vld [vmem:[%s13276_s5 + $0x30] ss:$12 sps:$4 sm:$0xff]  }
  0x5f   :  { %706 = vmatpush1.bf16.msra.mxu1 %v9140_v13  ;;  %663 = vmatpush1.bf16.msra.mxu0 %v9137_v14  ;;  %v9213_v13 = vld [vmem:[%s13276_s5 + $0x4c] ss:$12 sps:$4 sm:$0xff]   ;;  %v1430_v14 = vld [vmem:[%s13277_s1] sm:$0xff] }
  0x60   :  { %707 = vmatprep.subr.bf16.mxu1 %v10082_v0  ;;  %664 = vmatprep.subr.bf16.mxu0 %v9143_v15  ;;  %v9211_v15 = vld [vmem:[%s13276_s5 + $0x48] ss:$12 sps:$4 sm:$0xff]  }
  0x61   :  { %1434 = vperm.xlu0 %9041, %v1430_v14   ;;  %v9286_v14 = vld [vmem:[%s13272_s2 + $0x204] ss:$12 sps:$4 sm:$0xff]  }
  0x63   :  { %708 = vmatpush1.bf16.msra.mxu1 %v9144_v18  ;;  %665 = vmatpush1.bf16.msra.mxu0 %v9141_v16  ;;  %v9217_v16 = vld [vmem:[%s13276_s5 + $0x64] ss:$12 sps:$4 sm:$0xff]   ;;  %v9218_v18 = vld [vmem:[%s13276_s5 + $0x68] ss:$12 sps:$4 sm:$0xff]  }
  0x64   :  { %709 = vmatprep.subr.bf16.mxu1 %v10082_v0  ;;  %7401 = vmatprep.subr.msk.bf16.mxu0 %vm289_vm1, %v7399_v20  ;;  %v9221_v20 = vld [vmem:[%s13276_s5 + $0x7c] ss:$12 sps:$4 sm:$0xff]  }
  0x65   :  { %1439 = vperm.xlu0 %9041, %v1431_v17   ;;  %v9293_v17 = vld [vmem:[%s13272_s2 + $0x224] ss:$12 sps:$4 sm:$0xff]  }
  0x67   :  { %710 = vmatpush1.bf16.msra.mxu1 %v640_v22  ;;  %667 = vmatpush1.bf16.msra.mxu0 %v634_v23  ;;  %v9219_v22 = vld [vmem:[%s13276_s5 + $0x78] ss:$12 sps:$4 sm:$0xff]   ;;  %v9225_v23 = vld [vmem:[%s13276_s5 + $0x94] ss:$12 sps:$4 sm:$0xff]  }
  0x68   :  { %1034 = vmatprep.subr.bf16.mxu1 %v10082_v0  ;;  %991 = vmatprep.subr.bf16.mxu0 %v9150_v24  ;;  %v9226_v24 = vld [vmem:[%s13276_s5 + $0x98] ss:$12 sps:$4 sm:$0xff]  }
  0x6a   :  { %718 = vmatmul.mubr.bf16.vlgmr.msra.gmra.mrb[4].mxu1 %v10265_v45  ;;  %675 = vmatmul.mubr.bf16.vlgmr.msra.gmra.mrb[4].mxu0 %v10265_v45 }
  0x6b   :  { %1035 = vmatpush1.bf16.msra.mxu1 %v9151_v25  ;;  %992 = vmatpush1.bf16.msra.mxu0 %v9148_v27  ;;  %v9223_v25 = vld [vmem:[%s13276_s5 + $0x90] ss:$12 sps:$4 sm:$0xff]   ;;  %v9229_v27 = vld [vmem:[%s13276_s5 + $0xac] ss:$12 sps:$4 sm:$0xff]  }
  0x6c   :  { %1036 = vmatprep.subr.bf16.mxu1 %v10082_v0  ;;  %993 = vmatprep.subr.bf16.mxu0 %v9154_v28  ;;  %v9230_v28 = vld [vmem:[%s13276_s5 + $0xb0] ss:$12 sps:$4 sm:$0xff]  }
  0x6d   :  { %7445 = vmatprep.mubr.msk.bf16.mxu1 %vm285_vm0, %v10206_v26  ;;  %7444 = vmatprep.mubr.msk.bf16.mxu0 %vm285_vm0, %v10206_v26 }
  0x6f   :  { %1037 = vmatpush1.bf16.msra.mxu1 %v9155_v29  ;;  %994 = vmatpush1.bf16.msra.mxu0 %v9152_v30  ;;  %v9227_v29 = vld [vmem:[%s13276_s5 + $0xa8] ss:$12 sps:$4 sm:$0xff]   ;;  %v9233_v30 = vld [vmem:[%s13276_s5 + $0xc4] ss:$12 sps:$4 sm:$0xff]  }
  0x70   :  { %1038 = vmatprep.subr.bf16.mxu1 %v10082_v0  ;;  %995 = vmatprep.subr.bf16.mxu0 %v9158_v31  ;;  %v9231_v31 = vld [vmem:[%s13276_s5 + $0xc0] ss:$12 sps:$4 sm:$0xff]  }
  0x73   :  { %1039 = vmatpush1.bf16.msra.mxu1 %v9159_v32  ;;  %996 = vmatpush1.bf16.msra.mxu0 %v9156_v33  ;;  %v9234_v32 = vld [vmem:[%s13276_s5 + $0xc8] ss:$12 sps:$4 sm:$0xff]  }
  0x74   :  { %1040 = vmatprep.subr.bf16.mxu1 %v10082_v0  ;;  %997 = vmatprep.subr.bf16.mxu0 %v9162_v34  ;;  %v9237_v33 = vld [vmem:[%s13276_s5 + $0xdc] ss:$12 sps:$4 sm:$0xff]   ;;  %v9235_v34 = vld [vmem:[%s13276_s5 + $0xd8] ss:$12 sps:$4 sm:$0xff]  }
  0x77   :  { %1041 = vmatpush1.bf16.msra.mxu1 %v9163_v35  ;;  %998 = vmatpush1.bf16.msra.mxu0 %v9160_v36  ;;  %v9238_v35 = vld [vmem:[%s13276_s5 + $0xe0] ss:$12 sps:$4 sm:$0xff]  }
  0x78   :  { %1042 = vmatprep.subr.bf16.mxu1 %v10082_v0  ;;  %999 = vmatprep.subr.bf16.mxu0 %v9166_v37  ;;  %v9241_v36 = vld [vmem:[%s13276_s5 + $0xf4] ss:$12 sps:$4 sm:$0xff]   ;;  %v9242_v37 = vld [vmem:[%s13276_s5 + $0xf8] ss:$12 sps:$4 sm:$0xff]  }
  0x7b   :  { %1043 = vmatpush1.bf16.msra.mxu1 %v9167_v38  ;;  %1000 = vmatpush1.bf16.msra.mxu0 %v9164_v39  ;;  %v9239_v38 = vld [vmem:[%s13276_s5 + $0xf0] ss:$12 sps:$4 sm:$0xff]   ;;  %v9245_v39 = vld [vmem:[%s13276_s5 + $0x10c] ss:$12 sps:$4 sm:$0xff]  }
  0x7c   :  { %1044 = vmatprep.subr.bf16.mxu1 %v10082_v0  ;;  %1001 = vmatprep.subr.bf16.mxu0 %v9170_v40  ;;  %v9246_v40 = vld [vmem:[%s13276_s5 + $0x110] ss:$12 sps:$4 sm:$0xff]  }
  0x7f   :  { %1045 = vmatpush1.bf16.msra.mxu1 %v9171_v41  ;;  %1002 = vmatpush1.bf16.msra.mxu0 %v9168_v42  ;;  %v1129_v41 = vld [vmem:[%s13276_s5 + $0x120] sm:$0xff]  ;;  %v9243_v42 = vld [vmem:[%s13276_s5 + $0x108] ss:$12 sps:$4 sm:$0xff]  }
  0x80   :  { %1046 = vmatprep.subr.bf16.mxu1 %v10082_v0  ;;  %1003 = vmatprep.subr.bf16.mxu0 %v9174_v43  ;;  %v9248_v43 = vld [vmem:[%s13276_s5 + $0x128] ss:$0 sps:$4 sm:$0xff]  }
  0x83   :  { %1047 = vmatpush1.bf16.msra.mxu1 %v9175_v44  ;;  %1004 = vmatpush1.bf16.msra.mxu0 %v9172_v46  ;;  %v7483_v44 = vcombine.high %v1129_v41, %v1129_v41  ;;  %v7482_v46 = vcombine.low %v1129_v41, %v1129_v41 }
  0x84   :  { %1048 = vmatprep.subr.bf16.mxu1 %v10082_v0  ;;  %1005 = vmatprep.subr.bf16.mxu0 %v9178_v47  ;;  %v1338_v47 = vsel %vm289_vm1, %v9248_v43, 0 }
  0x87   :  { %1049 = vmatpush1.bf16.msra.mxu1 %v9179_v48  ;;  %1006 = vmatpush1.bf16.msra.mxu0 %v9176_v49  ;;  %v9252_v48 = vld [vmem:[%s13272_s2 + $0x130] ss:$12 sps:$4 sm:$0xff]   ;;  %v1332_v49 = vsel %vm289_vm1, %v7482_v46, 0 }
  0x88   :  { %1050 = vmatprep.subr.bf16.mxu1 %v10082_v0  ;;  %1007 = vmatprep.subr.bf16.mxu0 %v9182_v50  ;;  %v9253_v50 = vld [vmem:[%s13272_s2 + $0x134] ss:$12 sps:$4 sm:$0xff]   ;;  %v9312_v46 = vld [vmem:[%s13274_s3 + $0x15c] ss:$12 sps:$4 sm:$0xff]  }
  0x8b   :  { %1051 = vmatpush1.bf16.msra.mxu1 %v9183_v51  ;;  %1008 = vmatpush1.bf16.msra.mxu0 %v9180_v52  ;;  %v9250_v51 = vld [vmem:[%s13272_s2 + $0x12c] ss:$12 sps:$4 sm:$0xff]   ;;  %v9256_v52 = vld [vmem:[%s13272_s2 + $0x148] ss:$12 sps:$4 sm:$0xff]  }
  0x8c   :  { %1052 = vmatprep.subr.bf16.mxu1 %v10082_v0  ;;  %1009 = vmatprep.subr.bf16.mxu0 %v9186_v53  ;;  %v9257_v53 = vld [vmem:[%s13272_s2 + $0x14c] ss:$12 sps:$4 sm:$0xff]  }
  0x8f   :  { %1053 = vmatpush1.bf16.msra.mxu1 %v9187_v54  ;;  %1010 = vmatpush1.bf16.msra.mxu0 %v9184_v55  ;;  %v10697_v54 = vld [vmem:[%s13273_s0 + $0x14] ss:$8 sps:$4 sm:$0xff]   ;;  %v10078_v55 = vld [vmem:[%s13273_s0] ss:$8 sps:$4 sm:$0xff]  }
  0x90   :  { %1054 = vmatprep.subr.bf16.mxu1 %v10082_v0  ;;  %1011 = vmatprep.subr.bf16.mxu0 %v9190_v56  ;;  %v9254_v56 = vld [vmem:[%s13272_s2 + $0x144] ss:$12 sps:$4 sm:$0xff]  }
  0x93   :  { %1055 = vmatpush1.bf16.msra.mxu1 %v9191_v57  ;;  %1012 = vmatpush1.bf16.msra.mxu0 %v9188_v58  ;;  %v9260_v57 = vld [vmem:[%s13272_s2 + $0x160] ss:$12 sps:$4 sm:$0xff]   ;;  %v9261_v58 = vld [vmem:[%s13272_s2 + $0x164] ss:$12 sps:$4 sm:$0xff]  }
  0x94   :  { %1056 = vmatprep.subr.bf16.mxu1 %v10082_v0  ;;  %1013 = vmatprep.subr.bf16.mxu0 %v9194_v59  ;;  %v9258_v59 = vld [vmem:[%s13272_s2 + $0x15c] ss:$12 sps:$4 sm:$0xff]  }
  0x97   :  { %1057 = vmatpush1.bf16.msra.mxu1 %v9195_v62  ;;  %1014 = vmatpush1.bf16.msra.mxu0 %v9192_v60  ;;  %v9264_v60 = vld [vmem:[%s13272_s2 + $0x178] ss:$12 sps:$4 sm:$0xff]   ;;  %v9262_v62 = vld [vmem:[%s13272_s2 + $0x174] ss:$12 sps:$4 sm:$0xff]  }
  0x98   :  { %1058 = vmatprep.subr.bf16.mxu1 %v10082_v0  ;;  %7443 = vmatprep.subr.msk.bf16.mxu0 %vm289_vm1, %v7441_v1  ;;  %v9269_v1 = vld [vmem:[%s13272_s2 + $0x194] ss:$12 sps:$4 sm:$0xff]  }
  0x9b   :  { %1059 = vmatpush1.bf16.msra.mxu1 %v989_v3  ;;  %1016 = vmatpush1.bf16.msra.mxu0 %v983_v4  ;;  %v9272_v3 = vld [vmem:[%s13272_s2 + $0x1a8] ss:$12 sps:$4 sm:$0xff]   ;;  %v9273_v4 = vld [vmem:[%s13272_s2 + $0x1ac] ss:$12 sps:$4 sm:$0xff]  }
  0x9c   :  { %1383 = vmatprep.subr.bf16.mxu1 %v10082_v0  ;;  %1340 = vmatprep.subr.bf16.mxu0 %v9201_v5  ;;  %v9270_v5 = vld [vmem:[%s13272_s2 + $0x1a4] ss:$12 sps:$4 sm:$0xff]  }
  0x9e   :  { %1067 = vmatmul.mubr.bf16.vlgmr.msra.gmra.mrb[8].mxu1 %v10265_v45  ;;  %1024 = vmatmul.mubr.bf16.vlgmr.msra.gmra.mrb[8].mxu0 %v10265_v45  ;;  %v9210_v45 = vld [vmem:[%s13276_s5 + $0x38] ss:$12 sps:$4 sm:$0xff]  }
  0x9f   :  { %1384 = vmatpush1.bf16.msra.mxu1 %v9202_v6  ;;  %1341 = vmatpush1.bf16.msra.mxu0 %v9199_v7  ;;  %v9276_v6 = vld [vmem:[%s13272_s2 + $0x1c0] ss:$12 sps:$4 sm:$0xff]   ;;  %v9277_v7 = vld [vmem:[%s13272_s2 + $0x1c4] ss:$12 sps:$4 sm:$0xff]  }
  0xa0   :  { %1385 = vmatprep.subr.bf16.mxu1 %v10082_v0  ;;  %1342 = vmatprep.subr.bf16.mxu0 %v9205_v8  ;;  %v9274_v8 = vld [vmem:[%s13272_s2 + $0x1bc] ss:$12 sps:$4 sm:$0xff]  }
  0xa1   :  { %7487 = vmatprep.mubr.msk.bf16.mxu1 %vm285_vm0, %v10206_v26  ;;  %7486 = vmatprep.mubr.msk.bf16.mxu0 %vm285_vm0, %v10206_v26  ;;  %v9214_v26 = vld [vmem:[%s13276_s5 + $0x50] ss:$12 sps:$4 sm:$0xff]  }
  0xa3   :  { %1386 = vmatpush1.bf16.msra.mxu1 %v9206_v9  ;;  %1343 = vmatpush1.bf16.msra.mxu0 %v9203_v10  ;;  %v9280_v9 = vld [vmem:[%s13272_s2 + $0x1d8] ss:$12 sps:$4 sm:$0xff]   ;;  %v9281_v10 = vld [vmem:[%s13272_s2 + $0x1dc] ss:$12 sps:$4 sm:$0xff]  }
  0xa4   :  { %1387 = vmatprep.subr.bf16.mxu1 %v10082_v0  ;;  %1344 = vmatprep.subr.bf16.mxu0 %v9209_v11  ;;  %v9278_v11 = vld [vmem:[%s13272_s2 + $0x1d4] ss:$12 sps:$4 sm:$0xff]  }
  0xa7   :  { %1388 = vmatpush1.bf16.msra.mxu1 %v9210_v45  ;;  %1345 = vmatpush1.bf16.msra.mxu0 %v9207_v12  ;;  %v9284_v45 = vld [vmem:[%s13272_s2 + $0x1f0] ss:$12 sps:$4 sm:$0xff]   ;;  %v9282_v12 = vld [vmem:[%s13272_s2 + $0x1ec] ss:$12 sps:$4 sm:$0xff]  }
  0xa8   :  { %1389 = vmatprep.subr.bf16.mxu1 %v10082_v0  ;;  %1346 = vmatprep.subr.bf16.mxu0 %v9213_v13  ;;  %v9285_v13 = vld [vmem:[%s13272_s2 + $0x1f4] ss:$12 sps:$4 sm:$0xff]  }
  0xab   :  { %1390 = vmatpush1.bf16.msra.mxu1 %v9214_v26  ;;  %1347 = vmatpush1.bf16.msra.mxu0 %v9211_v15  ;;  %v9288_v26 = vld [vmem:[%s13272_s2 + $0x208] ss:$12 sps:$4 sm:$0xff]   ;;  %v9289_v15 = vld [vmem:[%s13272_s2 + $0x20c] ss:$12 sps:$4 sm:$0xff]  }
  0xac   :  { %1391 = vmatprep.subr.bf16.mxu1 %v10082_v0  ;;  %1348 = vmatprep.subr.bf16.mxu0 %v9217_v16  ;;  %v9292_v16 = vld [vmem:[%s13272_s2 + $0x220] ss:$12 sps:$4 sm:$0xff]  }
  0xaf   :  { %1392 = vmatpush1.bf16.msra.mxu1 %v9218_v18  ;;  %1349 = vmatpush1.bf16.msra.mxu0 %v9215_v19  ;;  %v9290_v18 = vld [vmem:[%s13272_s2 + $0x21c] ss:$12 sps:$4 sm:$0xff]   ;;  %v9296_v19 = vld [vmem:[%s13272_s2 + $0x238] ss:$12 sps:$4 sm:$0xff]  }
  0xb0   :  { %1393 = vmatprep.subr.bf16.mxu1 %v10082_v0  ;;  %1350 = vmatprep.subr.bf16.mxu0 %v9221_v20  ;;  %v9297_v20 = vld [vmem:[%s13272_s2 + $0x23c] ss:$12 sps:$4 sm:$0xff]  }
  0xb3   :  { %1394 = vmatpush1.bf16.msra.mxu1 %v9222_v21  ;;  %1351 = vmatpush1.bf16.msra.mxu0 %v9219_v22  ;;  %v7542_v21 = vld [vmem:[%s13272_s2 + $0x24c] sm:$0xff]  ;;  %v9294_v22 = vld [vmem:[%s13272_s2 + $0x234] ss:$12 sps:$4 sm:$0xff]  }
  0xb4   :  { %1395 = vmatprep.subr.bf16.mxu1 %v10082_v0  ;;  %1352 = vmatprep.subr.bf16.mxu0 %v9225_v23  ;;  %v9299_v23 = vld [vmem:[%s13272_s2 + $0x254] ss:$0 sps:$4 sm:$0xff]  }
  0xb7   :  { %1396 = vmatpush1.bf16.msra.mxu1 %v9226_v24  ;;  %1353 = vmatpush1.bf16.msra.mxu0 %v9223_v25  ;;  %v7583_v24 = vcombine.high %v7542_v21, %v7542_v21  ;;  %v7582_v25 = vcombine.low %v7542_v21, %v7542_v21  ;;  %v9362_v21 = vld [vmem:[%s13275_s4 + $0x14c] ss:$12 sps:$4 sm:$0xff]  }
  0xb8   :  { %1397 = vmatprep.subr.bf16.mxu1 %v10082_v0  ;;  %1354 = vmatprep.subr.bf16.mxu0 %v9229_v27  ;;  %v1751_v27 = vsel %vm289_vm1, %v9299_v23, 0  ;;  %v9365_v23 = vld [vmem:[%s13275_s4 + $0x160] ss:$12 sps:$4 sm:$0xff]  }
  0xbb   :  { %1398 = vmatpush1.bf16.msra.mxu1 %v9230_v28  ;;  %1355 = vmatpush1.bf16.msra.mxu0 %v9227_v29  ;;  %v10821_v28 = vld [vmem:[%s13273_s0 + $0x10] ss:$8 sps:$4 sm:$0xff]  }
  0xbc   :  { %1399 = vmatprep.subr.bf16.mxu1 %v10082_v0  ;;  %1356 = vmatprep.subr.bf16.mxu0 %v9233_v30  ;;  %v9306_v29 = vld [vmem:[%s13274_s3 + $0x130] ss:$12 sps:$4 sm:$0xff]   ;;  %v1745_v30 = vsel %vm289_vm1, %v7582_v25, 0 }
  0xbd   :  { %v9366_v25 = vld [vmem:[%s13275_s4 + $0x164] ss:$12 sps:$4 sm:$0xff]  }
  0xbf   :  { %1400 = vmatpush1.bf16.msra.mxu1 %v9234_v32  ;;  %1357 = vmatpush1.bf16.msra.mxu0 %v9231_v31  ;;  %v9307_v31 = vld [vmem:[%s13274_s3 + $0x134] ss:$12 sps:$4 sm:$0xff]   ;;  %v9304_v32 = vld [vmem:[%s13274_s3 + $0x12c] ss:$12 sps:$4 sm:$0xff]  }
  0xc0   :  { %1401 = vmatprep.subr.bf16.mxu1 %v10082_v0  ;;  %1358 = vmatprep.subr.bf16.mxu0 %v9237_v33  ;;  %v9310_v33 = vld [vmem:[%s13274_s3 + $0x148] ss:$12 sps:$4 sm:$0xff]  }
  0xc3   :  { %1402 = vmatpush1.bf16.msra.mxu1 %v9238_v35  ;;  %1359 = vmatpush1.bf16.msra.mxu0 %v9235_v34  ;;  %v9311_v34 = vld [vmem:[%s13274_s3 + $0x14c] ss:$12 sps:$4 sm:$0xff]   ;;  %v9308_v35 = vld [vmem:[%s13274_s3 + $0x144] ss:$12 sps:$4 sm:$0xff]  }
  0xc4   :  { %1403 = vmatprep.subr.bf16.mxu1 %v10082_v0  ;;  %1360 = vmatprep.subr.bf16.mxu0 %v9241_v36  ;;  %v9314_v36 = vld [vmem:[%s13274_s3 + $0x160] ss:$12 sps:$4 sm:$0xff]  }
  0xc7   :  { %1404 = vmatpush1.bf16.msra.mxu1 %v9242_v37  ;;  %1361 = vmatpush1.bf16.msra.mxu0 %v9239_v38  ;;  %v9315_v38 = vld [vmem:[%s13274_s3 + $0x164] ss:$12 sps:$4 sm:$0xff]  }
  0xc8   :  { %1405 = vmatprep.subr.bf16.mxu1 %v10082_v0  ;;  %1362 = vmatprep.subr.bf16.mxu0 %v9245_v39 }
  0xcb   :  { %1406 = vmatpush1.bf16.msra.mxu1 %v9246_v40  ;;  %1363 = vmatpush1.bf16.msra.mxu0 %v9243_v42 }
  0xcc   :  { %1407 = vmatprep.subr.bf16.mxu1 %v10082_v0  ;;  %7485 = vmatprep.subr.msk.bf16.mxu0 %vm289_vm1, %v7483_v44 }
  0xcf   :  { %1408 = vmatpush1.bf16.msra.mxu1 %v1338_v47  ;;  %1365 = vmatpush1.bf16.msra.mxu0 %v1332_v49  ;;  %v9318_v47 = vld [vmem:[%s13274_s3 + $0x178] ss:$12 sps:$4 sm:$0xff]   ;;  %v9319_v49 = vld [vmem:[%s13274_s3 + $0x17c] ss:$12 sps:$4 sm:$0xff]  }
  0xd0   :  { %1796 = vmatprep.subr.bf16.mxu1 %v10082_v0  ;;  %1753 = vmatprep.subr.bf16.mxu0 %v9252_v48 }
  0xd2   :  { %1416 = vmatmul.mubr.bf16.vlgmr.msra.gmra.mrb[12].mxu1 %v10078_v55  ;;  %1373 = vmatmul.mubr.bf16.vlgmr.msra.gmra.mrb[12].mxu0 %v10078_v55  ;;  %v9326_v55 = vld [vmem:[%s13274_s3 + $0x1a8] ss:$12 sps:$4 sm:$0xff]  }
  0xd3   :  { %1797 = vmatpush1.bf16.msra.mxu1 %v9253_v50  ;;  %1754 = vmatpush1.bf16.msra.mxu0 %v9250_v51  ;;  %v9316_v50 = vld [vmem:[%s13274_s3 + $0x174] ss:$12 sps:$4 sm:$0xff]   ;;  %v9322_v51 = vld [vmem:[%s13274_s3 + $0x190] ss:$12 sps:$4 sm:$0xff]  }
  0xd4   :  { %1798 = vmatprep.subr.bf16.mxu1 %v10082_v0  ;;  %1755 = vmatprep.subr.bf16.mxu0 %v9256_v52  ;;  %v9323_v52 = vld [vmem:[%s13274_s3 + $0x194] ss:$12 sps:$4 sm:$0xff]  }
  0xd5   :  { %7587 = vmatprep.mubr.msk.bf16.mxu1 %vm285_vm0, %v10697_v54  ;;  %7586 = vmatprep.mubr.msk.bf16.mxu0 %vm285_vm0, %v10697_v54 }
  0xd7   :  { %1799 = vmatpush1.bf16.msra.mxu1 %v9257_v53  ;;  %1756 = vmatpush1.bf16.msra.mxu0 %v9254_v56  ;;  %v9320_v53 = vld [vmem:[%s13274_s3 + $0x18c] ss:$12 sps:$4 sm:$0xff]  }
  0xd8   :  { %1800 = vmatprep.subr.bf16.mxu1 %v10082_v0  ;;  %1757 = vmatprep.subr.bf16.mxu0 %v9260_v57  ;;  %v9327_v56 = vld [vmem:[%s13274_s3 + $0x1ac] ss:$12 sps:$4 sm:$0xff]   ;;  %v9324_v57 = vld [vmem:[%s13274_s3 + $0x1a4] ss:$12 sps:$4 sm:$0xff]  }
  0xdb   :  { %1801 = vmatpush1.bf16.msra.mxu1 %v9261_v58  ;;  %1758 = vmatpush1.bf16.msra.mxu0 %v9258_v59  ;;  %v9330_v58 = vld [vmem:[%s13274_s3 + $0x1c0] ss:$12 sps:$4 sm:$0xff]   ;;  %v9331_v59 = vld [vmem:[%s13274_s3 + $0x1c4] ss:$12 sps:$4 sm:$0xff]  }
  0xdc   :  { %1802 = vmatprep.subr.bf16.mxu1 %v10082_v0  ;;  %1759 = vmatprep.subr.bf16.mxu0 %v9264_v60  ;;  %v9328_v60 = vld [vmem:[%s13274_s3 + $0x1bc] ss:$12 sps:$4 sm:$0xff]  }
  0xdf   :  { %1803 = vmatpush1.bf16.msra.mxu1 %v9265_v61  ;;  %1760 = vmatpush1.bf16.msra.mxu0 %v9262_v62  ;;  %v9334_v61 = vld [vmem:[%s13274_s3 + $0x1d8] ss:$12 sps:$4 sm:$0xff]   ;;  %v9335_v62 = vld [vmem:[%s13274_s3 + $0x1dc] ss:$12 sps:$4 sm:$0xff]  }
  0xe0   :  { %1804 = vmatprep.subr.bf16.mxu1 %v10082_v0  ;;  %1761 = vmatprep.subr.bf16.mxu0 %v9268_v63  ;;  %v9332_v63 = vld [vmem:[%s13274_s3 + $0x1d4] ss:$12 sps:$4 sm:$0xff]  }
  0xe3   :  { %1805 = vmatpush1.bf16.msra.mxu1 %v9269_v1  ;;  %1762 = vmatpush1.bf16.msra.mxu0 %v9266_v2  ;;  %v9338_v1 = vld [vmem:[%s13274_s3 + $0x1f0] ss:$12 sps:$4 sm:$0xff]   ;;  %v9336_v2 = vld [vmem:[%s13274_s3 + $0x1ec] ss:$12 sps:$4 sm:$0xff]  }
  0xe4   :  { %1806 = vmatprep.subr.bf16.mxu1 %v10082_v0  ;;  %1763 = vmatprep.subr.bf16.mxu0 %v9272_v3  ;;  %v9339_v3 = vld [vmem:[%s13274_s3 + $0x1f4] ss:$12 sps:$4 sm:$0xff]  }
  0xe7   :  { %1807 = vmatpush1.bf16.msra.mxu1 %v9273_v4  ;;  %1764 = vmatpush1.bf16.msra.mxu0 %v9270_v5  ;;  %v9342_v4 = vld [vmem:[%s13274_s3 + $0x208] ss:$12 sps:$4 sm:$0xff]   ;;  %v9340_v5 = vld [vmem:[%s13274_s3 + $0x204] ss:$12 sps:$4 sm:$0xff]  }
  0xe8   :  { %1808 = vmatprep.subr.bf16.mxu1 %v10082_v0  ;;  %1765 = vmatprep.subr.bf16.mxu0 %v9276_v6  ;;  %v9343_v6 = vld [vmem:[%s13274_s3 + $0x20c] ss:$12 sps:$4 sm:$0xff]  }
  0xeb   :  { %1809 = vmatpush1.bf16.msra.mxu1 %v9277_v7  ;;  %1766 = vmatpush1.bf16.msra.mxu0 %v9274_v8  ;;  %v9346_v7 = vld [vmem:[%s13274_s3 + $0x220] ss:$12 sps:$4 sm:$0xff]   ;;  %v9344_v8 = vld [vmem:[%s13274_s3 + $0x21c] ss:$12 sps:$4 sm:$0xff]  }
  0xec   :  { %1810 = vmatprep.subr.bf16.mxu1 %v10082_v0  ;;  %1767 = vmatprep.subr.bf16.mxu0 %v9280_v9  ;;  %v9347_v9 = vld [vmem:[%s13274_s3 + $0x224] ss:$12 sps:$4 sm:$0xff]  }
  0xef   :  { %1811 = vmatpush1.bf16.msra.mxu1 %v9281_v10  ;;  %1768 = vmatpush1.bf16.msra.mxu0 %v9278_v11  ;;  %v9350_v10 = vld [vmem:[%s13274_s3 + $0x238] ss:$12 sps:$4 sm:$0xff]   ;;  %v9351_v11 = vld [vmem:[%s13274_s3 + $0x23c] ss:$12 sps:$4 sm:$0xff]  }
  0xf0   :  { %1812 = vmatprep.subr.bf16.mxu1 %v10082_v0  ;;  %1769 = vmatprep.subr.bf16.mxu0 %v9284_v45  ;;  %v7636_v45 = vld [vmem:[%s13274_s3 + $0x24c] sm:$0xff] }
  0xf3   :  { %1813 = vmatpush1.bf16.msra.mxu1 %v9285_v13  ;;  %1770 = vmatpush1.bf16.msra.mxu0 %v9282_v12  ;;  %v9348_v12 = vld [vmem:[%s13274_s3 + $0x234] ss:$12 sps:$4 sm:$0xff]  }
  0xf4   :  { %1814 = vmatprep.subr.bf16.mxu1 %v10082_v0  ;;  %1771 = vmatprep.subr.bf16.mxu0 %v9288_v26  ;;  %v9353_v13 = vld [vmem:[%s13274_s3 + $0x254] ss:$0 sps:$4 sm:$0xff]   ;;  %v7674_v26 = vcombine.low %v7636_v45, %v7636_v45 }
  0xf7   :  { %1815 = vmatpush1.bf16.msra.mxu1 %v9289_v15  ;;  %1772 = vmatpush1.bf16.msra.mxu0 %v9286_v14  ;;  %v7675_v14 = vcombine.high %v7636_v45, %v7636_v45  ;;  %v2095_v15 = vsel %vm289_vm1, %v9353_v13, 0  ;;  %v7728_v45 = vld [vmem:[%s13275_s4 + $0x24c] sm:$0xff]  ;;  %v9404_v13 = vld [vmem:[%s13275_s4 + $0x254] ss:$0 sps:$4 sm:$0xff]  }
  0xf8   :  { %1816 = vmatprep.subr.bf16.mxu1 %v10082_v0  ;;  %1773 = vmatprep.subr.bf16.mxu0 %v9292_v16  ;;  %v2089_v16 = vsel %vm289_vm1, %v7674_v26, 0  ;;  %v7767_v26 = vcombine.high %v7728_v45, %v7728_v45 }
  0xfb   :  { %1817 = vmatpush1.bf16.msra.mxu1 %v9293_v17  ;;  %1774 = vmatpush1.bf16.msra.mxu0 %v9290_v18  ;;  %v9357_v17 = vld [vmem:[%s13275_s4 + $0x130] ss:$12 sps:$4 sm:$0xff]   ;;  %v9358_v18 = vld [vmem:[%s13275_s4 + $0x134] ss:$12 sps:$4 sm:$0xff]  }
  0xfc   :  { %1818 = vmatprep.subr.bf16.mxu1 %v10082_v0  ;;  %1775 = vmatprep.subr.bf16.mxu0 %v9296_v19  ;;  %v9355_v19 = vld [vmem:[%s13275_s4 + $0x12c] ss:$12 sps:$4 sm:$0xff]  }
  0xff   :  { %1819 = vmatpush1.bf16.msra.mxu1 %v9297_v20  ;;  %1776 = vmatpush1.bf16.msra.mxu0 %v9294_v22  ;;  %v9361_v20 = vld [vmem:[%s13275_s4 + $0x148] ss:$12 sps:$4 sm:$0xff]   ;;  %v9359_v22 = vld [vmem:[%s13275_s4 + $0x144] ss:$12 sps:$4 sm:$0xff]  }
 0x100   :  { %1820 = vmatprep.subr.bf16.mxu1 %v10082_v0  ;;  %7585 = vmatprep.subr.msk.bf16.mxu0 %vm289_vm1, %v7583_v24 }
 0x103   :  { %1821 = vmatpush1.bf16.msra.mxu1 %v1751_v27  ;;  %1778 = vmatpush1.bf16.msra.mxu0 %v1745_v30 }
 0x104   :  { %2140 = vmatprep.subr.bf16.mxu1 %v10082_v0  ;;  %2097 = vmatprep.subr.bf16.mxu0 %v9306_v29 }
 0x106   :  { %1829 = vmatmul.mubr.bf16.vlgmr.msra.gmra.mrb[16].mxu1 %v10821_v28  ;;  %1786 = vmatmul.mubr.bf16.vlgmr.msra.gmra.mrb[16].mxu0 %v10821_v28 }
 0x107   :  { %2141 = vmatpush1.bf16.msra.mxu1 %v9307_v31  ;;  %2098 = vmatpush1.bf16.msra.mxu0 %v9304_v32 }
 0x108   :  { %2142 = vmatprep.subr.bf16.mxu1 %v10082_v0  ;;  %2099 = vmatprep.subr.bf16.mxu0 %v9310_v33 }
 0x109   :  { %v10850_v37 = vpop.f32.mrb[0].mxu1  ;;  %7679 = vmatprep.mubr.msk.bf16.mxu1 %vm285_vm0, %v10697_v54  ;;  %v10857_v39 = vpop.f32.mrb[0].mxu0  ;;  %7678 = vmatprep.mubr.msk.bf16.mxu0 %vm285_vm0, %v10697_v54 }
 0x10a   :  { %v378_v40 = vpop.f32.mrb[1].mxu1  ;;  %v10861_v41 = vpop.f32.mrb[1].mxu0 }
 0x10b   :  { %v10863_v42 = vpop.f32.mrb[2].mxu1  ;;  %2143 = vmatpush1.bf16.msra.mxu1 %v9311_v34  ;;  %v10865_v43 = vpop.f32.mrb[2].mxu0  ;;  %2100 = vmatpush1.bf16.msra.mxu0 %v9308_v35  ;;  %v9369_v40 = vld [vmem:[%s13275_s4 + $0x178] ss:$12 sps:$4 sm:$0xff]  }
 0x10c   :  { %v381_v44 = vpop.f32.mrb[3].mxu1  ;;  %2144 = vmatprep.subr.bf16.mxu1 %v10082_v0  ;;  %v10874_v48 = vpop.f32.mrb[3].mxu0  ;;  %2101 = vmatprep.subr.bf16.mxu0 %v9314_v36 }
 0x10f   :  { %2145 = vmatpush1.bf16.msra.mxu1 %v9315_v38  ;;  %2102 = vmatpush1.bf16.msra.mxu0 %v9312_v46 }
 0x110   :  { %2146 = vmatprep.subr.bf16.mxu1 %v10082_v0  ;;  %2103 = vmatprep.subr.bf16.mxu0 %v9318_v47  ;;  %v9370_v47 = vld [vmem:[%s13275_s4 + $0x17c] ss:$12 sps:$4 sm:$0xff]  }
 0x113   :  { %2147 = vmatpush1.bf16.msra.mxu1 %v9319_v49  ;;  %2104 = vmatpush1.bf16.msra.mxu0 %v9316_v50  ;;  %v9367_v50 = vld [vmem:[%s13275_s4 + $0x174] ss:$12 sps:$4 sm:$0xff]  }
 0x114   :  { %2148 = vmatprep.subr.bf16.mxu1 %v10082_v0  ;;  %2105 = vmatprep.subr.bf16.mxu0 %v9322_v51  ;;  %v9373_v51 = vld [vmem:[%s13275_s4 + $0x190] ss:$12 sps:$4 sm:$0xff]  }
 0x117   :  { %2149 = vmatpush1.bf16.msra.mxu1 %v9323_v52  ;;  %2106 = vmatpush1.bf16.msra.mxu0 %v9320_v53  ;;  %v9374_v52 = vld [vmem:[%s13275_s4 + $0x194] ss:$12 sps:$4 sm:$0xff]   ;;  %v9371_v53 = vld [vmem:[%s13275_s4 + $0x18c] ss:$12 sps:$4 sm:$0xff]  }
 0x118   :  { %2150 = vmatprep.subr.bf16.mxu1 %v10082_v0  ;;  %2107 = vmatprep.subr.bf16.mxu0 %v9326_v55  ;;  %v9377_v55 = vld [vmem:[%s13275_s4 + $0x1a8] ss:$12 sps:$4 sm:$0xff]  }
 0x11b   :  { %2151 = vmatpush1.bf16.msra.mxu1 %v9327_v56  ;;  %2108 = vmatpush1.bf16.msra.mxu0 %v9324_v57  ;;  %v9378_v56 = vld [vmem:[%s13275_s4 + $0x1ac] ss:$12 sps:$4 sm:$0xff]   ;;  %v9375_v57 = vld [vmem:[%s13275_s4 + $0x1a4] ss:$12 sps:$4 sm:$0xff]  }
 0x11c   :  { %2152 = vmatprep.subr.bf16.mxu1 %v10082_v0  ;;  %2109 = vmatprep.subr.bf16.mxu0 %v9330_v58  ;;  %v9381_v58 = vld [vmem:[%s13275_s4 + $0x1c0] ss:$12 sps:$4 sm:$0xff]  }
 0x11f   :  { %2153 = vmatpush1.bf16.msra.mxu1 %v9331_v59  ;;  %2110 = vmatpush1.bf16.msra.mxu0 %v9328_v60  ;;  %v9382_v59 = vld [vmem:[%s13275_s4 + $0x1c4] ss:$12 sps:$4 sm:$0xff]   ;;  %v9379_v60 = vld [vmem:[%s13275_s4 + $0x1bc] ss:$12 sps:$4 sm:$0xff]  }
 0x120   :  { %2154 = vmatprep.subr.bf16.mxu1 %v10082_v0  ;;  %2111 = vmatprep.subr.bf16.mxu0 %v9334_v61  ;;  %v9385_v61 = vld [vmem:[%s13275_s4 + $0x1d8] ss:$12 sps:$4 sm:$0xff]  }
 0x123   :  { %2155 = vmatpush1.bf16.msra.mxu1 %v9335_v62  ;;  %2112 = vmatpush1.bf16.msra.mxu0 %v9332_v63  ;;  %v9386_v62 = vld [vmem:[%s13275_s4 + $0x1dc] ss:$12 sps:$4 sm:$0xff]   ;;  %v9383_v63 = vld [vmem:[%s13275_s4 + $0x1d4] ss:$12 sps:$4 sm:$0xff]  }
 0x124   :  { %2156 = vmatprep.subr.bf16.mxu1 %v10082_v0  ;;  %2113 = vmatprep.subr.bf16.mxu0 %v9338_v1  ;;  %v9389_v1 = vld [vmem:[%s13275_s4 + $0x1f0] ss:$12 sps:$4 sm:$0xff]  }
 0x127   :  { %2157 = vmatpush1.bf16.msra.mxu1 %v9339_v3  ;;  %2114 = vmatpush1.bf16.msra.mxu0 %v9336_v2  ;;  %v9387_v2 = vld [vmem:[%s13275_s4 + $0x1ec] ss:$12 sps:$4 sm:$0xff]   ;;  %v9390_v3 = vld [vmem:[%s13275_s4 + $0x1f4] ss:$12 sps:$4 sm:$0xff]  }
 0x128   :  { %2158 = vmatprep.subr.bf16.mxu1 %v10082_v0  ;;  %2115 = vmatprep.subr.bf16.mxu0 %v9342_v4  ;;  %v9393_v4 = vld [vmem:[%s13275_s4 + $0x208] ss:$12 sps:$4 sm:$0xff]  }
 0x12b   :  { %2159 = vmatpush1.bf16.msra.mxu1 %v9343_v6  ;;  %2116 = vmatpush1.bf16.msra.mxu0 %v9340_v5  ;;  %v9391_v5 = vld [vmem:[%s13275_s4 + $0x204] ss:$12 sps:$4 sm:$0xff]   ;;  %v9394_v6 = vld [vmem:[%s13275_s4 + $0x20c] ss:$12 sps:$4 sm:$0xff]  }
 0x12c   :  { %2160 = vmatprep.subr.bf16.mxu1 %v10082_v0  ;;  %2117 = vmatprep.subr.bf16.mxu0 %v9346_v7  ;;  %v9397_v7 = vld [vmem:[%s13275_s4 + $0x220] ss:$12 sps:$4 sm:$0xff]  }
 0x12f   :  { %2161 = vmatpush1.bf16.msra.mxu1 %v9347_v9  ;;  %2118 = vmatpush1.bf16.msra.mxu0 %v9344_v8  ;;  %v9398_v8 = vld [vmem:[%s13275_s4 + $0x224] ss:$12 sps:$4 sm:$0xff]   ;;  %v9395_v9 = vld [vmem:[%s13275_s4 + $0x21c] ss:$12 sps:$4 sm:$0xff]  }
 0x130   :  { %2162 = vmatprep.subr.bf16.mxu1 %v10082_v0  ;;  %2119 = vmatprep.subr.bf16.mxu0 %v9350_v10  ;;  %v9401_v10 = vld [vmem:[%s13275_s4 + $0x238] ss:$12 sps:$4 sm:$0xff]  }
 0x133   :  { %2163 = vmatpush1.bf16.msra.mxu1 %v9351_v11  ;;  %2120 = vmatpush1.bf16.msra.mxu0 %v9348_v12  ;;  %v9402_v11 = vld [vmem:[%s13275_s4 + $0x23c] ss:$12 sps:$4 sm:$0xff]   ;;  %v9399_v12 = vld [vmem:[%s13275_s4 + $0x234] ss:$12 sps:$4 sm:$0xff]  }
 0x134   :  { %2164 = vmatprep.subr.bf16.mxu1 %v10082_v0  ;;  %7677 = vmatprep.subr.msk.bf16.mxu0 %vm289_vm1, %v7675_v14  ;;  %v7766_v14 = vcombine.low %v7728_v45, %v7728_v45 }
 0x137   :  { %2165 = vmatpush1.bf16.msra.mxu1 %v2095_v15  ;;  %2122 = vmatpush1.bf16.msra.mxu0 %v2089_v16  ;;  %v2445_v15 = vsel %vm289_vm1, %v9404_v13, 0  ;;  %v9408_v16 = vld [vmem:[%s13276_s5 + $0x130] ss:$12 sps:$4 sm:$0xff]  }
 0x138   :  { %2490 = vmatprep.subr.bf16.mxu1 %v10082_v0  ;;  %2447 = vmatprep.subr.bf16.mxu0 %v9357_v17  ;;  %v2439_v17 = vsel %vm289_vm1, %v7766_v14, 0  ;;  %v9459_v13 = vld [vmem:[%s13272_s2 + $0x25c] ss:$12 sps:$4 sm:$0xff]   ;;  %v9460_v14 = vld [vmem:[%s13272_s2 + $0x260] ss:$12 sps:$4 sm:$0xff]  }
 0x13a   :  { %2173 = vmatmul.mubr.bf16.vlgmr.msra.gmra.mrb[20].mxu1 %v10821_v28  ;;  %2130 = vmatmul.mubr.bf16.vlgmr.msra.gmra.mrb[20].mxu0 %v10821_v28 }
 0x13b   :  { %2491 = vmatpush1.bf16.msra.mxu1 %v9358_v18  ;;  %2448 = vmatpush1.bf16.msra.mxu0 %v9355_v19  ;;  %v9409_v18 = vld [vmem:[%s13276_s5 + $0x134] ss:$12 sps:$4 sm:$0xff]   ;;  %v9406_v19 = vld [vmem:[%s13276_s5 + $0x12c] ss:$12 sps:$4 sm:$0xff]  }
 0x13c   :  { %2492 = vmatprep.subr.bf16.mxu1 %v10082_v0  ;;  %2449 = vmatprep.subr.bf16.mxu0 %v9361_v20  ;;  %v9412_v20 = vld [vmem:[%s13276_s5 + $0x148] ss:$12 sps:$4 sm:$0xff]  }
 0x13d   :  { %v10998_v24 = vpop.f32.mrb[4].mxu1  ;;  %7771 = vmatprep.mubr.msk.bf16.mxu1 %vm285_vm0, %v10697_v54  ;;  %v11007_v29 = vpop.f32.mrb[4].mxu0  ;;  %7770 = vmatprep.mubr.msk.bf16.mxu0 %vm285_vm0, %v10697_v54  ;;  %v9363_v54 = vld [vmem:[%s13275_s4 + $0x15c] ss:$12 sps:$4 sm:$0xff]  }
 0x13e   :  { %v728_v27 = vmax.f32 %v10850_v37, %v10998_v24  ;;  %v721_v30 = vpop.f32.mrb[5].mxu1  ;;  %v726_v31 = vmax.f32 %v10857_v39, %v11007_v29  ;;  %v11013_v32 = vpop.f32.mrb[5].mxu0  ;;  %v9414_v39 = vld [vmem:[%s13276_s5 + $0x15c] ss:$12 sps:$4 sm:$0xff]  }
 0x13f   :  { %v11015_v33 = vpop.f32.mrb[6].mxu1  ;;  %2493 = vmatpush1.bf16.msra.mxu1 %v9362_v21  ;;  %v727_v34 = vmax.f32 %v10861_v41, %v11013_v32  ;;  %v11021_v36 = vpop.f32.mrb[6].mxu0  ;;  %2450 = vmatpush1.bf16.msra.mxu0 %v9359_v22  ;;  %v9413_v21 = vld [vmem:[%s13276_s5 + $0x14c] ss:$12 sps:$4 sm:$0xff]   ;;  %v9410_v22 = vld [vmem:[%s13276_s5 + $0x144] ss:$12 sps:$4 sm:$0xff]  }
 0x140   :  { %v731_v35 = vmax.f32 %v10863_v42, %v11015_v33  ;;  %v724_v38 = vpop.f32.mrb[7].mxu1  ;;  %2494 = vmatprep.subr.bf16.mxu1 %v10082_v0  ;;  %v729_v44 = vmax.f32 %v10865_v43, %v11021_v36  ;;  %v11032_v46 = vpop.f32.mrb[7].mxu0  ;;  %2451 = vmatprep.subr.bf16.mxu0 %v9365_v23  ;;  %v9416_v23 = vld [vmem:[%s13276_s5 + $0x160] ss:$12 sps:$4 sm:$0xff]   ;;  %v9417_v30 = vld [vmem:[%s13276_s5 + $0x164] ss:$12 sps:$4 sm:$0xff]  }
 0x141   :  { %v730_v49 = vmax.f32 %v10874_v48, %v11032_v46  ;;  %v7864_v41 = vld [vmem:[%s13277_s1 + $0x10] sm:$0xff]  ;;  %v9421_v32 = vld [vmem:[%s13276_s5 + $0x17c] ss:$12 sps:$4 sm:$0xff]   ;;  %v9422_v36 = vld [vmem:[%s13276_s5 + $0x18c] ss:$12 sps:$4 sm:$0xff]  }
 0x142   :  { %2892 = vperm.xlu1 %9042, %v7864_v41   ;;  %v9418_v43 = vld [vmem:[%s13276_s5 + $0x174] ss:$12 sps:$4 sm:$0xff]   ;;  %v9429_v46 = vld [vmem:[%s13276_s5 + $0x1ac] ss:$12 sps:$4 sm:$0xff]  }
 0x143   :  { %2495 = vmatpush1.bf16.msra.mxu1 %v9366_v25  ;;  %2452 = vmatpush1.bf16.msra.mxu0 %v9363_v54  ;;  %v9425_v48 = vld [vmem:[%s13276_s5 + $0x194] ss:$12 sps:$4 sm:$0xff]  }
 0x144   :  { %2496 = vmatprep.subr.bf16.mxu1 %v10082_v0  ;;  %2453 = vmatprep.subr.bf16.mxu0 %v9369_v40 }
 0x147   :  { %2497 = vmatpush1.bf16.msra.mxu1 %v9370_v47  ;;  %2454 = vmatpush1.bf16.msra.mxu0 %v9367_v50 }
 0x148   :  { %2498 = vmatprep.subr.bf16.mxu1 %v10082_v0  ;;  %2455 = vmatprep.subr.bf16.mxu0 %v9373_v51 }
 0x14b   :  { %2499 = vmatpush1.bf16.msra.mxu1 %v9374_v52  ;;  %2456 = vmatpush1.bf16.msra.mxu0 %v9371_v53  ;;  %v9432_v53 = vld [vmem:[%s13276_s5 + $0x1c0] ss:$12 sps:$4 sm:$0xff]  }
 0x14c   :  { %2500 = vmatprep.subr.bf16.mxu1 %v10082_v0  ;;  %2457 = vmatprep.subr.bf16.mxu0 %v9377_v55  ;;  %v9433_v55 = vld [vmem:[%s13276_s5 + $0x1c4] ss:$12 sps:$4 sm:$0xff]  }
 0x14f   :  { %2501 = vmatpush1.bf16.msra.mxu1 %v9378_v56  ;;  %2458 = vmatpush1.bf16.msra.mxu0 %v9375_v57  ;;  %v9430_v56 = vld [vmem:[%s13276_s5 + $0x1bc] ss:$12 sps:$4 sm:$0xff]   ;;  %v9436_v57 = vld [vmem:[%s13276_s5 + $0x1d8] ss:$12 sps:$4 sm:$0xff]  }
 0x150   :  { %2502 = vmatprep.subr.bf16.mxu1 %v10082_v0  ;;  %2459 = vmatprep.subr.bf16.mxu0 %v9381_v58  ;;  %v9437_v58 = vld [vmem:[%s13276_s5 + $0x1dc] ss:$12 sps:$4 sm:$0xff]  }
 0x153   :  { %2503 = vmatpush1.bf16.msra.mxu1 %v9382_v59  ;;  %2460 = vmatpush1.bf16.msra.mxu0 %v9379_v60  ;;  %v9434_v59 = vld [vmem:[%s13276_s5 + $0x1d4] ss:$12 sps:$4 sm:$0xff]   ;;  %v9440_v60 = vld [vmem:[%s13276_s5 + $0x1f0] ss:$12 sps:$4 sm:$0xff]  }
 0x154   :  { %2504 = vmatprep.subr.bf16.mxu1 %v10082_v0  ;;  %2461 = vmatprep.subr.bf16.mxu0 %v9385_v61  ;;  %v9438_v61 = vld [vmem:[%s13276_s5 + $0x1ec] ss:$12 sps:$4 sm:$0xff]  }
 0x157   :  { %2505 = vmatpush1.bf16.msra.mxu1 %v9386_v62  ;;  %2462 = vmatpush1.bf16.msra.mxu0 %v9383_v63  ;;  %v9441_v62 = vld [vmem:[%s13276_s5 + $0x1f4] ss:$12 sps:$4 sm:$0xff]  }
 0x158   :  { %2506 = vmatprep.subr.bf16.mxu1 %v10082_v0  ;;  %2463 = vmatprep.subr.bf16.mxu0 %v9389_v1  ;;  %v9444_v63 = vld [vmem:[%s13276_s5 + $0x208] ss:$12 sps:$4 sm:$0xff]   ;;  %v9442_v1 = vld [vmem:[%s13276_s5 + $0x204] ss:$12 sps:$4 sm:$0xff]  }
 0x15b   :  { %2507 = vmatpush1.bf16.msra.mxu1 %v9390_v3  ;;  %2464 = vmatpush1.bf16.msra.mxu0 %v9387_v2  ;;  %v9445_v2 = vld [vmem:[%s13276_s5 + $0x20c] ss:$12 sps:$4 sm:$0xff]  }
 0x15c   :  { %2508 = vmatprep.subr.bf16.mxu1 %v10082_v0  ;;  %2465 = vmatprep.subr.bf16.mxu0 %v9393_v4  ;;  %v9448_v3 = vld [vmem:[%s13276_s5 + $0x220] ss:$12 sps:$4 sm:$0xff]   ;;  %v9449_v4 = vld [vmem:[%s13276_s5 + $0x224] ss:$12 sps:$4 sm:$0xff]  }
 0x15f   :  { %2509 = vmatpush1.bf16.msra.mxu1 %v9394_v6  ;;  %2466 = vmatpush1.bf16.msra.mxu0 %v9391_v5  ;;  %v9446_v5 = vld [vmem:[%s13276_s5 + $0x21c] ss:$12 sps:$4 sm:$0xff]   ;;  %v9452_v6 = vld [vmem:[%s13276_s5 + $0x238] ss:$12 sps:$4 sm:$0xff]  }
 0x160   :  { %2510 = vmatprep.subr.bf16.mxu1 %v10082_v0  ;;  %2467 = vmatprep.subr.bf16.mxu0 %v9397_v7  ;;  %v9453_v7 = vld [vmem:[%s13276_s5 + $0x23c] ss:$12 sps:$4 sm:$0xff]  }
 0x163   :  { %2511 = vmatpush1.bf16.msra.mxu1 %v9398_v8  ;;  %2468 = vmatpush1.bf16.msra.mxu0 %v9395_v9  ;;  %v7820_v8 = vld [vmem:[%s13276_s5 + $0x24c] sm:$0xff]  ;;  %v9450_v9 = vld [vmem:[%s13276_s5 + $0x234] ss:$12 sps:$4 sm:$0xff]  }
 0x164   :  { %2512 = vmatprep.subr.bf16.mxu1 %v10082_v0  ;;  %2469 = vmatprep.subr.bf16.mxu0 %v9401_v10  ;;  %v9455_v10 = vld [vmem:[%s13276_s5 + $0x254] ss:$0 sps:$4 sm:$0xff]   ;;  %v7858_v45 = vcombine.low %v7820_v8, %v7820_v8 }
 0x167   :  { %2513 = vmatpush1.bf16.msra.mxu1 %v9402_v11  ;;  %2470 = vmatpush1.bf16.msra.mxu0 %v9399_v12  ;;  %v7859_v11 = vcombine.high %v7820_v8, %v7820_v8  ;;  %v2795_v12 = vsel %vm289_vm1, %v9455_v10, 0  ;;  %v9488_v8 = vld [vmem:[%s13272_s2 + $0x308] ss:$12 sps:$4 sm:$0xff]  }
 0x168   :  { %2514 = vmatprep.subr.bf16.mxu1 %v10082_v0  ;;  %7769 = vmatprep.subr.msk.bf16.mxu0 %vm289_vm1, %v7767_v26  ;;  %v2789_v26 = vsel %vm289_vm1, %v7858_v45, 0  ;;  %v9491_v10 = vld [vmem:[%s13272_s2 + $0x31c] ss:$12 sps:$4 sm:$0xff]   ;;  %v9492_v45 = vld [vmem:[%s13272_s2 + $0x320] ss:$12 sps:$4 sm:$0xff]  }
 0x16b   :  { %2515 = vmatpush1.bf16.msra.mxu1 %v2445_v15  ;;  %2472 = vmatpush1.bf16.msra.mxu0 %v2439_v17  ;;  %v1435_v15 = vpop.permute.xlu0 %1434  ;;  %v9463_v17 = vld [vmem:[%s13272_s2 + $0x274] ss:$12 sps:$4 sm:$0xff]  }
 0x16c   :  { %2840 = vmatprep.subr.bf16.mxu1 %v10082_v0  ;;  %2797 = vmatprep.subr.bf16.mxu0 %v9408_v16  ;;  %v9457_v16 = vld [vmem:[%s13272_s2 + $0x258] ss:$12 sps:$4 sm:$0xff]  }
 0x16e   :  { %2523 = vmatmul.mubr.bf16.vlgmr.msra.gmra.mrb[24].mxu1 %v10821_v28  ;;  %2480 = vmatmul.mubr.bf16.vlgmr.msra.gmra.mrb[24].mxu0 %v10821_v28  ;;  %v10079_v28 = vld [vmem:[%s13273_s0 + $0x14] ss:$8 sps:$4 sm:$0xff]  }
 0x16f   :  { %2841 = vmatpush1.bf16.msra.mxu1 %v9409_v18  ;;  %2798 = vmatpush1.bf16.msra.mxu0 %v9406_v19  ;;  %v9464_v18 = vld [vmem:[%s13272_s2 + $0x278] ss:$12 sps:$4 sm:$0xff]  }
 0x170   :  { %2842 = vmatprep.subr.bf16.mxu1 %v10082_v0  ;;  %2799 = vmatprep.subr.bf16.mxu0 %v9412_v20  ;;  %v11325_v19 = vld [vmem:[%s13273_s0 + $0x24] ss:$8 sps:$4 sm:$0xff]   ;;  %v10080_v20 = vld [vmem:[%s13273_s0 + $0x10] ss:$8 sps:$4 sm:$0xff]  }
 0x171   :  { %v1068_v25 = vpop.f32.mrb[8].mxu1  ;;  %7863 = vmatprep.mubr.msk.bf16.mxu1 %vm285_vm0, %v10079_v28  ;;  %v1025_v54 = vpop.f32.mrb[8].mxu0  ;;  %7862 = vmatprep.mubr.msk.bf16.mxu0 %vm285_vm0, %v10079_v28 }
 0x172   :  { %v11168_v38 = vmax.f32 %v728_v27, %v1068_v25  ;;  %v1070_v40 = vpop.f32.mrb[9].mxu1  ;;  %v11174_v47 = vmax.f32 %v726_v31, %v1025_v54  ;;  %v1027_v50 = vpop.f32.mrb[9].mxu0  ;;  %v9420_v31 = vld [vmem:[%s13276_s5 + $0x178] ss:$12 sps:$4 sm:$0xff]  }
 0x173   :  { %v1071_v51 = vpop.f32.mrb[10].mxu1  ;;  %2843 = vmatpush1.bf16.msra.mxu1 %v9413_v21  ;;  %v11179_v52 = vmax.f32 %v727_v34, %v1027_v50  ;;  %v1029_v24 = vpop.f32.mrb[10].mxu0  ;;  %2800 = vmatpush1.bf16.msra.mxu0 %v9410_v22  ;;  %v9424_v34 = vld [vmem:[%s13276_s5 + $0x190] ss:$12 sps:$4 sm:$0xff]   ;;  %v9467_v22 = vld [vmem:[%s13272_s2 + $0x28c] ss:$12 sps:$4 sm:$0xff]  }
 0x174   :  { %v11184_v37 = vmax.f32 %v731_v35, %v1071_v51  ;;  %v1073_v27 = vpop.f32.mrb[11].mxu1  ;;  %2844 = vmatprep.subr.bf16.mxu1 %v10082_v0  ;;  %v11196_v29 = vmax.f32 %v729_v44, %v1029_v24  ;;  %v1031_v42 = vpop.f32.mrb[11].mxu0  ;;  %2801 = vmatprep.subr.bf16.mxu0 %v9416_v23  ;;  %v7865_v35 = vld [vmem:[%s13277_s1 + $0x18] sm:$0xff]  ;;  %v9428_v44 = vld [vmem:[%s13276_s5 + $0x1a8] ss:$12 sps:$4 sm:$0xff]  }
 0x175   :  { %v11207_v33 = vmax.f32 %v730_v49, %v1031_v42  ;;  %2897 = vperm.xlu1 %9042, %v7865_v35   ;;  %v9426_v49 = vld [vmem:[%s13276_s5 + $0x1a4] ss:$12 sps:$4 sm:$0xff]   ;;  %v1440_v25 = vpop.permute.xlu0 %1439 }
 0x176   :  { %v9461_v21 = vld [vmem:[%s13272_s2 + $0x270] ss:$12 sps:$4 sm:$0xff]  }
 0x177   :  { %2845 = vmatpush1.bf16.msra.mxu1 %v9417_v30  ;;  %2802 = vmatpush1.bf16.msra.mxu0 %v9414_v39  ;;  %v9468_v30 = vld [vmem:[%s13272_s2 + $0x290] ss:$12 sps:$4 sm:$0xff]  }
 0x178   :  { %2846 = vmatprep.subr.bf16.mxu1 %v10082_v0  ;;  %2803 = vmatprep.subr.bf16.mxu0 %v9420_v31 }
 0x17b   :  { %2847 = vmatpush1.bf16.msra.mxu1 %v9421_v32  ;;  %2804 = vmatpush1.bf16.msra.mxu0 %v9418_v43 }
 0x17c   :  { %2848 = vmatprep.subr.bf16.mxu1 %v10082_v0  ;;  %2805 = vmatprep.subr.bf16.mxu0 %v9424_v34 }
 0x17f   :  { %2849 = vmatpush1.bf16.msra.mxu1 %v9425_v48  ;;  %2806 = vmatpush1.bf16.msra.mxu0 %v9422_v36 }
 0x180   :  { %2850 = vmatprep.subr.bf16.mxu1 %v10082_v0  ;;  %2807 = vmatprep.subr.bf16.mxu0 %v9428_v44 }
 0x183   :  { %2851 = vmatpush1.bf16.msra.mxu1 %v9429_v46  ;;  %2808 = vmatpush1.bf16.msra.mxu0 %v9426_v49 }
 0x184   :  { %2852 = vmatprep.subr.bf16.mxu1 %v10082_v0  ;;  %2809 = vmatprep.subr.bf16.mxu0 %v9432_v53 }
 0x187   :  { %2853 = vmatpush1.bf16.msra.mxu1 %v9433_v55  ;;  %2810 = vmatpush1.bf16.msra.mxu0 %v9430_v56 }
 0x188   :  { %2854 = vmatprep.subr.bf16.mxu1 %v10082_v0  ;;  %2811 = vmatprep.subr.bf16.mxu0 %v9436_v57  ;;  %v9475_v57 = vld [vmem:[%s13272_s2 + $0x2bc] ss:$12 sps:$4 sm:$0xff]  }
 0x18b   :  { %2855 = vmatpush1.bf16.msra.mxu1 %v9437_v58  ;;  %2812 = vmatpush1.bf16.msra.mxu0 %v9434_v59 }
 0x18c   :  { %2856 = vmatprep.subr.bf16.mxu1 %v10082_v0  ;;  %2813 = vmatprep.subr.bf16.mxu0 %v9440_v60 }
 0x18f   :  { %2857 = vmatpush1.bf16.msra.mxu1 %v9441_v62  ;;  %2814 = vmatpush1.bf16.msra.mxu0 %v9438_v61 }
 0x190   :  { %2858 = vmatprep.subr.bf16.mxu1 %v10082_v0  ;;  %2815 = vmatprep.subr.bf16.mxu0 %v9444_v63  ;;  %v9473_v63 = vld [vmem:[%s13272_s2 + $0x2b8] ss:$12 sps:$4 sm:$0xff]  }
 0x193   :  { %2859 = vmatpush1.bf16.msra.mxu1 %v9445_v2  ;;  %2816 = vmatpush1.bf16.msra.mxu0 %v9442_v1  ;;  %v9479_v1 = vld [vmem:[%s13272_s2 + $0x2d4] ss:$12 sps:$4 sm:$0xff]   ;;  %v9480_v2 = vld [vmem:[%s13272_s2 + $0x2d8] ss:$12 sps:$4 sm:$0xff]  }
 0x194   :  { %2860 = vmatprep.subr.bf16.mxu1 %v10082_v0  ;;  %2817 = vmatprep.subr.bf16.mxu0 %v9448_v3  ;;  %v9477_v3 = vld [vmem:[%s13272_s2 + $0x2d0] ss:$12 sps:$4 sm:$0xff]  }
 0x197   :  { %2861 = vmatpush1.bf16.msra.mxu1 %v9449_v4  ;;  %2818 = vmatpush1.bf16.msra.mxu0 %v9446_v5  ;;  %v9483_v4 = vld [vmem:[%s13272_s2 + $0x2ec] ss:$12 sps:$4 sm:$0xff]   ;;  %v9484_v5 = vld [vmem:[%s13272_s2 + $0x2f0] ss:$12 sps:$4 sm:$0xff]  }
 0x198   :  { %2862 = vmatprep.subr.bf16.mxu1 %v10082_v0  ;;  %2819 = vmatprep.subr.bf16.mxu0 %v9452_v6  ;;  %v9481_v6 = vld [vmem:[%s13272_s2 + $0x2e8] ss:$12 sps:$4 sm:$0xff]  }
 0x19b   :  { %2863 = vmatpush1.bf16.msra.mxu1 %v9453_v7  ;;  %2820 = vmatpush1.bf16.msra.mxu0 %v9450_v9  ;;  %v9487_v7 = vld [vmem:[%s13272_s2 + $0x304] ss:$12 sps:$4 sm:$0xff]   ;;  %v9485_v9 = vld [vmem:[%s13272_s2 + $0x300] ss:$12 sps:$4 sm:$0xff]  }
 0x19c   :  { %2864 = vmatprep.subr.bf16.mxu1 %v10082_v0  ;;  %7861 = vmatprep.subr.msk.bf16.mxu0 %vm289_vm1, %v7859_v11  ;;  %v9489_v11 = vld [vmem:[%s13272_s2 + $0x318] ss:$12 sps:$4 sm:$0xff]  }
 0x19f   :  { %2865 = vmatpush1.bf16.msra.mxu1 %v2795_v12  ;;  %2822 = vmatpush1.bf16.msra.mxu0 %v2789_v26  ;;  %v9495_v12 = vld [vmem:[%s13272_s2 + $0x334] ss:$12 sps:$4 sm:$0xff]   ;;  %v9496_v26 = vld [vmem:[%s13272_s2 + $0x338] ss:$12 sps:$4 sm:$0xff]  }
 0x1a0   :  { %3255 = vmatprep.subr.bf16.mxu1 %v10082_v0  ;;  %3212 = vmatprep.subr.bf16.mxu0 %v9459_v13  ;;  %v9493_v13 = vld [vmem:[%s13272_s2 + $0x330] ss:$12 sps:$4 sm:$0xff]  }
 0x1a2   :  { %2873 = vmatmul.mubr.bf16.vlgmr.msra.gmra.mrb[28].mxu1 %v10080_v20  ;;  %2830 = vmatmul.mubr.bf16.vlgmr.msra.gmra.mrb[28].mxu0 %v10080_v20  ;;  %v9504_v20 = vld [vmem:[%s13272_s2 + $0x368] ss:$12 sps:$4 sm:$0xff]  }
 0x1a3   :  { %3256 = vmatpush1.bf16.msra.mxu1 %v9460_v14  ;;  %3213 = vmatpush1.bf16.msra.mxu0 %v9457_v16  ;;  %v9499_v14 = vld [vmem:[%s13272_s2 + $0x34c] ss:$12 sps:$4 sm:$0xff]   ;;  %v9500_v16 = vld [vmem:[%s13272_s2 + $0x350] ss:$12 sps:$4 sm:$0xff]  }
 0x1a4   :  { %3257 = vmatprep.subr.bf16.mxu1 %v10082_v0  ;;  %3214 = vmatprep.subr.bf16.mxu0 %v9463_v17  ;;  %v9503_v17 = vld [vmem:[%s13272_s2 + $0x364] ss:$12 sps:$4 sm:$0xff]  }
 0x1a5   :  { %v1417_v23 = vpop.f32.mrb[12].mxu1  ;;  %7969 = vmatprep.mubr.msk.bf16.mxu1 %vm285_vm0, %v11325_v19  ;;  %v1374_v54 = vpop.f32.mrb[12].mxu0  ;;  %7968 = vmatprep.mubr.msk.bf16.mxu0 %vm285_vm0, %v11325_v19 }
 0x1a6   :  { %v1426_v28 = vmax.f32 %v11168_v38, %v1417_v23  ;;  %v1419_v40 = vpop.f32.mrb[13].mxu1  ;;  %v1424_v50 = vmax.f32 %v11174_v47, %v1374_v54  ;;  %v1376_v51 = vpop.f32.mrb[13].mxu0  ;;  %v9465_v38 = vld [vmem:[%s13272_s2 + $0x288] ss:$12 sps:$4 sm:$0xff]   ;;  %v9471_v47 = vld [vmem:[%s13272_s2 + $0x2a4] ss:$12 sps:$4 sm:$0xff]  }
 0x1a7   :  { %v1420_v24 = vpop.f32.mrb[14].mxu1  ;;  %3258 = vmatpush1.bf16.msra.mxu1 %v9464_v18  ;;  %v1425_v39 = vmax.f32 %v11179_v52, %v1376_v51  ;;  %v1378_v42 = vpop.f32.mrb[14].mxu0  ;;  %3215 = vmatpush1.bf16.msra.mxu0 %v9461_v21  ;;  %v9472_v52 = vld [vmem:[%s13272_s2 + $0x2a8] ss:$12 sps:$4 sm:$0xff]   ;;  %v7924_v18 = vld [vmem:[%s13272_s2 + $0x378] sm:$0xff] }
 0x1a8   :  { %v1444_v27 = vadd.f32 %v1435_v15, %v1426_v28  ;;  %v1429_v41 = vmax.f32 %v11184_v37, %v1420_v24  ;;  %v1422_v31 = vpop.f32.mrb[15].mxu1  ;;  %3259 = vmatprep.subr.bf16.mxu1 %v10082_v0  ;;  %v1442_v32 = vadd.f32 %v1435_v15, %v1424_v50  ;;  %v1427_v43 = vmax.f32 %v11196_v29, %v1378_v42  ;;  %v1380_v34 = vpop.f32.mrb[15].mxu0  ;;  %v9469_v29 = vld [vmem:[%s13272_s2 + $0x2a0] ss:$12 sps:$4 sm:$0xff]   ;;  %v9513_v54 = vld [vmem:[%s13274_s3 + $0x25c] ss:$12 sps:$4 sm:$0xff]  }
 0x1a9   :  { %3216 = vmatprep.subr.bf16.mxu0 %v9467_v22  ;;  %v1443_v35 = vadd.f32 %v1435_v15, %v1425_v39  ;;  %v1428_v36 = vmax.f32 %v11207_v33, %v1380_v34  ;;  %v9476_v33 = vld [vmem:[%s13272_s2 + $0x2c0] ss:$12 sps:$4 sm:$0xff]   ;;  %v9497_v15 = vld [vmem:[%s13272_s2 + $0x348] ss:$12 sps:$4 sm:$0xff]   ;;  %v7965_v23 = vcombine.high %v7924_v18, %v7924_v18  ;;  %v9511_v51 = vld [vmem:[%s13274_s3 + $0x258] ss:$12 sps:$4 sm:$0xff]  }
 0x1aa   :  { %v1450_v37 = vmax.f32 %v1444_v27, 0.0  ;;  %v1447_v48 = vadd.f32 %v1440_v25, %v1429_v41  ;;  %v1448_v44 = vmax.f32 %v1442_v32, 0.0  ;;  %v1445_v46 = vadd.f32 %v1440_v25, %v1427_v43  ;;  %v9506_v21 = vld [vmem:[%s13272_s2 + $0x380] ss:$0 sps:$4 sm:$0xff]   ;;  %v9518_v27 = vld [vmem:[%s13274_s3 + $0x278] ss:$12 sps:$4 sm:$0xff]  }
 0x1ab   :  { %3260 = vmatpush1.bf16.msra.mxu1 %v9468_v30  ;;  %v1449_v53 = vmax.f32 %v1443_v35, 0.0  ;;  %v1446_v56 = vadd.f32 %v1440_v25, %v1428_v36  ;;  %3217 = vmatpush1.bf16.msra.mxu0 %v9465_v38  ;;  %v9501_v22 = vld [vmem:[%s13272_s2 + $0x360] ss:$12 sps:$4 sm:$0xff]   ;;  %v7964_v25 = vcombine.low %v7924_v18, %v7924_v18  ;;  %v3210_v30 = vsel %vm289_vm1, %v9506_v21, 0  ;;  %v9515_v39 = vld [vmem:[%s13274_s3 + $0x270] ss:$12 sps:$4 sm:$0xff]  }
 0x1ac   :  { %v9021_v49 = vpack.c.bf16 %v1450_v37, %v1450_v37  ;;  %v1453_v55 = vmax.f32 %v1447_v48, 0.0  ;;  %3261 = vmatprep.subr.bf16.mxu1 %v10082_v0  ;;  %v1451_v58 = vmax.f32 %v1445_v46, 0.0  ;;  %3218 = vmatprep.subr.bf16.mxu0 %v9471_v47  ;;  %v11467_v28 = vld [vmem:[%s13273_s0 + $0x20] ss:$8 sps:$4 sm:$0xff]   ;;  %v9521_v41 = vld [vmem:[%s13274_s3 + $0x28c] ss:$12 sps:$4 sm:$0xff]  }
 0x1ad   :  { %v9020_v59 = vpack.c.bf16 %v1449_v53, %v1448_v44  ;;  %v1452_v61 = vmax.f32 %v1446_v56, 0.0  ;;  %v3204_v40 = vsel %vm289_vm1, %v7964_v25, 0  ;;  %v9514_v50 = vld [vmem:[%s13274_s3 + $0x260] ss:$12 sps:$4 sm:$0xff]   ;;  %v9522_v31 = vld [vmem:[%s13274_s3 + $0x290] ss:$12 sps:$4 sm:$0xff]  }
 0x1ae   :  { %1475 = vst [vmem:[%s13278_s6 + $0x8] sm:$0xf] %v9021_v49  ;;  %v9023_v60 = vpack.c.bf16 %v1453_v55, %v1453_v55  ;;  %v9517_v24 = vld [vmem:[%s13274_s3 + $0x274] ss:$12 sps:$4 sm:$0xff]   ;;  %v9525_v35 = vld [vmem:[%s13274_s3 + $0x2a4] ss:$12 sps:$4 sm:$0xff]  }
 0x1af   :  { %3262 = vmatpush1.bf16.msra.mxu1 %v9472_v52  ;;  %1474 = vst [vmem:[%s13278_s6] sm:$0xff] %v9020_v59  ;;  %v9022_v62 = vpack.c.bf16 %v1452_v61, %v1451_v58  ;;  %3219 = vmatpush1.bf16.msra.mxu0 %v9469_v29  ;;  %v9519_v37 = vld [vmem:[%s13274_s3 + $0x288] ss:$12 sps:$4 sm:$0xff]   ;;  %v9523_v44 = vld [vmem:[%s13274_s3 + $0x2a0] ss:$12 sps:$4 sm:$0xff]   ;;  %v9527_v53 = vld [vmem:[%s13274_s3 + $0x2b8] ss:$12 sps:$4 sm:$0xff]  }
 0x1b0   :  { %1477 = vst [vmem:[%s13278_s6 + $0x14] sm:$0xf] %v9023_v60  ;;  %3263 = vmatprep.subr.bf16.mxu1 %v10082_v0  ;;  %3220 = vmatprep.subr.bf16.mxu0 %v9475_v57  ;;  %v9526_v36 = vld [vmem:[%s13274_s3 + $0x2a8] ss:$12 sps:$4 sm:$0xff]   ;;  %v9530_v49 = vld [vmem:[%s13274_s3 + $0x2c0] ss:$12 sps:$4 sm:$0xff]  }
 0x1b1   :  { %1476 = vst [vmem:[%s13278_s6 + $0xc] sm:$0xff] %v9022_v62  ;;  %v9529_v46 = vld [vmem:[%s13274_s3 + $0x2bc] ss:$12 sps:$4 sm:$0xff]   ;;  %v9533_v55 = vld [vmem:[%s13274_s3 + $0x2d4] ss:$12 sps:$4 sm:$0xff]  }
 0x1b2   :  { %v9534_v56 = vld [vmem:[%s13274_s3 + $0x2d8] ss:$12 sps:$4 sm:$0xff]   ;;  %v9531_v29 = vld [vmem:[%s13274_s3 + $0x2d0] ss:$12 sps:$4 sm:$0xff]   ;;  %v9542_v60 = vld [vmem:[%s13274_s3 + $0x308] ss:$12 sps:$4 sm:$0xff]  }
 0x1b3   :  { %3264 = vmatpush1.bf16.msra.mxu1 %v9476_v33  ;;  %3221 = vmatpush1.bf16.msra.mxu0 %v9473_v63  ;;  %v9537_v57 = vld [vmem:[%s13274_s3 + $0x2ec] ss:$12 sps:$4 sm:$0xff]   ;;  %v9538_v58 = vld [vmem:[%s13274_s3 + $0x2f0] ss:$12 sps:$4 sm:$0xff]   ;;  %v9535_v33 = vld [vmem:[%s13274_s3 + $0x2e8] ss:$12 sps:$4 sm:$0xff]  }
 0x1b4   :  { %3265 = vmatprep.subr.bf16.mxu1 %v10082_v0  ;;  %3222 = vmatprep.subr.bf16.mxu0 %v9479_v1  ;;  %v9541_v59 = vld [vmem:[%s13274_s3 + $0x304] ss:$12 sps:$4 sm:$0xff]   ;;  %v9539_v61 = vld [vmem:[%s13274_s3 + $0x300] ss:$12 sps:$4 sm:$0xff]   ;;  %v9545_v62 = vld [vmem:[%s13274_s3 + $0x31c] ss:$12 sps:$4 sm:$0xff]  }
 0x1b5   :  { %v9546_v63 = vld [vmem:[%s13274_s3 + $0x320] ss:$12 sps:$4 sm:$0xff]   ;;  %v9543_v1 = vld [vmem:[%s13274_s3 + $0x318] ss:$12 sps:$4 sm:$0xff]   ;;  %v9566_v21 = vld [vmem:[%s13275_s4 + $0x270] ss:$12 sps:$4 sm:$0xff]  }
 0x1b6   :  { %v9568_v18 = vld [vmem:[%s13275_s4 + $0x274] ss:$12 sps:$4 sm:$0xff]  }
 0x1b7   :  { %3266 = vmatpush1.bf16.msra.mxu1 %v9480_v2  ;;  %3223 = vmatpush1.bf16.msra.mxu0 %v9477_v3  ;;  %v9549_v2 = vld [vmem:[%s13274_s3 + $0x334] ss:$12 sps:$4 sm:$0xff]   ;;  %v9550_v3 = vld [vmem:[%s13274_s3 + $0x338] ss:$12 sps:$4 sm:$0xff]  }
 0x1b8   :  { %3267 = vmatprep.subr.bf16.mxu1 %v10082_v0  ;;  %3224 = vmatprep.subr.bf16.mxu0 %v9483_v4  ;;  %v9547_v4 = vld [vmem:[%s13274_s3 + $0x330] ss:$12 sps:$4 sm:$0xff]  }
 0x1bb   :  { %3268 = vmatpush1.bf16.msra.mxu1 %v9484_v5  ;;  %3225 = vmatpush1.bf16.msra.mxu0 %v9481_v6  ;;  %v9553_v5 = vld [vmem:[%s13274_s3 + $0x34c] ss:$12 sps:$4 sm:$0xff]   ;;  %v9554_v6 = vld [vmem:[%s13274_s3 + $0x350] ss:$12 sps:$4 sm:$0xff]  }
 0x1bc   :  { %3269 = vmatprep.subr.bf16.mxu1 %v10082_v0  ;;  %3226 = vmatprep.subr.bf16.mxu0 %v9487_v7  ;;  %v9551_v7 = vld [vmem:[%s13274_s3 + $0x348] ss:$12 sps:$4 sm:$0xff]  }
 0x1bf   :  { %3270 = vmatpush1.bf16.msra.mxu1 %v9488_v8  ;;  %3227 = vmatpush1.bf16.msra.mxu0 %v9485_v9  ;;  %v9557_v8 = vld [vmem:[%s13274_s3 + $0x364] ss:$12 sps:$4 sm:$0xff]   ;;  %v8018_v9 = vld [vmem:[%s13274_s3 + $0x378] sm:$0xff] }
 0x1c0   :  { %3271 = vmatprep.subr.bf16.mxu1 %v10082_v0  ;;  %3228 = vmatprep.subr.bf16.mxu0 %v9491_v10  ;;  %v9558_v10 = vld [vmem:[%s13274_s3 + $0x368] ss:$12 sps:$4 sm:$0xff]  }
 0x1c3   :  { %3272 = vmatpush1.bf16.msra.mxu1 %v9492_v45  ;;  %3229 = vmatpush1.bf16.msra.mxu0 %v9489_v11  ;;  %v9555_v11 = vld [vmem:[%s13274_s3 + $0x360] ss:$12 sps:$4 sm:$0xff]  }
 0x1c4   :  { %3273 = vmatprep.subr.bf16.mxu1 %v10082_v0  ;;  %3230 = vmatprep.subr.bf16.mxu0 %v9495_v12  ;;  %v9560_v45 = vld [vmem:[%s13274_s3 + $0x380] ss:$0 sps:$4 sm:$0xff]   ;;  %v8057_v12 = vcombine.high %v8018_v9, %v8018_v9 }
 0x1c7   :  { %3274 = vmatpush1.bf16.msra.mxu1 %v9496_v26  ;;  %3231 = vmatpush1.bf16.msra.mxu0 %v9493_v13  ;;  %v8056_v13 = vcombine.low %v8018_v9, %v8018_v9  ;;  %v3554_v26 = vsel %vm289_vm1, %v9560_v45, 0  ;;  %v8110_v9 = vld [vmem:[%s13275_s4 + $0x378] sm:$0xff]  ;;  %v9611_v45 = vld [vmem:[%s13275_s4 + $0x380] ss:$0 sps:$4 sm:$0xff]  }
 0x1c8   :  { %3275 = vmatprep.subr.bf16.mxu1 %v10082_v0  ;;  %3232 = vmatprep.subr.bf16.mxu0 %v9499_v14 }
 0x1c9   :  { %v3548_v14 = vsel %vm289_vm1, %v8056_v13, 0  ;;  %v8148_v13 = vcombine.low %v8110_v9, %v8110_v9 }
 0x1cb   :  { %3276 = vmatpush1.bf16.msra.mxu1 %v9500_v16  ;;  %3233 = vmatpush1.bf16.msra.mxu0 %v9497_v15  ;;  %v9564_v15 = vld [vmem:[%s13275_s4 + $0x25c] ss:$12 sps:$4 sm:$0xff]   ;;  %v9565_v16 = vld [vmem:[%s13275_s4 + $0x260] ss:$12 sps:$4 sm:$0xff]  }
 0x1cc   :  { %3277 = vmatprep.subr.bf16.mxu1 %v10082_v0  ;;  %3234 = vmatprep.subr.bf16.mxu0 %v9503_v17  ;;  %v9562_v17 = vld [vmem:[%s13275_s4 + $0x258] ss:$12 sps:$4 sm:$0xff]  }
 0x1cf   :  { %3278 = vmatpush1.bf16.msra.mxu1 %v9504_v20  ;;  %3235 = vmatpush1.bf16.msra.mxu0 %v9501_v22  ;;  %v9569_v20 = vld [vmem:[%s13275_s4 + $0x278] ss:$12 sps:$4 sm:$0xff]  }
 0x1d0   :  { %3279 = vmatprep.subr.bf16.mxu1 %v10082_v0  ;;  %7967 = vmatprep.subr.msk.bf16.mxu0 %vm289_vm1, %v7965_v23  ;;  %v9572_v23 = vld [vmem:[%s13275_s4 + $0x28c] ss:$12 sps:$4 sm:$0xff]  }
 0x1d3   :  { %3280 = vmatpush1.bf16.msra.mxu1 %v3210_v30  ;;  %3237 = vmatpush1.bf16.msra.mxu0 %v3204_v40 }
 0x1d4   :  { %3599 = vmatprep.subr.bf16.mxu1 %v10082_v0  ;;  %3556 = vmatprep.subr.bf16.mxu0 %v9513_v54 }
 0x1d6   :  { %3288 = vmatmul.mubr.bf16.vlgmr.msra.gmra.mrb[32].mxu1 %v11467_v28  ;;  %3245 = vmatmul.mubr.bf16.vlgmr.msra.gmra.mrb[32].mxu0 %v11467_v28 }
 0x1d7   :  { %3600 = vmatpush1.bf16.msra.mxu1 %v9514_v50  ;;  %3557 = vmatpush1.bf16.msra.mxu0 %v9511_v51 }
 0x1d8   :  { %3601 = vmatprep.subr.bf16.mxu1 %v10082_v0  ;;  %3558 = vmatprep.subr.bf16.mxu0 %v9517_v24  ;;  %v9573_v24 = vld [vmem:[%s13275_s4 + $0x290] ss:$12 sps:$4 sm:$0xff]  }
 0x1d9   :  { %v11496_v42 = vpop.f32.mrb[16].mxu1  ;;  %8061 = vmatprep.mubr.msk.bf16.mxu1 %vm285_vm0, %v11325_v19  ;;  %v11503_v38 = vpop.f32.mrb[16].mxu0  ;;  %8060 = vmatprep.mubr.msk.bf16.mxu0 %vm285_vm0, %v11325_v19 }
 0x1da   :  { %v1832_v47 = vpop.f32.mrb[17].mxu1  ;;  %v11507_v32 = vpop.f32.mrb[17].mxu0 }
 0x1db   :  { %v11509_v43 = vpop.f32.mrb[18].mxu1  ;;  %3602 = vmatpush1.bf16.msra.mxu1 %v9518_v27  ;;  %v11511_v34 = vpop.f32.mrb[18].mxu0  ;;  %3559 = vmatpush1.bf16.msra.mxu0 %v9515_v39 }
 0x1dc   :  { %v1835_v52 = vpop.f32.mrb[19].mxu1  ;;  %3603 = vmatprep.subr.bf16.mxu1 %v10082_v0  ;;  %v11520_v48 = vpop.f32.mrb[19].mxu0  ;;  %3560 = vmatprep.subr.bf16.mxu0 %v9521_v41 }
 0x1df   :  { %3604 = vmatpush1.bf16.msra.mxu1 %v9522_v31  ;;  %3561 = vmatpush1.bf16.msra.mxu0 %v9519_v37  ;;  %v9570_v31 = vld [vmem:[%s13275_s4 + $0x288] ss:$12 sps:$4 sm:$0xff]   ;;  %v9576_v37 = vld [vmem:[%s13275_s4 + $0x2a4] ss:$12 sps:$4 sm:$0xff]  }
 0x1e0   :  { %3605 = vmatprep.subr.bf16.mxu1 %v10082_v0  ;;  %3562 = vmatprep.subr.bf16.mxu0 %v9525_v35 }
 0x1e3   :  { %3606 = vmatpush1.bf16.msra.mxu1 %v9526_v36  ;;  %3563 = vmatpush1.bf16.msra.mxu0 %v9523_v44  ;;  %v9577_v36 = vld [vmem:[%s13275_s4 + $0x2a8] ss:$12 sps:$4 sm:$0xff]   ;;  %v9574_v44 = vld [vmem:[%s13275_s4 + $0x2a0] ss:$12 sps:$4 sm:$0xff]  }
 0x1e4   :  { %3607 = vmatprep.subr.bf16.mxu1 %v10082_v0  ;;  %3564 = vmatprep.subr.bf16.mxu0 %v9529_v46  ;;  %v9580_v46 = vld [vmem:[%s13275_s4 + $0x2bc] ss:$12 sps:$4 sm:$0xff]  }
 0x1e7   :  { %3608 = vmatpush1.bf16.msra.mxu1 %v9530_v49  ;;  %3565 = vmatpush1.bf16.msra.mxu0 %v9527_v53  ;;  %v9581_v49 = vld [vmem:[%s13275_s4 + $0x2c0] ss:$12 sps:$4 sm:$0xff]   ;;  %v9578_v53 = vld [vmem:[%s13275_s4 + $0x2b8] ss:$12 sps:$4 sm:$0xff]  }
 0x1e8   :  { %3609 = vmatprep.subr.bf16.mxu1 %v10082_v0  ;;  %3566 = vmatprep.subr.bf16.mxu0 %v9533_v55  ;;  %v9584_v55 = vld [vmem:[%s13275_s4 + $0x2d4] ss:$12 sps:$4 sm:$0xff]  }
 0x1eb   :  { %3610 = vmatpush1.bf16.msra.mxu1 %v9534_v56  ;;  %3567 = vmatpush1.bf16.msra.mxu0 %v9531_v29  ;;  %v9585_v56 = vld [vmem:[%s13275_s4 + $0x2d8] ss:$12 sps:$4 sm:$0xff]   ;;  %v9582_v29 = vld [vmem:[%s13275_s4 + $0x2d0] ss:$12 sps:$4 sm:$0xff]  }
 0x1ec   :  { %3611 = vmatprep.subr.bf16.mxu1 %v10082_v0  ;;  %3568 = vmatprep.subr.bf16.mxu0 %v9537_v57  ;;  %v9588_v57 = vld [vmem:[%s13275_s4 + $0x2ec] ss:$12 sps:$4 sm:$0xff]  }
 0x1ef   :  { %3612 = vmatpush1.bf16.msra.mxu1 %v9538_v58  ;;  %3569 = vmatpush1.bf16.msra.mxu0 %v9535_v33  ;;  %v9589_v58 = vld [vmem:[%s13275_s4 + $0x2f0] ss:$12 sps:$4 sm:$0xff]   ;;  %v9586_v33 = vld [vmem:[%s13275_s4 + $0x2e8] ss:$12 sps:$4 sm:$0xff]  }
 0x1f0   :  { %3613 = vmatprep.subr.bf16.mxu1 %v10082_v0  ;;  %3570 = vmatprep.subr.bf16.mxu0 %v9541_v59  ;;  %v9592_v59 = vld [vmem:[%s13275_s4 + $0x304] ss:$12 sps:$4 sm:$0xff]  }
 0x1f3   :  { %3614 = vmatpush1.bf16.msra.mxu1 %v9542_v60  ;;  %3571 = vmatpush1.bf16.msra.mxu0 %v9539_v61  ;;  %v9593_v60 = vld [vmem:[%s13275_s4 + $0x308] ss:$12 sps:$4 sm:$0xff]   ;;  %v9590_v61 = vld [vmem:[%s13275_s4 + $0x300] ss:$12 sps:$4 sm:$0xff]  }
 0x1f4   :  { %3615 = vmatprep.subr.bf16.mxu1 %v10082_v0  ;;  %3572 = vmatprep.subr.bf16.mxu0 %v9545_v62  ;;  %v9596_v62 = vld [vmem:[%s13275_s4 + $0x31c] ss:$12 sps:$4 sm:$0xff]  }
 0x1f7   :  { %3616 = vmatpush1.bf16.msra.mxu1 %v9546_v63  ;;  %3573 = vmatpush1.bf16.msra.mxu0 %v9543_v1  ;;  %v9597_v63 = vld [vmem:[%s13275_s4 + $0x320] ss:$12 sps:$4 sm:$0xff]   ;;  %v9594_v1 = vld [vmem:[%s13275_s4 + $0x318] ss:$12 sps:$4 sm:$0xff]  }
 0x1f8   :  { %3617 = vmatprep.subr.bf16.mxu1 %v10082_v0  ;;  %3574 = vmatprep.subr.bf16.mxu0 %v9549_v2  ;;  %v9600_v2 = vld [vmem:[%s13275_s4 + $0x334] ss:$12 sps:$4 sm:$0xff]  }
 0x1fb   :  { %3618 = vmatpush1.bf16.msra.mxu1 %v9550_v3  ;;  %3575 = vmatpush1.bf16.msra.mxu0 %v9547_v4  ;;  %v9601_v3 = vld [vmem:[%s13275_s4 + $0x338] ss:$12 sps:$4 sm:$0xff]   ;;  %v9598_v4 = vld [vmem:[%s13275_s4 + $0x330] ss:$12 sps:$4 sm:$0xff]  }
 0x1fc   :  { %3619 = vmatprep.subr.bf16.mxu1 %v10082_v0  ;;  %3576 = vmatprep.subr.bf16.mxu0 %v9553_v5  ;;  %v9604_v5 = vld [vmem:[%s13275_s4 + $0x34c] ss:$12 sps:$4 sm:$0xff]  }
 0x1ff   :  { %3620 = vmatpush1.bf16.msra.mxu1 %v9554_v6  ;;  %3577 = vmatpush1.bf16.msra.mxu0 %v9551_v7  ;;  %v9605_v6 = vld [vmem:[%s13275_s4 + $0x350] ss:$12 sps:$4 sm:$0xff]   ;;  %v9602_v7 = vld [vmem:[%s13275_s4 + $0x348] ss:$12 sps:$4 sm:$0xff]  }
 0x200   :  { %3621 = vmatprep.subr.bf16.mxu1 %v10082_v0  ;;  %3578 = vmatprep.subr.bf16.mxu0 %v9557_v8  ;;  %v9608_v8 = vld [vmem:[%s13275_s4 + $0x364] ss:$12 sps:$4 sm:$0xff]  }
 0x203   :  { %3622 = vmatpush1.bf16.msra.mxu1 %v9558_v10  ;;  %3579 = vmatpush1.bf16.msra.mxu0 %v9555_v11  ;;  %v9609_v10 = vld [vmem:[%s13275_s4 + $0x368] ss:$12 sps:$4 sm:$0xff]   ;;  %v9606_v11 = vld [vmem:[%s13275_s4 + $0x360] ss:$12 sps:$4 sm:$0xff]  }
 0x204   :  { %3623 = vmatprep.subr.bf16.mxu1 %v10082_v0  ;;  %8059 = vmatprep.subr.msk.bf16.mxu0 %vm289_vm1, %v8057_v12  ;;  %v8149_v12 = vcombine.high %v8110_v9, %v8110_v9  ;;  %v9662_v9 = vld [vmem:[%s13276_s5 + $0x380] ss:$0 sps:$4 sm:$0xff]  }
 0x207   :  { %3624 = vmatpush1.bf16.msra.mxu1 %v3554_v26  ;;  %3581 = vmatpush1.bf16.msra.mxu0 %v3548_v14  ;;  %v3904_v26 = vsel %vm289_vm1, %v9611_v45, 0  ;;  %v3898_v14 = vsel %vm289_vm1, %v8148_v13, 0  ;;  %v4254_v45 = vsel %vm289_vm1, %v9662_v9, 0  ;;  %v9666_v13 = vld [vmem:[%s13272_s2 + $0x388] ss:$12 sps:$4 sm:$0xff]  }
 0x208   :  { %3949 = vmatprep.subr.bf16.mxu1 %v10082_v0  ;;  %3906 = vmatprep.subr.bf16.mxu0 %v9564_v15  ;;  %v9615_v15 = vld [vmem:[%s13276_s5 + $0x25c] ss:$12 sps:$4 sm:$0xff]   ;;  %v9699_v9 = vld [vmem:[%s13272_s2 + $0x44c] ss:$12 sps:$4 sm:$0xff]  }
 0x20a   :  { %3632 = vmatmul.mubr.bf16.vlgmr.msra.gmra.mrb[36].mxu1 %v11467_v28  ;;  %3589 = vmatmul.mubr.bf16.vlgmr.msra.gmra.mrb[36].mxu0 %v11467_v28 }
 0x20b   :  { %3950 = vmatpush1.bf16.msra.mxu1 %v9565_v16  ;;  %3907 = vmatpush1.bf16.msra.mxu0 %v9562_v17  ;;  %v9616_v16 = vld [vmem:[%s13276_s5 + $0x260] ss:$12 sps:$4 sm:$0xff]   ;;  %v9613_v17 = vld [vmem:[%s13276_s5 + $0x258] ss:$12 sps:$4 sm:$0xff]  }
 0x20c   :  { %3951 = vmatprep.subr.bf16.mxu1 %v10082_v0  ;;  %3908 = vmatprep.subr.bf16.mxu0 %v9568_v18  ;;  %v9619_v18 = vld [vmem:[%s13276_s5 + $0x274] ss:$12 sps:$4 sm:$0xff]  }
 0x20d   :  { %v11641_v22 = vpop.f32.mrb[20].mxu1  ;;  %8153 = vmatprep.mubr.msk.bf16.mxu1 %vm285_vm0, %v11325_v19  ;;  %v11650_v30 = vpop.f32.mrb[20].mxu0  ;;  %8152 = vmatprep.mubr.msk.bf16.mxu0 %vm285_vm0, %v11325_v19 }
 0x20e   :  { %v2183_v25 = vmax.f32 %v11496_v42, %v11641_v22  ;;  %v2176_v54 = vpop.f32.mrb[21].mxu1  ;;  %v2181_v40 = vmax.f32 %v11503_v38, %v11650_v30  ;;  %v11656_v50 = vpop.f32.mrb[21].mxu0  ;;  %v9621_v30 = vld [vmem:[%s13276_s5 + $0x288] ss:$12 sps:$4 sm:$0xff]  }
 0x20f   :  { %v11658_v51 = vpop.f32.mrb[22].mxu1  ;;  %3952 = vmatpush1.bf16.msra.mxu1 %v9569_v20  ;;  %v2182_v27 = vmax.f32 %v11507_v32, %v11656_v50  ;;  %v11667_v41 = vpop.f32.mrb[22].mxu0  ;;  %3909 = vmatpush1.bf16.msra.mxu0 %v9566_v21  ;;  %v9620_v20 = vld [vmem:[%s13276_s5 + $0x278] ss:$12 sps:$4 sm:$0xff]   ;;  %v9617_v21 = vld [vmem:[%s13276_s5 + $0x270] ss:$12 sps:$4 sm:$0xff]  }
 0x210   :  { %v2186_v39 = vmax.f32 %v11509_v43, %v11658_v51  ;;  %v2179_v19 = vpop.f32.mrb[23].mxu1  ;;  %3953 = vmatprep.subr.bf16.mxu1 %v10082_v0  ;;  %v2184_v47 = vmax.f32 %v11511_v34, %v11667_v41  ;;  %v11675_v52 = vpop.f32.mrb[23].mxu0  ;;  %3910 = vmatprep.subr.bf16.mxu0 %v9572_v23  ;;  %v9623_v54 = vld [vmem:[%s13276_s5 + $0x28c] ss:$12 sps:$4 sm:$0xff]   ;;  %v9627_v43 = vld [vmem:[%s13276_s5 + $0x2a4] ss:$12 sps:$4 sm:$0xff]  }
 0x211   :  { %v2185_v35 = vmax.f32 %v11520_v48, %v11675_v52  ;;  %v9628_v51 = vld [vmem:[%s13276_s5 + $0x2a8] ss:$12 sps:$4 sm:$0xff]   ;;  %v8246_v34 = vld [vmem:[%s13277_s1 + $0x20] sm:$0xff] }
 0x212   :  { %v8247_v48 = vld [vmem:[%s13277_s1 + $0x28] sm:$0xff]  ;;  %4351 = vperm.xlu0 %9041, %v8246_v34   ;;  %v9635_v52 = vld [vmem:[%s13276_s5 + $0x2d4] ss:$12 sps:$4 sm:$0xff]  }
 0x213   :  { %3954 = vmatpush1.bf16.msra.mxu1 %v9573_v24  ;;  %3911 = vmatpush1.bf16.msra.mxu0 %v9570_v31  ;;  %v10081_v24 = vld [vmem:[%s13273_s0 + $0x24] ss:$8 sps:$4 sm:$0xff]  }
 0x214   :  { %3955 = vmatprep.subr.bf16.mxu1 %v10082_v0  ;;  %3912 = vmatprep.subr.bf16.mxu0 %v9576_v37  ;;  %v9632_v41 = vld [vmem:[%s13276_s5 + $0x2c0] ss:$12 sps:$4 sm:$0xff]  }
 0x215   :  { %4356 = vperm.xlu1 %9042, %v8247_v48  }
 0x217   :  { %3956 = vmatpush1.bf16.msra.mxu1 %v9577_v36  ;;  %3913 = vmatpush1.bf16.msra.mxu0 %v9574_v44 }
 0x218   :  { %3957 = vmatprep.subr.bf16.mxu1 %v10082_v0  ;;  %3914 = vmatprep.subr.bf16.mxu0 %v9580_v46 }
 0x21b   :  { %3958 = vmatpush1.bf16.msra.mxu1 %v9581_v49  ;;  %3915 = vmatpush1.bf16.msra.mxu0 %v9578_v53  ;;  %v9624_v49 = vld [vmem:[%s13276_s5 + $0x290] ss:$12 sps:$4 sm:$0xff]  }
 0x21c   :  { %3959 = vmatprep.subr.bf16.mxu1 %v10082_v0  ;;  %3916 = vmatprep.subr.bf16.mxu0 %v9584_v55  ;;  %v9633_v53 = vld [vmem:[%s13276_s5 + $0x2d0] ss:$12 sps:$4 sm:$0xff]   ;;  %v9639_v55 = vld [vmem:[%s13276_s5 + $0x2ec] ss:$12 sps:$4 sm:$0xff]  }
 0x21f   :  { %3960 = vmatpush1.bf16.msra.mxu1 %v9585_v56  ;;  %3917 = vmatpush1.bf16.msra.mxu0 %v9582_v29  ;;  %v9640_v56 = vld [vmem:[%s13276_s5 + $0x2f0] ss:$12 sps:$4 sm:$0xff]   ;;  %v9637_v29 = vld [vmem:[%s13276_s5 + $0x2e8] ss:$12 sps:$4 sm:$0xff]  }
 0x220   :  { %3961 = vmatprep.subr.bf16.mxu1 %v10082_v0  ;;  %3918 = vmatprep.subr.bf16.mxu0 %v9588_v57  ;;  %v9643_v57 = vld [vmem:[%s13276_s5 + $0x304] ss:$12 sps:$4 sm:$0xff]  }
 0x223   :  { %3962 = vmatpush1.bf16.msra.mxu1 %v9589_v58  ;;  %3919 = vmatpush1.bf16.msra.mxu0 %v9586_v33  ;;  %v9644_v58 = vld [vmem:[%s13276_s5 + $0x308] ss:$12 sps:$4 sm:$0xff]   ;;  %v9641_v33 = vld [vmem:[%s13276_s5 + $0x300] ss:$12 sps:$4 sm:$0xff]  }
 0x224   :  { %3963 = vmatprep.subr.bf16.mxu1 %v10082_v0  ;;  %3920 = vmatprep.subr.bf16.mxu0 %v9592_v59  ;;  %v9647_v59 = vld [vmem:[%s13276_s5 + $0x31c] ss:$12 sps:$4 sm:$0xff]  }
 0x227   :  { %3964 = vmatpush1.bf16.msra.mxu1 %v9593_v60  ;;  %3921 = vmatpush1.bf16.msra.mxu0 %v9590_v61  ;;  %v9648_v60 = vld [vmem:[%s13276_s5 + $0x320] ss:$12 sps:$4 sm:$0xff]   ;;  %v9645_v61 = vld [vmem:[%s13276_s5 + $0x318] ss:$12 sps:$4 sm:$0xff]  }
 0x228   :  { %3965 = vmatprep.subr.bf16.mxu1 %v10082_v0  ;;  %3922 = vmatprep.subr.bf16.mxu0 %v9596_v62  ;;  %v9651_v62 = vld [vmem:[%s13276_s5 + $0x334] ss:$12 sps:$4 sm:$0xff]  }
 0x22b   :  { %3966 = vmatpush1.bf16.msra.mxu1 %v9597_v63  ;;  %3923 = vmatpush1.bf16.msra.mxu0 %v9594_v1  ;;  %v9652_v63 = vld [vmem:[%s13276_s5 + $0x338] ss:$12 sps:$4 sm:$0xff]   ;;  %v9649_v1 = vld [vmem:[%s13276_s5 + $0x330] ss:$12 sps:$4 sm:$0xff]  }
 0x22c   :  { %3967 = vmatprep.subr.bf16.mxu1 %v10082_v0  ;;  %3924 = vmatprep.subr.bf16.mxu0 %v9600_v2  ;;  %v9655_v2 = vld [vmem:[%s13276_s5 + $0x34c] ss:$12 sps:$4 sm:$0xff]  }
 0x22f   :  { %3968 = vmatpush1.bf16.msra.mxu1 %v9601_v3  ;;  %3925 = vmatpush1.bf16.msra.mxu0 %v9598_v4  ;;  %v9656_v3 = vld [vmem:[%s13276_s5 + $0x350] ss:$12 sps:$4 sm:$0xff]   ;;  %v9653_v4 = vld [vmem:[%s13276_s5 + $0x348] ss:$12 sps:$4 sm:$0xff]  }
 0x230   :  { %3969 = vmatprep.subr.bf16.mxu1 %v10082_v0  ;;  %3926 = vmatprep.subr.bf16.mxu0 %v9604_v5  ;;  %v9659_v5 = vld [vmem:[%s13276_s5 + $0x364] ss:$12 sps:$4 sm:$0xff]  }
 0x233   :  { %3970 = vmatpush1.bf16.msra.mxu1 %v9605_v6  ;;  %3927 = vmatpush1.bf16.msra.mxu0 %v9602_v7  ;;  %v8202_v6 = vld [vmem:[%s13276_s5 + $0x378] sm:$0xff]  ;;  %v9660_v7 = vld [vmem:[%s13276_s5 + $0x368] ss:$12 sps:$4 sm:$0xff]  }
 0x234   :  { %3971 = vmatprep.subr.bf16.mxu1 %v10082_v0  ;;  %3928 = vmatprep.subr.bf16.mxu0 %v9608_v8  ;;  %v9657_v8 = vld [vmem:[%s13276_s5 + $0x360] ss:$12 sps:$4 sm:$0xff]  }
 0x237   :  { %3972 = vmatpush1.bf16.msra.mxu1 %v9609_v10  ;;  %3929 = vmatpush1.bf16.msra.mxu0 %v9606_v11  ;;  %v8241_v10 = vcombine.high %v8202_v6, %v8202_v6  ;;  %v8240_v11 = vcombine.low %v8202_v6, %v8202_v6  ;;  %v9695_v6 = vld [vmem:[%s13272_s2 + $0x434] ss:$12 sps:$4 sm:$0xff]  }
 0x238   :  { %3973 = vmatprep.subr.bf16.mxu1 %v10082_v0  ;;  %8151 = vmatprep.subr.msk.bf16.mxu0 %vm289_vm1, %v8149_v12 }
 0x239   :  { %v4248_v12 = vsel %vm289_vm1, %v8240_v11, 0  ;;  %v9702_v11 = vld [vmem:[%s13272_s2 + $0x460] ss:$12 sps:$4 sm:$0xff]  }
 0x23b   :  { %3974 = vmatpush1.bf16.msra.mxu1 %v3904_v26  ;;  %3931 = vmatpush1.bf16.msra.mxu0 %v3898_v14  ;;  %v9667_v26 = vld [vmem:[%s13272_s2 + $0x38c] ss:$12 sps:$4 sm:$0xff]   ;;  %v2893_v14 = vpop.permute.xlu1 %2892 }
 0x23c   :  { %4299 = vmatprep.subr.bf16.mxu1 %v10082_v0  ;;  %4256 = vmatprep.subr.bf16.mxu0 %v9615_v15  ;;  %v9664_v15 = vld [vmem:[%s13272_s2 + $0x384] ss:$12 sps:$4 sm:$0xff]  }
 0x23e   :  { %3982 = vmatmul.mubr.bf16.vlgmr.msra.gmra.mrb[40].mxu1 %v11467_v28  ;;  %3939 = vmatmul.mubr.bf16.vlgmr.msra.gmra.mrb[40].mxu0 %v11467_v28 }
 0x23f   :  { %4300 = vmatpush1.bf16.msra.mxu1 %v9616_v16  ;;  %4257 = vmatpush1.bf16.msra.mxu0 %v9613_v17  ;;  %v9670_v16 = vld [vmem:[%s13272_s2 + $0x3a0] ss:$12 sps:$4 sm:$0xff]   ;;  %v11968_v17 = vld [vmem:[%s13273_s0 + $0x34] ss:$8 sps:$4 sm:$0xff]  }
 0x240   :  { %4301 = vmatprep.subr.bf16.mxu1 %v10082_v0  ;;  %4258 = vmatprep.subr.bf16.mxu0 %v9619_v18  ;;  %v9671_v18 = vld [vmem:[%s13272_s2 + $0x3a4] ss:$12 sps:$4 sm:$0xff]  }
 0x241   :  { %v2524_v23 = vpop.f32.mrb[24].mxu1  ;;  %8245 = vmatprep.mubr.msk.bf16.mxu1 %vm285_vm0, %v10081_v24  ;;  %v2481_v31 = vpop.f32.mrb[24].mxu0  ;;  %8244 = vmatprep.mubr.msk.bf16.mxu0 %vm285_vm0, %v10081_v24 }
 0x242   :  { %v11811_v19 = vmax.f32 %v2183_v25, %v2524_v23  ;;  %v2526_v37 = vpop.f32.mrb[25].mxu1  ;;  %v11817_v36 = vmax.f32 %v2181_v40, %v2481_v31  ;;  %v2483_v44 = vpop.f32.mrb[25].mxu0 }
 0x243   :  { %v2527_v46 = vpop.f32.mrb[26].mxu1  ;;  %4302 = vmatpush1.bf16.msra.mxu1 %v9620_v20  ;;  %v11825_v42 = vmax.f32 %v2182_v27, %v2483_v44  ;;  %v2485_v38 = vpop.f32.mrb[26].mxu0  ;;  %4259 = vmatpush1.bf16.msra.mxu0 %v9617_v21  ;;  %v9625_v27 = vld [vmem:[%s13276_s5 + $0x2a0] ss:$12 sps:$4 sm:$0xff]   ;;  %v9668_v20 = vld [vmem:[%s13272_s2 + $0x39c] ss:$12 sps:$4 sm:$0xff]  }
 0x244   :  { %v11830_v22 = vmax.f32 %v2186_v39, %v2527_v46  ;;  %v2529_v25 = vpop.f32.mrb[27].mxu1  ;;  %4303 = vmatprep.subr.bf16.mxu1 %v10082_v0  ;;  %v11839_v32 = vmax.f32 %v2184_v47, %v2485_v38  ;;  %v2487_v40 = vpop.f32.mrb[27].mxu0  ;;  %4260 = vmatprep.subr.bf16.mxu0 %v9623_v54  ;;  %v9631_v39 = vld [vmem:[%s13276_s5 + $0x2bc] ss:$12 sps:$4 sm:$0xff]   ;;  %v9629_v47 = vld [vmem:[%s13276_s5 + $0x2b8] ss:$12 sps:$4 sm:$0xff]  }
 0x245   :  { %v11847_v50 = vmax.f32 %v2185_v35, %v2487_v40  ;;  %v9636_v35 = vld [vmem:[%s13276_s5 + $0x2d8] ss:$12 sps:$4 sm:$0xff]   ;;  %v2898_v23 = vpop.permute.xlu1 %2897 }
 0x246   :  { %v9674_v54 = vld [vmem:[%s13272_s2 + $0x3b8] ss:$12 sps:$4 sm:$0xff]  }
 0x247   :  { %4304 = vmatpush1.bf16.msra.mxu1 %v9624_v49  ;;  %4261 = vmatpush1.bf16.msra.mxu0 %v9621_v30  ;;  %v9675_v49 = vld [vmem:[%s13272_s2 + $0x3bc] ss:$12 sps:$4 sm:$0xff]  }
 0x248   :  { %4305 = vmatprep.subr.bf16.mxu1 %v10082_v0  ;;  %4262 = vmatprep.subr.bf16.mxu0 %v9627_v43 }
 0x24b   :  { %4306 = vmatpush1.bf16.msra.mxu1 %v9628_v51  ;;  %4263 = vmatpush1.bf16.msra.mxu0 %v9625_v27 }
 0x24c   :  { %4307 = vmatprep.subr.bf16.mxu1 %v10082_v0  ;;  %4264 = vmatprep.subr.bf16.mxu0 %v9631_v39 }
 0x24f   :  { %4308 = vmatpush1.bf16.msra.mxu1 %v9632_v41  ;;  %4265 = vmatpush1.bf16.msra.mxu0 %v9629_v47 }
 0x250   :  { %4309 = vmatprep.subr.bf16.mxu1 %v10082_v0  ;;  %4266 = vmatprep.subr.bf16.mxu0 %v9635_v52  ;;  %v9679_v52 = vld [vmem:[%s13272_s2 + $0x3d4] ss:$12 sps:$4 sm:$0xff]  }
 0x253   :  { %4310 = vmatpush1.bf16.msra.mxu1 %v9636_v35  ;;  %4267 = vmatpush1.bf16.msra.mxu0 %v9633_v53 }
 0x254   :  { %4311 = vmatprep.subr.bf16.mxu1 %v10082_v0  ;;  %4268 = vmatprep.subr.bf16.mxu0 %v9639_v55 }
 0x257   :  { %4312 = vmatpush1.bf16.msra.mxu1 %v9640_v56  ;;  %4269 = vmatpush1.bf16.msra.mxu0 %v9637_v29  ;;  %v9676_v56 = vld [vmem:[%s13272_s2 + $0x3cc] ss:$12 sps:$4 sm:$0xff]  }
 0x258   :  { %4313 = vmatprep.subr.bf16.mxu1 %v10082_v0  ;;  %4270 = vmatprep.subr.bf16.mxu0 %v9643_v57 }
 0x25b   :  { %4314 = vmatpush1.bf16.msra.mxu1 %v9644_v58  ;;  %4271 = vmatpush1.bf16.msra.mxu0 %v9641_v33 }
 0x25c   :  { %4315 = vmatprep.subr.bf16.mxu1 %v10082_v0  ;;  %4272 = vmatprep.subr.bf16.mxu0 %v9647_v59  ;;  %v9683_v59 = vld [vmem:[%s13272_s2 + $0x3ec] ss:$12 sps:$4 sm:$0xff]  }
 0x25f   :  { %4316 = vmatpush1.bf16.msra.mxu1 %v9648_v60  ;;  %4273 = vmatpush1.bf16.msra.mxu0 %v9645_v61  ;;  %v9680_v61 = vld [vmem:[%s13272_s2 + $0x3e4] ss:$12 sps:$4 sm:$0xff]  }
 0x260   :  { %4317 = vmatprep.subr.bf16.mxu1 %v10082_v0  ;;  %4274 = vmatprep.subr.bf16.mxu0 %v9651_v62  ;;  %v9686_v62 = vld [vmem:[%s13272_s2 + $0x400] ss:$12 sps:$4 sm:$0xff]  }
 0x263   :  { %4318 = vmatpush1.bf16.msra.mxu1 %v9652_v63  ;;  %4275 = vmatpush1.bf16.msra.mxu0 %v9649_v1  ;;  %v9687_v63 = vld [vmem:[%s13272_s2 + $0x404] ss:$12 sps:$4 sm:$0xff]   ;;  %v9684_v1 = vld [vmem:[%s13272_s2 + $0x3fc] ss:$12 sps:$4 sm:$0xff]  }
 0x264   :  { %4319 = vmatprep.subr.bf16.mxu1 %v10082_v0  ;;  %4276 = vmatprep.subr.bf16.mxu0 %v9655_v2  ;;  %v9690_v2 = vld [vmem:[%s13272_s2 + $0x418] ss:$12 sps:$4 sm:$0xff]  }
 0x267   :  { %4320 = vmatpush1.bf16.msra.mxu1 %v9656_v3  ;;  %4277 = vmatpush1.bf16.msra.mxu0 %v9653_v4  ;;  %v9691_v3 = vld [vmem:[%s13272_s2 + $0x41c] ss:$12 sps:$4 sm:$0xff]   ;;  %v9688_v4 = vld [vmem:[%s13272_s2 + $0x414] ss:$12 sps:$4 sm:$0xff]  }
 0x268   :  { %4321 = vmatprep.subr.bf16.mxu1 %v10082_v0  ;;  %4278 = vmatprep.subr.bf16.mxu0 %v9659_v5  ;;  %v9694_v5 = vld [vmem:[%s13272_s2 + $0x430] ss:$12 sps:$4 sm:$0xff]  }
 0x26b   :  { %4322 = vmatpush1.bf16.msra.mxu1 %v9660_v7  ;;  %4279 = vmatpush1.bf16.msra.mxu0 %v9657_v8  ;;  %v9692_v7 = vld [vmem:[%s13272_s2 + $0x42c] ss:$12 sps:$4 sm:$0xff]   ;;  %v9698_v8 = vld [vmem:[%s13272_s2 + $0x448] ss:$12 sps:$4 sm:$0xff]  }
 0x26c   :  { %4323 = vmatprep.subr.bf16.mxu1 %v10082_v0  ;;  %8243 = vmatprep.subr.msk.bf16.mxu0 %vm289_vm1, %v8241_v10  ;;  %v9696_v10 = vld [vmem:[%s13272_s2 + $0x444] ss:$12 sps:$4 sm:$0xff]  }
 0x26f   :  { %4324 = vmatpush1.bf16.msra.mxu1 %v4254_v45  ;;  %4281 = vmatpush1.bf16.msra.mxu0 %v4248_v12  ;;  %v9703_v45 = vld [vmem:[%s13272_s2 + $0x464] ss:$12 sps:$4 sm:$0xff]   ;;  %v9700_v12 = vld [vmem:[%s13272_s2 + $0x45c] ss:$12 sps:$4 sm:$0xff]  }
 0x270   :  { %4714 = vmatprep.subr.bf16.mxu1 %v10082_v0  ;;  %4671 = vmatprep.subr.bf16.mxu0 %v9666_v13  ;;  %v9706_v13 = vld [vmem:[%s13272_s2 + $0x478] ss:$12 sps:$4 sm:$0xff]  }
 0x272   :  { %4332 = vmatmul.mubr.bf16.vlgmr.msra.gmra.mrb[44].mxu1 %v11467_v28  ;;  %4289 = vmatmul.mubr.bf16.vlgmr.msra.gmra.mrb[44].mxu0 %v11467_v28 }
 0x273   :  { %4715 = vmatpush1.bf16.msra.mxu1 %v9667_v26  ;;  %4672 = vmatpush1.bf16.msra.mxu0 %v9664_v15  ;;  %v9707_v26 = vld [vmem:[%s13272_s2 + $0x47c] ss:$12 sps:$4 sm:$0xff]  }
 0x274   :  { %4716 = vmatprep.subr.bf16.mxu1 %v10082_v0  ;;  %4673 = vmatprep.subr.bf16.mxu0 %v9670_v16  ;;  %v9710_v15 = vld [vmem:[%s13272_s2 + $0x490] ss:$12 sps:$4 sm:$0xff]   ;;  %v8306_v16 = vld [vmem:[%s13272_s2 + $0x4a4] sm:$0xff] }
 0x275   :  { %v2874_v21 = vpop.f32.mrb[28].mxu1  ;;  %8351 = vmatprep.mubr.msk.bf16.mxu1 %vm285_vm0, %v11968_v17  ;;  %v2831_v24 = vpop.f32.mrb[28].mxu0  ;;  %8350 = vmatprep.mubr.msk.bf16.mxu0 %vm285_vm0, %v11968_v17 }
 0x276   :  { %v2883_v28 = vmax.f32 %v11811_v19, %v2874_v21  ;;  %v2876_v31 = vpop.f32.mrb[29].mxu1  ;;  %v2881_v37 = vmax.f32 %v11817_v36, %v2831_v24  ;;  %v2833_v44 = vpop.f32.mrb[29].mxu0  ;;  %v9672_v36 = vld [vmem:[%s13272_s2 + $0x3b4] ss:$12 sps:$4 sm:$0xff]   ;;  %v9713_v21 = vld [vmem:[%s13272_s2 + $0x4ac] ss:$0 sps:$4 sm:$0xff]  }
 0x277   :  { %v2877_v46 = vpop.f32.mrb[30].mxu1  ;;  %4717 = vmatpush1.bf16.msra.mxu1 %v9671_v18  ;;  %v2882_v25 = vmax.f32 %v11825_v42, %v2833_v44  ;;  %v2835_v19 = vpop.f32.mrb[30].mxu0  ;;  %4674 = vmatpush1.bf16.msra.mxu0 %v9668_v20  ;;  %v9678_v42 = vld [vmem:[%s13272_s2 + $0x3d0] ss:$12 sps:$4 sm:$0xff]   ;;  %v9711_v18 = vld [vmem:[%s13272_s2 + $0x494] ss:$12 sps:$4 sm:$0xff]  }
 0x278   :  { %v2902_v38 = vadd.f32 %v2893_v14, %v2883_v28  ;;  %v2886_v30 = vmax.f32 %v11830_v22, %v2877_v46  ;;  %v2879_v40 = vpop.f32.mrb[31].mxu1  ;;  %4718 = vmatprep.subr.bf16.mxu1 %v10082_v0  ;;  %v2900_v43 = vadd.f32 %v2893_v14, %v2881_v37  ;;  %v2884_v51 = vmax.f32 %v11839_v32, %v2835_v19  ;;  %v2837_v34 = vpop.f32.mrb[31].mxu0  ;;  %v9708_v20 = vld [vmem:[%s13272_s2 + $0x48c] ss:$12 sps:$4 sm:$0xff]   ;;  %v9720_v31 = vld [vmem:[%s13274_s3 + $0x388] ss:$12 sps:$4 sm:$0xff]  }
 0x279   :  { %4675 = vmatprep.subr.bf16.mxu0 %v9674_v54  ;;  %v2901_v22 = vadd.f32 %v2893_v14, %v2882_v25  ;;  %v2885_v39 = vmax.f32 %v11847_v50, %v2837_v34  ;;  %v9682_v50 = vld [vmem:[%s13272_s2 + $0x3e8] ss:$12 sps:$4 sm:$0xff]   ;;  %v8346_v54 = vcombine.low %v8306_v16, %v8306_v16  ;;  %v4669_v28 = vsel %vm289_vm1, %v9713_v21, 0  ;;  %v12117_v37 = vld [vmem:[%s13273_s0 + $0x30] ss:$8 sps:$4 sm:$0xff]  }
 0x27a   :  { %v2908_v27 = vmax.f32 %v2902_v38, 0.0  ;;  %v2905_v48 = vadd.f32 %v2898_v23, %v2886_v30  ;;  %v2906_v41 = vmax.f32 %v2900_v43, 0.0  ;;  %v2903_v47 = vadd.f32 %v2898_v23, %v2884_v51  ;;  %v9704_v14 = vld [vmem:[%s13272_s2 + $0x474] ss:$12 sps:$4 sm:$0xff]   ;;  %v9721_v44 = vld [vmem:[%s13274_s3 + $0x38c] ss:$12 sps:$4 sm:$0xff]  }
 0x27b   :  { %4719 = vmatpush1.bf16.msra.mxu1 %v9675_v49  ;;  %v2907_v32 = vmax.f32 %v2901_v22, 0.0  ;;  %v2904_v55 = vadd.f32 %v2898_v23, %v2885_v39  ;;  %4676 = vmatpush1.bf16.msra.mxu0 %v9672_v36  ;;  %v8347_v23 = vcombine.high %v8306_v16, %v8306_v16  ;;  %v4663_v24 = vsel %vm289_vm1, %v8346_v54, 0  ;;  %v9718_v46 = vld [vmem:[%s13274_s3 + $0x384] ss:$12 sps:$4 sm:$0xff]   ;;  %v9724_v49 = vld [vmem:[%s13274_s3 + $0x3a0] ss:$12 sps:$4 sm:$0xff]  }
 0x27c   :  { %v9025_v35 = vpack.c.bf16 %v2908_v27, %v2908_v27  ;;  %v2911_v53 = vmax.f32 %v2905_v48, 0.0  ;;  %4720 = vmatprep.subr.bf16.mxu1 %v10082_v0  ;;  %v2909_v29 = vmax.f32 %v2903_v47, 0.0  ;;  %4677 = vmatprep.subr.bf16.mxu0 %v9678_v42  ;;  %v9725_v38 = vld [vmem:[%s13274_s3 + $0x3a4] ss:$12 sps:$4 sm:$0xff]   ;;  %v9722_v25 = vld [vmem:[%s13274_s3 + $0x39c] ss:$12 sps:$4 sm:$0xff]  }
 0x27d   :  { %v9024_v57 = vpack.c.bf16 %v2907_v32, %v2906_v41  ;;  %v2910_v33 = vmax.f32 %v2904_v55, 0.0  ;;  %v9728_v19 = vld [vmem:[%s13274_s3 + $0x3b8] ss:$12 sps:$4 sm:$0xff]   ;;  %v9729_v34 = vld [vmem:[%s13274_s3 + $0x3bc] ss:$12 sps:$4 sm:$0xff]  }
 0x27e   :  { %7871 = vst [vmem:[%s13278_s6 + $0x20] sm:$0xf] %v9025_v35  ;;  %v9027_v58 = vpack.c.bf16 %v2911_v53, %v2911_v53  ;;  %v9726_v22 = vld [vmem:[%s13274_s3 + $0x3b4] ss:$12 sps:$4 sm:$0xff]   ;;  %v9732_v39 = vld [vmem:[%s13274_s3 + $0x3d0] ss:$12 sps:$4 sm:$0xff]  }
 0x27f   :  { %4721 = vmatpush1.bf16.msra.mxu1 %v9679_v52  ;;  %7870 = vst [vmem:[%s13278_s6 + $0x18] sm:$0xff] %v9024_v57  ;;  %v9026_v60 = vpack.c.bf16 %v2910_v33, %v2909_v29  ;;  %4678 = vmatpush1.bf16.msra.mxu0 %v9676_v56  ;;  %v9733_v41 = vld [vmem:[%s13274_s3 + $0x3d4] ss:$12 sps:$4 sm:$0xff]   ;;  %v9730_v47 = vld [vmem:[%s13274_s3 + $0x3cc] ss:$12 sps:$4 sm:$0xff]  }
 0x280   :  { %7873 = vst [vmem:[%s13278_s6 + $0x2c] sm:$0xf] %v9027_v58  ;;  %4722 = vmatprep.subr.bf16.mxu1 %v10082_v0  ;;  %4679 = vmatprep.subr.bf16.mxu0 %v9682_v50  ;;  %v9736_v52 = vld [vmem:[%s13274_s3 + $0x3e8] ss:$12 sps:$4 sm:$0xff]   ;;  %v9737_v35 = vld [vmem:[%s13274_s3 + $0x3ec] ss:$12 sps:$4 sm:$0xff]  }
 0x281   :  { %7872 = vst [vmem:[%s13278_s6 + $0x24] sm:$0xff] %v9026_v60  ;;  %v9734_v32 = vld [vmem:[%s13274_s3 + $0x3e4] ss:$12 sps:$4 sm:$0xff]   ;;  %v9740_v53 = vld [vmem:[%s13274_s3 + $0x400] ss:$12 sps:$4 sm:$0xff]  }
 0x282   :  { %v9741_v55 = vld [vmem:[%s13274_s3 + $0x404] ss:$12 sps:$4 sm:$0xff]   ;;  %v9738_v56 = vld [vmem:[%s13274_s3 + $0x3fc] ss:$12 sps:$4 sm:$0xff]   ;;  %v9742_v57 = vld [vmem:[%s13274_s3 + $0x414] ss:$12 sps:$4 sm:$0xff]  }
 0x283   :  { %4723 = vmatpush1.bf16.msra.mxu1 %v9683_v59  ;;  %4680 = vmatpush1.bf16.msra.mxu0 %v9680_v61  ;;  %v9744_v29 = vld [vmem:[%s13274_s3 + $0x418] ss:$12 sps:$4 sm:$0xff]   ;;  %v9745_v50 = vld [vmem:[%s13274_s3 + $0x41c] ss:$12 sps:$4 sm:$0xff]   ;;  %v9749_v33 = vld [vmem:[%s13274_s3 + $0x434] ss:$12 sps:$4 sm:$0xff]  }
 0x284   :  { %4724 = vmatprep.subr.bf16.mxu1 %v10082_v0  ;;  %4681 = vmatprep.subr.bf16.mxu0 %v9686_v62  ;;  %v9748_v58 = vld [vmem:[%s13274_s3 + $0x430] ss:$12 sps:$4 sm:$0xff]   ;;  %v9746_v59 = vld [vmem:[%s13274_s3 + $0x42c] ss:$12 sps:$4 sm:$0xff]   ;;  %v9752_v60 = vld [vmem:[%s13274_s3 + $0x448] ss:$12 sps:$4 sm:$0xff]  }
 0x285   :  { %v9753_v61 = vld [vmem:[%s13274_s3 + $0x44c] ss:$12 sps:$4 sm:$0xff]   ;;  %v9750_v62 = vld [vmem:[%s13274_s3 + $0x444] ss:$12 sps:$4 sm:$0xff]  }
 0x286   :  { %v9775_v16 = vld [vmem:[%s13275_s4 + $0x3a0] ss:$12 sps:$4 sm:$0xff]  }
 0x287   :  { %4725 = vmatpush1.bf16.msra.mxu1 %v9687_v63  ;;  %4682 = vmatpush1.bf16.msra.mxu0 %v9684_v1  ;;  %v9756_v63 = vld [vmem:[%s13274_s3 + $0x460] ss:$12 sps:$4 sm:$0xff]   ;;  %v9757_v1 = vld [vmem:[%s13274_s3 + $0x464] ss:$12 sps:$4 sm:$0xff]  }
 0x288   :  { %4726 = vmatprep.subr.bf16.mxu1 %v10082_v0  ;;  %4683 = vmatprep.subr.bf16.mxu0 %v9690_v2  ;;  %v9754_v2 = vld [vmem:[%s13274_s3 + $0x45c] ss:$12 sps:$4 sm:$0xff]  }
 0x28b   :  { %4727 = vmatpush1.bf16.msra.mxu1 %v9691_v3  ;;  %4684 = vmatpush1.bf16.msra.mxu0 %v9688_v4  ;;  %v9760_v3 = vld [vmem:[%s13274_s3 + $0x478] ss:$12 sps:$4 sm:$0xff]   ;;  %v9761_v4 = vld [vmem:[%s13274_s3 + $0x47c] ss:$12 sps:$4 sm:$0xff]  }
 0x28c   :  { %4728 = vmatprep.subr.bf16.mxu1 %v10082_v0  ;;  %4685 = vmatprep.subr.bf16.mxu0 %v9694_v5  ;;  %v9758_v5 = vld [vmem:[%s13274_s3 + $0x474] ss:$12 sps:$4 sm:$0xff]  }
 0x28f   :  { %4729 = vmatpush1.bf16.msra.mxu1 %v9695_v6  ;;  %4686 = vmatpush1.bf16.msra.mxu0 %v9692_v7  ;;  %v9764_v6 = vld [vmem:[%s13274_s3 + $0x490] ss:$12 sps:$4 sm:$0xff]   ;;  %v8400_v7 = vld [vmem:[%s13274_s3 + $0x4a4] sm:$0xff] }
 0x290   :  { %4730 = vmatprep.subr.bf16.mxu1 %v10082_v0  ;;  %4687 = vmatprep.subr.bf16.mxu0 %v9698_v8  ;;  %v9765_v8 = vld [vmem:[%s13274_s3 + $0x494] ss:$12 sps:$4 sm:$0xff]  }
 0x293   :  { %4731 = vmatpush1.bf16.msra.mxu1 %v9699_v9  ;;  %4688 = vmatpush1.bf16.msra.mxu0 %v9696_v10  ;;  %v9762_v9 = vld [vmem:[%s13274_s3 + $0x48c] ss:$12 sps:$4 sm:$0xff]  }
 0x294   :  { %4732 = vmatprep.subr.bf16.mxu1 %v10082_v0  ;;  %4689 = vmatprep.subr.bf16.mxu0 %v9702_v11  ;;  %v9767_v10 = vld [vmem:[%s13274_s3 + $0x4ac] ss:$0 sps:$4 sm:$0xff]   ;;  %v8439_v11 = vcombine.high %v8400_v7, %v8400_v7 }
 0x297   :  { %4733 = vmatpush1.bf16.msra.mxu1 %v9703_v45  ;;  %4690 = vmatpush1.bf16.msra.mxu0 %v9700_v12  ;;  %v8438_v45 = vcombine.low %v8400_v7, %v8400_v7  ;;  %v5013_v12 = vsel %vm289_vm1, %v9767_v10, 0  ;;  %v9815_v7 = vld [vmem:[%s13275_s4 + $0x490] ss:$12 sps:$4 sm:$0xff]   ;;  %v9813_v10 = vld [vmem:[%s13275_s4 + $0x48c] ss:$12 sps:$4 sm:$0xff]  }
 0x298   :  { %4734 = vmatprep.subr.bf16.mxu1 %v10082_v0  ;;  %4691 = vmatprep.subr.bf16.mxu0 %v9706_v13 }
 0x299   :  { %v5007_v13 = vsel %vm289_vm1, %v8438_v45, 0 }
 0x29b   :  { %4735 = vmatpush1.bf16.msra.mxu1 %v9707_v26  ;;  %4692 = vmatpush1.bf16.msra.mxu0 %v9704_v14  ;;  %v9771_v26 = vld [vmem:[%s13275_s4 + $0x388] ss:$12 sps:$4 sm:$0xff]   ;;  %v9772_v14 = vld [vmem:[%s13275_s4 + $0x38c] ss:$12 sps:$4 sm:$0xff]  }
 0x29c   :  { %4736 = vmatprep.subr.bf16.mxu1 %v10082_v0  ;;  %4693 = vmatprep.subr.bf16.mxu0 %v9710_v15  ;;  %v9769_v15 = vld [vmem:[%s13275_s4 + $0x384] ss:$12 sps:$4 sm:$0xff]  }
 0x29f   :  { %4737 = vmatpush1.bf16.msra.mxu1 %v9711_v18  ;;  %4694 = vmatpush1.bf16.msra.mxu0 %v9708_v20  ;;  %v9776_v18 = vld [vmem:[%s13275_s4 + $0x3a4] ss:$12 sps:$4 sm:$0xff]   ;;  %v9773_v20 = vld [vmem:[%s13275_s4 + $0x39c] ss:$12 sps:$4 sm:$0xff]  }
 0x2a0   :  { %4738 = vmatprep.subr.bf16.mxu1 %v10082_v0  ;;  %8349 = vmatprep.subr.msk.bf16.mxu0 %vm289_vm1, %v8347_v23  ;;  %v9779_v23 = vld [vmem:[%s13275_s4 + $0x3b8] ss:$12 sps:$4 sm:$0xff]  }
 0x2a3   :  { %4739 = vmatpush1.bf16.msra.mxu1 %v4669_v28  ;;  %4696 = vmatpush1.bf16.msra.mxu0 %v4663_v24 }
 0x2a4   :  { %5058 = vmatprep.subr.bf16.mxu1 %v10082_v0  ;;  %5015 = vmatprep.subr.bf16.mxu0 %v9720_v31 }
 0x2a6   :  { %4747 = vmatmul.mubr.bf16.vlgmr.msra.gmra.mrb[48].mxu1 %v12117_v37  ;;  %4704 = vmatmul.mubr.bf16.vlgmr.msra.gmra.mrb[48].mxu0 %v12117_v37 }
 0x2a7   :  { %5059 = vmatpush1.bf16.msra.mxu1 %v9721_v44  ;;  %5016 = vmatpush1.bf16.msra.mxu0 %v9718_v46 }
 0x2a8   :  { %5060 = vmatprep.subr.bf16.mxu1 %v10082_v0  ;;  %5017 = vmatprep.subr.bf16.mxu0 %v9724_v49  ;;  %v9780_v49 = vld [vmem:[%s13275_s4 + $0x3bc] ss:$12 sps:$4 sm:$0xff]  }
 0x2a9   :  { %v12138_v30 = vpop.f32.mrb[32].mxu1  ;;  %8443 = vmatprep.mubr.msk.bf16.mxu1 %vm285_vm0, %v11968_v17  ;;  %v12145_v40 = vpop.f32.mrb[32].mxu0  ;;  %8442 = vmatprep.mubr.msk.bf16.mxu0 %vm285_vm0, %v11968_v17 }
 0x2aa   :  { %v3291_v36 = vpop.f32.mrb[33].mxu1  ;;  %v12149_v43 = vpop.f32.mrb[33].mxu0 }
 0x2ab   :  { %v12151_v51 = vpop.f32.mrb[34].mxu1  ;;  %5061 = vmatpush1.bf16.msra.mxu1 %v9725_v38  ;;  %v12156_v42 = vpop.f32.mrb[34].mxu0  ;;  %5018 = vmatpush1.bf16.msra.mxu0 %v9722_v25 }
 0x2ac   :  { %v3294_v27 = vpop.f32.mrb[35].mxu1  ;;  %5062 = vmatprep.subr.bf16.mxu1 %v10082_v0  ;;  %v12162_v48 = vpop.f32.mrb[35].mxu0  ;;  %5019 = vmatprep.subr.bf16.mxu0 %v9728_v19 }
 0x2af   :  { %5063 = vmatpush1.bf16.msra.mxu1 %v9729_v34  ;;  %5020 = vmatpush1.bf16.msra.mxu0 %v9726_v22  ;;  %v9777_v34 = vld [vmem:[%s13275_s4 + $0x3b4] ss:$12 sps:$4 sm:$0xff]  }
 0x2b0   :  { %5064 = vmatprep.subr.bf16.mxu1 %v10082_v0  ;;  %5021 = vmatprep.subr.bf16.mxu0 %v9732_v39  ;;  %v9783_v39 = vld [vmem:[%s13275_s4 + $0x3d0] ss:$12 sps:$4 sm:$0xff]  }
 0x2b3   :  { %5065 = vmatpush1.bf16.msra.mxu1 %v9733_v41  ;;  %5022 = vmatpush1.bf16.msra.mxu0 %v9730_v47  ;;  %v9784_v47 = vld [vmem:[%s13275_s4 + $0x3d4] ss:$12 sps:$4 sm:$0xff]  }
 0x2b4   :  { %5066 = vmatprep.subr.bf16.mxu1 %v10082_v0  ;;  %5023 = vmatprep.subr.bf16.mxu0 %v9736_v52  ;;  %v9781_v52 = vld [vmem:[%s13275_s4 + $0x3cc] ss:$12 sps:$4 sm:$0xff]  }
 0x2b7   :  { %5067 = vmatpush1.bf16.msra.mxu1 %v9737_v35  ;;  %5024 = vmatpush1.bf16.msra.mxu0 %v9734_v32  ;;  %v9787_v35 = vld [vmem:[%s13275_s4 + $0x3e8] ss:$12 sps:$4 sm:$0xff]   ;;  %v9788_v32 = vld [vmem:[%s13275_s4 + $0x3ec] ss:$12 sps:$4 sm:$0xff]  }
 0x2b8   :  { %5068 = vmatprep.subr.bf16.mxu1 %v10082_v0  ;;  %5025 = vmatprep.subr.bf16.mxu0 %v9740_v53  ;;  %v9785_v53 = vld [vmem:[%s13275_s4 + $0x3e4] ss:$12 sps:$4 sm:$0xff]  }
 0x2bb   :  { %5069 = vmatpush1.bf16.msra.mxu1 %v9741_v55  ;;  %5026 = vmatpush1.bf16.msra.mxu0 %v9738_v56  ;;  %v9791_v55 = vld [vmem:[%s13275_s4 + $0x400] ss:$12 sps:$4 sm:$0xff]   ;;  %v9792_v56 = vld [vmem:[%s13275_s4 + $0x404] ss:$12 sps:$4 sm:$0xff]  }
 0x2bc   :  { %5070 = vmatprep.subr.bf16.mxu1 %v10082_v0  ;;  %5027 = vmatprep.subr.bf16.mxu0 %v9744_v29  ;;  %v9789_v29 = vld [vmem:[%s13275_s4 + $0x3fc] ss:$12 sps:$4 sm:$0xff]  }
 0x2bf   :  { %5071 = vmatpush1.bf16.msra.mxu1 %v9745_v50  ;;  %5028 = vmatpush1.bf16.msra.mxu0 %v9742_v57  ;;  %v9795_v50 = vld [vmem:[%s13275_s4 + $0x418] ss:$12 sps:$4 sm:$0xff]   ;;  %v9796_v57 = vld [vmem:[%s13275_s4 + $0x41c] ss:$12 sps:$4 sm:$0xff]  }
 0x2c0   :  { %5072 = vmatprep.subr.bf16.mxu1 %v10082_v0  ;;  %5029 = vmatprep.subr.bf16.mxu0 %v9748_v58  ;;  %v9793_v58 = vld [vmem:[%s13275_s4 + $0x414] ss:$12 sps:$4 sm:$0xff]  }
 0x2c3   :  { %5073 = vmatpush1.bf16.msra.mxu1 %v9749_v33  ;;  %5030 = vmatpush1.bf16.msra.mxu0 %v9746_v59  ;;  %v9799_v33 = vld [vmem:[%s13275_s4 + $0x430] ss:$12 sps:$4 sm:$0xff]   ;;  %v9800_v59 = vld [vmem:[%s13275_s4 + $0x434] ss:$12 sps:$4 sm:$0xff]  }
 0x2c4   :  { %5074 = vmatprep.subr.bf16.mxu1 %v10082_v0  ;;  %5031 = vmatprep.subr.bf16.mxu0 %v9752_v60  ;;  %v9797_v60 = vld [vmem:[%s13275_s4 + $0x42c] ss:$12 sps:$4 sm:$0xff]  }
 0x2c7   :  { %5075 = vmatpush1.bf16.msra.mxu1 %v9753_v61  ;;  %5032 = vmatpush1.bf16.msra.mxu0 %v9750_v62  ;;  %v9803_v61 = vld [vmem:[%s13275_s4 + $0x448] ss:$12 sps:$4 sm:$0xff]   ;;  %v9804_v62 = vld [vmem:[%s13275_s4 + $0x44c] ss:$12 sps:$4 sm:$0xff]  }
 0x2c8   :  { %5076 = vmatprep.subr.bf16.mxu1 %v10082_v0  ;;  %5033 = vmatprep.subr.bf16.mxu0 %v9756_v63  ;;  %v9801_v63 = vld [vmem:[%s13275_s4 + $0x444] ss:$12 sps:$4 sm:$0xff]  }
 0x2cb   :  { %5077 = vmatpush1.bf16.msra.mxu1 %v9757_v1  ;;  %5034 = vmatpush1.bf16.msra.mxu0 %v9754_v2  ;;  %v9807_v1 = vld [vmem:[%s13275_s4 + $0x460] ss:$12 sps:$4 sm:$0xff]   ;;  %v9808_v2 = vld [vmem:[%s13275_s4 + $0x464] ss:$12 sps:$4 sm:$0xff]  }
 0x2cc   :  { %5078 = vmatprep.subr.bf16.mxu1 %v10082_v0  ;;  %5035 = vmatprep.subr.bf16.mxu0 %v9760_v3  ;;  %v9805_v3 = vld [vmem:[%s13275_s4 + $0x45c] ss:$12 sps:$4 sm:$0xff]  }
 0x2cf   :  { %5079 = vmatpush1.bf16.msra.mxu1 %v9761_v4  ;;  %5036 = vmatpush1.bf16.msra.mxu0 %v9758_v5  ;;  %v9811_v4 = vld [vmem:[%s13275_s4 + $0x478] ss:$12 sps:$4 sm:$0xff]   ;;  %v9812_v5 = vld [vmem:[%s13275_s4 + $0x47c] ss:$12 sps:$4 sm:$0xff]  }
 0x2d0   :  { %5080 = vmatprep.subr.bf16.mxu1 %v10082_v0  ;;  %5037 = vmatprep.subr.bf16.mxu0 %v9764_v6  ;;  %v9809_v6 = vld [vmem:[%s13275_s4 + $0x474] ss:$12 sps:$4 sm:$0xff]  }
 0x2d3   :  { %5081 = vmatpush1.bf16.msra.mxu1 %v9765_v8  ;;  %5038 = vmatpush1.bf16.msra.mxu0 %v9762_v9  ;;  %v8492_v8 = vld [vmem:[%s13275_s4 + $0x4a4] sm:$0xff]  ;;  %v9816_v9 = vld [vmem:[%s13275_s4 + $0x494] ss:$12 sps:$4 sm:$0xff]  }
 0x2d4   :  { %5082 = vmatprep.subr.bf16.mxu1 %v10082_v0  ;;  %8441 = vmatprep.subr.msk.bf16.mxu0 %vm289_vm1, %v8439_v11  ;;  %v9818_v11 = vld [vmem:[%s13275_s4 + $0x4ac] ss:$0 sps:$4 sm:$0xff]   ;;  %v8531_v45 = vcombine.high %v8492_v8, %v8492_v8 }
 0x2d7   :  { %5083 = vmatpush1.bf16.msra.mxu1 %v5013_v12  ;;  %5040 = vmatpush1.bf16.msra.mxu0 %v5007_v13  ;;  %v8530_v12 = vcombine.low %v8492_v8, %v8492_v8  ;;  %v5363_v13 = vsel %vm289_vm1, %v9818_v11, 0 }
 0x2d8   :  { %5408 = vmatprep.subr.bf16.mxu1 %v10082_v0  ;;  %5365 = vmatprep.subr.bf16.mxu0 %v9771_v26 }
 0x2d9   :  { %v5357_v26 = vsel %vm289_vm1, %v8530_v12, 0  ;;  %v9874_v12 = vld [vmem:[%s13272_s2 + $0x4b8] ss:$12 sps:$4 sm:$0xff]  }
 0x2da   :  { %5091 = vmatmul.mubr.bf16.vlgmr.msra.gmra.mrb[52].mxu1 %v12117_v37  ;;  %5048 = vmatmul.mubr.bf16.vlgmr.msra.gmra.mrb[52].mxu0 %v12117_v37 }
 0x2db   :  { %5409 = vmatpush1.bf16.msra.mxu1 %v9772_v14  ;;  %5366 = vmatpush1.bf16.msra.mxu0 %v9769_v15  ;;  %v9822_v14 = vld [vmem:[%s13276_s5 + $0x388] ss:$12 sps:$4 sm:$0xff]   ;;  %v9823_v15 = vld [vmem:[%s13276_s5 + $0x38c] ss:$12 sps:$4 sm:$0xff]  }
 0x2dc   :  { %5410 = vmatprep.subr.bf16.mxu1 %v10082_v0  ;;  %5367 = vmatprep.subr.bf16.mxu0 %v9775_v16  ;;  %v9820_v16 = vld [vmem:[%s13276_s5 + $0x384] ss:$12 sps:$4 sm:$0xff]  }
 0x2dd   :  { %v12286_v21 = vpop.f32.mrb[36].mxu1  ;;  %8535 = vmatprep.mubr.msk.bf16.mxu1 %vm285_vm0, %v11968_v17  ;;  %v12295_v28 = vpop.f32.mrb[36].mxu0  ;;  %8534 = vmatprep.mubr.msk.bf16.mxu0 %vm285_vm0, %v11968_v17 }
 0x2de   :  { %v3642_v54 = vmax.f32 %v12138_v30, %v12286_v21  ;;  %v3635_v24 = vpop.f32.mrb[37].mxu1  ;;  %v3640_v31 = vmax.f32 %v12145_v40, %v12295_v28  ;;  %v12301_v44 = vpop.f32.mrb[37].mxu0 }
 0x2df   :  { %v12303_v46 = vpop.f32.mrb[38].mxu1  ;;  %5411 = vmatpush1.bf16.msra.mxu1 %v9776_v18  ;;  %v3641_v38 = vmax.f32 %v12149_v43, %v12301_v44  ;;  %v12312_v19 = vpop.f32.mrb[38].mxu0  ;;  %5368 = vmatpush1.bf16.msra.mxu0 %v9773_v20  ;;  %v9826_v18 = vld [vmem:[%s13276_s5 + $0x3a0] ss:$12 sps:$4 sm:$0xff]   ;;  %v9827_v20 = vld [vmem:[%s13276_s5 + $0x3a4] ss:$12 sps:$4 sm:$0xff]  }
 0x2e0   :  { %v3645_v25 = vmax.f32 %v12151_v51, %v12303_v46  ;;  %v3638_v36 = vpop.f32.mrb[39].mxu1  ;;  %5412 = vmatprep.subr.bf16.mxu1 %v10082_v0  ;;  %v3643_v27 = vmax.f32 %v12156_v42, %v12312_v19  ;;  %v12320_v22 = vpop.f32.mrb[39].mxu0  ;;  %5369 = vmatprep.subr.bf16.mxu0 %v9779_v23  ;;  %v9824_v23 = vld [vmem:[%s13276_s5 + $0x39c] ss:$12 sps:$4 sm:$0xff]   ;;  %v9835_v44 = vld [vmem:[%s13276_s5 + $0x3d4] ss:$12 sps:$4 sm:$0xff]  }
 0x2e1   :  { %v3644_v41 = vmax.f32 %v12162_v48, %v12320_v22  ;;  %v9834_v51 = vld [vmem:[%s13276_s5 + $0x3d0] ss:$12 sps:$4 sm:$0xff]   ;;  %v9832_v46 = vld [vmem:[%s13276_s5 + $0x3cc] ss:$12 sps:$4 sm:$0xff]  }
 0x2e2   :  { %v8628_v42 = vld [vmem:[%s13277_s1 + $0x30] sm:$0xff]  ;;  %v8629_v48 = vld [vmem:[%s13277_s1 + $0x38] sm:$0xff] }
 0x2e3   :  { %5413 = vmatpush1.bf16.msra.mxu1 %v9780_v49  ;;  %5370 = vmatpush1.bf16.msra.mxu0 %v9777_v34  ;;  %v9830_v49 = vld [vmem:[%s13276_s5 + $0x3b8] ss:$12 sps:$4 sm:$0xff]  }
 0x2e4   :  { %5414 = vmatprep.subr.bf16.mxu1 %v10082_v0  ;;  %5371 = vmatprep.subr.bf16.mxu0 %v9783_v39  ;;  %v9836_v19 = vld [vmem:[%s13276_s5 + $0x3e4] ss:$12 sps:$4 sm:$0xff]  }
 0x2e5   :  { %5810 = vperm.xlu0 %9041, %v8628_v42   ;;  %5815 = vperm.xlu1 %9042, %v8629_v48   ;;  %v9843_v22 = vld [vmem:[%s13276_s5 + $0x404] ss:$12 sps:$4 sm:$0xff]  }
 0x2e7   :  { %5415 = vmatpush1.bf16.msra.mxu1 %v9784_v47  ;;  %5372 = vmatpush1.bf16.msra.mxu0 %v9781_v52 }
 0x2e8   :  { %5416 = vmatprep.subr.bf16.mxu1 %v10082_v0  ;;  %5373 = vmatprep.subr.bf16.mxu0 %v9787_v35 }
 0x2eb   :  { %5417 = vmatpush1.bf16.msra.mxu1 %v9788_v32  ;;  %5374 = vmatpush1.bf16.msra.mxu0 %v9785_v53  ;;  %v9831_v32 = vld [vmem:[%s13276_s5 + $0x3bc] ss:$12 sps:$4 sm:$0xff]   ;;  %v9846_v53 = vld [vmem:[%s13276_s5 + $0x418] ss:$12 sps:$4 sm:$0xff]  }
 0x2ec   :  { %5418 = vmatprep.subr.bf16.mxu1 %v10082_v0  ;;  %5375 = vmatprep.subr.bf16.mxu0 %v9791_v55  ;;  %v9847_v55 = vld [vmem:[%s13276_s5 + $0x41c] ss:$12 sps:$4 sm:$0xff]  }
 0x2ef   :  { %5419 = vmatpush1.bf16.msra.mxu1 %v9792_v56  ;;  %5376 = vmatpush1.bf16.msra.mxu0 %v9789_v29  ;;  %v9844_v56 = vld [vmem:[%s13276_s5 + $0x414] ss:$12 sps:$4 sm:$0xff]   ;;  %v9850_v29 = vld [vmem:[%s13276_s5 + $0x430] ss:$12 sps:$4 sm:$0xff]  }
 0x2f0   :  { %5420 = vmatprep.subr.bf16.mxu1 %v10082_v0  ;;  %5377 = vmatprep.subr.bf16.mxu0 %v9795_v50  ;;  %v9851_v50 = vld [vmem:[%s13276_s5 + $0x434] ss:$12 sps:$4 sm:$0xff]  }
 0x2f3   :  { %5421 = vmatpush1.bf16.msra.mxu1 %v9796_v57  ;;  %5378 = vmatpush1.bf16.msra.mxu0 %v9793_v58  ;;  %v9848_v57 = vld [vmem:[%s13276_s5 + $0x42c] ss:$12 sps:$4 sm:$0xff]   ;;  %v9854_v58 = vld [vmem:[%s13276_s5 + $0x448] ss:$12 sps:$4 sm:$0xff]  }
 0x2f4   :  { %5422 = vmatprep.subr.bf16.mxu1 %v10082_v0  ;;  %5379 = vmatprep.subr.bf16.mxu0 %v9799_v33  ;;  %v9855_v33 = vld [vmem:[%s13276_s5 + $0x44c] ss:$12 sps:$4 sm:$0xff]  }
 0x2f7   :  { %5423 = vmatpush1.bf16.msra.mxu1 %v9800_v59  ;;  %5380 = vmatpush1.bf16.msra.mxu0 %v9797_v60  ;;  %v9852_v59 = vld [vmem:[%s13276_s5 + $0x444] ss:$12 sps:$4 sm:$0xff]   ;;  %v9858_v60 = vld [vmem:[%s13276_s5 + $0x460] ss:$12 sps:$4 sm:$0xff]  }
 0x2f8   :  { %5424 = vmatprep.subr.bf16.mxu1 %v10082_v0  ;;  %5381 = vmatprep.subr.bf16.mxu0 %v9803_v61  ;;  %v9859_v61 = vld [vmem:[%s13276_s5 + $0x464] ss:$12 sps:$4 sm:$0xff]  }
 0x2fb   :  { %5425 = vmatpush1.bf16.msra.mxu1 %v9804_v62  ;;  %5382 = vmatpush1.bf16.msra.mxu0 %v9801_v63  ;;  %v9856_v62 = vld [vmem:[%s13276_s5 + $0x45c] ss:$12 sps:$4 sm:$0xff]   ;;  %v9862_v63 = vld [vmem:[%s13276_s5 + $0x478] ss:$12 sps:$4 sm:$0xff]  }
 0x2fc   :  { %5426 = vmatprep.subr.bf16.mxu1 %v10082_v0  ;;  %5383 = vmatprep.subr.bf16.mxu0 %v9807_v1  ;;  %v9863_v1 = vld [vmem:[%s13276_s5 + $0x47c] ss:$12 sps:$4 sm:$0xff]  }
 0x2ff   :  { %5427 = vmatpush1.bf16.msra.mxu1 %v9808_v2  ;;  %5384 = vmatpush1.bf16.msra.mxu0 %v9805_v3  ;;  %v9860_v2 = vld [vmem:[%s13276_s5 + $0x474] ss:$12 sps:$4 sm:$0xff]   ;;  %v9866_v3 = vld [vmem:[%s13276_s5 + $0x490] ss:$12 sps:$4 sm:$0xff]  }
 0x300   :  { %5428 = vmatprep.subr.bf16.mxu1 %v10082_v0  ;;  %5385 = vmatprep.subr.bf16.mxu0 %v9811_v4  ;;  %v8584_v4 = vld [vmem:[%s13276_s5 + $0x4a4] sm:$0xff] }
 0x301   :  { %v8623_v8 = vcombine.high %v8584_v4, %v8584_v4 }
 0x303   :  { %5429 = vmatpush1.bf16.msra.mxu1 %v9812_v5  ;;  %5386 = vmatpush1.bf16.msra.mxu0 %v9809_v6  ;;  %v9867_v5 = vld [vmem:[%s13276_s5 + $0x494] ss:$12 sps:$4 sm:$0xff]   ;;  %v9864_v6 = vld [vmem:[%s13276_s5 + $0x48c] ss:$12 sps:$4 sm:$0xff]  }
 0x304   :  { %5430 = vmatprep.subr.bf16.mxu1 %v10082_v0  ;;  %5387 = vmatprep.subr.bf16.mxu0 %v9815_v7  ;;  %v9869_v7 = vld [vmem:[%s13276_s5 + $0x4ac] ss:$0 sps:$4 sm:$0xff]  }
 0x307   :  { %5431 = vmatpush1.bf16.msra.mxu1 %v9816_v9  ;;  %5388 = vmatpush1.bf16.msra.mxu0 %v9813_v10  ;;  %v8622_v9 = vcombine.low %v8584_v4, %v8584_v4  ;;  %v5713_v10 = vsel %vm289_vm1, %v9869_v7, 0  ;;  %v9902_v4 = vld [vmem:[%s13272_s2 + $0x560] ss:$12 sps:$4 sm:$0xff]   ;;  %v9906_v7 = vld [vmem:[%s13272_s2 + $0x578] ss:$12 sps:$4 sm:$0xff]  }
 0x308   :  { %5432 = vmatprep.subr.bf16.mxu1 %v10082_v0  ;;  %8533 = vmatprep.subr.msk.bf16.mxu0 %vm289_vm1, %v8531_v45  ;;  %v9873_v45 = vld [vmem:[%s13272_s2 + $0x4b4] ss:$12 sps:$4 sm:$0xff]  }
 0x309   :  { %v5707_v11 = vsel %vm289_vm1, %v8622_v9, 0  ;;  %v9909_v9 = vld [vmem:[%s13272_s2 + $0x58c] ss:$12 sps:$4 sm:$0xff]  }
 0x30b   :  { %5433 = vmatpush1.bf16.msra.mxu1 %v5363_v13  ;;  %5390 = vmatpush1.bf16.msra.mxu0 %v5357_v26  ;;  %v9871_v13 = vld [vmem:[%s13272_s2 + $0x4b0] ss:$12 sps:$4 sm:$0xff]   ;;  %v9877_v26 = vld [vmem:[%s13272_s2 + $0x4cc] ss:$12 sps:$4 sm:$0xff]  }
 0x30c   :  { %5758 = vmatprep.subr.bf16.mxu1 %v10082_v0  ;;  %5715 = vmatprep.subr.bf16.mxu0 %v9822_v14  ;;  %v12612_v14 = vld [vmem:[%s13273_s0 + $0x44] ss:$8 sps:$4 sm:$0xff]  }
 0x30e   :  { %5441 = vmatmul.mubr.bf16.vlgmr.msra.gmra.mrb[56].mxu1 %v12117_v37  ;;  %5398 = vmatmul.mubr.bf16.vlgmr.msra.gmra.mrb[56].mxu0 %v12117_v37 }
 0x30f   :  { %5759 = vmatpush1.bf16.msra.mxu1 %v9823_v15  ;;  %5716 = vmatpush1.bf16.msra.mxu0 %v9820_v16  ;;  %v9878_v15 = vld [vmem:[%s13272_s2 + $0x4d0] ss:$12 sps:$4 sm:$0xff]   ;;  %v4352_v16 = vpop.permute.xlu0 %4351 }
 0x310   :  { %5760 = vmatprep.subr.bf16.mxu1 %v10082_v0  ;;  %5717 = vmatprep.subr.bf16.mxu0 %v9826_v18  ;;  %v9875_v18 = vld [vmem:[%s13272_s2 + $0x4c8] ss:$12 sps:$4 sm:$0xff]  }
 0x311   :  { %v3983_v24 = vpop.f32.mrb[40].mxu1  ;;  %8627 = vmatprep.mubr.msk.bf16.mxu1 %vm285_vm0, %v11968_v17  ;;  %v3940_v34 = vpop.f32.mrb[40].mxu0  ;;  %8626 = vmatprep.mubr.msk.bf16.mxu0 %vm285_vm0, %v11968_v17 }
 0x312   :  { %v12454_v36 = vmax.f32 %v3642_v54, %v3983_v24  ;;  %v3985_v39 = vpop.f32.mrb[41].mxu1  ;;  %v12461_v47 = vmax.f32 %v3640_v31, %v3940_v34  ;;  %v3942_v52 = vpop.f32.mrb[41].mxu0  ;;  %v9828_v54 = vld [vmem:[%s13276_s5 + $0x3b4] ss:$12 sps:$4 sm:$0xff]  }
 0x313   :  { %v3986_v35 = vpop.f32.mrb[42].mxu1  ;;  %5761 = vmatpush1.bf16.msra.mxu1 %v9827_v20  ;;  %v12469_v30 = vmax.f32 %v3641_v38, %v3942_v52  ;;  %v3944_v40 = vpop.f32.mrb[42].mxu0  ;;  %5718 = vmatpush1.bf16.msra.mxu0 %v9824_v23  ;;  %v9838_v38 = vld [vmem:[%s13276_s5 + $0x3e8] ss:$12 sps:$4 sm:$0xff]  }
 0x314   :  { %v12474_v17 = vmax.f32 %v3645_v25, %v3986_v35  ;;  %v3988_v21 = vpop.f32.mrb[43].mxu1  ;;  %5762 = vmatprep.subr.bf16.mxu1 %v10082_v0  ;;  %v12483_v43 = vmax.f32 %v3643_v27, %v3944_v40  ;;  %v3946_v28 = vpop.f32.mrb[43].mxu0  ;;  %5719 = vmatprep.subr.bf16.mxu0 %v9830_v49  ;;  %v9839_v25 = vld [vmem:[%s13276_s5 + $0x3ec] ss:$12 sps:$4 sm:$0xff]  }
 0x315   :  { %v12491_v31 = vmax.f32 %v3644_v41, %v3946_v28  ;;  %v9842_v27 = vld [vmem:[%s13276_s5 + $0x400] ss:$12 sps:$4 sm:$0xff]   ;;  %v9840_v41 = vld [vmem:[%s13276_s5 + $0x3fc] ss:$12 sps:$4 sm:$0xff]   ;;  %v4357_v23 = vpop.permute.xlu1 %4356 }
 0x317   :  { %5763 = vmatpush1.bf16.msra.mxu1 %v9831_v32  ;;  %5720 = vmatpush1.bf16.msra.mxu0 %v9828_v54  ;;  %v9882_v32 = vld [vmem:[%s13272_s2 + $0x4e8] ss:$12 sps:$4 sm:$0xff]  }
 0x318   :  { %5764 = vmatprep.subr.bf16.mxu1 %v10082_v0  ;;  %5721 = vmatprep.subr.bf16.mxu0 %v9834_v51 }
 0x31b   :  { %5765 = vmatpush1.bf16.msra.mxu1 %v9835_v44  ;;  %5722 = vmatpush1.bf16.msra.mxu0 %v9832_v46 }
 0x31c   :  { %5766 = vmatprep.subr.bf16.mxu1 %v10082_v0  ;;  %5723 = vmatprep.subr.bf16.mxu0 %v9838_v38 }
 0x31f   :  { %5767 = vmatpush1.bf16.msra.mxu1 %v9839_v25  ;;  %5724 = vmatpush1.bf16.msra.mxu0 %v9836_v19 }
 0x320   :  { %5768 = vmatprep.subr.bf16.mxu1 %v10082_v0  ;;  %5725 = vmatprep.subr.bf16.mxu0 %v9842_v27  ;;  %v9886_v27 = vld [vmem:[%s13272_s2 + $0x500] ss:$12 sps:$4 sm:$0xff]  }
 0x323   :  { %5769 = vmatpush1.bf16.msra.mxu1 %v9843_v22  ;;  %5726 = vmatpush1.bf16.msra.mxu0 %v9840_v41 }
 0x324   :  { %5770 = vmatprep.subr.bf16.mxu1 %v10082_v0  ;;  %5727 = vmatprep.subr.bf16.mxu0 %v9846_v53 }
 0x327   :  { %5771 = vmatpush1.bf16.msra.mxu1 %v9847_v55  ;;  %5728 = vmatpush1.bf16.msra.mxu0 %v9844_v56  ;;  %v9883_v55 = vld [vmem:[%s13272_s2 + $0x4f8] ss:$12 sps:$4 sm:$0xff]  }
 0x328   :  { %5772 = vmatprep.subr.bf16.mxu1 %v10082_v0  ;;  %5729 = vmatprep.subr.bf16.mxu0 %v9850_v29 }
 0x32b   :  { %5773 = vmatpush1.bf16.msra.mxu1 %v9851_v50  ;;  %5730 = vmatpush1.bf16.msra.mxu0 %v9848_v57 }
 0x32c   :  { %5774 = vmatprep.subr.bf16.mxu1 %v10082_v0  ;;  %5731 = vmatprep.subr.bf16.mxu0 %v9854_v58  ;;  %v9890_v58 = vld [vmem:[%s13272_s2 + $0x518] ss:$12 sps:$4 sm:$0xff]  }
 0x32f   :  { %5775 = vmatpush1.bf16.msra.mxu1 %v9855_v33  ;;  %5732 = vmatpush1.bf16.msra.mxu0 %v9852_v59  ;;  %v9887_v59 = vld [vmem:[%s13272_s2 + $0x510] ss:$12 sps:$4 sm:$0xff]  }
 0x330   :  { %5776 = vmatprep.subr.bf16.mxu1 %v10082_v0  ;;  %5733 = vmatprep.subr.bf16.mxu0 %v9858_v60  ;;  %v9893_v60 = vld [vmem:[%s13272_s2 + $0x52c] ss:$12 sps:$4 sm:$0xff]  }
 0x333   :  { %5777 = vmatpush1.bf16.msra.mxu1 %v9859_v61  ;;  %5734 = vmatpush1.bf16.msra.mxu0 %v9856_v62  ;;  %v9894_v61 = vld [vmem:[%s13272_s2 + $0x530] ss:$12 sps:$4 sm:$0xff]   ;;  %v9891_v62 = vld [vmem:[%s13272_s2 + $0x528] ss:$12 sps:$4 sm:$0xff]  }
 0x334   :  { %5778 = vmatprep.subr.bf16.mxu1 %v10082_v0  ;;  %5735 = vmatprep.subr.bf16.mxu0 %v9862_v63  ;;  %v9897_v63 = vld [vmem:[%s13272_s2 + $0x544] ss:$12 sps:$4 sm:$0xff]  }
 0x337   :  { %5779 = vmatpush1.bf16.msra.mxu1 %v9863_v1  ;;  %5736 = vmatpush1.bf16.msra.mxu0 %v9860_v2  ;;  %v9898_v1 = vld [vmem:[%s13272_s2 + $0x548] ss:$12 sps:$4 sm:$0xff]   ;;  %v9895_v2 = vld [vmem:[%s13272_s2 + $0x540] ss:$12 sps:$4 sm:$0xff]  }
 0x338   :  { %5780 = vmatprep.subr.bf16.mxu1 %v10082_v0  ;;  %5737 = vmatprep.subr.bf16.mxu0 %v9866_v3  ;;  %v9901_v3 = vld [vmem:[%s13272_s2 + $0x55c] ss:$12 sps:$4 sm:$0xff]  }
 0x33b   :  { %5781 = vmatpush1.bf16.msra.mxu1 %v9867_v5  ;;  %5738 = vmatpush1.bf16.msra.mxu0 %v9864_v6  ;;  %v9899_v5 = vld [vmem:[%s13272_s2 + $0x558] ss:$12 sps:$4 sm:$0xff]   ;;  %v9905_v6 = vld [vmem:[%s13272_s2 + $0x574] ss:$12 sps:$4 sm:$0xff]  }
 0x33c   :  { %5782 = vmatprep.subr.bf16.mxu1 %v10082_v0  ;;  %8625 = vmatprep.subr.msk.bf16.mxu0 %vm289_vm1, %v8623_v8  ;;  %v9903_v8 = vld [vmem:[%s13272_s2 + $0x570] ss:$12 sps:$4 sm:$0xff]  }
 0x33f   :  { %5783 = vmatpush1.bf16.msra.mxu1 %v5713_v10  ;;  %5740 = vmatpush1.bf16.msra.mxu0 %v5707_v11  ;;  %v9910_v10 = vld [vmem:[%s13272_s2 + $0x590] ss:$12 sps:$4 sm:$0xff]   ;;  %v9907_v11 = vld [vmem:[%s13272_s2 + $0x588] ss:$12 sps:$4 sm:$0xff]  }
 0x340   :  { %6173 = vmatprep.subr.bf16.mxu1 %v10082_v0  ;;  %6130 = vmatprep.subr.bf16.mxu0 %v9873_v45  ;;  %v9913_v45 = vld [vmem:[%s13272_s2 + $0x5a4] ss:$12 sps:$4 sm:$0xff]  }
 0x342   :  { %5791 = vmatmul.mubr.bf16.vlgmr.msra.gmra.mrb[60].mxu1 %v12117_v37  ;;  %5748 = vmatmul.mubr.bf16.vlgmr.msra.gmra.mrb[60].mxu0 %v12117_v37  ;;  %v9881_v37 = vld [vmem:[%s13272_s2 + $0x4e4] ss:$12 sps:$4 sm:$0xff]  }
 0x343   :  { %6174 = vmatpush1.bf16.msra.mxu1 %v9874_v12  ;;  %6131 = vmatpush1.bf16.msra.mxu0 %v9871_v13  ;;  %v9914_v12 = vld [vmem:[%s13272_s2 + $0x5a8] ss:$12 sps:$4 sm:$0xff]   ;;  %v9911_v13 = vld [vmem:[%s13272_s2 + $0x5a0] ss:$12 sps:$4 sm:$0xff]  }
 0x344   :  { %6175 = vmatprep.subr.bf16.mxu1 %v10082_v0  ;;  %6132 = vmatprep.subr.bf16.mxu0 %v9877_v26  ;;  %v9917_v26 = vld [vmem:[%s13272_s2 + $0x5bc] ss:$12 sps:$4 sm:$0xff]  }
 0x345   :  { %v4333_v20 = vpop.f32.mrb[44].mxu1  ;;  %8733 = vmatprep.mubr.msk.bf16.mxu1 %vm285_vm0, %v12612_v14  ;;  %v4290_v49 = vpop.f32.mrb[44].mxu0  ;;  %8732 = vmatprep.mubr.msk.bf16.mxu0 %vm285_vm0, %v12612_v14 }
 0x346   :  { %v4342_v24 = vmax.f32 %v12454_v36, %v4333_v20  ;;  %v4335_v34 = vpop.f32.mrb[45].mxu1  ;;  %v4340_v39 = vmax.f32 %v12461_v47, %v4290_v49  ;;  %v4292_v52 = vpop.f32.mrb[45].mxu0  ;;  %v9879_v47 = vld [vmem:[%s13272_s2 + $0x4e0] ss:$12 sps:$4 sm:$0xff]   ;;  %v9920_v20 = vld [vmem:[%s13272_s2 + $0x5d8] ss:$0 sps:$4 sm:$0xff]  }
 0x347   :  { %v4336_v35 = vpop.f32.mrb[46].mxu1  ;;  %6176 = vmatpush1.bf16.msra.mxu1 %v9878_v15  ;;  %v4341_v21 = vmax.f32 %v12469_v30, %v4292_v52  ;;  %v4294_v36 = vpop.f32.mrb[46].mxu0  ;;  %6133 = vmatpush1.bf16.msra.mxu0 %v9875_v18  ;;  %v9885_v30 = vld [vmem:[%s13272_s2 + $0x4fc] ss:$12 sps:$4 sm:$0xff]   ;;  %v8688_v15 = vld [vmem:[%s13272_s2 + $0x5d0] sm:$0xff] }
 0x348   :  { %v4361_v40 = vadd.f32 %v4352_v16, %v4342_v24  ;;  %v4345_v54 = vmax.f32 %v12474_v17, %v4336_v35  ;;  %v4338_v28 = vpop.f32.mrb[47].mxu1  ;;  %6177 = vmatprep.subr.bf16.mxu1 %v10082_v0  ;;  %v4359_v51 = vadd.f32 %v4352_v16, %v4340_v39  ;;  %v4343_v44 = vmax.f32 %v12483_v43, %v4294_v36  ;;  %v4296_v42 = vpop.f32.mrb[47].mxu0  ;;  %v9915_v18 = vld [vmem:[%s13272_s2 + $0x5b8] ss:$12 sps:$4 sm:$0xff]   ;;  %v9927_v34 = vld [vmem:[%s13274_s3 + $0x4b4] ss:$12 sps:$4 sm:$0xff]  }
 0x349   :  { %6134 = vmatprep.subr.bf16.mxu0 %v9881_v37  ;;  %v4360_v17 = vadd.f32 %v4352_v16, %v4341_v21  ;;  %v4344_v38 = vmax.f32 %v12491_v31, %v4296_v42  ;;  %v9889_v31 = vld [vmem:[%s13272_s2 + $0x514] ss:$12 sps:$4 sm:$0xff]   ;;  %v8728_v37 = vcombine.low %v8688_v15, %v8688_v15  ;;  %v6128_v24 = vsel %vm289_vm1, %v9920_v20, 0  ;;  %v9928_v52 = vld [vmem:[%s13274_s3 + $0x4b8] ss:$12 sps:$4 sm:$0xff]  }
 0x34a   :  { %v4367_v46 = vmax.f32 %v4361_v40, 0.0  ;;  %v4364_v48 = vadd.f32 %v4357_v23, %v4345_v54  ;;  %v4365_v25 = vmax.f32 %v4359_v51, 0.0  ;;  %v4362_v19 = vadd.f32 %v4357_v23, %v4343_v44  ;;  %v9918_v16 = vld [vmem:[%s13272_s2 + $0x5c0] ss:$12 sps:$4 sm:$0xff]   ;;  %v9925_v35 = vld [vmem:[%s13274_s3 + $0x4b0] ss:$12 sps:$4 sm:$0xff]  }
 0x34b   :  { %6178 = vmatpush1.bf16.msra.mxu1 %v9882_v32  ;;  %v4366_v43 = vmax.f32 %v4360_v17, 0.0  ;;  %v4363_v53 = vadd.f32 %v4357_v23, %v4344_v38  ;;  %6135 = vmatpush1.bf16.msra.mxu0 %v9879_v47  ;;  %v8729_v23 = vcombine.high %v8688_v15, %v8688_v15  ;;  %v6122_v49 = vsel %vm289_vm1, %v8728_v37, 0  ;;  %v12761_v39 = vld [vmem:[%s13273_s0 + $0x40] ss:$8 sps:$4 sm:$0xff]   ;;  %v9931_v32 = vld [vmem:[%s13274_s3 + $0x4cc] ss:$12 sps:$4 sm:$0xff]  }
 0x34c   :  { %v9029_v22 = vpack.c.bf16 %v4367_v46, %v4367_v46  ;;  %v4370_v41 = vmax.f32 %v4364_v48, 0.0  ;;  %6179 = vmatprep.subr.bf16.mxu1 %v10082_v0  ;;  %v4368_v56 = vmax.f32 %v4362_v19, 0.0  ;;  %6136 = vmatprep.subr.bf16.mxu0 %v9885_v30  ;;  %v9932_v40 = vld [vmem:[%s13274_s3 + $0x4d0] ss:$12 sps:$4 sm:$0xff]   ;;  %v9929_v21 = vld [vmem:[%s13274_s3 + $0x4c8] ss:$12 sps:$4 sm:$0xff]  }
 0x34d   :  { %v9028_v29 = vpack.c.bf16 %v4366_v43, %v4365_v25  ;;  %v4369_v57 = vmax.f32 %v4363_v53, 0.0  ;;  %v9935_v36 = vld [vmem:[%s13274_s3 + $0x4e4] ss:$12 sps:$4 sm:$0xff]   ;;  %v9936_v42 = vld [vmem:[%s13274_s3 + $0x4e8] ss:$12 sps:$4 sm:$0xff]  }
 0x34e   :  { %8253 = vst [vmem:[%s13278_s6 + $0x38] sm:$0xf] %v9029_v22  ;;  %v9031_v50 = vpack.c.bf16 %v4370_v41, %v4370_v41  ;;  %v9933_v17 = vld [vmem:[%s13274_s3 + $0x4e0] ss:$12 sps:$4 sm:$0xff]   ;;  %v9939_v38 = vld [vmem:[%s13274_s3 + $0x4fc] ss:$12 sps:$4 sm:$0xff]  }
 0x34f   :  { %6180 = vmatpush1.bf16.msra.mxu1 %v9886_v27  ;;  %8252 = vst [vmem:[%s13278_s6 + $0x30] sm:$0xff] %v9028_v29  ;;  %v9030_v33 = vpack.c.bf16 %v4369_v57, %v4368_v56  ;;  %6137 = vmatpush1.bf16.msra.mxu0 %v9883_v55  ;;  %v9940_v25 = vld [vmem:[%s13274_s3 + $0x500] ss:$12 sps:$4 sm:$0xff]   ;;  %v9937_v19 = vld [vmem:[%s13274_s3 + $0x4f8] ss:$12 sps:$4 sm:$0xff]  }
 0x350   :  { %8255 = vst [vmem:[%s13278_s6 + $0x44] sm:$0xf] %v9031_v50  ;;  %6181 = vmatprep.subr.bf16.mxu1 %v10082_v0  ;;  %6138 = vmatprep.subr.bf16.mxu0 %v9889_v31  ;;  %v9943_v27 = vld [vmem:[%s13274_s3 + $0x514] ss:$12 sps:$4 sm:$0xff]   ;;  %v9944_v22 = vld [vmem:[%s13274_s3 + $0x518] ss:$12 sps:$4 sm:$0xff]  }
 0x351   :  { %8254 = vst [vmem:[%s13278_s6 + $0x3c] sm:$0xff] %v9030_v33  ;;  %v9941_v43 = vld [vmem:[%s13274_s3 + $0x510] ss:$12 sps:$4 sm:$0xff]   ;;  %v9947_v41 = vld [vmem:[%s13274_s3 + $0x52c] ss:$12 sps:$4 sm:$0xff]  }
 0x352   :  { %v9948_v53 = vld [vmem:[%s13274_s3 + $0x530] ss:$12 sps:$4 sm:$0xff]   ;;  %v9945_v55 = vld [vmem:[%s13274_s3 + $0x528] ss:$12 sps:$4 sm:$0xff]   ;;  %v9949_v29 = vld [vmem:[%s13274_s3 + $0x540] ss:$12 sps:$4 sm:$0xff]  }
 0x353   :  { %6182 = vmatpush1.bf16.msra.mxu1 %v9890_v58  ;;  %6139 = vmatpush1.bf16.msra.mxu0 %v9887_v59  ;;  %v9951_v56 = vld [vmem:[%s13274_s3 + $0x544] ss:$12 sps:$4 sm:$0xff]   ;;  %v9952_v31 = vld [vmem:[%s13274_s3 + $0x548] ss:$12 sps:$4 sm:$0xff]   ;;  %v9956_v57 = vld [vmem:[%s13274_s3 + $0x560] ss:$12 sps:$4 sm:$0xff]  }
 0x354   :  { %6183 = vmatprep.subr.bf16.mxu1 %v10082_v0  ;;  %6140 = vmatprep.subr.bf16.mxu0 %v9893_v60  ;;  %v9955_v50 = vld [vmem:[%s13274_s3 + $0x55c] ss:$12 sps:$4 sm:$0xff]   ;;  %v9953_v58 = vld [vmem:[%s13274_s3 + $0x558] ss:$12 sps:$4 sm:$0xff]   ;;  %v9959_v33 = vld [vmem:[%s13274_s3 + $0x574] ss:$12 sps:$4 sm:$0xff]  }
 0x355   :  { %v9960_v59 = vld [vmem:[%s13274_s3 + $0x578] ss:$12 sps:$4 sm:$0xff]   ;;  %v9957_v60 = vld [vmem:[%s13274_s3 + $0x570] ss:$12 sps:$4 sm:$0xff]  }
 0x356   :  { %v9982_v15 = vld [vmem:[%s13275_s4 + $0x4cc] ss:$12 sps:$4 sm:$0xff]  }
 0x357   :  { %6184 = vmatpush1.bf16.msra.mxu1 %v9894_v61  ;;  %6141 = vmatpush1.bf16.msra.mxu0 %v9891_v62  ;;  %v9963_v61 = vld [vmem:[%s13274_s3 + $0x58c] ss:$12 sps:$4 sm:$0xff]   ;;  %v9964_v62 = vld [vmem:[%s13274_s3 + $0x590] ss:$12 sps:$4 sm:$0xff]  }
 0x358   :  { %6185 = vmatprep.subr.bf16.mxu1 %v10082_v0  ;;  %6142 = vmatprep.subr.bf16.mxu0 %v9897_v63  ;;  %v9961_v63 = vld [vmem:[%s13274_s3 + $0x588] ss:$12 sps:$4 sm:$0xff]  }
 0x35b   :  { %6186 = vmatpush1.bf16.msra.mxu1 %v9898_v1  ;;  %6143 = vmatpush1.bf16.msra.mxu0 %v9895_v2  ;;  %v9967_v1 = vld [vmem:[%s13274_s3 + $0x5a4] ss:$12 sps:$4 sm:$0xff]   ;;  %v9968_v2 = vld [vmem:[%s13274_s3 + $0x5a8] ss:$12 sps:$4 sm:$0xff]  }
 0x35c   :  { %6187 = vmatprep.subr.bf16.mxu1 %v10082_v0  ;;  %6144 = vmatprep.subr.bf16.mxu0 %v9901_v3  ;;  %v9965_v3 = vld [vmem:[%s13274_s3 + $0x5a0] ss:$12 sps:$4 sm:$0xff]  }
 0x35f   :  { %6188 = vmatpush1.bf16.msra.mxu1 %v9902_v4  ;;  %6145 = vmatpush1.bf16.msra.mxu0 %v9899_v5  ;;  %v9971_v4 = vld [vmem:[%s13274_s3 + $0x5bc] ss:$12 sps:$4 sm:$0xff]   ;;  %v8782_v5 = vld [vmem:[%s13274_s3 + $0x5d0] sm:$0xff] }
 0x360   :  { %6189 = vmatprep.subr.bf16.mxu1 %v10082_v0  ;;  %6146 = vmatprep.subr.bf16.mxu0 %v9905_v6  ;;  %v9972_v6 = vld [vmem:[%s13274_s3 + $0x5c0] ss:$12 sps:$4 sm:$0xff]  }
 0x363   :  { %6190 = vmatpush1.bf16.msra.mxu1 %v9906_v7  ;;  %6147 = vmatpush1.bf16.msra.mxu0 %v9903_v8  ;;  %v9969_v7 = vld [vmem:[%s13274_s3 + $0x5b8] ss:$12 sps:$4 sm:$0xff]  }
 0x364   :  { %6191 = vmatprep.subr.bf16.mxu1 %v10082_v0  ;;  %6148 = vmatprep.subr.bf16.mxu0 %v9909_v9  ;;  %v9974_v8 = vld [vmem:[%s13274_s3 + $0x5d8] ss:$0 sps:$4 sm:$0xff]   ;;  %v8821_v9 = vcombine.high %v8782_v5, %v8782_v5 }
 0x367   :  { %6192 = vmatpush1.bf16.msra.mxu1 %v9910_v10  ;;  %6149 = vmatpush1.bf16.msra.mxu0 %v9907_v11  ;;  %v8820_v10 = vcombine.low %v8782_v5, %v8782_v5  ;;  %v6472_v11 = vsel %vm289_vm1, %v9974_v8, 0  ;;  %v10019_v5 = vld [vmem:[%s13275_s4 + $0x5a8] ss:$12 sps:$4 sm:$0xff]  }
 0x368   :  { %6193 = vmatprep.subr.bf16.mxu1 %v10082_v0  ;;  %6150 = vmatprep.subr.bf16.mxu0 %v9913_v45  ;;  %v8874_v8 = vld [vmem:[%s13275_s4 + $0x5d0] sm:$0xff] }
 0x369   :  { %v6466_v45 = vsel %vm289_vm1, %v8820_v10, 0  ;;  %v10020_v10 = vld [vmem:[%s13275_s4 + $0x5b8] ss:$12 sps:$4 sm:$0xff]  }
 0x36b   :  { %6194 = vmatpush1.bf16.msra.mxu1 %v9914_v12  ;;  %6151 = vmatpush1.bf16.msra.mxu0 %v9911_v13  ;;  %v9978_v12 = vld [vmem:[%s13275_s4 + $0x4b4] ss:$12 sps:$4 sm:$0xff]   ;;  %v9979_v13 = vld [vmem:[%s13275_s4 + $0x4b8] ss:$12 sps:$4 sm:$0xff]  }
 0x36c   :  { %6195 = vmatprep.subr.bf16.mxu1 %v10082_v0  ;;  %6152 = vmatprep.subr.bf16.mxu0 %v9917_v26  ;;  %v9976_v26 = vld [vmem:[%s13275_s4 + $0x4b0] ss:$12 sps:$4 sm:$0xff]  }
 0x36f   :  { %6196 = vmatpush1.bf16.msra.mxu1 %v9918_v16  ;;  %6153 = vmatpush1.bf16.msra.mxu0 %v9915_v18  ;;  %v9983_v16 = vld [vmem:[%s13275_s4 + $0x4d0] ss:$12 sps:$4 sm:$0xff]   ;;  %v9980_v18 = vld [vmem:[%s13275_s4 + $0x4c8] ss:$12 sps:$4 sm:$0xff]  }
 0x370   :  { %6197 = vmatprep.subr.bf16.mxu1 %v10082_v0  ;;  %8731 = vmatprep.subr.msk.bf16.mxu0 %vm289_vm1, %v8729_v23  ;;  %v9986_v23 = vld [vmem:[%s13275_s4 + $0x4e4] ss:$12 sps:$4 sm:$0xff]  }
 0x373   :  { %6198 = vmatpush1.bf16.msra.mxu1 %v6128_v24  ;;  %6155 = vmatpush1.bf16.msra.mxu0 %v6122_v49 }
 0x374   :  { %6517 = vmatprep.subr.bf16.mxu1 %v10082_v0  ;;  %6474 = vmatprep.subr.bf16.mxu0 %v9927_v34 }
 0x376   :  { %6206 = vmatmul.mubr.bf16.vlgmr.msra.gmra.mrb[64].mxu1 %v12761_v39  ;;  %6163 = vmatmul.mubr.bf16.vlgmr.msra.gmra.mrb[64].mxu0 %v12761_v39 }
 0x377   :  { %6518 = vmatpush1.bf16.msra.mxu1 %v9928_v52  ;;  %6475 = vmatpush1.bf16.msra.mxu0 %v9925_v35 }
 0x378   :  { %6519 = vmatprep.subr.bf16.mxu1 %v10082_v0  ;;  %6476 = vmatprep.subr.bf16.mxu0 %v9931_v32  ;;  %v9987_v32 = vld [vmem:[%s13275_s4 + $0x4e8] ss:$12 sps:$4 sm:$0xff]  }
 0x379   :  { %v12782_v54 = vpop.f32.mrb[48].mxu1  ;;  %8825 = vmatprep.mubr.msk.bf16.mxu1 %vm285_vm0, %v12612_v14  ;;  %v12789_v28 = vpop.f32.mrb[48].mxu0  ;;  %8824 = vmatprep.mubr.msk.bf16.mxu0 %vm285_vm0, %v12612_v14 }
 0x37a   :  { %v4750_v47 = vpop.f32.mrb[49].mxu1  ;;  %v12793_v51 = vpop.f32.mrb[49].mxu0 }
 0x37b   :  { %v12795_v44 = vpop.f32.mrb[50].mxu1  ;;  %6520 = vmatpush1.bf16.msra.mxu1 %v9932_v40  ;;  %v12800_v30 = vpop.f32.mrb[50].mxu0  ;;  %6477 = vmatpush1.bf16.msra.mxu0 %v9929_v21 }
 0x37c   :  { %v4753_v46 = vpop.f32.mrb[51].mxu1  ;;  %6521 = vmatprep.subr.bf16.mxu1 %v10082_v0  ;;  %v12806_v48 = vpop.f32.mrb[51].mxu0  ;;  %6478 = vmatprep.subr.bf16.mxu0 %v9935_v36 }
 0x37f   :  { %6522 = vmatpush1.bf16.msra.mxu1 %v9936_v42  ;;  %6479 = vmatpush1.bf16.msra.mxu0 %v9933_v17  ;;  %v9984_v42 = vld [vmem:[%s13275_s4 + $0x4e0] ss:$12 sps:$4 sm:$0xff]  }
 0x380   :  { %6523 = vmatprep.subr.bf16.mxu1 %v10082_v0  ;;  %6480 = vmatprep.subr.bf16.mxu0 %v9939_v38  ;;  %v9990_v38 = vld [vmem:[%s13275_s4 + $0x4fc] ss:$12 sps:$4 sm:$0xff]  }
 0x383   :  { %6524 = vmatpush1.bf16.msra.mxu1 %v9940_v25  ;;  %6481 = vmatpush1.bf16.msra.mxu0 %v9937_v19  ;;  %v9991_v19 = vld [vmem:[%s13275_s4 + $0x500] ss:$12 sps:$4 sm:$0xff]  }
 0x384   :  { %6525 = vmatprep.subr.bf16.mxu1 %v10082_v0  ;;  %6482 = vmatprep.subr.bf16.mxu0 %v9943_v27  ;;  %v9988_v27 = vld [vmem:[%s13275_s4 + $0x4f8] ss:$12 sps:$4 sm:$0xff]  }
 0x387   :  { %6526 = vmatpush1.bf16.msra.mxu1 %v9944_v22  ;;  %6483 = vmatpush1.bf16.msra.mxu0 %v9941_v43  ;;  %v9994_v22 = vld [vmem:[%s13275_s4 + $0x514] ss:$12 sps:$4 sm:$0xff]   ;;  %v9995_v43 = vld [vmem:[%s13275_s4 + $0x518] ss:$12 sps:$4 sm:$0xff]  }
 0x388   :  { %6527 = vmatprep.subr.bf16.mxu1 %v10082_v0  ;;  %6484 = vmatprep.subr.bf16.mxu0 %v9947_v41  ;;  %v9992_v41 = vld [vmem:[%s13275_s4 + $0x510] ss:$12 sps:$4 sm:$0xff]  }
 0x38b   :  { %6528 = vmatpush1.bf16.msra.mxu1 %v9948_v53  ;;  %6485 = vmatpush1.bf16.msra.mxu0 %v9945_v55  ;;  %v9998_v53 = vld [vmem:[%s13275_s4 + $0x52c] ss:$12 sps:$4 sm:$0xff]   ;;  %v9999_v55 = vld [vmem:[%s13275_s4 + $0x530] ss:$12 sps:$4 sm:$0xff]  }
 0x38c   :  { %6529 = vmatprep.subr.bf16.mxu1 %v10082_v0  ;;  %6486 = vmatprep.subr.bf16.mxu0 %v9951_v56  ;;  %v9996_v56 = vld [vmem:[%s13275_s4 + $0x528] ss:$12 sps:$4 sm:$0xff]  }
 0x38f   :  { %6530 = vmatpush1.bf16.msra.mxu1 %v9952_v31  ;;  %6487 = vmatpush1.bf16.msra.mxu0 %v9949_v29  ;;  %v10002_v31 = vld [vmem:[%s13275_s4 + $0x544] ss:$12 sps:$4 sm:$0xff]   ;;  %v10003_v29 = vld [vmem:[%s13275_s4 + $0x548] ss:$12 sps:$4 sm:$0xff]  }
 0x390   :  { %6531 = vmatprep.subr.bf16.mxu1 %v10082_v0  ;;  %6488 = vmatprep.subr.bf16.mxu0 %v9955_v50  ;;  %v10000_v50 = vld [vmem:[%s13275_s4 + $0x540] ss:$12 sps:$4 sm:$0xff]  }
 0x393   :  { %6532 = vmatpush1.bf16.msra.mxu1 %v9956_v57  ;;  %6489 = vmatpush1.bf16.msra.mxu0 %v9953_v58  ;;  %v10006_v57 = vld [vmem:[%s13275_s4 + $0x55c] ss:$12 sps:$4 sm:$0xff]   ;;  %v10007_v58 = vld [vmem:[%s13275_s4 + $0x560] ss:$12 sps:$4 sm:$0xff]  }
 0x394   :  { %6533 = vmatprep.subr.bf16.mxu1 %v10082_v0  ;;  %6490 = vmatprep.subr.bf16.mxu0 %v9959_v33  ;;  %v10004_v33 = vld [vmem:[%s13275_s4 + $0x558] ss:$12 sps:$4 sm:$0xff]  }
 0x397   :  { %6534 = vmatpush1.bf16.msra.mxu1 %v9960_v59  ;;  %6491 = vmatpush1.bf16.msra.mxu0 %v9957_v60  ;;  %v10010_v59 = vld [vmem:[%s13275_s4 + $0x574] ss:$12 sps:$4 sm:$0xff]   ;;  %v10011_v60 = vld [vmem:[%s13275_s4 + $0x578] ss:$12 sps:$4 sm:$0xff]  }
 0x398   :  { %6535 = vmatprep.subr.bf16.mxu1 %v10082_v0  ;;  %6492 = vmatprep.subr.bf16.mxu0 %v9963_v61  ;;  %v10008_v61 = vld [vmem:[%s13275_s4 + $0x570] ss:$12 sps:$4 sm:$0xff]  }
 0x39b   :  { %6536 = vmatpush1.bf16.msra.mxu1 %v9964_v62  ;;  %6493 = vmatpush1.bf16.msra.mxu0 %v9961_v63  ;;  %v10014_v62 = vld [vmem:[%s13275_s4 + $0x58c] ss:$12 sps:$4 sm:$0xff]   ;;  %v10015_v63 = vld [vmem:[%s13275_s4 + $0x590] ss:$12 sps:$4 sm:$0xff]  }
 0x39c   :  { %6537 = vmatprep.subr.bf16.mxu1 %v10082_v0  ;;  %6494 = vmatprep.subr.bf16.mxu0 %v9967_v1  ;;  %v10012_v1 = vld [vmem:[%s13275_s4 + $0x588] ss:$12 sps:$4 sm:$0xff]  }
 0x39f   :  { %6538 = vmatpush1.bf16.msra.mxu1 %v9968_v2  ;;  %6495 = vmatpush1.bf16.msra.mxu0 %v9965_v3  ;;  %v10018_v2 = vld [vmem:[%s13275_s4 + $0x5a4] ss:$12 sps:$4 sm:$0xff]   ;;  %v9011_v3 = vld [vmem:[%s13277_s1 + $0x48] sm:$0xff] }
 0x3a0   :  { %6539 = vmatprep.subr.bf16.mxu1 %v10082_v0  ;;  %6496 = vmatprep.subr.bf16.mxu0 %v9971_v4  ;;  %v9010_v4 = vld [vmem:[%s13277_s1 + $0x40] sm:$0xff] }
 0x3a1   :  { %7274 = vperm.xlu1 %9042, %v9011_v3   ;;  %7269 = vperm.xlu0 %9041, %v9010_v4   ;;  %v10074_v3 = vld [vmem:[%s13276_s5 + $0x5c0] ss:$12 sps:$4 sm:$0xff]   ;;  %v10071_v4 = vld [vmem:[%s13276_s5 + $0x5b8] ss:$12 sps:$4 sm:$0xff]  }
 0x3a3   :  { %6540 = vmatpush1.bf16.msra.mxu1 %v9972_v6  ;;  %6497 = vmatpush1.bf16.msra.mxu0 %v9969_v7  ;;  %v10016_v6 = vld [vmem:[%s13275_s4 + $0x5a0] ss:$12 sps:$4 sm:$0xff]   ;;  %v10022_v7 = vld [vmem:[%s13275_s4 + $0x5bc] ss:$12 sps:$4 sm:$0xff]  }
 0x3a4   :  { %6541 = vmatprep.subr.bf16.mxu1 %v10082_v0  ;;  %8823 = vmatprep.subr.msk.bf16.mxu0 %vm289_vm1, %v8821_v9  ;;  %v10023_v9 = vld [vmem:[%s13275_s4 + $0x5c0] ss:$12 sps:$4 sm:$0xff]  }
 0x3a7   :  { %6542 = vmatpush1.bf16.msra.mxu1 %v6472_v11  ;;  %6499 = vmatpush1.bf16.msra.mxu0 %v6466_v45  ;;  %v10025_v11 = vld [vmem:[%s13275_s4 + $0x5d8] ss:$0 sps:$4 sm:$0xff]   ;;  %v8913_v45 = vcombine.high %v8874_v8, %v8874_v8 }
 0x3a8   :  { %6867 = vmatprep.subr.bf16.mxu1 %v10082_v0  ;;  %6824 = vmatprep.subr.bf16.mxu0 %v9978_v12  ;;  %v8912_v12 = vcombine.low %v8874_v8, %v8874_v8 }
 0x3aa   :  { %6550 = vmatmul.mubr.bf16.vlgmr.msra.gmra.mrb[68].mxu1 %v12761_v39  ;;  %6507 = vmatmul.mubr.bf16.vlgmr.msra.gmra.mrb[68].mxu0 %v12761_v39 }
 0x3ab   :  { %6868 = vmatpush1.bf16.msra.mxu1 %v9979_v13  ;;  %6825 = vmatpush1.bf16.msra.mxu0 %v9976_v26  ;;  %v6822_v13 = vsel %vm289_vm1, %v10025_v11, 0  ;;  %v6816_v26 = vsel %vm289_vm1, %v8912_v12, 0 }
 0x3ac   :  { %6869 = vmatprep.subr.bf16.mxu1 %v10082_v0  ;;  %6826 = vmatprep.subr.bf16.mxu0 %v9982_v15  ;;  %v10029_v15 = vld [vmem:[%s13276_s5 + $0x4b4] ss:$12 sps:$4 sm:$0xff]  }
 0x3ad   :  { %v12930_v20 = vpop.f32.mrb[52].mxu1  ;;  %8917 = vmatprep.mubr.msk.bf16.mxu1 %vm285_vm0, %v12612_v14  ;;  %v12939_v24 = vpop.f32.mrb[52].mxu0  ;;  %8916 = vmatprep.mubr.msk.bf16.mxu0 %vm285_vm0, %v12612_v14 }
 0x3ae   :  { %v5101_v37 = vmax.f32 %v12782_v54, %v12930_v20  ;;  %v5094_v49 = vpop.f32.mrb[53].mxu1  ;;  %v5099_v34 = vmax.f32 %v12789_v28, %v12939_v24  ;;  %v12945_v52 = vpop.f32.mrb[53].mxu0 }
 0x3af   :  { %v12947_v35 = vpop.f32.mrb[54].mxu1  ;;  %6870 = vmatpush1.bf16.msra.mxu1 %v9983_v16  ;;  %v5100_v40 = vmax.f32 %v12793_v51, %v12945_v52  ;;  %v12956_v36 = vpop.f32.mrb[54].mxu0  ;;  %6827 = vmatpush1.bf16.msra.mxu0 %v9980_v18  ;;  %v10030_v16 = vld [vmem:[%s13276_s5 + $0x4b8] ss:$12 sps:$4 sm:$0xff]   ;;  %v10027_v18 = vld [vmem:[%s13276_s5 + $0x4b0] ss:$12 sps:$4 sm:$0xff]  }
 0x3b0   :  { %v5104_v21 = vmax.f32 %v12795_v44, %v12947_v35  ;;  %v5097_v47 = vpop.f32.mrb[55].mxu1  ;;  %6871 = vmatprep.subr.bf16.mxu1 %v10082_v0  ;;  %v5102_v46 = vmax.f32 %v12800_v30, %v12956_v36  ;;  %v12964_v17 = vpop.f32.mrb[55].mxu0  ;;  %6828 = vmatprep.subr.bf16.mxu0 %v9986_v23  ;;  %v10033_v23 = vld [vmem:[%s13276_s5 + $0x4cc] ss:$12 sps:$4 sm:$0xff]   ;;  %v10034_v49 = vld [vmem:[%s13276_s5 + $0x4d0] ss:$12 sps:$4 sm:$0xff]  }
 0x3b1   :  { %v5103_v25 = vmax.f32 %v12806_v48, %v12964_v17  ;;  %v10041_v44 = vld [vmem:[%s13276_s5 + $0x4fc] ss:$12 sps:$4 sm:$0xff]   ;;  %v10042_v52 = vld [vmem:[%s13276_s5 + $0x500] ss:$12 sps:$4 sm:$0xff]   ;;  %v10039_v30 = vld [vmem:[%s13276_s5 + $0x4f8] ss:$12 sps:$4 sm:$0xff]  }
 0x3b2   :  { %v10045_v35 = vld [vmem:[%s13276_s5 + $0x514] ss:$12 sps:$4 sm:$0xff]   ;;  %v10046_v48 = vld [vmem:[%s13276_s5 + $0x518] ss:$12 sps:$4 sm:$0xff]   ;;  %v10050_v36 = vld [vmem:[%s13276_s5 + $0x530] ss:$12 sps:$4 sm:$0xff]  }
 0x3b3   :  { %6872 = vmatpush1.bf16.msra.mxu1 %v9987_v32  ;;  %6829 = vmatpush1.bf16.msra.mxu0 %v9984_v42  ;;  %v10031_v32 = vld [vmem:[%s13276_s5 + $0x4c8] ss:$12 sps:$4 sm:$0xff]   ;;  %v10037_v42 = vld [vmem:[%s13276_s5 + $0x4e4] ss:$12 sps:$4 sm:$0xff]  }
 0x3b4   :  { %6873 = vmatprep.subr.bf16.mxu1 %v10082_v0  ;;  %6830 = vmatprep.subr.bf16.mxu0 %v9990_v38  ;;  %v10053_v17 = vld [vmem:[%s13276_s5 + $0x544] ss:$12 sps:$4 sm:$0xff]  }
 0x3b7   :  { %6874 = vmatpush1.bf16.msra.mxu1 %v9991_v19  ;;  %6831 = vmatpush1.bf16.msra.mxu0 %v9988_v27 }
 0x3b8   :  { %6875 = vmatprep.subr.bf16.mxu1 %v10082_v0  ;;  %6832 = vmatprep.subr.bf16.mxu0 %v9994_v22 }
 0x3bb   :  { %6876 = vmatpush1.bf16.msra.mxu1 %v9995_v43  ;;  %6833 = vmatpush1.bf16.msra.mxu0 %v9992_v41 }
 0x3bc   :  { %6877 = vmatprep.subr.bf16.mxu1 %v10082_v0  ;;  %6834 = vmatprep.subr.bf16.mxu0 %v9998_v53  ;;  %v10038_v53 = vld [vmem:[%s13276_s5 + $0x4e8] ss:$12 sps:$4 sm:$0xff]  }
 0x3bf   :  { %6878 = vmatpush1.bf16.msra.mxu1 %v9999_v55  ;;  %6835 = vmatpush1.bf16.msra.mxu0 %v9996_v56  ;;  %v10051_v55 = vld [vmem:[%s13276_s5 + $0x540] ss:$12 sps:$4 sm:$0xff]   ;;  %v10057_v56 = vld [vmem:[%s13276_s5 + $0x55c] ss:$12 sps:$4 sm:$0xff]  }
 0x3c0   :  { %6879 = vmatprep.subr.bf16.mxu1 %v10082_v0  ;;  %6836 = vmatprep.subr.bf16.mxu0 %v10002_v31  ;;  %v10058_v31 = vld [vmem:[%s13276_s5 + $0x560] ss:$12 sps:$4 sm:$0xff]  }
 0x3c3   :  { %6880 = vmatpush1.bf16.msra.mxu1 %v10003_v29  ;;  %6837 = vmatpush1.bf16.msra.mxu0 %v10000_v50  ;;  %v10055_v29 = vld [vmem:[%s13276_s5 + $0x558] ss:$12 sps:$4 sm:$0xff]   ;;  %v10061_v50 = vld [vmem:[%s13276_s5 + $0x574] ss:$12 sps:$4 sm:$0xff]  }
 0x3c4   :  { %6881 = vmatprep.subr.bf16.mxu1 %v10082_v0  ;;  %6838 = vmatprep.subr.bf16.mxu0 %v10006_v57  ;;  %v10062_v57 = vld [vmem:[%s13276_s5 + $0x578] ss:$12 sps:$4 sm:$0xff]  }
 0x3c7   :  { %6882 = vmatpush1.bf16.msra.mxu1 %v10007_v58  ;;  %6839 = vmatpush1.bf16.msra.mxu0 %v10004_v33  ;;  %v10059_v58 = vld [vmem:[%s13276_s5 + $0x570] ss:$12 sps:$4 sm:$0xff]   ;;  %v10065_v33 = vld [vmem:[%s13276_s5 + $0x58c] ss:$12 sps:$4 sm:$0xff]  }
 0x3c8   :  { %6883 = vmatprep.subr.bf16.mxu1 %v10082_v0  ;;  %6840 = vmatprep.subr.bf16.mxu0 %v10010_v59  ;;  %v10066_v59 = vld [vmem:[%s13276_s5 + $0x590] ss:$12 sps:$4 sm:$0xff]  }
 0x3cb   :  { %6884 = vmatpush1.bf16.msra.mxu1 %v10011_v60  ;;  %6841 = vmatpush1.bf16.msra.mxu0 %v10008_v61  ;;  %v10063_v60 = vld [vmem:[%s13276_s5 + $0x588] ss:$12 sps:$4 sm:$0xff]   ;;  %v10069_v61 = vld [vmem:[%s13276_s5 + $0x5a4] ss:$12 sps:$4 sm:$0xff]  }
 0x3cc   :  { %6885 = vmatprep.subr.bf16.mxu1 %v10082_v0  ;;  %6842 = vmatprep.subr.bf16.mxu0 %v10014_v62  ;;  %v10070_v62 = vld [vmem:[%s13276_s5 + $0x5a8] ss:$12 sps:$4 sm:$0xff]  }
 0x3cf   :  { %6886 = vmatpush1.bf16.msra.mxu1 %v10015_v63  ;;  %6843 = vmatpush1.bf16.msra.mxu0 %v10012_v1  ;;  %v10067_v63 = vld [vmem:[%s13276_s5 + $0x5a0] ss:$12 sps:$4 sm:$0xff]   ;;  %v10073_v1 = vld [vmem:[%s13276_s5 + $0x5bc] ss:$12 sps:$4 sm:$0xff]  }
 0x3d0   :  { %6887 = vmatprep.subr.bf16.mxu1 %v10082_v0  ;;  %6844 = vmatprep.subr.bf16.mxu0 %v10018_v2  ;;  %v8966_v2 = vld [vmem:[%s13276_s5 + $0x5d0] sm:$0xff] }
 0x3d3   :  { %6888 = vmatpush1.bf16.msra.mxu1 %v10019_v5  ;;  %6845 = vmatpush1.bf16.msra.mxu0 %v10016_v6  ;;  %v10076_v5 = vld [vmem:[%s13276_s5 + $0x5d8] ss:$0 sps:$4 sm:$0xff]   ;;  %v9005_v6 = vcombine.high %v8966_v2, %v8966_v2 }
 0x3d4   :  { %6889 = vmatprep.subr.bf16.mxu1 %v10082_v0  ;;  %6846 = vmatprep.subr.bf16.mxu0 %v10022_v7  ;;  %v9004_v7 = vcombine.low %v8966_v2, %v8966_v2  ;;  %v7172_v8 = vsel %vm289_vm1, %v10076_v5, 0 }
 0x3d7   :  { %6890 = vmatpush1.bf16.msra.mxu1 %v10023_v9  ;;  %6847 = vmatpush1.bf16.msra.mxu0 %v10020_v10  ;;  %v7166_v9 = vsel %vm289_vm1, %v9004_v7, 0  ;;  %v5811_v10 = vpop.permute.xlu0 %5810 }
 0x3d8   :  { %6891 = vmatprep.subr.bf16.mxu1 %v10082_v0  ;;  %8915 = vmatprep.subr.msk.bf16.mxu0 %vm289_vm1, %v8913_v45  ;;  %v5816_v45 = vpop.permute.xlu1 %5815 }
 0x3db   :  { %6892 = vmatpush1.bf16.msra.mxu1 %v6822_v13  ;;  %6849 = vmatpush1.bf16.msra.mxu0 %v6816_v26 }
 0x3dc   :  { %7217 = vmatprep.subr.bf16.mxu1 %v10082_v0  ;;  %7174 = vmatprep.subr.bf16.mxu0 %v10029_v15 }
 0x3de   :  { %6900 = vmatmul.mubr.bf16.vlgmr.msra.gmra.mrb[72].mxu1 %v12761_v39  ;;  %6857 = vmatmul.mubr.bf16.vlgmr.msra.gmra.mrb[72].mxu0 %v12761_v39 }
 0x3df   :  { %7218 = vmatpush1.bf16.msra.mxu1 %v10030_v16  ;;  %7175 = vmatpush1.bf16.msra.mxu0 %v10027_v18 }
 0x3e0   :  { %7219 = vmatprep.subr.bf16.mxu1 %v10082_v0  ;;  %7176 = vmatprep.subr.bf16.mxu0 %v10033_v23 }
 0x3e1   :  { %v5442_v47 = vpop.f32.mrb[56].mxu1  ;;  %9009 = vmatprep.mubr.msk.bf16.mxu1 %vm285_vm0, %v12612_v14  ;;  %v5399_v19 = vpop.f32.mrb[56].mxu0  ;;  %9008 = vmatprep.mubr.msk.bf16.mxu0 %vm285_vm0, %v12612_v14 }
 0x3e2   :  { %v13104_v38 = vmax.f32 %v5101_v37, %v5442_v47  ;;  %v5444_v27 = vpop.f32.mrb[57].mxu1  ;;  %v13111_v22 = vmax.f32 %v5099_v34, %v5399_v19  ;;  %v5401_v43 = vpop.f32.mrb[57].mxu0  ;;  %v10035_v37 = vld [vmem:[%s13276_s5 + $0x4e0] ss:$12 sps:$4 sm:$0xff]  }
 0x3e3   :  { %v5445_v41 = vpop.f32.mrb[58].mxu1  ;;  %7220 = vmatpush1.bf16.msra.mxu1 %v10034_v49  ;;  %v13119_v54 = vmax.f32 %v5100_v40, %v5401_v43  ;;  %v5403_v28 = vpop.f32.mrb[58].mxu0  ;;  %7177 = vmatpush1.bf16.msra.mxu0 %v10031_v32  ;;  %v10043_v40 = vld [vmem:[%s13276_s5 + $0x510] ss:$12 sps:$4 sm:$0xff]  }
 0x3e4   :  { %v13124_v14 = vmax.f32 %v5104_v21, %v5445_v41  ;;  %v5447_v20 = vpop.f32.mrb[59].mxu1  ;;  %7221 = vmatprep.subr.bf16.mxu1 %v10082_v0  ;;  %v13133_v51 = vmax.f32 %v5102_v46, %v5403_v28  ;;  %v5405_v24 = vpop.f32.mrb[59].mxu0  ;;  %7178 = vmatprep.subr.bf16.mxu0 %v10037_v42  ;;  %v10049_v21 = vld [vmem:[%s13276_s5 + $0x52c] ss:$12 sps:$4 sm:$0xff]   ;;  %v10047_v46 = vld [vmem:[%s13276_s5 + $0x528] ss:$12 sps:$4 sm:$0xff]  }
 0x3e5   :  { %v13141_v34 = vmax.f32 %v5103_v25, %v5405_v24  ;;  %v10054_v25 = vld [vmem:[%s13276_s5 + $0x548] ss:$12 sps:$4 sm:$0xff]  }
 0x3e7   :  { %7222 = vmatpush1.bf16.msra.mxu1 %v10038_v53  ;;  %7179 = vmatpush1.bf16.msra.mxu0 %v10035_v37 }
 0x3e8   :  { %7223 = vmatprep.subr.bf16.mxu1 %v10082_v0  ;;  %7180 = vmatprep.subr.bf16.mxu0 %v10041_v44 }
 0x3eb   :  { %7224 = vmatpush1.bf16.msra.mxu1 %v10042_v52  ;;  %7181 = vmatpush1.bf16.msra.mxu0 %v10039_v30 }
 0x3ec   :  { %7225 = vmatprep.subr.bf16.mxu1 %v10082_v0  ;;  %7182 = vmatprep.subr.bf16.mxu0 %v10045_v35 }
 0x3ef   :  { %7226 = vmatpush1.bf16.msra.mxu1 %v10046_v48  ;;  %7183 = vmatpush1.bf16.msra.mxu0 %v10043_v40 }
 0x3f0   :  { %7227 = vmatprep.subr.bf16.mxu1 %v10082_v0  ;;  %7184 = vmatprep.subr.bf16.mxu0 %v10049_v21 }
 0x3f3   :  { %7228 = vmatpush1.bf16.msra.mxu1 %v10050_v36  ;;  %7185 = vmatpush1.bf16.msra.mxu0 %v10047_v46 }
 0x3f4   :  { %7229 = vmatprep.subr.bf16.mxu1 %v10082_v0  ;;  %7186 = vmatprep.subr.bf16.mxu0 %v10053_v17 }
 0x3f7   :  { %7230 = vmatpush1.bf16.msra.mxu1 %v10054_v25  ;;  %7187 = vmatpush1.bf16.msra.mxu0 %v10051_v55 }
 0x3f8   :  { %7231 = vmatprep.subr.bf16.mxu1 %v10082_v0  ;;  %7188 = vmatprep.subr.bf16.mxu0 %v10057_v56 }
 0x3fb   :  { %7232 = vmatpush1.bf16.msra.mxu1 %v10058_v31  ;;  %7189 = vmatpush1.bf16.msra.mxu0 %v10055_v29 }
 0x3fc   :  { %7233 = vmatprep.subr.bf16.mxu1 %v10082_v0  ;;  %7190 = vmatprep.subr.bf16.mxu0 %v10061_v50 }
 0x3ff   :  { %7234 = vmatpush1.bf16.msra.mxu1 %v10062_v57  ;;  %7191 = vmatpush1.bf16.msra.mxu0 %v10059_v58 }
 0x400   :  { %7235 = vmatprep.subr.bf16.mxu1 %v10082_v0  ;;  %7192 = vmatprep.subr.bf16.mxu0 %v10065_v33 }
 0x403   :  { %7236 = vmatpush1.bf16.msra.mxu1 %v10066_v59  ;;  %7193 = vmatpush1.bf16.msra.mxu0 %v10063_v60 }
 0x404   :  { %7237 = vmatprep.subr.bf16.mxu1 %v10082_v0  ;;  %7194 = vmatprep.subr.bf16.mxu0 %v10069_v61 }
 0x407   :  { %7238 = vmatpush1.bf16.msra.mxu1 %v10070_v62  ;;  %7195 = vmatpush1.bf16.msra.mxu0 %v10067_v63 }
 0x408   :  { %7239 = vmatprep.subr.bf16.mxu1 %v10082_v0  ;;  %7196 = vmatprep.subr.bf16.mxu0 %v10073_v1 }
 0x40b   :  { %7240 = vmatpush1.bf16.msra.mxu1 %v10074_v3  ;;  %7197 = vmatpush1.bf16.msra.mxu0 %v10071_v4 }
 0x40c   :  { %7241 = vmatprep.subr.bf16.mxu1 %v10082_v0  ;;  %9007 = vmatprep.subr.msk.bf16.mxu0 %vm289_vm1, %v9005_v6 }
 0x40f   :  { %7242 = vmatpush1.bf16.msra.mxu1 %v7172_v8  ;;  %7199 = vmatpush1.bf16.msra.mxu0 %v7166_v9 }
 0x412   :  { %7250 = vmatmul.mubr.bf16.vlgmr.msra.gmra.mrb[76].mxu1 %v12761_v39  ;;  %7207 = vmatmul.mubr.bf16.vlgmr.msra.gmra.mrb[76].mxu0 %v12761_v39 }
 0x415   :  { %v5792_v11 = vpop.f32.mrb[60].mxu1  ;;  %v5749_v13 = vpop.f32.mrb[60].mxu0 }
 0x416   :  { %v5801_v12 = vmax.f32 %v13104_v38, %v5792_v11  ;;  %v5794_v26 = vpop.f32.mrb[61].mxu1  ;;  %v5799_v0 = vmax.f32 %v13111_v22, %v5749_v13  ;;  %v5751_v15 = vpop.f32.mrb[61].mxu0 }
 0x417   :  { %v5795_v16 = vpop.f32.mrb[62].mxu1  ;;  %v5800_v23 = vmax.f32 %v13119_v54, %v5751_v15  ;;  %v5753_v32 = vpop.f32.mrb[62].mxu0 }
 0x418   :  { %v5820_v18 = vadd.f32 %v5811_v10, %v5801_v12  ;;  %v5804_v49 = vmax.f32 %v13124_v14, %v5795_v16  ;;  %v5797_v47 = vpop.f32.mrb[63].mxu1  ;;  %v5818_v42 = vadd.f32 %v5811_v10, %v5799_v0  ;;  %v5802_v39 = vmax.f32 %v13133_v51, %v5753_v32  ;;  %v5755_v19 = vpop.f32.mrb[63].mxu0 }
 0x419   :  { %v5819_v43 = vadd.f32 %v5811_v10, %v5800_v23  ;;  %v5803_v41 = vmax.f32 %v13141_v34, %v5755_v19 }
 0x41a   :  { %v5826_v27 = vmax.f32 %v5820_v18, 0.0  ;;  %v5823_v38 = vadd.f32 %v5816_v45, %v5804_v49  ;;  %v5824_v53 = vmax.f32 %v5818_v42, 0.0  ;;  %v5821_v22 = vadd.f32 %v5816_v45, %v5802_v39 }
 0x41b   :  { %v5825_v20 = vmax.f32 %v5819_v43, 0.0  ;;  %v5822_v24 = vadd.f32 %v5816_v45, %v5803_v41 }
 0x41c   :  { %v9033_v28 = vpack.c.bf16 %v5826_v27, %v5826_v27  ;;  %v5829_v37 = vmax.f32 %v5823_v38, 0.0  ;;  %v5827_v54 = vmax.f32 %v5821_v22, 0.0 }
 0x41d   :  { %v9032_v14 = vpack.c.bf16 %v5825_v20, %v5824_v53  ;;  %v5828_v51 = vmax.f32 %v5822_v24, 0.0 }
 0x41e   :  { %8635 = vst [vmem:[%s13278_s6 + $0x50] sm:$0xf] %v9033_v28  ;;  %v9035_v44 = vpack.c.bf16 %v5829_v37, %v5829_v37 }
 0x41f   :  { %8634 = vst [vmem:[%s13278_s6 + $0x48] sm:$0xff] %v9032_v14  ;;  %v9034_v34 = vpack.c.bf16 %v5828_v51, %v5827_v54 }
 0x420   :  { %8637 = vst [vmem:[%s13278_s6 + $0x5c] sm:$0xf] %v9035_v44  ;;  %v7270_v13 = vpop.permute.xlu0 %7269  ;;  %v7275_v27 = vpop.permute.xlu1 %7274 }
 0x421   :  { %8636 = vst [vmem:[%s13278_s6 + $0x54] sm:$0xff] %v9034_v34 }
 0x449   :  { %v6207_v52 = vpop.f32.mrb[64].mxu1  ;;  %v6164_v30 = vpop.f32.mrb[64].mxu0 }
 0x44a   :  { %v6209_v35 = vpop.f32.mrb[65].mxu1  ;;  %v6166_v48 = vpop.f32.mrb[65].mxu0 }
 0x44b   :  { %v6210_v40 = vpop.f32.mrb[66].mxu1  ;;  %v6168_v21 = vpop.f32.mrb[66].mxu0 }
 0x44c   :  { %v6212_v36 = vpop.f32.mrb[67].mxu1  ;;  %v6170_v46 = vpop.f32.mrb[67].mxu0 }
 0x47d   :  { %v6551_v17 = vpop.f32.mrb[68].mxu1  ;;  %v6508_v55 = vpop.f32.mrb[68].mxu0 }
 0x47e   :  { %v6560_v25 = vmax.f32 %v6207_v52, %v6551_v17  ;;  %v6553_v56 = vpop.f32.mrb[69].mxu1  ;;  %v6558_v31 = vmax.f32 %v6164_v30, %v6508_v55  ;;  %v6510_v29 = vpop.f32.mrb[69].mxu0 }
 0x47f   :  { %v6554_v50 = vpop.f32.mrb[70].mxu1  ;;  %v6559_v57 = vmax.f32 %v6166_v48, %v6510_v29  ;;  %v6512_v33 = vpop.f32.mrb[70].mxu0 }
 0x480   :  { %v6563_v58 = vmax.f32 %v6210_v40, %v6554_v50  ;;  %v6556_v59 = vpop.f32.mrb[71].mxu1  ;;  %v6561_v60 = vmax.f32 %v6168_v21, %v6512_v33  ;;  %v6514_v61 = vpop.f32.mrb[71].mxu0 }
 0x481   :  { %v6562_v62 = vmax.f32 %v6170_v46, %v6514_v61 }
 0x4b1   :  { %v6901_v63 = vpop.f32.mrb[72].mxu1  ;;  %v6858_v2 = vpop.f32.mrb[72].mxu0 }
 0x4b2   :  { %v6910_v1 = vmax.f32 %v6560_v25, %v6901_v63  ;;  %v6903_v3 = vpop.f32.mrb[73].mxu1  ;;  %v6908_v4 = vmax.f32 %v6558_v31, %v6858_v2  ;;  %v6860_v5 = vpop.f32.mrb[73].mxu0 }
 0x4b3   :  { %v6904_v6 = vpop.f32.mrb[74].mxu1  ;;  %v6909_v7 = vmax.f32 %v6559_v57, %v6860_v5  ;;  %v6862_v9 = vpop.f32.mrb[74].mxu0 }
 0x4b4   :  { %v6913_v8 = vmax.f32 %v6563_v58, %v6904_v6  ;;  %v6906_v10 = vpop.f32.mrb[75].mxu1  ;;  %v6911_v11 = vmax.f32 %v6561_v60, %v6862_v9  ;;  %v6864_v45 = vpop.f32.mrb[75].mxu0 }
 0x4b5   :  { %v6912_v12 = vmax.f32 %v6562_v62, %v6864_v45 }
 0x4e5   :  { %v7251_v26 = vpop.f32.mrb[76].mxu1  ;;  %v7208_v15 = vpop.f32.mrb[76].mxu0 }
 0x4e6   :  { %v7260_v0 = vmax.f32 %v6910_v1, %v7251_v26  ;;  %v7253_v16 = vpop.f32.mrb[77].mxu1  ;;  %v7258_v18 = vmax.f32 %v6908_v4, %v7208_v15  ;;  %v7210_v23 = vpop.f32.mrb[77].mxu0 }
 0x4e7   :  { %v7254_v49 = vpop.f32.mrb[78].mxu1  ;;  %v7259_v47 = vmax.f32 %v6909_v7, %v7210_v23  ;;  %v7212_v39 = vpop.f32.mrb[78].mxu0 }
 0x4e8   :  { %v7279_v32 = vadd.f32 %v7270_v13, %v7260_v0  ;;  %v7263_v42 = vmax.f32 %v6913_v8, %v7254_v49  ;;  %v7256_v19 = vpop.f32.mrb[79].mxu1  ;;  %v7277_v43 = vadd.f32 %v7270_v13, %v7258_v18  ;;  %v7261_v38 = vmax.f32 %v6911_v11, %v7212_v39  ;;  %v7214_v41 = vpop.f32.mrb[79].mxu0 }
 0x4e9   :  { %v7278_v22 = vadd.f32 %v7270_v13, %v7259_v47  ;;  %v7262_v20 = vmax.f32 %v6912_v12, %v7214_v41 }
 0x4ea   :  { %v7285_v53 = vmax.f32 %v7279_v32, 0.0  ;;  %v7282_v28 = vadd.f32 %v7275_v27, %v7263_v42  ;;  %v7283_v37 = vmax.f32 %v7277_v43, 0.0  ;;  %v7280_v24 = vadd.f32 %v7275_v27, %v7261_v38 }
 0x4eb   :  { %v7284_v14 = vmax.f32 %v7278_v22, 0.0  ;;  %v7281_v51 = vadd.f32 %v7275_v27, %v7262_v20 }
 0x4ec   :  { %v9037_v54 = vpack.c.bf16 %v7285_v53, %v7285_v53  ;;  %v7288_v44 = vmax.f32 %v7282_v28, 0.0  ;;  %v7286_v34 = vmax.f32 %v7280_v24, 0.0 }
 0x4ed   :  { %v9036_v52 = vpack.c.bf16 %v7284_v14, %v7283_v37  ;;  %v7287_v35 = vmax.f32 %v7281_v51, 0.0 }
 0x4ee   :  { %9017 = vst [vmem:[%s13278_s6 + $0x68] sm:$0xf] %v9037_v54  ;;  %v9039_v30 = vpack.c.bf16 %v7288_v44, %v7288_v44 }
 0x4ef   :  { %9016 = vst [vmem:[%s13278_s6 + $0x60] sm:$0xff] %v9036_v52  ;;  %v9038_v48 = vpack.c.bf16 %v7287_v35, %v7286_v34 }
 0x4f0   :  { %9019 = vst [vmem:[%s13278_s6 + $0x74] sm:$0xf] %v9039_v30 }
 0x4f1   :  { %9018 = vst [vmem:[%s13278_s6 + $0x6c] sm:$0xff] %v9038_v48 }

// kernel: ensemble_forward.6
= control target key start
LH: loop header
LB: loop body
LE: loop exit
PB: predicated region body
PF: predicated region fallthrough
CT: control target
= control target key end

     0   :  { %v5401_v1 = vmov 0   ;;  %vm517_vm0 = vcmask 130048   ;;  %s6485_s2 = inlined_call_operand.vmem [shape: bf16[5,784,128], index: 2, kind: input, shape index: {}]   ;;  %s6486_s0 = inlined_call_operand.vmem [shape: bf16[5,32,784], index: 0, kind: input, shape index: {}]   ;;  %s6487_s1 = inlined_call_operand.vmem [shape: f32[5,32,1], index: 1, kind: input, shape index: {}]   ;;  %s6488_s3 = inlined_call_operand.vmem [shape: bf16[5,32,128], index: 3, kind: output, shape index: {}]  }
   0x1   :  { %v5056_v0 = vld [vmem:[%s6485_s2 + $0x40] sm:$0xff]   ;;  %5054 = vset.pattern.permute.xlu0 %v5401_v1  ;;  %5055 = vset.pattern.permute.xlu1 %v5401_v1  ;;  %v5060_v5 = vld [vmem:[%s6485_s2 + $0x48] sm:$0xff]   ;;  %v5064_v9 = vld [vmem:[%s6485_s2 + $0x50] sm:$0xff]  }
   0x2   :  { %v5057_v2 = vld [vmem:[%s6485_s2 + $0xc0] sm:$0xff]   ;;  %4588 = vmatprep.subr.bf16.mxu0 %v5056_v0  ;;  %v5061_v6 = vld [vmem:[%s6485_s2 + $0xc8] sm:$0xff]   ;;  %v5065_v10 = vld [vmem:[%s6485_s2 + $0xd0] sm:$0xff]  }
   0x3   :  { %v5058_v3 = vld [vmem:[%s6485_s2] sm:$0xff]   ;;  %4616 = vmatprep.subr.bf16.mxu1 %v5057_v2  ;;  %v5062_v7 = vld [vmem:[%s6485_s2 + $0x8] sm:$0xff]   ;;  %v5066_v11 = vld [vmem:[%s6485_s2 + $0x10] sm:$0xff]  }
   0x4   :  { %v5059_v4 = vld [vmem:[%s6485_s2 + $0x80] sm:$0xff]   ;;  %4589 = vmatpush3.bf16.msra.mxu0 %v5058_v3  ;;  %v5063_v8 = vld [vmem:[%s6485_s2 + $0x88] sm:$0xff]   ;;  %v5067_v12 = vld [vmem:[%s6485_s2 + $0x90] sm:$0xff]  }
   0x5   :  { %4617 = vmatpush3.bf16.msra.mxu1 %v5059_v4  ;;  %4590 = vmatprep.subr.bf16.mxu0 %v5060_v5  ;;  %v5068_v13 = vld [vmem:[%s6485_s2 + $0x58] sm:$0xff]   ;;  %v5072_v17 = vld [vmem:[%s6485_s2 + $0x60] sm:$0xff]   ;;  %v5076_v21 = vld [vmem:[%s6485_s2 + $0x68] sm:$0xff]  }
   0x6   :  { %4618 = vmatprep.subr.bf16.mxu1 %v5061_v6  ;;  %v5069_v14 = vld [vmem:[%s6485_s2 + $0xd8] sm:$0xff]   ;;  %v5073_v18 = vld [vmem:[%s6485_s2 + $0xe0] sm:$0xff]   ;;  %v5077_v22 = vld [vmem:[%s6485_s2 + $0xe8] sm:$0xff]  }
   0x7   :  { %v5070_v15 = vld [vmem:[%s6485_s2 + $0x18] sm:$0xff]   ;;  %v5074_v19 = vld [vmem:[%s6485_s2 + $0x20] sm:$0xff]   ;;  %v5078_v23 = vld [vmem:[%s6485_s2 + $0x28] sm:$0xff]  }
   0x8   :  { %4591 = vmatpush3.bf16.msra.mxu0 %v5062_v7  ;;  %v5071_v16 = vld [vmem:[%s6485_s2 + $0x98] sm:$0xff]   ;;  %v5075_v20 = vld [vmem:[%s6485_s2 + $0xa0] sm:$0xff]   ;;  %v5079_v24 = vld [vmem:[%s6485_s2 + $0xa8] sm:$0xff]  }
   0x9   :  { %4619 = vmatpush3.bf16.msra.mxu1 %v5063_v8  ;;  %4592 = vmatprep.subr.bf16.mxu0 %v5064_v9  ;;  %v5080_v25 = vld [vmem:[%s6485_s2 + $0x70] sm:$0xff]   ;;  %v5084_v29 = vld [vmem:[%s6485_s2 + $0x78] sm:$0xff]   ;;  %v5090_v34 = vld [vmem:[%s6486_s0 + $0x4] ss:$28 sps:$4 sm:$0xff]  }
   0xa   :  { %4620 = vmatprep.subr.bf16.mxu1 %v5065_v10  ;;  %v5081_v26 = vld [vmem:[%s6485_s2 + $0xf0] sm:$0xff]   ;;  %v5085_v30 = vld [vmem:[%s6485_s2 + $0xf8] sm:$0xff]   ;;  %v5091_v35 = vld [vmem:[%s6486_s0 + $0x8] ss:$28 sps:$4 sm:$0xff]   ;;  %556 = vmatprep.mubr.bf16.mxu0 %v5090_v34 }
   0xb   :  { %v5082_v27 = vld [vmem:[%s6485_s2 + $0x30] sm:$0xff]   ;;  %v5086_v31 = vld [vmem:[%s6485_s2 + $0x38] sm:$0xff]   ;;  %v5093_v36 = vld [vmem:[%s6486_s0 + $0xc] ss:$28 sps:$4 sm:$0xff]  }
   0xc   :  { %4593 = vmatpush3.bf16.msra.mxu0 %v5066_v11  ;;  %v5083_v28 = vld [vmem:[%s6485_s2 + $0xb0] sm:$0xff]   ;;  %v5087_v32 = vld [vmem:[%s6485_s2 + $0xb8] sm:$0xff]   ;;  %v5094_v37 = vld [vmem:[%s6485_s2 + $0x140] sm:$0xff]   ;;  %605 = vmatprep.mubr.bf16.mxu1 %v5093_v36 }
   0xd   :  { %4621 = vmatpush3.bf16.msra.mxu1 %v5067_v12  ;;  %4594 = vmatprep.subr.bf16.mxu0 %v5068_v13  ;;  %v5088_v33 = vld [vmem:[%s6486_s0] ss:$28 sps:$4 sm:$0xff]   ;;  %v5097_v40 = vld [vmem:[%s6485_s2 + $0x148] sm:$0xff]   ;;  %v5103_v44 = vld [vmem:[%s6486_s0 + $0x38] ss:$28 sps:$4 sm:$0xff]  }
   0xe   :  { %4622 = vmatprep.subr.bf16.mxu1 %v5069_v14  ;;  %v5095_v38 = vld [vmem:[%s6485_s2 + $0x180] sm:$0xff]   ;;  %v5098_v41 = vld [vmem:[%s6485_s2 + $0x108] sm:$0xff]   ;;  %v5099_v42 = vld [vmem:[%s6486_s0 + $0x3c] ss:$28 sps:$4 sm:$0xff]  }
   0xf   :  { %v5096_v39 = vld [vmem:[%s6485_s2 + $0x100] sm:$0xff]   ;;  %v5105_v46 = vld [vmem:[%s6485_s2 + $0x150] sm:$0xff]   ;;  %v5107_v48 = vld [vmem:[%s6485_s2 + $0x158] sm:$0xff]  }
  0x10   :  { %4595 = vmatpush3.bf16.msra.mxu0 %v5070_v15  ;;  %v5101_v43 = vld [vmem:[%s6486_s0 + $0x44] ss:$28 sps:$4 sm:$0xff]   ;;  %v5106_v47 = vld [vmem:[%s6485_s2 + $0x110] sm:$0xff]   ;;  %v5108_v49 = vld [vmem:[%s6485_s2 + $0x118] sm:$0xff]  }
  0x11   :  { %4623 = vmatpush3.bf16.msra.mxu1 %v5071_v16  ;;  %4596 = vmatprep.subr.bf16.mxu0 %v5072_v17  ;;  %v5104_v45 = vld [vmem:[%s6486_s0 + $0x40] ss:$28 sps:$4 sm:$0xff]   ;;  %v5109_v50 = vld [vmem:[%s6486_s0 + $0x18] ss:$28 sps:$4 sm:$0xff]   ;;  %v5110_v51 = vld [vmem:[%s6485_s2 + $0x1c8] sm:$0xff]  }
  0x12   :  { %4624 = vmatprep.subr.bf16.mxu1 %v5073_v18  ;;  %v5111_v52 = vld [vmem:[%s6485_s2 + $0x160] sm:$0xff]   ;;  %v5112_v53 = vld [vmem:[%s6486_s0 + $0x50] ss:$28 sps:$4 sm:$0xff]   ;;  %v5119_v60 = vld [vmem:[%s6485_s2 + $0x1d8] sm:$0xff]  }
  0x13   :  { %v5113_v54 = vld [vmem:[%s6485_s2 + $0x188] sm:$0xff]   ;;  %v5114_v55 = vld [vmem:[%s6485_s2 + $0x120] sm:$0xff]   ;;  %v5115_v56 = vld [vmem:[%s6485_s2 + $0x1d0] sm:$0xff]  }
  0x14   :  { %4597 = vmatpush3.bf16.msra.mxu0 %v5074_v19  ;;  %v5116_v57 = vld [vmem:[%s6485_s2 + $0x168] sm:$0xff]   ;;  %v5117_v58 = vld [vmem:[%s6485_s2 + $0x190] sm:$0xff]   ;;  %v5121_v62 = vld [vmem:[%s6485_s2 + $0x198] sm:$0xff]  }
  0x15   :  { %4625 = vmatpush3.bf16.msra.mxu1 %v5075_v20  ;;  %4598 = vmatprep.subr.bf16.mxu0 %v5076_v21  ;;  %v5118_v59 = vld [vmem:[%s6485_s2 + $0x128] sm:$0xff]   ;;  %v5120_v61 = vld [vmem:[%s6485_s2 + $0x170] sm:$0xff]   ;;  %v5123_v0 = vld [vmem:[%s6485_s2 + $0x1e0] sm:$0xff]  }
  0x16   :  { %4626 = vmatprep.subr.bf16.mxu1 %v5077_v22  ;;  %v5122_v63 = vld [vmem:[%s6485_s2 + $0x130] sm:$0xff]   ;;  %v5124_v1 = vld [vmem:[%s6485_s2 + $0x178] sm:$0xff]   ;;  %v5125_v2 = vld [vmem:[%s6485_s2 + $0x1a0] sm:$0xff]  }
  0x17   :  { %v5126_v3 = vld [vmem:[%s6485_s2 + $0x138] sm:$0xff]   ;;  %v5127_v4 = vld [vmem:[%s6486_s0 + $0x10] ss:$28 sps:$4 sm:$0xff]   ;;  %v5141_v16 = vld [vmem:[%s6486_s0 + $0x48] ss:$28 sps:$4 sm:$0xff]  }
  0x18   :  { %4599 = vmatpush3.bf16.msra.mxu0 %v5078_v23  ;;  %v5129_v5 = vld [vmem:[%s6486_s0 + $0x14] ss:$28 sps:$4 sm:$0xff]   ;;  %v5130_v6 = vld [vmem:[%s6485_s2 + $0x1e8] sm:$0xff]   ;;  %v5140_v15 = vld [vmem:[%s6485_s2 + $0x1f8] sm:$0xff]  }
  0x19   :  { %4627 = vmatpush3.bf16.msra.mxu1 %v5079_v24  ;;  %4600 = vmatprep.subr.bf16.mxu0 %v5080_v25  ;;  %v5131_v7 = vld [vmem:[%s6485_s2 + $0x1a8] sm:$0xff]   ;;  %v5134_v10 = vld [vmem:[%s6485_s2 + $0x1f0] sm:$0xff]   ;;  %v5142_v17 = vld [vmem:[%s6485_s2 + $0x1b8] sm:$0xff]  }
  0x1a   :  { %4628 = vmatprep.subr.bf16.mxu1 %v5081_v26  ;;  %v5132_v8 = vld [vmem:[%s6485_s2 + $0x248] sm:$0xff]   ;;  %v5135_v11 = vld [vmem:[%s6485_s2 + $0x1b0] sm:$0xff]   ;;  %v5143_v18 = vld [vmem:[%s6485_s2 + $0x258] sm:$0xff]  }
  0x1b   :  { %v5133_v9 = vld [vmem:[%s6485_s2 + $0x208] sm:$0xff]   ;;  %v5136_v12 = vld [vmem:[%s6485_s2 + $0x250] sm:$0xff]   ;;  %v5144_v19 = vld [vmem:[%s6485_s2 + $0x218] sm:$0xff]  }
  0x1c   :  { %4601 = vmatpush3.bf16.msra.mxu0 %v5082_v27  ;;  %v5137_v13 = vld [vmem:[%s6485_s2 + $0x210] sm:$0xff]   ;;  %v5138_v14 = vld [vmem:[%s6486_s0 + $0x4c] ss:$28 sps:$4 sm:$0xff]   ;;  %v5145_v20 = vld [vmem:[%s6485_s2 + $0x200] sm:$0xff]  }
  0x1d   :  { %4629 = vmatpush3.bf16.msra.mxu1 %v5083_v28  ;;  %4602 = vmatprep.subr.bf16.mxu0 %v5084_v29  ;;  %v5146_v21 = vld [vmem:[%s6485_s2 + $0x1c0] sm:$0xff]   ;;  %v5149_v24 = vld [vmem:[%s6486_s0 + $0x70] ss:$28 sps:$4 sm:$0xff]   ;;  %v5160_v34 = vld [vmem:[%s6485_s2 + $0x2d8] sm:$0xff]  }
  0x1e   :  { %4630 = vmatprep.subr.bf16.mxu1 %v5085_v30  ;;  %v5147_v22 = vld [vmem:[%s6485_s2 + $0x260] sm:$0xff]   ;;  %v5151_v25 = vld [vmem:[%s6486_s0 + $0x74] ss:$28 sps:$4 sm:$0xff]   ;;  %v5152_v26 = vld [vmem:[%s6485_s2 + $0x2c8] sm:$0xff]  }
  0x1f   :  { %v5148_v23 = vld [vmem:[%s6485_s2 + $0x220] sm:$0xff]   ;;  %v5153_v27 = vld [vmem:[%s6485_s2 + $0x268] sm:$0xff]   ;;  %v5156_v30 = vld [vmem:[%s6485_s2 + $0x2d0] sm:$0xff]  }
  0x20   :  { %4603 = vmatpush3.bf16.msra.mxu0 %v5086_v31  ;;  %v5154_v28 = vld [vmem:[%s6485_s2 + $0x288] sm:$0xff]   ;;  %v5157_v31 = vld [vmem:[%s6485_s2 + $0x270] sm:$0xff]   ;;  %v5162_v36 = vld [vmem:[%s6485_s2 + $0x298] sm:$0xff]  }
  0x21   :  { %4631 = vmatpush3.bf16.msra.mxu1 %v5087_v32  ;;  %4644 = vmatprep.subr.bf16.mxu0 %v5094_v37  ;;  %v5155_v29 = vld [vmem:[%s6485_s2 + $0x228] sm:$0xff]   ;;  %v5158_v32 = vld [vmem:[%s6485_s2 + $0x290] sm:$0xff]   ;;  %v5163_v37 = vld [vmem:[%s6485_s2 + $0x238] sm:$0xff]  }
  0x22   :  { %5023 = vmatprep.subr.bf16.mxu1 %v5095_v38 }
  0x23   :  { %557 = vmatmul.mubr.bf16.vlgmr.msra.gmra.mrb[0].mxu0 %v5088_v33  ;;  %v5159_v33 = vld [vmem:[%s6485_s2 + $0x230] sm:$0xff]  }
  0x24   :  { %606 = vmatmul.mubr.bf16.vlgmr.msra.gmra.mrb[0].mxu1 %v5091_v35  ;;  %4645 = vmatpush3.bf16.msra.mxu0 %v5096_v39  ;;  %v5161_v35 = vld [vmem:[%s6485_s2 + $0x278] sm:$0xff]   ;;  %v5165_v39 = vld [vmem:[%s6485_s2 + $0x280] sm:$0xff]  }
  0x25   :  { %5024 = vmatpush3.bf16.msra.mxu1 %v5095_v38  ;;  %4646 = vmatprep.subr.bf16.mxu0 %v5097_v40  ;;  %v5164_v38 = vld [vmem:[%s6485_s2 + $0x2e0] sm:$0xff]  }
  0x26   :  { %564 = vmatprep.mubr.bf16.mxu0 %v5099_v42  ;;  %613 = vmatprep.mubr.bf16.mxu1 %v5101_v43  ;;  %v5166_v40 = vld [vmem:[%s6485_s2 + $0x2a0] sm:$0xff]   ;;  %v5168_v42 = vld [vmem:[%s6486_s0 + $0x78] ss:$28 sps:$4 sm:$0xff]  }
  0x27   :  { %4675 = vmatprep.subr.bf16.mxu1 %v5110_v51  ;;  %v5170_v43 = vld [vmem:[%s6486_s0 + $0x7c] ss:$28 sps:$4 sm:$0xff]   ;;  %v5179_v51 = vld [vmem:[%s6485_s2 + $0x2b0] sm:$0xff]  }
  0x28   :  { %4647 = vmatpush3.bf16.msra.mxu0 %v5098_v41  ;;  %v5167_v41 = vld [vmem:[%s6485_s2 + $0x240] sm:$0xff]  }
  0x29   :  { %4648 = vmatprep.subr.bf16.mxu0 %v5105_v46  ;;  %v5173_v46 = vld [vmem:[%s6485_s2 + $0x350] sm:$0xff]  }
  0x2b   :  { %565 = vmatmul.mubr.bf16.gmra.mrb[4].mxu0 %v5103_v44  ;;  %v5171_v44 = vld [vmem:[%s6485_s2 + $0x2e8] sm:$0xff]  }
  0x2c   :  { %614 = vmatmul.mubr.bf16.gmra.mrb[4].mxu1 %v5104_v45  ;;  %4649 = vmatpush3.bf16.msra.mxu0 %v5106_v47  ;;  %v5172_v45 = vld [vmem:[%s6485_s2 + $0x2a8] sm:$0xff]   ;;  %v5174_v47 = vld [vmem:[%s6485_s2 + $0x310] sm:$0xff]  }
  0x2d   :  { %4650 = vmatprep.subr.bf16.mxu0 %v5107_v48  ;;  %5025 = vmatprep.mubr.msk.bf16.mxu1 %vm517_vm0, %v5109_v50  ;;  %v5175_v48 = vld [vmem:[%s6486_s0 + $0xac] ss:$28 sps:$4 sm:$0xff]  }
  0x2e   :  { %654 = vmatprep.mubr.bf16.mxu0 %v5129_v5  ;;  %v5178_v50 = vld [vmem:[%s6486_s0 + $0xa8] ss:$28 sps:$4 sm:$0xff]   ;;  %v5199_v5 = vld [vmem:[%s6485_s2 + $0x378] sm:$0xff]  }
  0x30   :  { %4651 = vmatpush3.bf16.msra.mxu0 %v5108_v49  ;;  %v5177_v49 = vld [vmem:[%s6485_s2 + $0x2f0] sm:$0xff]  }
  0x31   :  { %4652 = vmatprep.subr.bf16.mxu0 %v5111_v52  ;;  %v5180_v52 = vld [vmem:[%s6485_s2 + $0x358] sm:$0xff]  }
  0x34   :  { %5026 = vmatmul.mubr.msk.bf16.vlgmr.msra.gmra.mrb[8].mxu1 %vm517_vm0, %v5112_v53  ;;  %4653 = vmatpush3.bf16.msra.mxu0 %v5114_v55  ;;  %v5181_v53 = vld [vmem:[%s6485_s2 + $0x318] sm:$0xff]  }
  0x35   :  { %4676 = vmatpush3.bf16.msra.mxu1 %v5113_v54  ;;  %4654 = vmatprep.subr.bf16.mxu0 %v5116_v57  ;;  %v5182_v54 = vld [vmem:[%s6486_s0 + $0xb4] ss:$28 sps:$4 sm:$0xff]   ;;  %v5184_v55 = vld [vmem:[%s6485_s2 + $0x2f8] sm:$0xff]  }
  0x36   :  { %4677 = vmatprep.subr.bf16.mxu1 %v5115_v56  ;;  %1287 = vmatprep.mubr.bf16.mxu1 %v5151_v25  ;;  %v5185_v56 = vld [vmem:[%s6486_s0 + $0xb0] ss:$28 sps:$4 sm:$0xff]   ;;  %v5186_v57 = vld [vmem:[%s6485_s2 + $0x2b8] sm:$0xff]  }
  0x37   :  { %v5217_v25 = vld [vmem:[%s6485_s2 + $0x3d8] sm:$0xff]  }
  0x38   :  { %4655 = vmatpush3.bf16.msra.mxu0 %v5118_v59  ;;  %v5188_v59 = vld [vmem:[%s6485_s2 + $0x320] sm:$0xff]  }
  0x39   :  { %4678 = vmatpush3.bf16.msra.mxu1 %v5117_v58  ;;  %4656 = vmatprep.subr.bf16.mxu0 %v5120_v61  ;;  %v5187_v58 = vld [vmem:[%s6485_s2 + $0x360] sm:$0xff]  }
  0x3a   :  { %4679 = vmatprep.subr.bf16.mxu1 %v5119_v60  ;;  %v5189_v60 = vld [vmem:[%s6485_s2 + $0x300] sm:$0xff]  }
  0x3b   :  { %v5190_v61 = vld [vmem:[%s6485_s2 + $0x2c0] sm:$0xff]  }
  0x3c   :  { %4657 = vmatpush3.bf16.msra.mxu0 %v5122_v63  ;;  %v5192_v63 = vld [vmem:[%s6485_s2 + $0x328] sm:$0xff]  }
  0x3d   :  { %4680 = vmatpush3.bf16.msra.mxu1 %v5121_v62  ;;  %4658 = vmatprep.subr.bf16.mxu0 %v5124_v1  ;;  %v5191_v62 = vld [vmem:[%s6485_s2 + $0x368] sm:$0xff]   ;;  %v5195_v1 = vld [vmem:[%s6486_s0 + $0x84] ss:$28 sps:$4 sm:$0xff]  }
  0x3e   :  { %4681 = vmatprep.subr.bf16.mxu1 %v5123_v0  ;;  %v5193_v0 = vld [vmem:[%s6486_s0 + $0x80] ss:$28 sps:$4 sm:$0xff]  }
  0x40   :  { %4659 = vmatpush3.bf16.msra.mxu0 %v5126_v3  ;;  %v5197_v3 = vld [vmem:[%s6485_s2 + $0x370] sm:$0xff]  }
  0x41   :  { %4682 = vmatpush3.bf16.msra.mxu1 %v5125_v2  ;;  %4703 = vmatprep.subr.bf16.mxu0 %v5132_v8  ;;  %v5196_v2 = vld [vmem:[%s6485_s2 + $0x308] sm:$0xff]   ;;  %v5201_v8 = vld [vmem:[%s6486_s0 + $0xbc] ss:$28 sps:$4 sm:$0xff]  }
  0x42   :  { %4683 = vmatprep.subr.bf16.mxu1 %v5130_v6  ;;  %v129_v6 = vld [vmem:[%s6487_s1] sm:$0xff] }
  0x43   :  { %655 = vmatmul.mubr.bf16.vlgmr.msra.gmra.mrb[8].mxu0 %v5127_v4  ;;  %v5198_v4 = vld [vmem:[%s6485_s2 + $0x330] sm:$0xff]   ;;  %135 = vperm.xlu0 %5054, %v129_v6   ;;  %v5265_v6 = vld [vmem:[%s6485_s2 + $0x568] sm:$0xff]  }
  0x44   :  { %4704 = vmatpush3.bf16.msra.mxu0 %v5133_v9  ;;  %662 = vmatprep.mubr.bf16.mxu0 %v5138_v14  ;;  %v5203_v9 = vld [vmem:[%s6486_s0 + $0xb8] ss:$28 sps:$4 sm:$0xff]  }
  0x45   :  { %4684 = vmatpush3.bf16.msra.mxu1 %v5131_v7  ;;  %4705 = vmatprep.subr.bf16.mxu0 %v5136_v12  ;;  %v5200_v7 = vld [vmem:[%s6485_s2 + $0x338] sm:$0xff]   ;;  %v5205_v12 = vld [vmem:[%s6485_s2 + $0x340] sm:$0xff]   ;;  %v131_v14 = vld [vmem:[%s6487_s1 + $0x10] sm:$0xff] }
  0x46   :  { %4685 = vmatprep.subr.bf16.mxu1 %v5134_v10  ;;  %v5204_v10 = vld [vmem:[%s6485_s2 + $0x380] sm:$0xff]   ;;  %145 = vperm.xlu1 %5055, %v131_v14   ;;  %v5273_v14 = vld [vmem:[%s6485_s2 + $0x578] sm:$0xff]  }
  0x48   :  { %4706 = vmatpush3.bf16.msra.mxu0 %v5137_v13  ;;  %v5206_v13 = vld [vmem:[%s6485_s2 + $0x388] sm:$0xff]  }
  0x49   :  { %4686 = vmatpush3.bf16.msra.mxu1 %v5135_v11  ;;  %4707 = vmatprep.subr.bf16.mxu0 %v5143_v18  ;;  %v130_v11 = vld [vmem:[%s6487_s1 + $0x8] sm:$0xff]  ;;  %v5210_v18 = vld [vmem:[%s6486_s0 + $0xc0] ss:$28 sps:$4 sm:$0xff]  }
  0x4a   :  { %4687 = vmatprep.subr.bf16.mxu1 %v5140_v15  ;;  %140 = vperm.xlu0 %5054, %v130_v11   ;;  %v5207_v15 = vld [vmem:[%s6485_s2 + $0x348] sm:$0xff]   ;;  %v5270_v11 = vld [vmem:[%s6485_s2 + $0x530] sm:$0xff]  }
  0x4b   :  { %663 = vmatmul.mubr.bf16.gmra.mrb[12].mxu0 %v5141_v16  ;;  %v5208_v16 = vld [vmem:[%s6486_s0 + $0x88] ss:$28 sps:$4 sm:$0xff]  }
  0x4c   :  { %4708 = vmatpush3.bf16.msra.mxu0 %v5144_v19  ;;  %1336 = vmatprep.mubr.bf16.mxu0 %v5170_v43  ;;  %v5211_v19 = vld [vmem:[%s6486_s0 + $0xe0] ss:$28 sps:$4 sm:$0xff]  }
  0x4d   :  { %4688 = vmatpush3.bf16.msra.mxu1 %v5142_v17  ;;  %4709 = vmatprep.subr.bf16.mxu0 %v5147_v22  ;;  %v5209_v17 = vld [vmem:[%s6485_s2 + $0x3d0] sm:$0xff]   ;;  %v5235_v43 = vld [vmem:[%s6485_s2 + $0x478] sm:$0xff]  }
  0x4e   :  { %4689 = vmatprep.subr.bf16.mxu1 %v5145_v20  ;;  %v5213_v20 = vld [vmem:[%s6486_s0 + $0xe4] ss:$28 sps:$4 sm:$0xff]   ;;  %v5215_v22 = vld [vmem:[%s6485_s2 + $0x450] sm:$0xff]  }
  0x50   :  { %4710 = vmatpush3.bf16.msra.mxu0 %v5148_v23  ;;  %v132_v23 = vld [vmem:[%s6487_s1 + $0x18] sm:$0xff] }
  0x51   :  { %4690 = vmatpush3.bf16.msra.mxu1 %v5146_v21  ;;  %4711 = vmatprep.subr.bf16.mxu0 %v5153_v27  ;;  %v5214_v21 = vld [vmem:[%s6485_s2 + $0x390] sm:$0xff]   ;;  %v5219_v27 = vld [vmem:[%s6485_s2 + $0x458] sm:$0xff]  }
  0x52   :  { %4731 = vmatprep.subr.bf16.mxu1 %v5152_v26  ;;  %150 = vperm.xlu1 %5055, %v132_v23   ;;  %v5218_v26 = vld [vmem:[%s6485_s2 + $0x398] sm:$0xff]   ;;  %v5282_v23 = vld [vmem:[%s6485_s2 + $0x4f0] sm:$0xff]  }
  0x54   :  { %1288 = vmatmul.mubr.bf16.vlgmr.msra.gmra.mrb[12].mxu1 %v5149_v24  ;;  %4712 = vmatpush3.bf16.msra.mxu0 %v5155_v29  ;;  %v5216_v24 = vld [vmem:[%s6485_s2 + $0x410] sm:$0xff]   ;;  %v5221_v29 = vld [vmem:[%s6485_s2 + $0x3e0] sm:$0xff]  }
  0x55   :  { %4732 = vmatpush3.bf16.msra.mxu1 %v5154_v28  ;;  %4713 = vmatprep.subr.bf16.mxu0 %v5157_v31  ;;  %v5220_v28 = vld [vmem:[%s6485_s2 + $0x418] sm:$0xff]   ;;  %v5223_v31 = vld [vmem:[%s6485_s2 + $0x460] sm:$0xff]  }
  0x56   :  { %4733 = vmatprep.subr.bf16.mxu1 %v5156_v30  ;;  %1295 = vmatprep.mubr.bf16.mxu1 %v5175_v48  ;;  %v5222_v30 = vld [vmem:[%s6485_s2 + $0x3a0] sm:$0xff]   ;;  %v5241_v48 = vld [vmem:[%s6486_s0 + $0x118] ss:$28 sps:$4 sm:$0xff]  }
  0x58   :  { %4714 = vmatpush3.bf16.msra.mxu0 %v5159_v33  ;;  %v5225_v33 = vld [vmem:[%s6485_s2 + $0x3e8] sm:$0xff]  }
  0x59   :  { %4734 = vmatpush3.bf16.msra.mxu1 %v5158_v32  ;;  %4715 = vmatprep.subr.bf16.mxu0 %v5161_v35  ;;  %v5224_v32 = vld [vmem:[%s6485_s2 + $0x420] sm:$0xff]   ;;  %v5227_v35 = vld [vmem:[%s6485_s2 + $0x468] sm:$0xff]  }
  0x5a   :  { %4735 = vmatprep.subr.bf16.mxu1 %v5160_v34  ;;  %v5226_v34 = vld [vmem:[%s6485_s2 + $0x3a8] sm:$0xff]  }
  0x5c   :  { %4716 = vmatpush3.bf16.msra.mxu0 %v5163_v37  ;;  %1296 = vmatmul.mubr.bf16.gmra.mrb[16].mxu1 %v5178_v50  ;;  %v5229_v37 = vld [vmem:[%s6485_s2 + $0x3f0] sm:$0xff]   ;;  %v5243_v50 = vld [vmem:[%s6485_s2 + $0x440] sm:$0xff]  }
  0x5d   :  { %4736 = vmatpush3.bf16.msra.mxu1 %v5162_v36  ;;  %4717 = vmatprep.subr.bf16.mxu0 %v5165_v39  ;;  %v5228_v36 = vld [vmem:[%s6485_s2 + $0x428] sm:$0xff]   ;;  %v5231_v39 = vld [vmem:[%s6485_s2 + $0x470] sm:$0xff]  }
  0x5e   :  { %4737 = vmatprep.subr.bf16.mxu1 %v5164_v38  ;;  %1385 = vmatprep.mubr.bf16.mxu1 %v5195_v1  ;;  %v5230_v38 = vld [vmem:[%s6485_s2 + $0x3b0] sm:$0xff]   ;;  %v3859_v1 = vld [vmem:[%s6487_s1 + $0x20] sm:$0xff] }
  0x5f   :  { %867 = vperm.xlu0 %5054, %v3859_v1   ;;  %v5324_v1 = vld [vmem:[%s6485_s2 + $0x678] sm:$0xff]  }
  0x60   :  { %4718 = vmatpush3.bf16.msra.mxu0 %v5167_v41  ;;  %v5233_v41 = vld [vmem:[%s6485_s2 + $0x3f8] sm:$0xff]  }
  0x61   :  { %4738 = vmatpush3.bf16.msra.mxu1 %v5166_v40  ;;  %4762 = vmatprep.subr.bf16.mxu0 %v5173_v46  ;;  %v5232_v40 = vld [vmem:[%s6485_s2 + $0x430] sm:$0xff]   ;;  %v5238_v46 = vld [vmem:[%s6486_s0 + $0x11c] ss:$28 sps:$4 sm:$0xff]  }
  0x62   :  { %4739 = vmatprep.subr.bf16.mxu1 %v5171_v44  ;;  %v5236_v44 = vld [vmem:[%s6485_s2 + $0x438] sm:$0xff]  }
  0x63   :  { %1337 = vmatmul.mubr.bf16.vlgmr.msra.gmra.mrb[16].mxu0 %v5168_v42  ;;  %v5234_v42 = vld [vmem:[%s6485_s2 + $0x3b8] sm:$0xff]  }
  0x64   :  { %4763 = vmatpush3.bf16.msra.mxu0 %v5174_v47  ;;  %1344 = vmatprep.mubr.bf16.mxu0 %v5182_v54  ;;  %v5240_v47 = vld [vmem:[%s6485_s2 + $0x3c0] sm:$0xff]  }
  0x65   :  { %4740 = vmatpush3.bf16.msra.mxu1 %v5172_v45  ;;  %4764 = vmatprep.subr.bf16.mxu0 %v5180_v52  ;;  %v5237_v45 = vld [vmem:[%s6485_s2 + $0x400] sm:$0xff]   ;;  %v5245_v52 = vld [vmem:[%s6485_s2 + $0x3c8] sm:$0xff]  }
  0x66   :  { %4741 = vmatprep.subr.bf16.mxu1 %v5177_v49  ;;  %v5242_v49 = vld [vmem:[%s6485_s2 + $0x480] sm:$0xff]  }
  0x67   :  { %v5247_v54 = vld [vmem:[%s6486_s0 + $0xe8] ss:$28 sps:$4 sm:$0xff]  }
  0x68   :  { %4765 = vmatpush3.bf16.msra.mxu0 %v5181_v53  ;;  %v5246_v53 = vld [vmem:[%s6485_s2 + $0x488] sm:$0xff]  }
  0x69   :  { %4742 = vmatpush3.bf16.msra.mxu1 %v5179_v51  ;;  %4766 = vmatprep.subr.bf16.mxu0 %v5187_v58  ;;  %v5244_v51 = vld [vmem:[%s6485_s2 + $0x408] sm:$0xff]  }
  0x6a   :  { %4743 = vmatprep.subr.bf16.mxu1 %v5184_v55  ;;  %v5249_v55 = vld [vmem:[%s6486_s0 + $0xec] ss:$28 sps:$4 sm:$0xff]  }
  0x6b   :  { %1345 = vmatmul.mubr.bf16.gmra.mrb[20].mxu0 %v5185_v56  ;;  %v5250_v56 = vld [vmem:[%s6485_s2 + $0x448] sm:$0xff]  }
  0x6c   :  { %4767 = vmatpush3.bf16.msra.mxu0 %v5188_v59  ;;  %2019 = vmatprep.mubr.bf16.mxu0 %v5213_v20  ;;  %v5252_v58 = vld [vmem:[%s6486_s0 + $0xf0] ss:$28 sps:$4 sm:$0xff]   ;;  %v5279_v20 = vld [vmem:[%s6485_s2 + $0x540] sm:$0xff]  }
  0x6d   :  { %4744 = vmatpush3.bf16.msra.mxu1 %v5186_v57  ;;  %4768 = vmatprep.subr.bf16.mxu0 %v5191_v62  ;;  %v5251_v57 = vld [vmem:[%s6485_s2 + $0x490] sm:$0xff]   ;;  %v5257_v62 = vld [vmem:[%s6485_s2 + $0x560] sm:$0xff]  }
  0x6e   :  { %4745 = vmatprep.subr.bf16.mxu1 %v5189_v60  ;;  %v5254_v59 = vld [vmem:[%s6486_s0 + $0xf4] ss:$28 sps:$4 sm:$0xff]   ;;  %v5255_v60 = vld [vmem:[%s6485_s2 + $0x558] sm:$0xff]  }
  0x70   :  { %4769 = vmatpush3.bf16.msra.mxu0 %v5192_v63  ;;  %v5258_v63 = vld [vmem:[%s6486_s0 + $0x124] ss:$28 sps:$4 sm:$0xff]  }
  0x71   :  { %4746 = vmatpush3.bf16.msra.mxu1 %v5190_v61  ;;  %4770 = vmatprep.subr.bf16.mxu0 %v5197_v3  ;;  %v5256_v61 = vld [vmem:[%s6485_s2 + $0x518] sm:$0xff]   ;;  %v5262_v3 = vld [vmem:[%s6486_s0 + $0x12c] ss:$28 sps:$4 sm:$0xff]  }
  0x72   :  { %5029 = vmatprep.subr.bf16.mxu1 %v5196_v2 }
  0x74   :  { %1386 = vmatmul.mubr.bf16.vlgmr.msra.gmra.mrb[20].mxu1 %v5193_v0  ;;  %4771 = vmatpush3.bf16.msra.mxu0 %v5198_v4  ;;  %v5260_v0 = vld [vmem:[%s6485_s2 + $0x520] sm:$0xff]   ;;  %v3860_v4 = vld [vmem:[%s6487_s1 + $0x28] sm:$0xff] }
  0x75   :  { %5030 = vmatpush3.bf16.msra.mxu1 %v5196_v2  ;;  %4772 = vmatprep.subr.bf16.mxu0 %v5199_v5  ;;  %v5261_v2 = vld [vmem:[%s6486_s0 + $0x120] ss:$28 sps:$4 sm:$0xff]   ;;  %v5264_v5 = vld [vmem:[%s6486_s0 + $0x128] ss:$28 sps:$4 sm:$0xff]  }
  0x76   :  { %1393 = vmatprep.mubr.bf16.mxu1 %v5201_v8  ;;  %4790 = vmatprep.subr.bf16.mxu1 %v5209_v17  ;;  %v5267_v8 = vld [vmem:[%s6485_s2 + $0x570] sm:$0xff]   ;;  %v5276_v17 = vld [vmem:[%s6485_s2 + $0x4a0] sm:$0xff]  }
  0x77   :  { %872 = vperm.xlu1 %5055, %v3860_v4   ;;  %v5327_v4 = vld [vmem:[%s6485_s2 + $0x5b8] sm:$0xff]  }
  0x78   :  { %4773 = vmatpush3.bf16.msra.mxu0 %v5200_v7  ;;  %v5266_v7 = vld [vmem:[%s6485_s2 + $0x528] sm:$0xff]  }
  0x79   :  { %4774 = vmatprep.subr.bf16.mxu0 %v5204_v10  ;;  %v5269_v10 = vld [vmem:[%s6485_s2 + $0x4d8] sm:$0xff]  }
  0x7c   :  { %1394 = vmatmul.mubr.bf16.gmra.mrb[24].mxu1 %v5203_v9  ;;  %4775 = vmatpush3.bf16.msra.mxu0 %v5205_v12  ;;  %v5268_v9 = vld [vmem:[%s6486_s0 + $0xf8] ss:$28 sps:$4 sm:$0xff]   ;;  %v5271_v12 = vld [vmem:[%s6486_s0 + $0x130] ss:$28 sps:$4 sm:$0xff]  }
  0x7d   :  { %4776 = vmatprep.subr.bf16.mxu0 %v5206_v13  ;;  %5031 = vmatprep.mubr.msk.bf16.mxu1 %vm517_vm0, %v5208_v16  ;;  %v5272_v13 = vld [vmem:[%s6485_s2 + $0x498] sm:$0xff]  }
  0x7e   :  { %v5275_v16 = vld [vmem:[%s6485_s2 + $0x538] sm:$0xff]  }
  0x80   :  { %4777 = vmatpush3.bf16.msra.mxu0 %v5207_v15  ;;  %v5274_v15 = vld [vmem:[%s6485_s2 + $0x4e0] sm:$0xff]  }
  0x81   :  { %4818 = vmatprep.subr.bf16.mxu0 %v5215_v22  ;;  %v5281_v22 = vld [vmem:[%s6485_s2 + $0x588] sm:$0xff]  }
  0x83   :  { %2020 = vmatmul.mubr.bf16.vlgmr.msra.gmra.mrb[24].mxu0 %v5211_v19  ;;  %v5278_v19 = vld [vmem:[%s6485_s2 + $0x4e8] sm:$0xff]  }
  0x84   :  { %5032 = vmatmul.mubr.msk.bf16.vlgmr.msra.gmra.mrb[28].mxu1 %vm517_vm0, %v5210_v18  ;;  %4819 = vmatpush3.bf16.msra.mxu0 %v5216_v24  ;;  %v5277_v18 = vld [vmem:[%s6485_s2 + $0x580] sm:$0xff]   ;;  %v5283_v24 = vld [vmem:[%s6485_s2 + $0x548] sm:$0xff]  }
  0x85   :  { %4791 = vmatpush3.bf16.msra.mxu1 %v5214_v21  ;;  %4820 = vmatprep.subr.bf16.mxu0 %v5219_v27  ;;  %v5280_v21 = vld [vmem:[%s6485_s2 + $0x4a8] sm:$0xff]   ;;  %v3862_v27 = vld [vmem:[%s6487_s1 + $0x38] sm:$0xff] }
  0x86   :  { %4792 = vmatprep.subr.bf16.mxu1 %v5217_v25  ;;  %2027 = vmatprep.mubr.bf16.mxu0 %v5238_v46  ;;  %v5284_v25 = vld [vmem:[%s6485_s2 + $0x4b0] sm:$0xff]   ;;  %v5306_v46 = vld [vmem:[%s6485_s2 + $0x598] sm:$0xff]  }
  0x87   :  { %2068 = vmatprep.mubr.bf16.mxu1 %v5249_v55  ;;  %882 = vperm.xlu1 %5055, %v3862_v27   ;;  %v5316_v55 = vld [vmem:[%s6485_s2 + $0x628] sm:$0xff]   ;;  %v5343_v27 = vld [vmem:[%s6486_s0 + $0x164] ss:$28 sps:$4 sm:$0xff]  }
  0x88   :  { %4821 = vmatpush3.bf16.msra.mxu0 %v5220_v28  ;;  %v3861_v28 = vld [vmem:[%s6487_s1 + $0x30] sm:$0xff] }
  0x89   :  { %4793 = vmatpush3.bf16.msra.mxu1 %v5218_v26  ;;  %4822 = vmatprep.subr.bf16.mxu0 %v5223_v31  ;;  %v5285_v26 = vld [vmem:[%s6485_s2 + $0x590] sm:$0xff]   ;;  %v5288_v31 = vld [vmem:[%s6485_s2 + $0x4b8] sm:$0xff]  }
  0x8a   :  { %4794 = vmatprep.subr.bf16.mxu1 %v5221_v29  ;;  %v5286_v29 = vld [vmem:[%s6485_s2 + $0x4f8] sm:$0xff]   ;;  %877 = vperm.xlu0 %5054, %v3861_v28  }
  0x8b   :  { %2028 = vmatmul.mubr.bf16.gmra.mrb[28].mxu0 %v5241_v48  ;;  %v5308_v48 = vld [vmem:[%s6485_s2 + $0x660] sm:$0xff]  }
  0x8c   :  { %4823 = vmatpush3.bf16.msra.mxu0 %v5224_v32  ;;  %2117 = vmatprep.mubr.bf16.mxu0 %v5254_v59  ;;  %v5289_v32 = vld [vmem:[%s6486_s0 + $0x158] ss:$28 sps:$4 sm:$0xff]  }
  0x8d   :  { %4795 = vmatpush3.bf16.msra.mxu1 %v5222_v30  ;;  %4824 = vmatprep.subr.bf16.mxu0 %v5227_v35  ;;  %v5287_v30 = vld [vmem:[%s6485_s2 + $0x550] sm:$0xff]   ;;  %v5293_v35 = vld [vmem:[%s6485_s2 + $0x4c0] sm:$0xff]  }
  0x8e   :  { %4796 = vmatprep.subr.bf16.mxu1 %v5225_v33  ;;  %v5291_v33 = vld [vmem:[%s6486_s0 + $0x15c] ss:$28 sps:$4 sm:$0xff]   ;;  %v5320_v59 = vld [vmem:[%s6485_s2 + $0x670] sm:$0xff]  }
  0x90   :  { %4825 = vmatpush3.bf16.msra.mxu0 %v5228_v36  ;;  %v5294_v36 = vld [vmem:[%s6485_s2 + $0x618] sm:$0xff]  }
  0x91   :  { %4797 = vmatpush3.bf16.msra.mxu1 %v5226_v34  ;;  %4826 = vmatprep.subr.bf16.mxu0 %v5231_v39  ;;  %v5292_v34 = vld [vmem:[%s6485_s2 + $0x500] sm:$0xff]   ;;  %v5297_v39 = vld [vmem:[%s6486_s0 + $0x194] ss:$28 sps:$4 sm:$0xff]  }
  0x92   :  { %4798 = vmatprep.subr.bf16.mxu1 %v5229_v37  ;;  %v5295_v37 = vld [vmem:[%s6485_s2 + $0x508] sm:$0xff]  }
  0x94   :  { %4827 = vmatpush3.bf16.msra.mxu0 %v5232_v40  ;;  %v5299_v40 = vld [vmem:[%s6486_s0 + $0x190] ss:$28 sps:$4 sm:$0xff]  }
  0x95   :  { %4799 = vmatpush3.bf16.msra.mxu1 %v5230_v38  ;;  %4828 = vmatprep.subr.bf16.mxu0 %v5235_v43  ;;  %v5296_v38 = vld [vmem:[%s6485_s2 + $0x4c8] sm:$0xff]  }
  0x96   :  { %4800 = vmatprep.subr.bf16.mxu1 %v5233_v41  ;;  %v5300_v41 = vld [vmem:[%s6485_s2 + $0x510] sm:$0xff]  }
  0x97   :  { %v5302_v43 = vld [vmem:[%s6486_s0 + $0x150] ss:$28 sps:$4 sm:$0xff]  }
  0x98   :  { %4829 = vmatpush3.bf16.msra.mxu0 %v5236_v44  ;;  %v5304_v44 = vld [vmem:[%s6486_s0 + $0x154] ss:$28 sps:$4 sm:$0xff]  }
  0x99   :  { %4801 = vmatpush3.bf16.msra.mxu1 %v5234_v42  ;;  %4830 = vmatprep.subr.bf16.mxu0 %v5242_v49  ;;  %v5301_v42 = vld [vmem:[%s6485_s2 + $0x4d0] sm:$0xff]   ;;  %v5309_v49 = vld [vmem:[%s6486_s0 + $0x1a0] ss:$28 sps:$4 sm:$0xff]  }
  0x9a   :  { %4802 = vmatprep.subr.bf16.mxu1 %v5237_v45  ;;  %v5305_v45 = vld [vmem:[%s6485_s2 + $0x5d8] sm:$0xff]  }
  0x9c   :  { %4831 = vmatpush3.bf16.msra.mxu0 %v5243_v50  ;;  %v5310_v50 = vld [vmem:[%s6485_s2 + $0x620] sm:$0xff]  }
  0x9d   :  { %4803 = vmatpush3.bf16.msra.mxu1 %v5240_v47  ;;  %4832 = vmatprep.subr.bf16.mxu0 %v5246_v53  ;;  %v5307_v47 = vld [vmem:[%s6486_s0 + $0x168] ss:$28 sps:$4 sm:$0xff]  }
  0x9e   :  { %4804 = vmatprep.subr.bf16.mxu1 %v5244_v51  ;;  %v5311_v51 = vld [vmem:[%s6485_s2 + $0x5e0] sm:$0xff]   ;;  %v5313_v53 = vld [vmem:[%s6485_s2 + $0x668] sm:$0xff]  }
  0xa0   :  { %4833 = vmatpush3.bf16.msra.mxu0 %v5250_v56  ;;  %v5317_v56 = vld [vmem:[%s6486_s0 + $0x188] ss:$28 sps:$4 sm:$0xff]  }
  0xa1   :  { %4805 = vmatpush3.bf16.msra.mxu1 %v5245_v52  ;;  %4877 = vmatprep.subr.bf16.mxu0 %v5255_v60  ;;  %v5312_v52 = vld [vmem:[%s6485_s2 + $0x5a0] sm:$0xff]   ;;  %v5321_v60 = vld [vmem:[%s6485_s2 + $0x630] sm:$0xff]  }
  0xa2   :  { %5035 = vmatprep.subr.bf16.mxu1 %v5251_v57 }
  0xa3   :  { %2118 = vmatmul.mubr.bf16.vlgmr.msra.gmra.mrb[32].mxu0 %v5252_v58  ;;  %v5319_v58 = vld [vmem:[%s6485_s2 + $0x5a8] sm:$0xff]  }
  0xa4   :  { %2069 = vmatmul.mubr.bf16.vlgmr.msra.gmra.mrb[32].mxu1 %v5247_v54  ;;  %4878 = vmatpush3.bf16.msra.mxu0 %v5256_v61  ;;  %v5314_v54 = vld [vmem:[%s6486_s0 + $0x18c] ss:$28 sps:$4 sm:$0xff]  }
  0xa5   :  { %5036 = vmatpush3.bf16.msra.mxu1 %v5251_v57  ;;  %4879 = vmatprep.subr.bf16.mxu0 %v5257_v62  ;;  %v5318_v57 = vld [vmem:[%s6485_s2 + $0x5e8] sm:$0xff]   ;;  %v4050_v62 = vld [vmem:[%s6487_s1 + $0x40] sm:$0xff] }
  0xa6   :  { %2076 = vmatprep.mubr.bf16.mxu1 %v5258_v63  ;;  %2125 = vmatprep.mubr.bf16.mxu0 %v5262_v3  ;;  %v4051_v61 = vld [vmem:[%s6487_s1 + $0x48] sm:$0xff]  ;;  %v5322_v63 = vld [vmem:[%s6485_s2 + $0x5f0] sm:$0xff]   ;;  %v5326_v3 = vld [vmem:[%s6485_s2 + $0x5f8] sm:$0xff]  }
  0xa7   :  { %4849 = vmatprep.subr.bf16.mxu1 %v5269_v10  ;;  %1604 = vperm.xlu1 %5055, %v4051_v61   ;;  %v5333_v10 = vld [vmem:[%s6485_s2 + $0x648] sm:$0xff]   ;;  %v5355_v61 = vld [vmem:[%s6486_s0 + $0x19c] ss:$28 sps:$4 sm:$0xff]  }
  0xa8   :  { %4880 = vmatpush3.bf16.msra.mxu0 %v5260_v0  ;;  %1599 = vperm.xlu0 %5054, %v4050_v62   ;;  %v5323_v0 = vld [vmem:[%s6485_s2 + $0x5b0] sm:$0xff]  }
  0xa9   :  { %4881 = vmatprep.subr.bf16.mxu0 %v5265_v6  ;;  %v5329_v6 = vld [vmem:[%s6485_s2 + $0x640] sm:$0xff]  }
  0xab   :  { %2126 = vmatmul.mubr.bf16.gmra.mrb[36].mxu0 %v5264_v5  ;;  %v5328_v5 = vld [vmem:[%s6485_s2 + $0x680] sm:$0xff]  }
  0xac   :  { %2077 = vmatmul.mubr.bf16.gmra.mrb[36].mxu1 %v5261_v2  ;;  %4882 = vmatpush3.bf16.msra.mxu0 %v5266_v7  ;;  %v5325_v2 = vld [vmem:[%s6485_s2 + $0x638] sm:$0xff]   ;;  %v5330_v7 = vld [vmem:[%s6485_s2 + $0x600] sm:$0xff]  }
  0xad   :  { %4883 = vmatprep.subr.bf16.mxu0 %v5267_v8  ;;  %5037 = vmatprep.mubr.msk.bf16.mxu1 %vm517_vm0, %v5268_v9  ;;  %v5331_v8 = vld [vmem:[%s6485_s2 + $0x5c0] sm:$0xff]   ;;  %v5332_v9 = vld [vmem:[%s6485_s2 + $0x688] sm:$0xff]  }
  0xae   :  { %2800 = vmatprep.mubr.bf16.mxu0 %v5291_v33  ;;  %v5345_v33 = vld [vmem:[%s6485_s2 + $0x6e0] sm:$0xff]  }
  0xb0   :  { %4884 = vmatpush3.bf16.msra.mxu0 %v5270_v11  ;;  %v5334_v11 = vld [vmem:[%s6485_s2 + $0x608] sm:$0xff]  }
  0xb1   :  { %4885 = vmatprep.subr.bf16.mxu0 %v5273_v14 }
  0xb4   :  { %5038 = vmatmul.mubr.msk.bf16.vlgmr.msra.gmra.mrb[40].mxu1 %vm517_vm0, %v5271_v12  ;;  %4886 = vmatpush3.bf16.msra.mxu0 %v5275_v16  ;;  %v5335_v12 = vld [vmem:[%s6485_s2 + $0x5c8] sm:$0xff]  }
  0xb5   :  { %4850 = vmatpush3.bf16.msra.mxu1 %v5272_v13  ;;  %4887 = vmatprep.subr.bf16.mxu0 %v5277_v18  ;;  %v5336_v13 = vld [vmem:[%s6485_s2 + $0x690] sm:$0xff]  }
  0xb6   :  { %4851 = vmatprep.subr.bf16.mxu1 %v5274_v15  ;;  %2751 = vmatprep.mubr.bf16.mxu1 %v5304_v44  ;;  %v5337_v15 = vld [vmem:[%s6485_s2 + $0x650] sm:$0xff]  }
  0xb8   :  { %4888 = vmatpush3.bf16.msra.mxu0 %v5279_v20 }
  0xb9   :  { %4852 = vmatpush3.bf16.msra.mxu1 %v5276_v17  ;;  %4889 = vmatprep.subr.bf16.mxu0 %v5281_v22  ;;  %v5338_v17 = vld [vmem:[%s6485_s2 + $0x610] sm:$0xff]   ;;  %v5340_v22 = vld [vmem:[%s6485_s2 + $0x698] sm:$0xff]  }
  0xba   :  { %4853 = vmatprep.subr.bf16.mxu1 %v5278_v19  ;;  %v5339_v19 = vld [vmem:[%s6485_s2 + $0x5d0] sm:$0xff]  }
  0xbc   :  { %4890 = vmatpush3.bf16.msra.mxu0 %v5283_v24 }
  0xbd   :  { %4854 = vmatpush3.bf16.msra.mxu1 %v5280_v21  ;;  %4891 = vmatprep.subr.bf16.mxu0 %v5285_v26  ;;  %v5341_v26 = vld [vmem:[%s6486_s0 + $0x160] ss:$28 sps:$4 sm:$0xff]  }
  0xbe   :  { %4855 = vmatprep.subr.bf16.mxu1 %v5282_v23 }
  0xc0   :  { %4892 = vmatpush3.bf16.msra.mxu0 %v5287_v30 }
  0xc1   :  { %4856 = vmatpush3.bf16.msra.mxu1 %v5284_v25  ;;  %5041 = vmatprep.subr.bf16.mxu0 %v5294_v36 }
  0xc2   :  { %4857 = vmatprep.subr.bf16.mxu1 %v5286_v29  ;;  %v5344_v29 = vld [vmem:[%s6485_s2 + $0x658] sm:$0xff]   ;;  %v136_v30 = vpop.permute.xlu0 %135 }
  0xc3   :  { %2801 = vmatmul.mubr.bf16.vlgmr.msra.gmra.mrb[40].mxu0 %v5289_v32 }
  0xc4   :  { %5042 = vmatpush3.bf16.msra.mxu0 %v5294_v36  ;;  %2808 = vmatprep.mubr.bf16.mxu0 %v5297_v39  ;;  %v5346_v36 = vld [vmem:[%s6486_s0 + $0x1c0] ss:$28 sps:$4 sm:$0xff]  }
  0xc5   :  { %4858 = vmatpush3.bf16.msra.mxu1 %v5288_v31  ;;  %4936 = vmatprep.subr.bf16.mxu0 %v5308_v48  ;;  %v4052_v48 = vld [vmem:[%s6487_s1 + $0x50] sm:$0xff] }
  0xc6   :  { %4859 = vmatprep.subr.bf16.mxu1 %v5292_v34  ;;  %1609 = vperm.xlu0 %5054, %v4052_v48   ;;  %v5385_v48 = vld [vmem:[%s6486_s0 + $0x1c8] ss:$28 sps:$4 sm:$0xff]  }
  0xc9   :  { %4860 = vmatpush3.bf16.msra.mxu1 %v5293_v35 }
  0xca   :  { %4861 = vmatprep.subr.bf16.mxu1 %v5295_v37 }
  0xcb   :  { %2809 = vmatmul.mubr.bf16.gmra.mrb[44].mxu0 %v5299_v40  ;;  %v5349_v40 = vld [vmem:[%s6485_s2 + $0x6a0] sm:$0xff]  }
  0xcc   :  { %5043 = vmatprep.mubr.msk.bf16.mxu0 %vm517_vm0, %v5307_v47  ;;  %v4053_v47 = vld [vmem:[%s6487_s1 + $0x58] sm:$0xff] }
  0xcd   :  { %4862 = vmatpush3.bf16.msra.mxu1 %v5296_v38  ;;  %v5348_v38 = vld [vmem:[%s6486_s0 + $0x1c4] ss:$28 sps:$4 sm:$0xff]   ;;  %1614 = vperm.xlu1 %5055, %v4053_v47  }
  0xce   :  { %4863 = vmatprep.subr.bf16.mxu1 %v5300_v41  ;;  %v141_v41 = vpop.permute.xlu0 %140 }
  0xd1   :  { %4864 = vmatpush3.bf16.msra.mxu1 %v5301_v42 }
  0xd2   :  { %4905 = vmatprep.subr.bf16.mxu1 %v5305_v45 }
  0xd3   :  { %5044 = vmatmul.mubr.msk.bf16.vlgmr.msra.gmra.mrb[48].mxu0 %vm517_vm0, %v5309_v49 }
  0xd4   :  { %2752 = vmatmul.mubr.bf16.vlgmr.msra.gmra.mrb[44].mxu1 %v5302_v43  ;;  %4937 = vmatpush3.bf16.msra.mxu0 %v5310_v50  ;;  %v5350_v43 = vld [vmem:[%s6485_s2 + $0x760] sm:$0xff]  }
  0xd5   :  { %4906 = vmatpush3.bf16.msra.mxu1 %v5306_v46  ;;  %4938 = vmatprep.subr.bf16.mxu0 %v5313_v53  ;;  %v5351_v46 = vld [vmem:[%s6485_s2 + $0x720] sm:$0xff]   ;;  %v146_v53 = vpop.permute.xlu1 %145 }
  0xd6   :  { %4907 = vmatprep.subr.bf16.mxu1 %v5311_v51  ;;  %2759 = vmatprep.mubr.bf16.mxu1 %v5314_v54  ;;  %v5352_v51 = vld [vmem:[%s6485_s2 + $0x6e8] sm:$0xff]  }
  0xd7   :  { %3483 = vmatprep.mubr.bf16.mxu0 %v5348_v38 }
  0xd8   :  { %4939 = vmatpush3.bf16.msra.mxu0 %v5316_v55 }
  0xd9   :  { %4908 = vmatpush3.bf16.msra.mxu1 %v5312_v52  ;;  %4940 = vmatprep.subr.bf16.mxu0 %v5320_v59  ;;  %v5354_v59 = vld [vmem:[%s6485_s2 + $0x768] sm:$0xff]  }
  0xda   :  { %4909 = vmatprep.subr.bf16.mxu1 %v5318_v57 }
  0xdc   :  { %2760 = vmatmul.mubr.bf16.gmra.mrb[48].mxu1 %v5317_v56  ;;  %4941 = vmatpush3.bf16.msra.mxu0 %v5321_v60  ;;  %v5353_v56 = vld [vmem:[%s6485_s2 + $0x6a8] sm:$0xff]  }
  0xdd   :  { %4910 = vmatpush3.bf16.msra.mxu1 %v5319_v58  ;;  %4942 = vmatprep.subr.bf16.mxu0 %v5324_v1  ;;  %v5357_v1 = vld [vmem:[%s6485_s2 + $0x728] sm:$0xff]  }
  0xde   :  { %4911 = vmatprep.subr.bf16.mxu1 %v5322_v63  ;;  %2849 = vmatprep.mubr.bf16.mxu1 %v5343_v27  ;;  %v5376_v27 = vld [vmem:[%s6485_s2 + $0x788] sm:$0xff]  }
  0xe0   :  { %4943 = vmatpush3.bf16.msra.mxu0 %v5325_v2 }
  0xe1   :  { %4912 = vmatpush3.bf16.msra.mxu1 %v5323_v0  ;;  %4944 = vmatprep.subr.bf16.mxu0 %v5328_v5  ;;  %v5359_v5 = vld [vmem:[%s6485_s2 + $0x6f0] sm:$0xff]  }
  0xe2   :  { %4913 = vmatprep.subr.bf16.mxu1 %v5326_v3 }
  0xe4   :  { %4945 = vmatpush3.bf16.msra.mxu0 %v5329_v6 }
  0xe5   :  { %4914 = vmatpush3.bf16.msra.mxu1 %v5327_v4  ;;  %4946 = vmatprep.subr.bf16.mxu0 %v5332_v9  ;;  %v5358_v4 = vld [vmem:[%s6486_s0 + $0x198] ss:$28 sps:$4 sm:$0xff]  }
  0xe6   :  { %4915 = vmatprep.subr.bf16.mxu1 %v5330_v7  ;;  %v5360_v7 = vld [vmem:[%s6486_s0 + $0x1fc] ss:$28 sps:$4 sm:$0xff]   ;;  %v5362_v9 = vld [vmem:[%s6485_s2 + $0x6b0] sm:$0xff]  }
  0xe8   :  { %4947 = vmatpush3.bf16.msra.mxu0 %v5333_v10  ;;  %v5363_v10 = vld [vmem:[%s6486_s0 + $0x1f8] ss:$28 sps:$4 sm:$0xff]  }
  0xe9   :  { %4916 = vmatpush3.bf16.msra.mxu1 %v5331_v8  ;;  %4948 = vmatprep.subr.bf16.mxu0 %v5336_v13  ;;  %v151_v8 = vpop.permute.xlu1 %150  ;;  %v5364_v13 = vld [vmem:[%s6485_s2 + $0x770] sm:$0xff]  }
  0xea   :  { %4917 = vmatprep.subr.bf16.mxu1 %v5334_v11 }
  0xec   :  { %4949 = vmatpush3.bf16.msra.mxu0 %v5337_v15  ;;  %v5365_v15 = vld [vmem:[%s6485_s2 + $0x730] sm:$0xff]  }
  0xed   :  { %4918 = vmatpush3.bf16.msra.mxu1 %v5335_v12  ;;  %4950 = vmatprep.subr.bf16.mxu0 %v5340_v22  ;;  %v5371_v22 = vld [vmem:[%s6485_s2 + $0x6c0] sm:$0xff]  }
  0xee   :  { %4919 = vmatprep.subr.bf16.mxu1 %v5338_v17  ;;  %v5366_v17 = vld [vmem:[%s6485_s2 + $0x6f8] sm:$0xff]  }
  0xf0   :  { %4951 = vmatpush3.bf16.msra.mxu0 %v5344_v29  ;;  %v5377_v29 = vld [vmem:[%s6485_s2 + $0x748] sm:$0xff]  }
  0xf1   :  { %4920 = vmatpush3.bf16.msra.mxu1 %v5339_v19  ;;  %4992 = vmatprep.subr.bf16.mxu0 %v5350_v43  ;;  %v5368_v19 = vld [vmem:[%s6485_s2 + $0x778] sm:$0xff]  }
  0xf2   :  { %4964 = vmatprep.subr.bf16.mxu1 %v5345_v33 }
  0xf3   :  { %3484 = vmatmul.mubr.bf16.vlgmr.msra.gmra.mrb[52].mxu0 %v5346_v36  ;;  %v5380_v36 = vld [vmem:[%s6485_s2 + $0x790] sm:$0xff]  }
  0xf4   :  { %2850 = vmatmul.mubr.bf16.vlgmr.msra.gmra.mrb[52].mxu1 %v5341_v26  ;;  %4993 = vmatpush3.bf16.msra.mxu0 %v5351_v46  ;;  %v5375_v26 = vld [vmem:[%s6485_s2 + $0x6c8] sm:$0xff]  }
  0xf5   :  { %4965 = vmatpush3.bf16.msra.mxu1 %v5349_v40  ;;  %4994 = vmatprep.subr.bf16.mxu0 %v5354_v59  ;;  %v5381_v40 = vld [vmem:[%s6485_s2 + $0x750] sm:$0xff]  }
  0xf6   :  { %v4604_v14 = vpop.f32.mrb[0].mxu0  ;;  %4966 = vmatprep.subr.bf16.mxu1 %v5352_v51  ;;  %2857 = vmatprep.mubr.bf16.mxu1 %v5355_v61  ;;  %v5388_v51 = vld [vmem:[%s6485_s2 + $0x758] sm:$0xff]  }
  0xf7   :  { %v4632_v16 = vpop.f32.mrb[0].mxu1  ;;  %v4605_v18 = vpop.f32.mrb[1].mxu0  ;;  %3491 = vmatprep.mubr.bf16.mxu0 %v5360_v7  ;;  %v4242_v7 = vld [vmem:[%s6487_s1 + $0x68] sm:$0xff] }
  0xf8   :  { %v4606_v20 = vadd.f32 %v4605_v18, %v4604_v14  ;;  %v4633_v21 = vpop.f32.mrb[1].mxu1  ;;  %v4607_v24 = vpop.f32.mrb[2].mxu0  ;;  %4995 = vmatpush3.bf16.msra.mxu0 %v5357_v1  ;;  %v5367_v18 = vld [vmem:[%s6485_s2 + $0x6b8] sm:$0xff]   ;;  %v5396_v1 = vld [vmem:[%s6486_s0 + $0x20c] ss:$28 sps:$4 sm:$0xff]   ;;  %2336 = vperm.xlu1 %5055, %v4242_v7  }
  0xf9   :  { %v4634_v23 = vadd.f32 %v4633_v21, %v4632_v16  ;;  %v4635_v25 = vpop.f32.mrb[2].mxu1  ;;  %v4608_v28 = vpop.f32.mrb[3].mxu0  ;;  %4967 = vmatpush3.bf16.msra.mxu1 %v5353_v56  ;;  %4996 = vmatprep.subr.bf16.mxu0 %v5364_v13  ;;  %v5370_v21 = vld [vmem:[%s6485_s2 + $0x700] sm:$0xff]   ;;  %v5390_v56 = vld [vmem:[%s6486_s0 + $0x1d0] ss:$28 sps:$4 sm:$0xff]  }
  0xfa   :  { %v4609_v31 = vadd.f32 %v4608_v28, %v4607_v24  ;;  %v4636_v32 = vpop.f32.mrb[3].mxu1  ;;  %v559_v34 = vadd.f32 %v4606_v20, %v136_v30  ;;  %4968 = vmatprep.subr.bf16.mxu1 %v5359_v5  ;;  %v5369_v20 = vld [vmem:[%s6485_s2 + $0x738] sm:$0xff]   ;;  %v5373_v24 = vld [vmem:[%s6485_s2 + $0x740] sm:$0xff]  }
  0xfb   :  { %v4637_v35 = vadd.f32 %v4636_v32, %v4635_v25  ;;  %3492 = vmatmul.mubr.bf16.gmra.mrb[56].mxu0 %v5363_v10  ;;  %v5374_v25 = vld [vmem:[%s6485_s2 + $0x708] sm:$0xff]  }
  0xfc   :  { %v6267_v39 = vadd.f32 %v4634_v23, %v559_v34  ;;  %v562_v44 = vadd.f32 %v4609_v31, %v141_v41  ;;  %2858 = vmatmul.mubr.bf16.gmra.mrb[56].mxu1 %v5358_v4  ;;  %4997 = vmatpush3.bf16.msra.mxu0 %v5365_v15  ;;  %v5372_v23 = vld [vmem:[%s6485_s2 + $0x780] sm:$0xff]   ;;  %v5378_v31 = vld [vmem:[%s6485_s2 + $0x710] sm:$0xff]   ;;  %v5382_v41 = vld [vmem:[%s6485_s2 + $0x718] sm:$0xff]  }
  0xfd   :  { %4969 = vmatpush3.bf16.msra.mxu1 %v5362_v9  ;;  %4998 = vmatprep.subr.bf16.mxu0 %v5368_v19  ;;  %v5379_v34 = vld [vmem:[%s6485_s2 + $0x6d0] sm:$0xff]   ;;  %v4241_v4 = vld [vmem:[%s6487_s1 + $0x60] sm:$0xff]  ;;  %v4244_v15 = vld [vmem:[%s6487_s1 + $0x78] sm:$0xff] }
  0xfe   :  { %v4610_v37 = vpop.f32.mrb[4].mxu0  ;;  %v6287_v52 = vadd.f32 %v4637_v35, %v562_v44  ;;  %4970 = vmatprep.subr.bf16.mxu1 %v5366_v17  ;;  %v5383_v44 = vld [vmem:[%s6485_s2 + $0x6d8] sm:$0xff]   ;;  %2331 = vperm.xlu0 %5054, %v4241_v4   ;;  %v5398_v13 = vld [vmem:[%s6486_s0 + $0x208] ss:$28 sps:$4 sm:$0xff]  }
  0xff   :  { %v4638_v42 = vpop.f32.mrb[4].mxu1  ;;  %v4611_v45 = vpop.f32.mrb[5].mxu0  ;;  %v4432_v19 = vld [vmem:[%s6487_s1 + $0x80] sm:$0xff]  ;;  %2346 = vperm.xlu1 %5055, %v4244_v15  }
 0x100   :  { %v4612_v49 = vadd.f32 %v4611_v45, %v4610_v37  ;;  %v4639_v50 = vpop.f32.mrb[5].mxu1  ;;  %v4613_v55 = vpop.f32.mrb[6].mxu0  ;;  %4999 = vmatpush3.bf16.msra.mxu0 %v5369_v20  ;;  %v5400_v20 = vld [vmem:[%s6486_s0 + $0x210] ss:$28 sps:$4 sm:$0xff]  }
 0x101   :  { %v4640_v54 = vadd.f32 %v4639_v50, %v4638_v42  ;;  %v4641_v58 = vpop.f32.mrb[6].mxu1  ;;  %v4614_v60 = vpop.f32.mrb[7].mxu0  ;;  %4971 = vmatpush3.bf16.msra.mxu1 %v5367_v18  ;;  %5000 = vmatprep.subr.bf16.mxu0 %v5372_v23  ;;  %v4435_v23 = vld [vmem:[%s6487_s1 + $0x98] sm:$0xff] }
 0x102   :  { %v567_v57 = vadd.f32 %v4612_v49, %v146_v53  ;;  %v4615_v63 = vadd.f32 %v4614_v60, %v4613_v55  ;;  %v4642_v0 = vpop.f32.mrb[7].mxu1  ;;  %4972 = vmatprep.subr.bf16.mxu1 %v5370_v21  ;;  %v5387_v49 = vld [vmem:[%s6486_s0 + $0x1cc] ss:$28 sps:$4 sm:$0xff]   ;;  %v5392_v60 = vld [vmem:[%s6486_s0 + $0x1d4] ss:$28 sps:$4 sm:$0xff]  }
 0x103   :  { %v4643_v2 = vadd.f32 %v4642_v0, %v4641_v58  ;;  %3532 = vmatprep.mubr.bf16.mxu1 %v5387_v49  ;;  %3581 = vmatprep.mubr.bf16.mxu0 %v5392_v60  ;;  %v4433_v21 = vld [vmem:[%s6487_s1 + $0x88] sm:$0xff] }
 0x104   :  { %v6298_v62 = vadd.f32 %v4640_v54, %v567_v57  ;;  %v570_v11 = vadd.f32 %v4615_v63, %v151_v8  ;;  %5001 = vmatpush3.bf16.msra.mxu0 %v5373_v24  ;;  %v5389_v54 = vld [vmem:[%s6485_s2 + $0x7a0] sm:$0xff]   ;;  %v4243_v8 = vld [vmem:[%s6487_s1 + $0x70] sm:$0xff]  ;;  %3068 = vperm.xlu1 %5055, %v4433_v21   ;;  %v868_v24 = vpop.permute.xlu0 %867 }
 0x105   :  { %4973 = vmatpush3.bf16.msra.mxu1 %v5371_v22  ;;  %5002 = vmatprep.subr.bf16.mxu0 %v5376_v27  ;;  %v5393_v63 = vld [vmem:[%s6486_s0 + $0x204] ss:$28 sps:$4 sm:$0xff]   ;;  %v4434_v22 = vld [vmem:[%s6487_s1 + $0x90] sm:$0xff] }
 0x106   :  { %v6328_v16 = vadd.f32 %v4643_v2, %v570_v11  ;;  %4974 = vmatprep.subr.bf16.mxu1 %v5374_v25  ;;  %2341 = vperm.xlu0 %5054, %v4243_v8  }
 0x107   :  { %v6303_v3 = vpop.f32.mrb[8].mxu1 }
 0x108   :  { %v705_v6 = vpop.f32.mrb[9].mxu1  ;;  %5003 = vmatpush3.bf16.msra.mxu0 %v5377_v29  ;;  %3078 = vperm.xlu1 %5055, %v4435_v23  }
 0x109   :  { %v6320_v12 = vpop.f32.mrb[10].mxu1  ;;  %4975 = vmatpush3.bf16.msra.mxu1 %v5375_v26  ;;  %5004 = vmatprep.subr.bf16.mxu0 %v5380_v36  ;;  %v873_v26 = vpop.permute.xlu1 %872 }
 0x10a   :  { %v708_v14 = vpop.f32.mrb[11].mxu1  ;;  %4976 = vmatprep.subr.bf16.mxu1 %v5378_v31  ;;  %3063 = vperm.xlu0 %5054, %v4432_v19  }
 0x10c   :  { %5005 = vmatpush3.bf16.msra.mxu0 %v5381_v40 }
 0x10d   :  { %4977 = vmatpush3.bf16.msra.mxu1 %v5379_v34 }
 0x10e   :  { %4978 = vmatprep.subr.bf16.mxu1 %v5382_v41  ;;  %3073 = vperm.xlu0 %5054, %v4434_v22  }
 0x111   :  { %4979 = vmatpush3.bf16.msra.mxu1 %v5383_v44 }
 0x112   :  { %5047 = vmatprep.subr.bf16.mxu1 %v5389_v54 }
 0x114   :  { %3533 = vmatmul.mubr.bf16.vlgmr.msra.gmra.mrb[60].mxu1 %v5385_v48 }
 0x115   :  { %5048 = vmatpush3.bf16.msra.mxu1 %v5389_v54  ;;  %3540 = vmatprep.mubr.bf16.mxu1 %v5393_v63 }
 0x116   :  { %v4660_v28 = vpop.f32.mrb[8].mxu0 }
 0x117   :  { %v4661_v30 = vpop.f32.mrb[9].mxu0 }
 0x118   :  { %v4662_v32 = vadd.f32 %v4661_v30, %v4660_v28  ;;  %v4663_v33 = vpop.f32.mrb[10].mxu0 }
 0x119   :  { %v4664_v35 = vpop.f32.mrb[11].mxu0 }
 0x11a   :  { %v657_v37 = vadd.f32 %v4662_v32, %v6267_v39  ;;  %v4665_v38 = vadd.f32 %v4664_v35, %v4663_v33  ;;  %v5384_v39 = vld [vmem:[%s6485_s2 + $0x798] sm:$0xff]  }
 0x11b   :  { %5006 = vmatprep.subr.bf16.mxu0 %v5384_v39 }
 0x11c   :  { %v706_v42 = vadd.f32 %v705_v6, %v657_v37  ;;  %v660_v43 = vadd.f32 %v4665_v38, %v6287_v52  ;;  %5007 = vmatpush3.bf16.msra.mxu0 %v5388_v51 }
 0x11e   :  { %v720_v45 = vmax.f32 %v706_v42, 0.0  ;;  %v709_v46 = vadd.f32 %v708_v14, %v660_v43  ;;  %v4666_v47 = vpop.f32.mrb[12].mxu0 }
 0x11f   :  { %v4667_v50 = vpop.f32.mrb[13].mxu0  ;;  %3582 = vmatmul.mubr.bf16.vlgmr.msra.gmra.mrb[60].mxu0 %v5390_v56 }
 0x120   :  { %v721_v52 = vmax.f32 %v709_v46, 0.0  ;;  %v4668_v53 = vadd.f32 %v4667_v50, %v4666_v47  ;;  %v4669_v55 = vpop.f32.mrb[14].mxu0  ;;  %3589 = vmatprep.mubr.bf16.mxu0 %v5396_v1  ;;  %v883_v47 = vpop.permute.xlu1 %882 }
 0x121   :  { %v4670_v59 = vpop.f32.mrb[15].mxu0  ;;  %v878_v50 = vpop.permute.xlu0 %877 }
 0x122   :  { %v4532_v57 = vpack.c.bf16 %v721_v52, %v720_v45  ;;  %v665_v58 = vadd.f32 %v4668_v53, %v6298_v62  ;;  %v4671_v61 = vadd.f32 %v4670_v59, %v4669_v55  ;;  %v5395_v62 = vld [vmem:[%s6486_s0 + $0x200] ss:$28 sps:$4 sm:$0xff]  }
 0x123   :  { %3541 = vmatmul.mubr.bf16.gmra.mrb[64].mxu1 %v5395_v62 }
 0x124   :  { %4533 = vst [vmem:[%s6488_s3] sm:$0xff] %v4532_v57   ;;  %v714_v0 = vadd.f32 %v6303_v3, %v665_v58  ;;  %v668_v2 = vadd.f32 %v4671_v61, %v6328_v16  ;;  %v5399_v3 = vld [vmem:[%s6486_s0 + $0x1d8] ss:$28 sps:$4 sm:$0xff]  }
 0x125   :  { %5049 = vmatprep.mubr.msk.bf16.mxu1 %vm517_vm0, %v5399_v3 }
 0x126   :  { %v717_v5 = vadd.f32 %v6320_v12, %v668_v2  ;;  %v722_v9 = vmax.f32 %v714_v0, 0.0 }
 0x127   :  { %v4691_v6 = vpop.f32.mrb[12].mxu1  ;;  %3590 = vmatmul.mubr.bf16.gmra.mrb[64].mxu0 %v5398_v13 }
 0x128   :  { %v723_v10 = vmax.f32 %v717_v5, 0.0  ;;  %v4692_v11 = vpop.f32.mrb[13].mxu1 }
 0x129   :  { %v4693_v12 = vadd.f32 %v4692_v11, %v4691_v6  ;;  %v4694_v14 = vpop.f32.mrb[14].mxu1 }
 0x12a   :  { %v4537_v16 = vpack.c.bf16 %v723_v10, %v722_v9  ;;  %v4695_v17 = vpop.f32.mrb[15].mxu1 }
 0x12b   :  { %v4696_v18 = vadd.f32 %v4695_v17, %v4694_v14  ;;  %5050 = vmatmul.mubr.msk.bf16.vlgmr.msra.gmra.mrb[68].mxu1 %vm517_vm0, %v5400_v20  ;;  %v1290_v28 = vadd.f32 %v4693_v12, %v868_v24 }
 0x12c   :  { %4579 = vst [vmem:[%s6488_s3 + $0x8] sm:$0xff] %v4537_v16  }
 0x12d   :  { %v1293_v32 = vadd.f32 %v4696_v18, %v873_v26 }
 0x12f   :  { %v4697_v35 = vpop.f32.mrb[16].mxu1 }
 0x130   :  { %v4698_v36 = vpop.f32.mrb[17].mxu1 }
 0x131   :  { %v4699_v38 = vadd.f32 %v4698_v36, %v4697_v35  ;;  %v4700_v40 = vpop.f32.mrb[18].mxu1  ;;  %v1605_v35 = vpop.permute.xlu1 %1604 }
 0x132   :  { %v4701_v41 = vpop.f32.mrb[19].mxu1 }
 0x133   :  { %v4702_v42 = vadd.f32 %v4701_v41, %v4700_v40  ;;  %v1298_v51 = vadd.f32 %v4699_v38, %v878_v50 }
 0x135   :  { %v1301_v49 = vadd.f32 %v4702_v42, %v883_v47 }
 0x136   :  { %v4719_v25 = vpop.f32.mrb[16].mxu0 }
 0x137   :  { %v4720_v27 = vpop.f32.mrb[17].mxu0 }
 0x138   :  { %v4721_v29 = vadd.f32 %v4720_v27, %v4719_v25  ;;  %v4722_v30 = vpop.f32.mrb[18].mxu0 }
 0x139   :  { %v4723_v31 = vpop.f32.mrb[19].mxu0 }
 0x13a   :  { %v1339_v33 = vadd.f32 %v4721_v29, %v1290_v28  ;;  %v4724_v34 = vadd.f32 %v4723_v31, %v4722_v30 }
 0x13c   :  { %v1342_v37 = vadd.f32 %v4724_v34, %v1293_v32  ;;  %v1600_v32 = vpop.permute.xlu0 %1599 }
 0x13e   :  { %v4725_v43 = vpop.f32.mrb[20].mxu0 }
 0x13f   :  { %v4726_v44 = vpop.f32.mrb[21].mxu0 }
 0x140   :  { %v4727_v39 = vadd.f32 %v4726_v44, %v4725_v43  ;;  %v4728_v45 = vpop.f32.mrb[22].mxu0 }
 0x141   :  { %v4729_v46 = vpop.f32.mrb[23].mxu0 }
 0x142   :  { %v4730_v48 = vadd.f32 %v4729_v46, %v4728_v45  ;;  %v1347_v53 = vadd.f32 %v4727_v39, %v1298_v51 }
 0x144   :  { %v1350_v52 = vadd.f32 %v4730_v48, %v1301_v49 }
 0x145   :  { %v1610_v47 = vpop.permute.xlu0 %1609 }
 0x147   :  { %v4747_v54 = vpop.f32.mrb[20].mxu1 }
 0x148   :  { %v4748_v55 = vpop.f32.mrb[21].mxu1 }
 0x149   :  { %v4749_v56 = vadd.f32 %v4748_v55, %v4747_v54  ;;  %v4750_v57 = vpop.f32.mrb[22].mxu1 }
 0x14a   :  { %v4751_v58 = vpop.f32.mrb[23].mxu1 }
 0x14b   :  { %v4752_v59 = vadd.f32 %v4751_v58, %v4750_v57  ;;  %v1388_v60 = vadd.f32 %v4749_v56, %v1339_v33 }
 0x14d   :  { %v1391_v61 = vadd.f32 %v4752_v59, %v1342_v37 }
 0x14f   :  { %v4753_v63 = vpop.f32.mrb[24].mxu1 }
 0x150   :  { %v4754_v0 = vpop.f32.mrb[25].mxu1 }
 0x151   :  { %v4755_v62 = vadd.f32 %v4754_v0, %v4753_v63  ;;  %v4756_v1 = vpop.f32.mrb[26].mxu1 }
 0x152   :  { %v4757_v2 = vpop.f32.mrb[27].mxu1 }
 0x153   :  { %v4758_v4 = vadd.f32 %v4757_v2, %v4756_v1  ;;  %v1396_v3 = vadd.f32 %v4755_v62, %v1347_v53  ;;  %v1615_v53 = vpop.permute.xlu1 %1614 }
 0x155   :  { %v1399_v5 = vadd.f32 %v4758_v4, %v1350_v52 }
 0x156   :  { %v4778_v9 = vpop.f32.mrb[24].mxu0 }
 0x157   :  { %v5033_v6 = vpop.f32.mrb[28].mxu1  ;;  %v4779_v13 = vpop.f32.mrb[25].mxu0 }
 0x158   :  { %v1445_v7 = vadd.f32 %v5033_v6, %v1396_v3  ;;  %v1436_v8 = vpop.f32.mrb[29].mxu1  ;;  %v4780_v14 = vadd.f32 %v4779_v13, %v4778_v9  ;;  %v4781_v16 = vpop.f32.mrb[26].mxu0 }
 0x159   :  { %v1437_v10 = vadd.f32 %v1436_v8, %v1388_v60  ;;  %v5034_v11 = vpop.f32.mrb[30].mxu1  ;;  %v4782_v18 = vpop.f32.mrb[27].mxu0 }
 0x15a   :  { %v1448_v12 = vadd.f32 %v5034_v11, %v1399_v5  ;;  %v1439_v15 = vpop.f32.mrb[31].mxu1  ;;  %v1453_v19 = vmax.f32 %v1445_v7, 0.0  ;;  %v4783_v21 = vadd.f32 %v4782_v18, %v4781_v16  ;;  %v2022_v36 = vadd.f32 %v4780_v14, %v1600_v32 }
 0x15b   :  { %v1440_v17 = vadd.f32 %v1439_v15, %v1391_v61  ;;  %v1451_v22 = vmax.f32 %v1437_v10, 0.0 }
 0x15c   :  { %v1454_v20 = vmax.f32 %v1448_v12, 0.0  ;;  %v2025_v43 = vadd.f32 %v4783_v21, %v1605_v35 }
 0x15d   :  { %v1452_v23 = vmax.f32 %v1440_v17, 0.0 }
 0x15e   :  { %v4547_v24 = vpack.c.bf16 %v1454_v20, %v1453_v19  ;;  %v4784_v26 = vpop.f32.mrb[28].mxu0 }
 0x15f   :  { %v4542_v25 = vpack.c.bf16 %v1452_v23, %v1451_v22  ;;  %v4785_v27 = vpop.f32.mrb[29].mxu0 }
 0x160   :  { %4581 = vst [vmem:[%s6488_s3 + $0x18] sm:$0xff] %v4547_v24   ;;  %v4786_v28 = vadd.f32 %v4785_v27, %v4784_v26  ;;  %v4787_v29 = vpop.f32.mrb[30].mxu0 }
 0x161   :  { %4580 = vst [vmem:[%s6488_s3 + $0x10] sm:$0xff] %v4542_v25   ;;  %v4788_v30 = vpop.f32.mrb[31].mxu0 }
 0x162   :  { %v4789_v31 = vadd.f32 %v4788_v30, %v4787_v29  ;;  %v2030_v55 = vadd.f32 %v4786_v28, %v1610_v47 }
 0x164   :  { %v2033_v61 = vadd.f32 %v4789_v31, %v1615_v53 }
 0x176   :  { %v4834_v40 = vpop.f32.mrb[32].mxu0 }
 0x177   :  { %v4806_v33 = vpop.f32.mrb[32].mxu1  ;;  %v4835_v39 = vpop.f32.mrb[33].mxu0 }
 0x178   :  { %v4807_v34 = vpop.f32.mrb[33].mxu1  ;;  %v4836_v45 = vadd.f32 %v4835_v39, %v4834_v40  ;;  %v4837_v46 = vpop.f32.mrb[34].mxu0 }
 0x179   :  { %v4808_v37 = vadd.f32 %v4807_v34, %v4806_v33  ;;  %v4809_v38 = vpop.f32.mrb[34].mxu1  ;;  %v4838_v49 = vpop.f32.mrb[35].mxu0 }
 0x17a   :  { %v4810_v42 = vpop.f32.mrb[35].mxu1  ;;  %v4839_v50 = vadd.f32 %v4838_v49, %v4837_v46  ;;  %v2337_v40 = vpop.permute.xlu1 %2336 }
 0x17b   :  { %v2071_v41 = vadd.f32 %v4808_v37, %v2022_v36  ;;  %v4811_v44 = vadd.f32 %v4810_v42, %v4809_v38 }
 0x17d   :  { %v2074_v48 = vadd.f32 %v4811_v44, %v2025_v43  ;;  %v2120_v52 = vadd.f32 %v4836_v45, %v2071_v41  ;;  %v2332_v36 = vpop.permute.xlu0 %2331 }
 0x17e   :  { %v4840_v59 = vpop.f32.mrb[36].mxu0 }
 0x17f   :  { %v4812_v51 = vpop.f32.mrb[36].mxu1  ;;  %v2123_v58 = vadd.f32 %v4839_v50, %v2074_v48  ;;  %v4841_v62 = vpop.f32.mrb[37].mxu0 }
 0x180   :  { %v4813_v54 = vpop.f32.mrb[37].mxu1  ;;  %v4842_v1 = vadd.f32 %v4841_v62, %v4840_v59  ;;  %v4843_v2 = vpop.f32.mrb[38].mxu0 }
 0x181   :  { %v4814_v56 = vadd.f32 %v4813_v54, %v4812_v51  ;;  %v4815_v57 = vpop.f32.mrb[38].mxu1  ;;  %v4844_v3 = vpop.f32.mrb[39].mxu0 }
 0x182   :  { %v4816_v60 = vpop.f32.mrb[39].mxu1  ;;  %v4845_v5 = vadd.f32 %v4844_v3, %v4843_v2 }
 0x183   :  { %v2079_v63 = vadd.f32 %v4814_v56, %v2030_v55  ;;  %v4817_v0 = vadd.f32 %v4816_v60, %v4815_v57  ;;  %v2347_v56 = vpop.permute.xlu1 %2346 }
 0x185   :  { %v2082_v4 = vadd.f32 %v4817_v0, %v2033_v61  ;;  %v2128_v6 = vadd.f32 %v4842_v1, %v2079_v63 }
 0x187   :  { %v5039_v7 = vpop.f32.mrb[40].mxu1  ;;  %v2131_v10 = vadd.f32 %v4845_v5, %v2082_v4 }
 0x188   :  { %v2177_v8 = vadd.f32 %v5039_v7, %v2128_v6  ;;  %v2168_v9 = vpop.f32.mrb[41].mxu1 }
 0x189   :  { %v2169_v11 = vadd.f32 %v2168_v9, %v2120_v52  ;;  %v5040_v13 = vpop.f32.mrb[42].mxu1  ;;  %v2342_v52 = vpop.permute.xlu0 %2341 }
 0x18a   :  { %v2180_v12 = vadd.f32 %v5040_v13, %v2131_v10  ;;  %v2171_v14 = vpop.f32.mrb[43].mxu1  ;;  %v2185_v16 = vmax.f32 %v2177_v8, 0.0 }
 0x18b   :  { %v2172_v15 = vadd.f32 %v2171_v14, %v2123_v58  ;;  %v2183_v18 = vmax.f32 %v2169_v11, 0.0 }
 0x18c   :  { %v2186_v17 = vmax.f32 %v2180_v12, 0.0 }
 0x18d   :  { %v2184_v19 = vmax.f32 %v2172_v15, 0.0 }
 0x18e   :  { %v4557_v20 = vpack.c.bf16 %v2186_v17, %v2185_v16 }
 0x18f   :  { %v4552_v21 = vpack.c.bf16 %v2184_v19, %v2183_v18 }
 0x190   :  { %4583 = vst [vmem:[%s6488_s3 + $0x28] sm:$0xff] %v4557_v20  }
 0x191   :  { %4582 = vst [vmem:[%s6488_s3 + $0x20] sm:$0xff] %v4552_v21  }
 0x196   :  { %v4893_v22 = vpop.f32.mrb[40].mxu0 }
 0x197   :  { %v4894_v23 = vpop.f32.mrb[41].mxu0 }
 0x198   :  { %v4895_v24 = vadd.f32 %v4894_v23, %v4893_v22  ;;  %v4896_v25 = vpop.f32.mrb[42].mxu0 }
 0x199   :  { %v4897_v26 = vpop.f32.mrb[43].mxu0 }
 0x19a   :  { %v4898_v27 = vadd.f32 %v4897_v26, %v4896_v25 }
 0x19e   :  { %v4899_v28 = vpop.f32.mrb[44].mxu0 }
 0x19f   :  { %v4900_v29 = vpop.f32.mrb[45].mxu0 }
 0x1a0   :  { %v4901_v30 = vadd.f32 %v4900_v29, %v4899_v28  ;;  %v4902_v31 = vpop.f32.mrb[46].mxu0 }
 0x1a1   :  { %v4903_v32 = vpop.f32.mrb[47].mxu0 }
 0x1a2   :  { %v4904_v33 = vadd.f32 %v4903_v32, %v4902_v31 }
 0x1a6   :  { %v5045_v42 = vpop.f32.mrb[48].mxu0 }
 0x1a7   :  { %v4865_v34 = vpop.f32.mrb[44].mxu1  ;;  %v2900_v39 = vpop.f32.mrb[49].mxu0 }
 0x1a8   :  { %v4866_v35 = vpop.f32.mrb[45].mxu1  ;;  %v5046_v45 = vpop.f32.mrb[50].mxu0 }
 0x1a9   :  { %v4867_v37 = vadd.f32 %v4866_v35, %v4865_v34  ;;  %v4868_v38 = vpop.f32.mrb[46].mxu1  ;;  %v2903_v48 = vpop.f32.mrb[51].mxu0 }
 0x1aa   :  { %v4869_v41 = vpop.f32.mrb[47].mxu1 }
 0x1ab   :  { %v2754_v43 = vadd.f32 %v4867_v37, %v2332_v36  ;;  %v4870_v44 = vadd.f32 %v4869_v41, %v4868_v38  ;;  %v3064_v37 = vpop.permute.xlu0 %3063 }
 0x1ad   :  { %v2803_v46 = vadd.f32 %v4895_v24, %v2754_v43  ;;  %v2757_v47 = vadd.f32 %v4870_v44, %v2337_v40  ;;  %v3069_v44 = vpop.permute.xlu1 %3068 }
 0x1af   :  { %v2806_v49 = vadd.f32 %v4898_v27, %v2757_v47  ;;  %v4871_v50 = vpop.f32.mrb[48].mxu1 }
 0x1b0   :  { %v4872_v51 = vpop.f32.mrb[49].mxu1 }
 0x1b1   :  { %v4873_v53 = vadd.f32 %v4872_v51, %v4871_v50  ;;  %v4874_v54 = vpop.f32.mrb[50].mxu1 }
 0x1b2   :  { %v4875_v55 = vpop.f32.mrb[51].mxu1 }
 0x1b3   :  { %v2762_v57 = vadd.f32 %v4873_v53, %v2342_v52  ;;  %v4876_v58 = vadd.f32 %v4875_v55, %v4874_v54 }
 0x1b5   :  { %v2811_v59 = vadd.f32 %v4901_v30, %v2762_v57  ;;  %v2765_v60 = vadd.f32 %v4876_v58, %v2347_v56  ;;  %v3074_v56 = vpop.permute.xlu0 %3073 }
 0x1b7   :  { %v2814_v61 = vadd.f32 %v4904_v33, %v2765_v60 }
 0x1c6   :  { %v4952_v5 = vpop.f32.mrb[52].mxu0 }
 0x1c7   :  { %v4921_v63 = vpop.f32.mrb[52].mxu1  ;;  %v4953_v6 = vpop.f32.mrb[53].mxu0 }
 0x1c8   :  { %v4922_v0 = vpop.f32.mrb[53].mxu1  ;;  %v4954_v9 = vadd.f32 %v4953_v6, %v4952_v5  ;;  %v4955_v10 = vpop.f32.mrb[54].mxu0 }
 0x1c9   :  { %v4923_v62 = vadd.f32 %v4922_v0, %v4921_v63  ;;  %v4924_v1 = vpop.f32.mrb[54].mxu1  ;;  %v4956_v11 = vpop.f32.mrb[55].mxu0 }
 0x1ca   :  { %v4925_v2 = vpop.f32.mrb[55].mxu1  ;;  %v4957_v12 = vadd.f32 %v4956_v11, %v4955_v10  ;;  %v3486_v40 = vadd.f32 %v4954_v9, %v3064_v37  ;;  %v3079_v63 = vpop.permute.xlu1 %3078 }
 0x1cb   :  { %v2852_v4 = vadd.f32 %v4923_v62, %v2803_v46  ;;  %v4926_v3 = vadd.f32 %v4925_v2, %v4924_v1 }
 0x1cd   :  { %v2901_v7 = vadd.f32 %v2900_v39, %v2852_v4  ;;  %v2855_v8 = vadd.f32 %v4926_v3, %v2806_v49 }
 0x1ce   :  { %v4958_v21 = vpop.f32.mrb[56].mxu0 }
 0x1cf   :  { %v2904_v13 = vadd.f32 %v2903_v48, %v2855_v8  ;;  %v2915_v14 = vmax.f32 %v2901_v7, 0.0  ;;  %v4927_v17 = vpop.f32.mrb[56].mxu1  ;;  %v4959_v25 = vpop.f32.mrb[57].mxu0 }
 0x1d0   :  { %v4928_v18 = vpop.f32.mrb[57].mxu1  ;;  %v4960_v26 = vadd.f32 %v4959_v25, %v4958_v21  ;;  %v4961_v27 = vpop.f32.mrb[58].mxu0 }
 0x1d1   :  { %v2916_v15 = vmax.f32 %v2904_v13, 0.0  ;;  %v4929_v19 = vadd.f32 %v4928_v18, %v4927_v17  ;;  %v4930_v20 = vpop.f32.mrb[58].mxu1  ;;  %v4962_v30 = vpop.f32.mrb[59].mxu0 }
 0x1d2   :  { %v4931_v22 = vpop.f32.mrb[59].mxu1  ;;  %v4963_v31 = vadd.f32 %v4962_v30, %v4961_v27  ;;  %v3494_v58 = vadd.f32 %v4960_v26, %v3074_v56 }
 0x1d3   :  { %v4562_v16 = vpack.c.bf16 %v2916_v15, %v2915_v14  ;;  %v2860_v23 = vadd.f32 %v4929_v19, %v2811_v59  ;;  %v4932_v24 = vadd.f32 %v4931_v22, %v4930_v20 }
 0x1d4   :  { %v3497_v62 = vadd.f32 %v4963_v31, %v3079_v63 }
 0x1d5   :  { %4584 = vst [vmem:[%s6488_s3 + $0x30] sm:$0xff] %v4562_v16   ;;  %v2909_v28 = vadd.f32 %v5045_v42, %v2860_v23  ;;  %v2863_v29 = vadd.f32 %v4932_v24, %v2814_v61  ;;  %v3489_v42 = vadd.f32 %v4957_v12, %v3069_v44 }
 0x1d7   :  { %v2912_v32 = vadd.f32 %v5046_v45, %v2863_v29  ;;  %v2917_v33 = vmax.f32 %v2909_v28, 0.0 }
 0x1d9   :  { %v2918_v34 = vmax.f32 %v2912_v32, 0.0 }
 0x1db   :  { %v4567_v35 = vpack.c.bf16 %v2918_v34, %v2917_v33 }
 0x1dd   :  { %4585 = vst [vmem:[%s6488_s3 + $0x38] sm:$0xff] %v4567_v35  }
 0x1e7   :  { %v4980_v36 = vpop.f32.mrb[60].mxu1 }
 0x1e8   :  { %v4981_v38 = vpop.f32.mrb[61].mxu1 }
 0x1e9   :  { %v4982_v41 = vadd.f32 %v4981_v38, %v4980_v36  ;;  %v4983_v43 = vpop.f32.mrb[62].mxu1 }
 0x1ea   :  { %v4984_v39 = vpop.f32.mrb[63].mxu1 }
 0x1eb   :  { %v3535_v46 = vadd.f32 %v4982_v41, %v3486_v40  ;;  %v4985_v48 = vadd.f32 %v4984_v39, %v4983_v43 }
 0x1ed   :  { %v3538_v49 = vadd.f32 %v4985_v48, %v3489_v42 }
 0x1f2   :  { %v5008_v47 = vpop.f32.mrb[60].mxu0 }
 0x1f3   :  { %v5009_v45 = vpop.f32.mrb[61].mxu0 }
 0x1f4   :  { %v5010_v50 = vadd.f32 %v5009_v45, %v5008_v47  ;;  %v5011_v51 = vpop.f32.mrb[62].mxu0 }
 0x1f5   :  { %v5012_v52 = vpop.f32.mrb[63].mxu0 }
 0x1f6   :  { %v5013_v53 = vadd.f32 %v5012_v52, %v5011_v51  ;;  %v4986_v54 = vpop.f32.mrb[64].mxu1  ;;  %v3584_v55 = vadd.f32 %v5010_v50, %v3535_v46 }
 0x1f7   :  { %v4987_v57 = vpop.f32.mrb[65].mxu1 }
 0x1f8   :  { %v4988_v59 = vadd.f32 %v4987_v57, %v4986_v54  ;;  %v4989_v60 = vpop.f32.mrb[66].mxu1  ;;  %v3587_v61 = vadd.f32 %v5013_v53, %v3538_v49 }
 0x1f9   :  { %v4990_v0 = vpop.f32.mrb[67].mxu1 }
 0x1fa   :  { %v3543_v1 = vadd.f32 %v4988_v59, %v3494_v58  ;;  %v5014_v2 = vpop.f32.mrb[64].mxu0  ;;  %v4991_v4 = vadd.f32 %v4990_v0, %v4989_v60 }
 0x1fb   :  { %v5015_v3 = vpop.f32.mrb[65].mxu0 }
 0x1fc   :  { %v3546_v5 = vadd.f32 %v4991_v4, %v3497_v62  ;;  %v5016_v6 = vadd.f32 %v5015_v3, %v5014_v2  ;;  %v5017_v7 = vpop.f32.mrb[66].mxu0 }
 0x1fd   :  { %v5018_v8 = vpop.f32.mrb[67].mxu0 }
 0x1fe   :  { %v5019_v9 = vadd.f32 %v5018_v8, %v5017_v7  ;;  %v3592_v10 = vadd.f32 %v5016_v6, %v3543_v1  ;;  %v5051_v11 = vpop.f32.mrb[68].mxu1 }
 0x1ff   :  { %v3632_v13 = vpop.f32.mrb[69].mxu1 }
 0x200   :  { %v3641_v12 = vadd.f32 %v5051_v11, %v3592_v10  ;;  %v3633_v14 = vadd.f32 %v3632_v13, %v3584_v55  ;;  %v3595_v15 = vadd.f32 %v5019_v9, %v3546_v5  ;;  %v5052_v16 = vpop.f32.mrb[70].mxu1 }
 0x201   :  { %v3635_v17 = vpop.f32.mrb[71].mxu1 }
 0x202   :  { %v3644_v18 = vadd.f32 %v5052_v16, %v3595_v15  ;;  %v3636_v19 = vadd.f32 %v3635_v17, %v3587_v61  ;;  %v3649_v20 = vmax.f32 %v3641_v12, 0.0  ;;  %v3647_v21 = vmax.f32 %v3633_v14, 0.0 }
 0x204   :  { %v3650_v22 = vmax.f32 %v3644_v18, 0.0  ;;  %v3648_v23 = vmax.f32 %v3636_v19, 0.0 }
 0x206   :  { %v4577_v24 = vpack.c.bf16 %v3650_v22, %v3649_v20  ;;  %v4572_v25 = vpack.c.bf16 %v3648_v23, %v3647_v21 }
 0x208   :  { %4587 = vst [vmem:[%s6488_s3 + $0x48] sm:$0xff] %v4577_v24   ;;  %4586 = vst [vmem:[%s6488_s3 + $0x40] sm:$0xff] %v4572_v25  }

// kernel: ensemble_forward.7
= control target key start
LH: loop header
LB: loop body
LE: loop exit
PB: predicated region body
PF: predicated region fallthrough
CT: control target
= control target key end

     0   :  { %v7399_v1 = vmov 0   ;;  %vm4318_vm0 = vcmask 261120   ;;  %vm5593_vm1 = vcmask 15360   ;;  %vm5595_vm2 = vcmask 14336   ;;  %s9147_s2 = inlined_call_operand.vmem [shape: bf16[7840,2], index: 2, kind: input, shape index: {}]   ;;  %s9148_s0 = inlined_call_operand.vmem [shape: bf16[15,7840], index: 0, kind: input, shape index: {}]   ;;  %s9149_s1 = inlined_call_operand.vmem [shape: f32[15,1], index: 1, kind: input, shape index: {}]   ;;  %s9150_s3 = inlined_call_operand.vmem [shape: f32[15,2], index: 3, kind: output, shape index: {}]  }
   0x1   :  { %v6816_v0 = vld [vmem:[%s9147_s2 + $0x40] sm:$0xff]   ;;  %6815 = vset.pattern.permute.xlu0 %v7399_v1  ;;  %v6818_v3 = vld [vmem:[%s9147_s2 + $0x48] sm:$0xff]   ;;  %v6820_v5 = vld [vmem:[%s9147_s2 + $0x50] sm:$0xff]  }
   0x2   :  { %v6817_v2 = vld [vmem:[%s9147_s2] sm:$0xff]   ;;  %6154 = vmatprep.subr.bf16.mxu1 %v6816_v0  ;;  %v6819_v4 = vld [vmem:[%s9147_s2 + $0x8] sm:$0xff]   ;;  %v6821_v6 = vld [vmem:[%s9147_s2 + $0x10] sm:$0xff]  }
   0x3   :  { %6155 = vmatpush3.bf16.msra.mxu1 %v6817_v2  ;;  %v6822_v7 = vld [vmem:[%s9147_s2 + $0x58] sm:$0xff]   ;;  %v6824_v9 = vld [vmem:[%s9147_s2 + $0x60] sm:$0xff]   ;;  %v6826_v13 = vld [vmem:[%s9147_s2 + $0x68] sm:$0xff]  }
   0x4   :  { %6156 = vmatprep.subr.bf16.mxu1 %v6818_v3  ;;  %v6823_v8 = vld [vmem:[%s9147_s2 + $0x18] sm:$0xff]   ;;  %v6825_v10 = vld [vmem:[%s9147_s2 + $0x20] sm:$0xff]   ;;  %v6827_v14 = vld [vmem:[%s9147_s2 + $0x28] sm:$0xff]  }
   0x5   :  { %v6830_v11 = vld [vmem:[%s9147_s2 + $0x140] sm:$0xff]   ;;  %v6834_v15 = vld [vmem:[%s9147_s2 + $0x148] sm:$0xff]   ;;  %v6828_v16 = vld [vmem:[%s9147_s2 + $0x70] sm:$0xff]  }
   0x6   :  { %v6831_v12 = vld [vmem:[%s9147_s2 + $0x100] sm:$0xff]   ;;  %6198 = vmatprep.subr.bf16.mxu0 %v6830_v11  ;;  %v6838_v18 = vld [vmem:[%s9147_s2 + $0x108] sm:$0xff]   ;;  %v6829_v19 = vld [vmem:[%s9147_s2 + $0x30] sm:$0xff]  }
   0x7   :  { %6157 = vmatpush3.bf16.msra.mxu1 %v6819_v4  ;;  %6199 = vmatpush3.bf16.msra.mxu0 %v6831_v12  ;;  %v6837_v17 = vld [vmem:[%s9148_s0 + $0x4] ss:$248 sps:$4 sm:$0xff]   ;;  %v6841_v21 = vld [vmem:[%s9147_s2 + $0x150] sm:$0xff]   ;;  %v6835_v25 = vld [vmem:[%s9148_s0] ss:$248 sps:$4 sm:$0xff]  }
   0x8   :  { %6158 = vmatprep.subr.bf16.mxu1 %v6820_v5  ;;  %6200 = vmatprep.subr.bf16.mxu0 %v6834_v15  ;;  %v6832_v20 = vld [vmem:[%s9147_s2 + $0x78] sm:$0xff]   ;;  %v6842_v22 = vld [vmem:[%s9147_s2 + $0x110] sm:$0xff]   ;;  %v6839_v24 = vld [vmem:[%s9147_s2 + $0xc0] sm:$0xff]  }
   0x9   :  { %4354 = vmatprep.mubr.bf16.mxu1 %v6837_v17  ;;  %v6833_v23 = vld [vmem:[%s9147_s2 + $0x38] sm:$0xff]   ;;  %v6840_v28 = vld [vmem:[%s9147_s2 + $0x80] sm:$0xff]   ;;  %v6843_v29 = vld [vmem:[%s9147_s2 + $0xc8] sm:$0xff]  }
   0xa   :  { %v6845_v26 = vld [vmem:[%s9147_s2 + $0x158] sm:$0xff]   ;;  %v6849_v30 = vld [vmem:[%s9147_s2 + $0x160] sm:$0xff]   ;;  %v6844_v32 = vld [vmem:[%s9147_s2 + $0x88] sm:$0xff]  }
   0xb   :  { %6159 = vmatpush3.bf16.msra.mxu1 %v6821_v6  ;;  %6201 = vmatpush3.bf16.msra.mxu0 %v6838_v18  ;;  %v6846_v27 = vld [vmem:[%s9147_s2 + $0x118] sm:$0xff]   ;;  %v6850_v31 = vld [vmem:[%s9147_s2 + $0x120] sm:$0xff]   ;;  %v6847_v33 = vld [vmem:[%s9147_s2 + $0xd0] sm:$0xff]  }
   0xc   :  { %6160 = vmatprep.subr.bf16.mxu1 %v6822_v7  ;;  %6202 = vmatprep.subr.bf16.mxu0 %v6841_v21  ;;  %v6853_v34 = vld [vmem:[%s9147_s2 + $0x168] sm:$0xff]   ;;  %v6848_v36 = vld [vmem:[%s9147_s2 + $0x90] sm:$0xff]   ;;  %v6851_v37 = vld [vmem:[%s9147_s2 + $0xd8] sm:$0xff]  }
   0xd   :  { %v6854_v35 = vld [vmem:[%s9147_s2 + $0x128] sm:$0xff]   ;;  %v6857_v38 = vld [vmem:[%s9147_s2 + $0x170] sm:$0xff]   ;;  %v6852_v40 = vld [vmem:[%s9147_s2 + $0x98] sm:$0xff]  }
   0xe   :  { %v6858_v39 = vld [vmem:[%s9147_s2 + $0x130] sm:$0xff]   ;;  %v6855_v41 = vld [vmem:[%s9147_s2 + $0xe0] sm:$0xff]   ;;  %v6861_v42 = vld [vmem:[%s9147_s2 + $0x178] sm:$0xff]  }
   0xf   :  { %6161 = vmatpush3.bf16.msra.mxu1 %v6823_v8  ;;  %6203 = vmatpush3.bf16.msra.mxu0 %v6842_v22  ;;  %v6862_v43 = vld [vmem:[%s9147_s2 + $0x138] sm:$0xff]   ;;  %v6856_v44 = vld [vmem:[%s9147_s2 + $0xa0] sm:$0xff]   ;;  %v6859_v45 = vld [vmem:[%s9147_s2 + $0xe8] sm:$0xff]  }
  0x10   :  { %6162 = vmatprep.subr.bf16.mxu1 %v6824_v9  ;;  %6204 = vmatprep.subr.bf16.mxu0 %v6845_v26  ;;  %v6865_v46 = vld [vmem:[%s9148_s0 + $0x10] ss:$248 sps:$4 sm:$0xff]   ;;  %v6867_v47 = vld [vmem:[%s9148_s0 + $0x14] ss:$248 sps:$4 sm:$0xff]   ;;  %v6868_v48 = vld [vmem:[%s9147_s2 + $0x240] sm:$0xff]  }
  0x11   :  { %4436 = vmatprep.mubr.bf16.mxu0 %v6867_v47  ;;  %v6869_v49 = vld [vmem:[%s9147_s2 + $0x200] sm:$0xff]   ;;  %v6860_v50 = vld [vmem:[%s9147_s2 + $0xa8] sm:$0xff]   ;;  %v6863_v51 = vld [vmem:[%s9147_s2 + $0xf0] sm:$0xff]  }
  0x12   :  { %v6872_v52 = vld [vmem:[%s9147_s2 + $0x248] sm:$0xff]   ;;  %v6864_v53 = vld [vmem:[%s9147_s2 + $0xb0] sm:$0xff]   ;;  %v6870_v56 = vld [vmem:[%s9147_s2 + $0xf8] sm:$0xff]  }
  0x13   :  { %6163 = vmatpush3.bf16.msra.mxu1 %v6825_v10  ;;  %6205 = vmatpush3.bf16.msra.mxu0 %v6846_v27  ;;  %v6875_v54 = vld [vmem:[%s9148_s0 + $0xc] ss:$248 sps:$4 sm:$0xff]   ;;  %v6871_v57 = vld [vmem:[%s9147_s2 + $0xb8] sm:$0xff]   ;;  %v6879_v58 = vld [vmem:[%s9147_s2 + $0x250] sm:$0xff]  }
  0x14   :  { %6164 = vmatprep.subr.bf16.mxu1 %v6826_v13  ;;  %6206 = vmatprep.subr.bf16.mxu0 %v6849_v30  ;;  %v6876_v55 = vld [vmem:[%s9147_s2 + $0x208] sm:$0xff]   ;;  %v6880_v59 = vld [vmem:[%s9147_s2 + $0x210] sm:$0xff]   ;;  %v6877_v61 = vld [vmem:[%s9147_s2 + $0x1c0] sm:$0xff]  }
  0x15   :  { %v6873_v60 = vld [vmem:[%s9148_s0 + $0x8] ss:$248 sps:$4 sm:$0xff]   ;;  %v6883_v63 = vld [vmem:[%s9147_s2 + $0x258] sm:$0xff]   ;;  %v6885_v6 = vld [vmem:[%s9147_s2 + $0x1d0] sm:$0xff]  }
  0x16   :  { %v6878_v62 = vld [vmem:[%s9147_s2 + $0x180] sm:$0xff]   ;;  %v6884_v0 = vld [vmem:[%s9147_s2 + $0x218] sm:$0xff]   ;;  %v6881_v2 = vld [vmem:[%s9147_s2 + $0x1c8] sm:$0xff]  }
  0x17   :  { %6165 = vmatpush3.bf16.msra.mxu1 %v6827_v14  ;;  %6207 = vmatpush3.bf16.msra.mxu0 %v6850_v31  ;;  %v6882_v3 = vld [vmem:[%s9147_s2 + $0x188] sm:$0xff]   ;;  %v6887_v4 = vld [vmem:[%s9147_s2 + $0x260] sm:$0xff]   ;;  %v6886_v7 = vld [vmem:[%s9147_s2 + $0x190] sm:$0xff]  }
  0x18   :  { %6166 = vmatprep.subr.bf16.mxu1 %v6828_v16  ;;  %6208 = vmatprep.subr.bf16.mxu0 %v6853_v34  ;;  %v6888_v5 = vld [vmem:[%s9147_s2 + $0x220] sm:$0xff]   ;;  %v6891_v8 = vld [vmem:[%s9147_s2 + $0x268] sm:$0xff]   ;;  %v6889_v10 = vld [vmem:[%s9147_s2 + $0x1d8] sm:$0xff]  }
  0x19   :  { %v6892_v9 = vld [vmem:[%s9147_s2 + $0x228] sm:$0xff]   ;;  %v6890_v11 = vld [vmem:[%s9147_s2 + $0x198] sm:$0xff]   ;;  %v6895_v12 = vld [vmem:[%s9147_s2 + $0x270] sm:$0xff]  }
  0x1a   :  { %v6896_v13 = vld [vmem:[%s9147_s2 + $0x230] sm:$0xff]   ;;  %v6893_v14 = vld [vmem:[%s9147_s2 + $0x1e0] sm:$0xff]   ;;  %v6899_v16 = vld [vmem:[%s9147_s2 + $0x278] sm:$0xff]  }
  0x1b   :  { %6167 = vmatpush3.bf16.msra.mxu1 %v6829_v19  ;;  %6209 = vmatpush3.bf16.msra.mxu0 %v6854_v35  ;;  %v6894_v15 = vld [vmem:[%s9147_s2 + $0x1a0] sm:$0xff]   ;;  %v6900_v17 = vld [vmem:[%s9147_s2 + $0x238] sm:$0xff]   ;;  %v6897_v18 = vld [vmem:[%s9147_s2 + $0x1e8] sm:$0xff]  }
  0x1c   :  { %6168 = vmatprep.subr.bf16.mxu1 %v6832_v20  ;;  %6210 = vmatprep.subr.bf16.mxu0 %v6857_v38  ;;  %v6898_v19 = vld [vmem:[%s9147_s2 + $0x1a8] sm:$0xff]   ;;  %v6901_v20 = vld [vmem:[%s9147_s2 + $0x1f0] sm:$0xff]   ;;  %v6903_v21 = vld [vmem:[%s9148_s0 + $0x20] ss:$248 sps:$4 sm:$0xff]  }
  0x1d   :  { %v6905_v22 = vld [vmem:[%s9148_s0 + $0x24] ss:$248 sps:$4 sm:$0xff]   ;;  %v6910_v27 = vld [vmem:[%s9147_s2 + $0x348] sm:$0xff]   ;;  %v6911_v31 = vld [vmem:[%s9148_s0 + $0x18] ss:$248 sps:$4 sm:$0xff]  }
  0x1e   :  { %v6908_v26 = vld [vmem:[%s9147_s2 + $0x1f8] sm:$0xff]   ;;  %v6918_v34 = vld [vmem:[%s9147_s2 + $0x310] sm:$0xff]   ;;  %v6916_v35 = vld [vmem:[%s9147_s2 + $0x280] sm:$0xff]  }
  0x1f   :  { %6169 = vmatpush3.bf16.msra.mxu1 %v6833_v23  ;;  %6211 = vmatpush3.bf16.msra.mxu0 %v6858_v39  ;;  %v6906_v23 = vld [vmem:[%s9147_s2 + $0x340] sm:$0xff]   ;;  %v6909_v30 = vld [vmem:[%s9147_s2 + $0x1b8] sm:$0xff]   ;;  %v6920_v39 = vld [vmem:[%s9147_s2 + $0x288] sm:$0xff]  }
  0x20   :  { %6176 = vmatprep.subr.bf16.mxu1 %v6839_v24  ;;  %6212 = vmatprep.subr.bf16.mxu0 %v6861_v42  ;;  %v6907_v24 = vld [vmem:[%s9147_s2 + $0x300] sm:$0xff]   ;;  %v6922_v38 = vld [vmem:[%s9147_s2 + $0x318] sm:$0xff]  }
  0x21   :  { %v6926_v42 = vld [vmem:[%s9147_s2 + $0x320] sm:$0xff]   ;;  %v6928_v47 = vld [vmem:[%s9147_s2 + $0x298] sm:$0xff]  }
  0x22   :  { %4355 = vmatmul.mubr.bf16.vlgmr.msra.gmra.mrb[0].mxu1 %v6835_v25  ;;  %v6902_v25 = vld [vmem:[%s9147_s2 + $0x1b0] sm:$0xff]  }
  0x23   :  { %6177 = vmatpush3.bf16.msra.mxu1 %v6840_v28  ;;  %6213 = vmatpush3.bf16.msra.mxu0 %v6862_v43  ;;  %v6913_v28 = vld [vmem:[%s9148_s0 + $0x1c] ss:$248 sps:$4 sm:$0xff]  }
  0x24   :  { %6178 = vmatprep.subr.bf16.mxu1 %v6843_v29  ;;  %6242 = vmatprep.subr.bf16.mxu0 %v6868_v48  ;;  %v6914_v29 = vld [vmem:[%s9147_s2 + $0x308] sm:$0xff]   ;;  %v6924_v43 = vld [vmem:[%s9147_s2 + $0x290] sm:$0xff]   ;;  %v6931_v48 = vld [vmem:[%s9147_s2 + $0x2e0] sm:$0xff]  }
  0x25   :  { %4395 = vmatprep.mubr.bf16.mxu1 %v6875_v54  ;;  %v6936_v54 = vld [vmem:[%s9147_s2 + $0x2a8] sm:$0xff]  }
  0x26   :  { %4437 = vmatmul.mubr.bf16.vlgmr.msra.gmra.mrb[0].mxu0 %v6865_v46  ;;  %v6930_v46 = vld [vmem:[%s9147_s2 + $0x328] sm:$0xff]  }
  0x27   :  { %6179 = vmatpush3.bf16.msra.mxu1 %v6844_v32  ;;  %6243 = vmatpush3.bf16.msra.mxu0 %v6869_v49  ;;  %v6915_v32 = vld [vmem:[%s9147_s2 + $0x2c0] sm:$0xff]   ;;  %v6933_v49 = vld [vmem:[%s9147_s2 + $0x370] sm:$0xff]  }
  0x28   :  { %6180 = vmatprep.subr.bf16.mxu1 %v6847_v33  ;;  %6244 = vmatprep.subr.bf16.mxu0 %v6872_v52  ;;  %v6917_v33 = vld [vmem:[%s9147_s2 + $0x350] sm:$0xff]   ;;  %v1057_v52 = vld [vmem:[%s9149_s1] sm:$0xff] }
  0x29   :  { %4518 = vmatprep.mubr.bf16.mxu0 %v6905_v22  ;;  %1061 = vperm.xlu0 %6815, %v1057_v52   ;;  %v6968_v22 = vld [vmem:[%s9147_s2 + $0x428] sm:$0xff]   ;;  %v7000_v52 = vld [vmem:[%s9147_s2 + $0x490] sm:$0xff]  }
  0x2b   :  { %6181 = vmatpush3.bf16.msra.mxu1 %v6848_v36  ;;  %6245 = vmatpush3.bf16.msra.mxu0 %v6876_v55  ;;  %v6919_v36 = vld [vmem:[%s9147_s2 + $0x2c8] sm:$0xff]   ;;  %v6937_v55 = vld [vmem:[%s9147_s2 + $0x378] sm:$0xff]  }
  0x2c   :  { %6182 = vmatprep.subr.bf16.mxu1 %v6851_v37  ;;  %6246 = vmatprep.subr.bf16.mxu0 %v6879_v58  ;;  %v6921_v37 = vld [vmem:[%s9147_s2 + $0x358] sm:$0xff]   ;;  %v1058_v58 = vld [vmem:[%s9149_s1 + $0x8] sm:$0x7f] }
  0x2d   :  { %1066 = vperm.xlu0 %6815, %v1058_v58   ;;  %v7006_v58 = vld [vmem:[%s9147_s2 + $0x528] sm:$0xff]  }
  0x2f   :  { %6183 = vmatpush3.bf16.msra.mxu1 %v6852_v40  ;;  %6247 = vmatpush3.bf16.msra.mxu0 %v6880_v59  ;;  %v6923_v40 = vld [vmem:[%s9147_s2 + $0x2d0] sm:$0xff]  }
  0x30   :  { %6184 = vmatprep.subr.bf16.mxu1 %v6855_v41  ;;  %6248 = vmatprep.subr.bf16.mxu0 %v6883_v63  ;;  %v6925_v41 = vld [vmem:[%s9147_s2 + $0x360] sm:$0xff]   ;;  %v6940_v59 = vld [vmem:[%s9147_s2 + $0x2b0] sm:$0xff]  }
  0x31   :  { %v6945_v63 = vld [vmem:[%s9147_s2 + $0x400] sm:$0xff]  }
  0x33   :  { %6185 = vmatpush3.bf16.msra.mxu1 %v6856_v44  ;;  %6249 = vmatpush3.bf16.msra.mxu0 %v6884_v0  ;;  %v6927_v44 = vld [vmem:[%s9147_s2 + $0x2d8] sm:$0xff]  }
  0x34   :  { %6186 = vmatprep.subr.bf16.mxu1 %v6859_v45  ;;  %6250 = vmatprep.subr.bf16.mxu0 %v6887_v4  ;;  %v6929_v45 = vld [vmem:[%s9147_s2 + $0x368] sm:$0xff]   ;;  %v6946_v0 = vld [vmem:[%s9147_s2 + $0x2f8] sm:$0xff]  }
  0x35   :  { %v6949_v4 = vld [vmem:[%s9148_s0 + $0x28] ss:$248 sps:$4 sm:$0xff]  }
  0x37   :  { %6187 = vmatpush3.bf16.msra.mxu1 %v6860_v50  ;;  %6251 = vmatpush3.bf16.msra.mxu0 %v6888_v5  ;;  %v6934_v50 = vld [vmem:[%s9147_s2 + $0x330] sm:$0xff]   ;;  %v6951_v5 = vld [vmem:[%s9148_s0 + $0x2c] ss:$248 sps:$4 sm:$0xff]  }
  0x38   :  { %6188 = vmatprep.subr.bf16.mxu1 %v6863_v51  ;;  %6252 = vmatprep.subr.bf16.mxu0 %v6891_v8  ;;  %v6932_v51 = vld [vmem:[%s9147_s2 + $0x2a0] sm:$0xff]  }
  0x39   :  { %v6954_v8 = vld [vmem:[%s9147_s2 + $0x380] sm:$0xff]  }
  0x3b   :  { %6189 = vmatpush3.bf16.msra.mxu1 %v6864_v53  ;;  %6253 = vmatpush3.bf16.msra.mxu0 %v6892_v9  ;;  %v6935_v53 = vld [vmem:[%s9147_s2 + $0x2e8] sm:$0xff]   ;;  %v6955_v9 = vld [vmem:[%s9147_s2 + $0x450] sm:$0xff]  }
  0x3c   :  { %6190 = vmatprep.subr.bf16.mxu1 %v6870_v56  ;;  %6254 = vmatprep.subr.bf16.mxu0 %v6895_v12  ;;  %v6938_v56 = vld [vmem:[%s9147_s2 + $0x338] sm:$0xff]   ;;  %v6958_v12 = vld [vmem:[%s9147_s2 + $0x388] sm:$0xff]  }
  0x3f   :  { %6191 = vmatpush3.bf16.msra.mxu1 %v6871_v57  ;;  %6255 = vmatpush3.bf16.msra.mxu0 %v6896_v13  ;;  %v6939_v57 = vld [vmem:[%s9147_s2 + $0x2f0] sm:$0xff]   ;;  %v6959_v13 = vld [vmem:[%s9147_s2 + $0x458] sm:$0xff]  }
  0x40   :  { %6220 = vmatprep.subr.bf16.mxu1 %v6877_v61  ;;  %6256 = vmatprep.subr.bf16.mxu0 %v6899_v16  ;;  %v6943_v61 = vld [vmem:[%s9148_s0 + $0x34] ss:$248 sps:$4 sm:$0xff]  }
  0x41   :  { %v6962_v16 = vld [vmem:[%s9147_s2 + $0x390] sm:$0xff]  }
  0x42   :  { %4396 = vmatmul.mubr.bf16.vlgmr.msra.gmra.mrb[4].mxu1 %v6873_v60  ;;  %v6941_v60 = vld [vmem:[%s9148_s0 + $0x30] ss:$248 sps:$4 sm:$0xff]  }
  0x43   :  { %6221 = vmatpush3.bf16.msra.mxu1 %v6878_v62  ;;  %6257 = vmatpush3.bf16.msra.mxu0 %v6900_v17  ;;  %v6944_v62 = vld [vmem:[%s9147_s2 + $0x440] sm:$0xff]  }
  0x44   :  { %6222 = vmatprep.subr.bf16.mxu1 %v6881_v2  ;;  %6286 = vmatprep.subr.bf16.mxu0 %v6906_v23  ;;  %v6947_v2 = vld [vmem:[%s9147_s2 + $0x2b8] sm:$0xff]   ;;  %v6963_v17 = vld [vmem:[%s9147_s2 + $0x460] sm:$0xff]  }
  0x45   :  { %4477 = vmatprep.mubr.bf16.mxu1 %v6913_v28  ;;  %v6969_v23 = vld [vmem:[%s9147_s2 + $0x3e0] sm:$0xff]   ;;  %v6974_v28 = vld [vmem:[%s9147_s2 + $0x3a8] sm:$0xff]  }
  0x46   :  { %4519 = vmatmul.mubr.bf16.vlgmr.msra.gmra.mrb[4].mxu0 %v6903_v21  ;;  %v6967_v21 = vld [vmem:[%s9147_s2 + $0x468] sm:$0xff]  }
  0x47   :  { %6223 = vmatpush3.bf16.msra.mxu1 %v6882_v3  ;;  %6287 = vmatpush3.bf16.msra.mxu0 %v6907_v24  ;;  %v6948_v3 = vld [vmem:[%s9147_s2 + $0x448] sm:$0xff]   ;;  %v6970_v24 = vld [vmem:[%s9147_s2 + $0x3a0] sm:$0xff]  }
  0x48   :  { %6224 = vmatprep.subr.bf16.mxu1 %v6885_v6  ;;  %6288 = vmatprep.subr.bf16.mxu0 %v6910_v27  ;;  %v6952_v6 = vld [vmem:[%s9147_s2 + $0x408] sm:$0xff]  }
  0x49   :  { %4600 = vmatprep.mubr.bf16.mxu0 %v6943_v61  ;;  %v6973_v27 = vld [vmem:[%s9147_s2 + $0x3e8] sm:$0xff]   ;;  %v7009_v61 = vld [vmem:[%s9147_s2 + $0x570] sm:$0xff]  }
  0x4b   :  { %6225 = vmatpush3.bf16.msra.mxu1 %v6886_v7  ;;  %6289 = vmatpush3.bf16.msra.mxu0 %v6914_v29  ;;  %v6953_v7 = vld [vmem:[%s9147_s2 + $0x3c0] sm:$0xff]   ;;  %v6975_v29 = vld [vmem:[%s9147_s2 + $0x478] sm:$0xff]  }
  0x4c   :  { %6226 = vmatprep.subr.bf16.mxu1 %v6889_v10  ;;  %6290 = vmatprep.subr.bf16.mxu0 %v6917_v33  ;;  %v6956_v10 = vld [vmem:[%s9147_s2 + $0x410] sm:$0xff]   ;;  %v6979_v33 = vld [vmem:[%s9148_s0 + $0x40] ss:$248 sps:$4 sm:$0xff]  }
  0x4f   :  { %6227 = vmatpush3.bf16.msra.mxu1 %v6890_v11  ;;  %6291 = vmatpush3.bf16.msra.mxu0 %v6918_v34  ;;  %v6957_v11 = vld [vmem:[%s9147_s2 + $0x3c8] sm:$0xff]   ;;  %v6981_v34 = vld [vmem:[%s9148_s0 + $0x44] ss:$248 sps:$4 sm:$0xff]  }
  0x50   :  { %6228 = vmatprep.subr.bf16.mxu1 %v6893_v14  ;;  %6292 = vmatprep.subr.bf16.mxu0 %v6921_v37  ;;  %v6960_v14 = vld [vmem:[%s9147_s2 + $0x418] sm:$0xff]  }
  0x51   :  { %v6984_v37 = vld [vmem:[%s9147_s2 + $0x3f8] sm:$0xff]  }
  0x53   :  { %6229 = vmatpush3.bf16.msra.mxu1 %v6894_v15  ;;  %6293 = vmatpush3.bf16.msra.mxu0 %v6922_v38  ;;  %v6961_v15 = vld [vmem:[%s9147_s2 + $0x3d0] sm:$0xff]   ;;  %v6985_v38 = vld [vmem:[%s9147_s2 + $0x3b8] sm:$0xff]  }
  0x54   :  { %6230 = vmatprep.subr.bf16.mxu1 %v6897_v18  ;;  %6294 = vmatprep.subr.bf16.mxu0 %v6925_v41  ;;  %v6964_v18 = vld [vmem:[%s9147_s2 + $0x420] sm:$0xff]   ;;  %v6989_v41 = vld [vmem:[%s9148_s0 + $0x3c] ss:$248 sps:$4 sm:$0xff]  }
  0x57   :  { %6231 = vmatpush3.bf16.msra.mxu1 %v6898_v19  ;;  %6295 = vmatpush3.bf16.msra.mxu0 %v6926_v42  ;;  %v6965_v19 = vld [vmem:[%s9147_s2 + $0x3d8] sm:$0xff]   ;;  %v6990_v42 = vld [vmem:[%s9147_s2 + $0x508] sm:$0xff]  }
  0x58   :  { %6232 = vmatprep.subr.bf16.mxu1 %v6901_v20  ;;  %6296 = vmatprep.subr.bf16.mxu0 %v6929_v45  ;;  %v6966_v20 = vld [vmem:[%s9147_s2 + $0x398] sm:$0xff]   ;;  %v6993_v45 = vld [vmem:[%s9147_s2 + $0x550] sm:$0xff]  }
  0x5b   :  { %6233 = vmatpush3.bf16.msra.mxu1 %v6902_v25  ;;  %6297 = vmatpush3.bf16.msra.mxu0 %v6930_v46  ;;  %v6971_v25 = vld [vmem:[%s9147_s2 + $0x470] sm:$0xff]  }
  0x5c   :  { %6234 = vmatprep.subr.bf16.mxu1 %v6908_v26  ;;  %6298 = vmatprep.subr.bf16.mxu0 %v6933_v49  ;;  %v6972_v26 = vld [vmem:[%s9147_s2 + $0x430] sm:$0xff]   ;;  %v6997_v49 = vld [vmem:[%s9147_s2 + $0x558] sm:$0xff]  }
  0x5d   :  { %v6994_v46 = vld [vmem:[%s9147_s2 + $0x510] sm:$0xff]  }
  0x5f   :  { %6235 = vmatpush3.bf16.msra.mxu1 %v6909_v30  ;;  %6299 = vmatpush3.bf16.msra.mxu0 %v6934_v50  ;;  %v6976_v30 = vld [vmem:[%s9147_s2 + $0x438] sm:$0xff]  }
  0x60   :  { %6264 = vmatprep.subr.bf16.mxu1 %v6915_v32  ;;  %6300 = vmatprep.subr.bf16.mxu0 %v6937_v55  ;;  %v6978_v32 = vld [vmem:[%s9147_s2 + $0x3b0] sm:$0xff]   ;;  %v6998_v50 = vld [vmem:[%s9147_s2 + $0x518] sm:$0xff]  }
  0x61   :  { %v7003_v55 = vld [vmem:[%s9147_s2 + $0x4d8] sm:$0xff]  }
  0x62   :  { %4478 = vmatmul.mubr.bf16.vlgmr.msra.gmra.mrb[8].mxu1 %v6911_v31  ;;  %v6977_v31 = vld [vmem:[%s9147_s2 + $0x3f0] sm:$0xff]  }
  0x63   :  { %6265 = vmatpush3.bf16.msra.mxu1 %v6916_v35  ;;  %6301 = vmatpush3.bf16.msra.mxu0 %v6938_v56  ;;  %v6982_v35 = vld [vmem:[%s9147_s2 + $0x540] sm:$0xff]   ;;  %v7004_v56 = vld [vmem:[%s9147_s2 + $0x498] sm:$0xff]  }
  0x64   :  { %6266 = vmatprep.subr.bf16.mxu1 %v6919_v36  ;;  %6330 = vmatprep.subr.bf16.mxu0 %v6944_v62  ;;  %v6983_v36 = vld [vmem:[%s9147_s2 + $0x500] sm:$0xff]   ;;  %v7010_v62 = vld [vmem:[%s9147_s2 + $0x530] sm:$0xff]  }
  0x65   :  { %4559 = vmatprep.mubr.bf16.mxu1 %v6951_v5  ;;  %v7016_v5 = vld [vmem:[%s9147_s2 + $0x4b0] sm:$0xff]  }
  0x66   :  { %4601 = vmatmul.mubr.bf16.vlgmr.msra.gmra.mrb[8].mxu0 %v6941_v60  ;;  %v7008_v60 = vld [vmem:[%s9147_s2 + $0x4a0] sm:$0xff]  }
  0x67   :  { %6267 = vmatpush3.bf16.msra.mxu1 %v6920_v39  ;;  %6331 = vmatpush3.bf16.msra.mxu0 %v6945_v63  ;;  %v6986_v39 = vld [vmem:[%s9147_s2 + $0x548] sm:$0xff]  }
  0x68   :  { %6268 = vmatprep.subr.bf16.mxu1 %v6923_v40  ;;  %6332 = vmatprep.subr.bf16.mxu0 %v6948_v3  ;;  %v6987_v40 = vld [vmem:[%s9148_s0 + $0x38] ss:$248 sps:$4 sm:$0xff]   ;;  %v7011_v63 = vld [vmem:[%s9147_s2 + $0x4e8] sm:$0xff]  }
  0x69   :  { %4682 = vmatprep.mubr.bf16.mxu0 %v6981_v34  ;;  %v7014_v3 = vld [vmem:[%s9147_s2 + $0x538] sm:$0xff]   ;;  %v7047_v34 = vld [vmem:[%s9147_s2 + $0x670] sm:$0xff]  }
  0x6b   :  { %6269 = vmatpush3.bf16.msra.mxu1 %v6924_v43  ;;  %6333 = vmatpush3.bf16.msra.mxu0 %v6952_v6  ;;  %v6991_v43 = vld [vmem:[%s9147_s2 + $0x4c0] sm:$0xff]   ;;  %v7017_v6 = vld [vmem:[%s9148_s0 + $0x50] ss:$248 sps:$4 sm:$0xff]  }
  0x6c   :  { %6270 = vmatprep.subr.bf16.mxu1 %v6927_v44  ;;  %6334 = vmatprep.subr.bf16.mxu0 %v6955_v9  ;;  %v6992_v44 = vld [vmem:[%s9147_s2 + $0x480] sm:$0xff]  }
  0x6d   :  { %v7021_v9 = vld [vmem:[%s9147_s2 + $0x600] sm:$0xff]  }
  0x6f   :  { %6271 = vmatpush3.bf16.msra.mxu1 %v6928_v47  ;;  %6335 = vmatpush3.bf16.msra.mxu0 %v6956_v10  ;;  %v6995_v47 = vld [vmem:[%s9147_s2 + $0x4c8] sm:$0xff]   ;;  %v7022_v10 = vld [vmem:[%s9147_s2 + $0x4f8] sm:$0xff]  }
  0x70   :  { %6272 = vmatprep.subr.bf16.mxu1 %v6931_v48  ;;  %6336 = vmatprep.subr.bf16.mxu0 %v6959_v13  ;;  %v6996_v48 = vld [vmem:[%s9147_s2 + $0x488] sm:$0xff]  }
  0x71   :  { %v7025_v13 = vld [vmem:[%s9148_s0 + $0x48] ss:$248 sps:$4 sm:$0xff]  }
  0x73   :  { %6273 = vmatpush3.bf16.msra.mxu1 %v6932_v51  ;;  %6337 = vmatpush3.bf16.msra.mxu0 %v6960_v14  ;;  %v6999_v51 = vld [vmem:[%s9147_s2 + $0x4d0] sm:$0xff]   ;;  %v7027_v14 = vld [vmem:[%s9148_s0 + $0x4c] ss:$248 sps:$4 sm:$0xff]  }
  0x74   :  { %6274 = vmatprep.subr.bf16.mxu1 %v6935_v53  ;;  %6338 = vmatprep.subr.bf16.mxu0 %v6963_v17  ;;  %v7001_v53 = vld [vmem:[%s9147_s2 + $0x560] sm:$0xff]  }
  0x75   :  { %v7030_v17 = vld [vmem:[%s9147_s2 + $0x580] sm:$0xff]  }
  0x77   :  { %6275 = vmatpush3.bf16.msra.mxu1 %v6936_v54  ;;  %6339 = vmatpush3.bf16.msra.mxu0 %v6964_v18  ;;  %v7002_v54 = vld [vmem:[%s9147_s2 + $0x520] sm:$0xff]   ;;  %v7031_v18 = vld [vmem:[%s9147_s2 + $0x650] sm:$0xff]  }
  0x78   :  { %6276 = vmatprep.subr.bf16.mxu1 %v6939_v57  ;;  %6340 = vmatprep.subr.bf16.mxu0 %v6967_v21  ;;  %v7005_v57 = vld [vmem:[%s9147_s2 + $0x568] sm:$0xff]  }
  0x79   :  { %v7034_v21 = vld [vmem:[%s9147_s2 + $0x588] sm:$0xff]  }
  0x7b   :  { %6277 = vmatpush3.bf16.msra.mxu1 %v6940_v59  ;;  %6341 = vmatpush3.bf16.msra.mxu0 %v6968_v22  ;;  %v7007_v59 = vld [vmem:[%s9147_s2 + $0x4e0] sm:$0xff]   ;;  %v7035_v22 = vld [vmem:[%s9147_s2 + $0x658] sm:$0xff]  }
  0x7c   :  { %6278 = vmatprep.subr.bf16.mxu1 %v6946_v0  ;;  %6342 = vmatprep.subr.bf16.mxu0 %v6971_v25  ;;  %v7012_v0 = vld [vmem:[%s9147_s2 + $0x4a8] sm:$0xff]   ;;  %v7038_v25 = vld [vmem:[%s9147_s2 + $0x590] sm:$0xff]  }
  0x7f   :  { %6279 = vmatpush3.bf16.msra.mxu1 %v6947_v2  ;;  %6343 = vmatpush3.bf16.msra.mxu0 %v6972_v26  ;;  %v7013_v2 = vld [vmem:[%s9147_s2 + $0x578] sm:$0xff]   ;;  %v7039_v26 = vld [vmem:[%s9147_s2 + $0x660] sm:$0xff]  }
  0x80   :  { %6308 = vmatprep.subr.bf16.mxu1 %v6953_v7  ;;  %6344 = vmatprep.subr.bf16.mxu0 %v6975_v29  ;;  %v7019_v7 = vld [vmem:[%s9148_s0 + $0x54] ss:$248 sps:$4 sm:$0xff]   ;;  %v7042_v29 = vld [vmem:[%s9147_s2 + $0x598] sm:$0xff]  }
  0x82   :  { %4560 = vmatmul.mubr.bf16.vlgmr.msra.gmra.mrb[12].mxu1 %v6949_v4  ;;  %v7015_v4 = vld [vmem:[%s9147_s2 + $0x4f0] sm:$0xff]  }
  0x83   :  { %6309 = vmatpush3.bf16.msra.mxu1 %v6954_v8  ;;  %6345 = vmatpush3.bf16.msra.mxu0 %v6976_v30  ;;  %v7020_v8 = vld [vmem:[%s9147_s2 + $0x640] sm:$0xff]   ;;  %v7043_v30 = vld [vmem:[%s9147_s2 + $0x668] sm:$0xff]  }
  0x84   :  { %6310 = vmatprep.subr.bf16.mxu1 %v6957_v11  ;;  %6374 = vmatprep.subr.bf16.mxu0 %v6982_v35  ;;  %v7023_v11 = vld [vmem:[%s9147_s2 + $0x4b8] sm:$0xff]   ;;  %v7048_v35 = vld [vmem:[%s9147_s2 + $0x630] sm:$0xff]  }
  0x85   :  { %4641 = vmatprep.mubr.bf16.mxu1 %v6989_v41  ;;  %v7054_v41 = vld [vmem:[%s9147_s2 + $0x5b0] sm:$0xff]  }
  0x86   :  { %4683 = vmatmul.mubr.bf16.vlgmr.msra.gmra.mrb[12].mxu0 %v6979_v33  ;;  %v7046_v33 = vld [vmem:[%s9147_s2 + $0x5a0] sm:$0xff]  }
  0x87   :  { %6311 = vmatpush3.bf16.msra.mxu1 %v6958_v12  ;;  %6375 = vmatpush3.bf16.msra.mxu0 %v6983_v36  ;;  %v7024_v12 = vld [vmem:[%s9147_s2 + $0x648] sm:$0xff]  }
  0x88   :  { %6312 = vmatprep.subr.bf16.mxu1 %v6961_v15  ;;  %6376 = vmatprep.subr.bf16.mxu0 %v6986_v39  ;;  %v7028_v15 = vld [vmem:[%s9147_s2 + $0x608] sm:$0xff]   ;;  %v7052_v39 = vld [vmem:[%s9147_s2 + $0x638] sm:$0xff]  }
  0x89   :  { %4764 = vmatprep.mubr.bf16.mxu0 %v7019_v7  ;;  %v7049_v36 = vld [vmem:[%s9147_s2 + $0x5e8] sm:$0xff]  }
  0x8b   :  { %6313 = vmatpush3.bf16.msra.mxu1 %v6962_v16  ;;  %6377 = vmatpush3.bf16.msra.mxu0 %v6990_v42  ;;  %v7029_v16 = vld [vmem:[%s9147_s2 + $0x5c0] sm:$0xff]  }
  0x8c   :  { %6314 = vmatprep.subr.bf16.mxu1 %v6965_v19  ;;  %6378 = vmatprep.subr.bf16.mxu0 %v6993_v45  ;;  %v7032_v19 = vld [vmem:[%s9147_s2 + $0x610] sm:$0xff]   ;;  %v7055_v42 = vld [vmem:[%s9148_s0 + $0x60] ss:$248 sps:$4 sm:$0xff]  }
  0x8d   :  { %v7059_v45 = vld [vmem:[%s9147_s2 + $0x700] sm:$0xff]  }
  0x8f   :  { %6315 = vmatpush3.bf16.msra.mxu1 %v6966_v20  ;;  %6379 = vmatpush3.bf16.msra.mxu0 %v6994_v46  ;;  %v7033_v20 = vld [vmem:[%s9147_s2 + $0x5c8] sm:$0xff]   ;;  %v7060_v46 = vld [vmem:[%s9147_s2 + $0x5f8] sm:$0xff]  }
  0x90   :  { %6316 = vmatprep.subr.bf16.mxu1 %v6969_v23  ;;  %6380 = vmatprep.subr.bf16.mxu0 %v6997_v49  ;;  %v7036_v23 = vld [vmem:[%s9147_s2 + $0x618] sm:$0xff]  }
  0x91   :  { %v7063_v49 = vld [vmem:[%s9148_s0 + $0x58] ss:$248 sps:$4 sm:$0xff]  }
  0x93   :  { %6317 = vmatpush3.bf16.msra.mxu1 %v6970_v24  ;;  %6381 = vmatpush3.bf16.msra.mxu0 %v6998_v50  ;;  %v7037_v24 = vld [vmem:[%s9147_s2 + $0x5d0] sm:$0xff]  }
  0x94   :  { %6318 = vmatprep.subr.bf16.mxu1 %v6973_v27  ;;  %6382 = vmatprep.subr.bf16.mxu0 %v7001_v53  ;;  %v7040_v27 = vld [vmem:[%s9147_s2 + $0x620] sm:$0xff]   ;;  %v7065_v50 = vld [vmem:[%s9148_s0 + $0x5c] ss:$248 sps:$4 sm:$0xff]  }
  0x95   :  { %v7068_v53 = vld [vmem:[%s9147_s2 + $0x680] sm:$0xff]  }
  0x97   :  { %6319 = vmatpush3.bf16.msra.mxu1 %v6974_v28  ;;  %6383 = vmatpush3.bf16.msra.mxu0 %v7002_v54  ;;  %v7041_v28 = vld [vmem:[%s9147_s2 + $0x5d8] sm:$0xff]   ;;  %v7069_v54 = vld [vmem:[%s9147_s2 + $0x750] sm:$0xff]  }
  0x98   :  { %6320 = vmatprep.subr.bf16.mxu1 %v6977_v31  ;;  %6384 = vmatprep.subr.bf16.mxu0 %v7005_v57  ;;  %v7044_v31 = vld [vmem:[%s9147_s2 + $0x628] sm:$0xff]  }
  0x99   :  { %v7072_v57 = vld [vmem:[%s9147_s2 + $0x688] sm:$0xff]  }
  0x9b   :  { %6321 = vmatpush3.bf16.msra.mxu1 %v6978_v32  ;;  %6385 = vmatpush3.bf16.msra.mxu0 %v7006_v58  ;;  %v7045_v32 = vld [vmem:[%s9147_s2 + $0x5e0] sm:$0xff]   ;;  %v7073_v58 = vld [vmem:[%s9147_s2 + $0x758] sm:$0xff]  }
  0x9c   :  { %6322 = vmatprep.subr.bf16.mxu1 %v6984_v37  ;;  %6386 = vmatprep.subr.bf16.mxu0 %v7009_v61  ;;  %v7050_v37 = vld [vmem:[%s9147_s2 + $0x5a8] sm:$0xff]   ;;  %v7076_v61 = vld [vmem:[%s9147_s2 + $0x690] sm:$0xff]  }
  0x9f   :  { %6323 = vmatpush3.bf16.msra.mxu1 %v6985_v38  ;;  %6387 = vmatpush3.bf16.msra.mxu0 %v7010_v62  ;;  %v7051_v38 = vld [vmem:[%s9147_s2 + $0x678] sm:$0xff]   ;;  %v7077_v62 = vld [vmem:[%s9147_s2 + $0x760] sm:$0xff]  }
  0xa0   :  { %6352 = vmatprep.subr.bf16.mxu1 %v6991_v43  ;;  %6388 = vmatprep.subr.bf16.mxu0 %v7013_v2  ;;  %v7057_v43 = vld [vmem:[%s9148_s0 + $0x64] ss:$248 sps:$4 sm:$0xff]  }
  0xa1   :  { %v7080_v2 = vld [vmem:[%s9147_s2 + $0x698] sm:$0xff]  }
  0xa2   :  { %4642 = vmatmul.mubr.bf16.vlgmr.msra.gmra.mrb[16].mxu1 %v6987_v40  ;;  %v7053_v40 = vld [vmem:[%s9147_s2 + $0x5f0] sm:$0xff]  }
  0xa3   :  { %6353 = vmatpush3.bf16.msra.mxu1 %v6992_v44  ;;  %6389 = vmatpush3.bf16.msra.mxu0 %v7014_v3  ;;  %v7058_v44 = vld [vmem:[%s9147_s2 + $0x740] sm:$0xff]   ;;  %v7081_v3 = vld [vmem:[%s9147_s2 + $0x768] sm:$0xff]  }
  0xa4   :  { %6354 = vmatprep.subr.bf16.mxu1 %v6995_v47  ;;  %6418 = vmatprep.subr.bf16.mxu0 %v7020_v8  ;;  %v7061_v47 = vld [vmem:[%s9147_s2 + $0x5b8] sm:$0xff]   ;;  %v7084_v8 = vld [vmem:[%s9147_s2 + $0x6a0] sm:$0xff]  }
  0xa5   :  { %4723 = vmatprep.mubr.bf16.mxu1 %v7027_v14 }
  0xa6   :  { %4765 = vmatmul.mubr.bf16.vlgmr.msra.gmra.mrb[16].mxu0 %v7017_v6  ;;  %v7083_v6 = vld [vmem:[%s9147_s2 + $0x6e0] sm:$0xff]  }
  0xa7   :  { %6355 = vmatpush3.bf16.msra.mxu1 %v6996_v48  ;;  %6419 = vmatpush3.bf16.msra.mxu0 %v7021_v9  ;;  %v7062_v48 = vld [vmem:[%s9147_s2 + $0x748] sm:$0xff]  }
  0xa8   :  { %6356 = vmatprep.subr.bf16.mxu1 %v6999_v51  ;;  %6420 = vmatprep.subr.bf16.mxu0 %v7024_v12  ;;  %v7066_v51 = vld [vmem:[%s9147_s2 + $0x708] sm:$0xff]  }
  0xa9   :  { %4846 = vmatprep.mubr.bf16.mxu0 %v7057_v43  ;;  %v7111_v43 = vld [vmem:[%s9147_s2 + $0x858] sm:$0xff]  }
  0xab   :  { %6357 = vmatpush3.bf16.msra.mxu1 %v7000_v52  ;;  %6421 = vmatpush3.bf16.msra.mxu0 %v7028_v15  ;;  %v7067_v52 = vld [vmem:[%s9147_s2 + $0x6c0] sm:$0xff]   ;;  %v7087_v15 = vld [vmem:[%s9147_s2 + $0x6e8] sm:$0xff]  }
  0xac   :  { %6358 = vmatprep.subr.bf16.mxu1 %v7003_v55  ;;  %6422 = vmatprep.subr.bf16.mxu0 %v7031_v18  ;;  %v7070_v55 = vld [vmem:[%s9147_s2 + $0x710] sm:$0xff]   ;;  %v7090_v18 = vld [vmem:[%s9147_s2 + $0x738] sm:$0xff]  }
  0xaf   :  { %6359 = vmatpush3.bf16.msra.mxu1 %v7004_v56  ;;  %6423 = vmatpush3.bf16.msra.mxu0 %v7032_v19  ;;  %v7071_v56 = vld [vmem:[%s9147_s2 + $0x6c8] sm:$0xff]   ;;  %v7091_v19 = vld [vmem:[%s9147_s2 + $0x6f0] sm:$0xff]  }
  0xb0   :  { %6360 = vmatprep.subr.bf16.mxu1 %v7007_v59  ;;  %6424 = vmatprep.subr.bf16.mxu0 %v7035_v22  ;;  %v7074_v59 = vld [vmem:[%s9147_s2 + $0x718] sm:$0xff]   ;;  %v7095_v22 = vld [vmem:[%s9148_s0 + $0x74] ss:$248 sps:$4 sm:$0xff]  }
  0xb3   :  { %6361 = vmatpush3.bf16.msra.mxu1 %v7008_v60  ;;  %6425 = vmatpush3.bf16.msra.mxu0 %v7036_v23  ;;  %v7075_v60 = vld [vmem:[%s9147_s2 + $0x6d0] sm:$0xff]   ;;  %v7096_v23 = vld [vmem:[%s9147_s2 + $0x840] sm:$0xff]  }
  0xb4   :  { %6362 = vmatprep.subr.bf16.mxu1 %v7011_v63  ;;  %6426 = vmatprep.subr.bf16.mxu0 %v7039_v26  ;;  %v7078_v63 = vld [vmem:[%s9147_s2 + $0x720] sm:$0xff]   ;;  %v7099_v26 = vld [vmem:[%s9147_s2 + $0x6b8] sm:$0xff]  }
  0xb7   :  { %6363 = vmatpush3.bf16.msra.mxu1 %v7012_v0  ;;  %6427 = vmatpush3.bf16.msra.mxu0 %v7040_v27  ;;  %v7079_v0 = vld [vmem:[%s9147_s2 + $0x6d8] sm:$0xff]   ;;  %v7100_v27 = vld [vmem:[%s9147_s2 + $0x848] sm:$0xff]  }
  0xb8   :  { %6364 = vmatprep.subr.bf16.mxu1 %v7015_v4  ;;  %6428 = vmatprep.subr.bf16.mxu0 %v7043_v30  ;;  %v7082_v4 = vld [vmem:[%s9147_s2 + $0x728] sm:$0xff]  }
  0xb9   :  { %v7104_v30 = vld [vmem:[%s9147_s2 + $0x808] sm:$0xff]  }
  0xbb   :  { %6365 = vmatpush3.bf16.msra.mxu1 %v7016_v5  ;;  %6429 = vmatpush3.bf16.msra.mxu0 %v7044_v31 }
  0xbc   :  { %6366 = vmatprep.subr.bf16.mxu1 %v7022_v10  ;;  %6430 = vmatprep.subr.bf16.mxu0 %v7047_v34  ;;  %v7106_v34 = vld [vmem:[%s9147_s2 + $0x780] sm:$0xff]  }
  0xbf   :  { %6367 = vmatpush3.bf16.msra.mxu1 %v7023_v11  ;;  %6431 = vmatpush3.bf16.msra.mxu0 %v7048_v35  ;;  %v7085_v11 = vld [vmem:[%s9147_s2 + $0x770] sm:$0xff]  }
  0xc0   :  { %6396 = vmatprep.subr.bf16.mxu1 %v7029_v16  ;;  %6432 = vmatprep.subr.bf16.mxu0 %v7051_v38  ;;  %v7088_v16 = vld [vmem:[%s9147_s2 + $0x6a8] sm:$0xff]  }
  0xc2   :  { %4724 = vmatmul.mubr.bf16.vlgmr.msra.gmra.mrb[20].mxu1 %v7025_v13  ;;  %v7086_v13 = vld [vmem:[%s9147_s2 + $0x730] sm:$0xff]  }
  0xc3   :  { %6397 = vmatpush3.bf16.msra.mxu1 %v7030_v17  ;;  %6433 = vmatpush3.bf16.msra.mxu0 %v7052_v39  ;;  %v7089_v17 = vld [vmem:[%s9147_s2 + $0x778] sm:$0xff]   ;;  %v7108_v39 = vld [vmem:[%s9147_s2 + $0x810] sm:$0xff]  }
  0xc4   :  { %6398 = vmatprep.subr.bf16.mxu1 %v7033_v20  ;;  %6462 = vmatprep.subr.bf16.mxu0 %v7058_v44  ;;  %v7092_v20 = vld [vmem:[%s9147_s2 + $0x6b0] sm:$0xff]   ;;  %v1062_v44 = vpop.permute.xlu0 %1061 }
  0xc5   :  { %4805 = vmatprep.mubr.bf16.mxu1 %v7065_v50  ;;  %v7117_v50 = vld [vmem:[%s9147_s2 + $0x7d8] sm:$0xff]  }
  0xc6   :  { %4847 = vmatmul.mubr.bf16.vlgmr.msra.gmra.mrb[20].mxu0 %v7055_v42  ;;  %v7110_v42 = vld [vmem:[%s9147_s2 + $0x788] sm:$0xff]  }
  0xc7   :  { %6399 = vmatpush3.bf16.msra.mxu1 %v7034_v21  ;;  %6463 = vmatpush3.bf16.msra.mxu0 %v7059_v45  ;;  %v7093_v21 = vld [vmem:[%s9148_s0 + $0x70] ss:$248 sps:$4 sm:$0xff]   ;;  %v7112_v45 = vld [vmem:[%s9147_s2 + $0x818] sm:$0xff]  }
  0xc8   :  { %6400 = vmatprep.subr.bf16.mxu1 %v7037_v24  ;;  %6464 = vmatprep.subr.bf16.mxu0 %v7062_v48  ;;  %v7097_v24 = vld [vmem:[%s9147_s2 + $0x800] sm:$0xff]  }
  0xc9   :  { %4928 = vmatprep.mubr.bf16.mxu0 %v7095_v22  ;;  %v7115_v48 = vld [vmem:[%s9147_s2 + $0x860] sm:$0xff]  }
  0xcb   :  { %6401 = vmatpush3.bf16.msra.mxu1 %v7038_v25  ;;  %6465 = vmatpush3.bf16.msra.mxu0 %v7066_v51  ;;  %v7098_v25 = vld [vmem:[%s9147_s2 + $0x6f8] sm:$0xff]  }
  0xcc   :  { %6402 = vmatprep.subr.bf16.mxu1 %v7041_v28  ;;  %6466 = vmatprep.subr.bf16.mxu0 %v7069_v54  ;;  %v7101_v28 = vld [vmem:[%s9148_s0 + $0x68] ss:$248 sps:$4 sm:$0xff]  }
  0xcf   :  { %6403 = vmatpush3.bf16.msra.mxu1 %v7042_v29  ;;  %6467 = vmatpush3.bf16.msra.mxu0 %v7070_v55  ;;  %v7103_v29 = vld [vmem:[%s9148_s0 + $0x6c] ss:$248 sps:$4 sm:$0xff]  }
  0xd0   :  { %6404 = vmatprep.subr.bf16.mxu1 %v7045_v32  ;;  %6468 = vmatprep.subr.bf16.mxu0 %v7073_v58  ;;  %v7105_v32 = vld [vmem:[%s9147_s2 + $0x7c0] sm:$0xff]  }
  0xd3   :  { %6405 = vmatpush3.bf16.msra.mxu1 %v7046_v33  ;;  %6469 = vmatpush3.bf16.msra.mxu0 %v7074_v59  ;;  %v7120_v59 = vld [vmem:[%s9147_s2 + $0x828] sm:$0xff]  }
  0xd4   :  { %6406 = vmatprep.subr.bf16.mxu1 %v7049_v36  ;;  %6470 = vmatprep.subr.bf16.mxu0 %v7077_v62  ;;  %v7121_v62 = vld [vmem:[%s9147_s2 + $0x7e0] sm:$0xff]  }
  0xd7   :  { %6407 = vmatpush3.bf16.msra.mxu1 %v7050_v37  ;;  %6471 = vmatpush3.bf16.msra.mxu0 %v7078_v63  ;;  %v7107_v37 = vld [vmem:[%s9147_s2 + $0x850] sm:$0xff]  }
  0xd8   :  { %6408 = vmatprep.subr.bf16.mxu1 %v7053_v40  ;;  %6472 = vmatprep.subr.bf16.mxu0 %v7081_v3  ;;  %v7123_v3 = vld [vmem:[%s9147_s2 + $0x870] sm:$0xff]  }
  0xdb   :  { %6409 = vmatpush3.bf16.msra.mxu1 %v7054_v41  ;;  %6473 = vmatpush3.bf16.msra.mxu0 %v7082_v4  ;;  %v7109_v41 = vld [vmem:[%s9147_s2 + $0x7c8] sm:$0xff]  }
  0xdc   :  { %6410 = vmatprep.subr.bf16.mxu1 %v7060_v46  ;;  %6474 = vmatprep.subr.bf16.mxu0 %v7085_v11  ;;  %v7113_v46 = vld [vmem:[%s9147_s2 + $0x7d0] sm:$0xff]   ;;  %v7128_v11 = vld [vmem:[%s9147_s2 + $0x838] sm:$0xff]  }
  0xdf   :  { %6411 = vmatpush3.bf16.msra.mxu1 %v7061_v47  ;;  %6475 = vmatpush3.bf16.msra.mxu0 %v7086_v13  ;;  %v7114_v47 = vld [vmem:[%s9147_s2 + $0x790] sm:$0xff]  }
  0xe0   :  { %6440 = vmatprep.subr.bf16.mxu1 %v7067_v52  ;;  %6476 = vmatprep.subr.bf16.mxu0 %v7089_v17  ;;  %v1067_v52 = vpop.permute.xlu0 %1066  ;;  %v7130_v13 = vld [vmem:[%s9147_s2 + $0x7b0] sm:$0xff]   ;;  %v7135_v17 = vld [vmem:[%s9147_s2 + $0x900] sm:$0xff]  }
  0xe2   :  { %4806 = vmatmul.mubr.bf16.vlgmr.msra.gmra.mrb[24].mxu1 %v7063_v49  ;;  %v7116_v49 = vld [vmem:[%s9147_s2 + $0x820] sm:$0xff]  }
  0xe3   :  { %6441 = vmatpush3.bf16.msra.mxu1 %v7068_v53  ;;  %6477 = vmatpush3.bf16.msra.mxu0 %v7090_v18  ;;  %v7118_v53 = vld [vmem:[%s9147_s2 + $0x798] sm:$0xff]  }
  0xe4   :  { %6442 = vmatprep.subr.bf16.mxu1 %v7071_v56  ;;  %6506 = vmatprep.subr.bf16.mxu0 %v7096_v23  ;;  %v7119_v56 = vld [vmem:[%s9147_s2 + $0x868] sm:$0xff]   ;;  %v7136_v18 = vld [vmem:[%s9147_s2 + $0x7f8] sm:$0xff]  }
  0xe5   :  { %4887 = vmatprep.mubr.bf16.mxu1 %v7103_v29  ;;  %v7141_v23 = vld [vmem:[%s9148_s0 + $0x7c] ss:$248 sps:$4 sm:$0xff]   ;;  %v7144_v29 = vld [vmem:[%s9147_s2 + $0x880] sm:$0xff]  }
  0xe6   :  { %4929 = vmatmul.mubr.bf16.vlgmr.msra.gmra.mrb[24].mxu0 %v7093_v21  ;;  %v7139_v21 = vld [vmem:[%s9148_s0 + $0x78] ss:$248 sps:$4 sm:$0xff]  }
  0xe7   :  { %6443 = vmatpush3.bf16.msra.mxu1 %v7072_v57  ;;  %6507 = vmatpush3.bf16.msra.mxu0 %v7097_v24  ;;  %v7142_v24 = vld [vmem:[%s9147_s2 + $0x908] sm:$0xff]  }
  0xe8   :  { %6444 = vmatprep.subr.bf16.mxu1 %v7075_v60  ;;  %6508 = vmatprep.subr.bf16.mxu0 %v7100_v27 }
  0xeb   :  { %6445 = vmatpush3.bf16.msra.mxu1 %v7076_v61  ;;  %6509 = vmatpush3.bf16.msra.mxu0 %v7104_v30 }
  0xec   :  { %6446 = vmatprep.subr.bf16.mxu1 %v7079_v0  ;;  %6510 = vmatprep.subr.bf16.mxu0 %v7107_v37  ;;  %v7150_v37 = vld [vmem:[%s9147_s2 + $0x918] sm:$0xff]  }
  0xef   :  { %6447 = vmatpush3.bf16.msra.mxu1 %v7080_v2  ;;  %6511 = vmatpush3.bf16.msra.mxu0 %v7108_v39  ;;  %v7122_v2 = vld [vmem:[%s9147_s2 + $0x7a0] sm:$0xff]   ;;  %v7152_v39 = vld [vmem:[%s9147_s2 + $0x890] sm:$0xff]  }
  0xf0   :  { %6448 = vmatprep.subr.bf16.mxu1 %v7083_v6  ;;  %6512 = vmatprep.subr.bf16.mxu0 %v7111_v43  ;;  %v7124_v6 = vld [vmem:[%s9147_s2 + $0x830] sm:$0xff]   ;;  %v7154_v43 = vld [vmem:[%s9147_s2 + $0x920] sm:$0xff]  }
  0xf3   :  { %6449 = vmatpush3.bf16.msra.mxu1 %v7084_v8  ;;  %6513 = vmatpush3.bf16.msra.mxu0 %v7112_v45 }
  0xf4   :  { %6450 = vmatprep.subr.bf16.mxu1 %v7087_v15  ;;  %6514 = vmatprep.subr.bf16.mxu0 %v7115_v48  ;;  %v7133_v15 = vld [vmem:[%s9148_s0 + $0x84] ss:$248 sps:$4 sm:$0xff]  }
  0xf5   :  { %v6170_v5 = vpop.f32.mrb[0].mxu1  ;;  %5010 = vmatprep.mubr.bf16.mxu0 %v7133_v15  ;;  %v7156_v48 = vld [vmem:[%s9147_s2 + $0x898] sm:$0xff]   ;;  %v7181_v15 = vld [vmem:[%s9147_s2 + $0x9c0] sm:$0xff]  }
  0xf6   :  { %v6171_v7 = vpop.f32.mrb[1].mxu1 }
  0xf7   :  { %v8195_v9 = vadd.f32 %v6171_v7, %v6170_v5  ;;  %v6173_v10 = vpop.f32.mrb[2].mxu1  ;;  %6451 = vmatpush3.bf16.msra.mxu1 %v7088_v16  ;;  %6515 = vmatpush3.bf16.msra.mxu0 %v7116_v49  ;;  %v7125_v7 = vld [vmem:[%s9147_s2 + $0x7e8] sm:$0xff]   ;;  %v7134_v16 = vld [vmem:[%s9147_s2 + $0x940] sm:$0xff]  }
  0xf8   :  { %v6174_v12 = vpop.f32.mrb[3].mxu1  ;;  %6452 = vmatprep.subr.bf16.mxu1 %v7091_v19  ;;  %6516 = vmatprep.subr.bf16.mxu0 %v7119_v56  ;;  %v7137_v19 = vld [vmem:[%s9147_s2 + $0x7b8] sm:$0xff]   ;;  %v7160_v56 = vld [vmem:[%s9147_s2 + $0x8a0] sm:$0xff]  }
  0xf9   :  { %v8203_v14 = vadd.f32 %v6174_v12, %v6173_v10  ;;  %v6214_v31 = vpop.f32.mrb[0].mxu0  ;;  %v4357_v55 = vadd.f32 %v8195_v9, %v1062_v44  ;;  %v7126_v9 = vld [vmem:[%s9147_s2 + $0x7a8] sm:$0xff]   ;;  %v7127_v10 = vld [vmem:[%s9147_s2 + $0x878] sm:$0xff]   ;;  %v7129_v12 = vld [vmem:[%s9147_s2 + $0x7f0] sm:$0xff]  }
  0xfa   :  { %v6215_v33 = vpop.f32.mrb[1].mxu0 }
  0xfb   :  { %6453 = vmatpush3.bf16.msra.mxu1 %v7092_v20  ;;  %v6216_v35 = vadd.f32 %v6215_v33, %v6214_v31  ;;  %v6217_v36 = vpop.f32.mrb[2].mxu0  ;;  %v4360_v61 = vadd.f32 %v8203_v14, %v1067_v52  ;;  %6517 = vmatpush3.bf16.msra.mxu0 %v7120_v59  ;;  %v7131_v14 = vld [vmem:[%s9148_s0 + $0x80] ss:$248 sps:$4 sm:$0xff]   ;;  %v7138_v20 = vld [vmem:[%s9147_s2 + $0x948] sm:$0xff]   ;;  %v7145_v31 = vld [vmem:[%s9147_s2 + $0x950] sm:$0xff]  }
  0xfc   :  { %6454 = vmatprep.subr.bf16.mxu1 %v7098_v25  ;;  %v6218_v38 = vpop.f32.mrb[3].mxu0  ;;  %6518 = vmatprep.subr.bf16.mxu0 %v7123_v3  ;;  %v7146_v33 = vld [vmem:[%s9147_s2 + $0x910] sm:$0xff]   ;;  %v7158_v52 = vld [vmem:[%s9147_s2 + $0x928] sm:$0xff]  }
  0xfd   :  { %v6219_v40 = vadd.f32 %v6218_v38, %v6217_v36  ;;  %v7149_v36 = vld [vmem:[%s9147_s2 + $0x958] sm:$0xff]   ;;  %v7151_v38 = vld [vmem:[%s9147_s2 + $0x8d0] sm:$0xff]  }
  0xfe   :  { %v7162_v59 = vld [vmem:[%s9147_s2 + $0x930] sm:$0xff]  }
  0xff   :  { %6455 = vmatpush3.bf16.msra.mxu1 %v7099_v26  ;;  %6519 = vmatpush3.bf16.msra.mxu0 %v7124_v6  ;;  %v7143_v26 = vld [vmem:[%s9147_s2 + $0x8c0] sm:$0xff]   ;;  %v7169_v3 = vld [vmem:[%s9148_s0 + $0x90] ss:$248 sps:$4 sm:$0xff]  }
 0x100   :  { %6484 = vmatprep.subr.bf16.mxu1 %v7105_v32  ;;  %6520 = vmatprep.subr.bf16.mxu0 %v7127_v10  ;;  %v7173_v6 = vld [vmem:[%s9147_s2 + $0xa00] sm:$0xff]  }
 0x101   :  { %v7177_v10 = vld [vmem:[%s9148_s0 + $0x88] ss:$248 sps:$4 sm:$0xff]  }
 0x102   :  { %4888 = vmatmul.mubr.bf16.vlgmr.msra.gmra.mrb[28].mxu1 %v7101_v28 }
 0x103   :  { %6485 = vmatpush3.bf16.msra.mxu1 %v7106_v34  ;;  %6521 = vmatpush3.bf16.msra.mxu0 %v7128_v11  ;;  %v7147_v34 = vld [vmem:[%s9147_s2 + $0x8c8] sm:$0xff]  }
 0x104   :  { %6486 = vmatprep.subr.bf16.mxu1 %v7109_v41  ;;  %6550 = vmatprep.subr.bf16.mxu0 %v7134_v16  ;;  %v7153_v41 = vld [vmem:[%s9147_s2 + $0x960] sm:$0xff]  }
 0x105   :  { %4969 = vmatprep.mubr.bf16.mxu1 %v7141_v23  ;;  %v7179_v11 = vld [vmem:[%s9148_s0 + $0x8c] ss:$248 sps:$4 sm:$0xff]  }
 0x106   :  { %5011 = vmatmul.mubr.bf16.vlgmr.msra.gmra.mrb[28].mxu0 %v7131_v14  ;;  %v7185_v23 = vld [vmem:[%s9147_s2 + $0x9c8] sm:$0xff]  }
 0x107   :  { %6487 = vmatpush3.bf16.msra.mxu1 %v7110_v42  ;;  %6551 = vmatpush3.bf16.msra.mxu0 %v7135_v17 }
 0x108   :  { %6488 = vmatprep.subr.bf16.mxu1 %v7113_v46  ;;  %6552 = vmatprep.subr.bf16.mxu0 %v7138_v20  ;;  %v7155_v46 = vld [vmem:[%s9147_s2 + $0x8d8] sm:$0xff]   ;;  %v7183_v20 = vld [vmem:[%s9147_s2 + $0xa50] sm:$0xff]  }
 0x10b   :  { %6489 = vmatpush3.bf16.msra.mxu1 %v7114_v47  ;;  %6553 = vmatpush3.bf16.msra.mxu0 %v7142_v24  ;;  %v7186_v24 = vld [vmem:[%s9147_s2 + $0x988] sm:$0xff]  }
 0x10c   :  { %6490 = vmatprep.subr.bf16.mxu1 %v7117_v50  ;;  %6554 = vmatprep.subr.bf16.mxu0 %v7145_v31 }
 0x10f   :  { %6491 = vmatpush3.bf16.msra.mxu1 %v7118_v53  ;;  %6555 = vmatpush3.bf16.msra.mxu0 %v7146_v33  ;;  %v7191_v33 = vld [vmem:[%s9147_s2 + $0xa60] sm:$0xff]  }
 0x110   :  { %6492 = vmatprep.subr.bf16.mxu1 %v7121_v62  ;;  %6556 = vmatprep.subr.bf16.mxu0 %v7149_v36  ;;  %v7165_v62 = vld [vmem:[%s9147_s2 + $0x978] sm:$0xff]  }
 0x113   :  { %6493 = vmatpush3.bf16.msra.mxu1 %v7122_v2  ;;  %6557 = vmatpush3.bf16.msra.mxu0 %v7150_v37  ;;  %v7168_v2 = vld [vmem:[%s9147_s2 + $0x8b0] sm:$0xff]  }
 0x114   :  { %6494 = vmatprep.subr.bf16.mxu1 %v7125_v7  ;;  %6558 = vmatprep.subr.bf16.mxu0 %v7153_v41  ;;  %v7174_v7 = vld [vmem:[%s9147_s2 + $0x8f8] sm:$0xff]  }
 0x115   :  { %v6192_v51 = vpop.f32.mrb[4].mxu1 }
 0x116   :  { %v6193_v54 = vpop.f32.mrb[5].mxu1 }
 0x117   :  { %v6194_v57 = vadd.f32 %v6193_v54, %v6192_v51  ;;  %v6195_v58 = vpop.f32.mrb[6].mxu1  ;;  %6495 = vmatpush3.bf16.msra.mxu1 %v7126_v9  ;;  %6559 = vmatpush3.bf16.msra.mxu0 %v7154_v43  ;;  %v7157_v51 = vld [vmem:[%s9147_s2 + $0x968] sm:$0xff]  }
 0x118   :  { %v6196_v60 = vpop.f32.mrb[7].mxu1  ;;  %6496 = vmatprep.subr.bf16.mxu1 %v7129_v12  ;;  %6560 = vmatprep.subr.bf16.mxu0 %v7157_v51  ;;  %v7176_v9 = vld [vmem:[%s9147_s2 + $0xa48] sm:$0xff]   ;;  %v7203_v51 = vld [vmem:[%s9147_s2 + $0xa78] sm:$0xff]  }
 0x119   :  { %v4398_v63 = vadd.f32 %v6194_v57, %v4357_v55  ;;  %v6197_v0 = vadd.f32 %v6196_v60, %v6195_v58  ;;  %v6258_v22 = vpop.f32.mrb[4].mxu0  ;;  %v7159_v55 = vld [vmem:[%s9147_s2 + $0x8e0] sm:$0xff]   ;;  %v7161_v58 = vld [vmem:[%s9147_s2 + $0x970] sm:$0xff]   ;;  %v7163_v60 = vld [vmem:[%s9147_s2 + $0x8e8] sm:$0xff]  }
 0x11a   :  { %v6259_v25 = vpop.f32.mrb[5].mxu0  ;;  %v7196_v43 = vld [vmem:[%s9147_s2 + $0xa28] sm:$0xff]  }
 0x11b   :  { %v4401_v4 = vadd.f32 %v6197_v0, %v4360_v61  ;;  %v8312_v5 = vadd.f32 %v6216_v35, %v4398_v63  ;;  %6497 = vmatpush3.bf16.msra.mxu1 %v7130_v13  ;;  %v6260_v27 = vadd.f32 %v6259_v25, %v6258_v22  ;;  %v6261_v28 = vpop.f32.mrb[6].mxu0  ;;  %v7148_v35 = vld [vmem:[%s9147_s2 + $0x888] sm:$0xff]   ;;  %6561 = vmatpush3.bf16.msra.mxu0 %v7158_v52  ;;  %v7166_v63 = vld [vmem:[%s9147_s2 + $0x938] sm:$0xff]   ;;  %v7167_v0 = vld [vmem:[%s9147_s2 + $0x8f0] sm:$0xff]  }
 0x11c   :  { %6498 = vmatprep.subr.bf16.mxu1 %v7136_v18  ;;  %v6262_v30 = vpop.f32.mrb[7].mxu0  ;;  %6562 = vmatprep.subr.bf16.mxu0 %v7161_v58  ;;  %v7164_v61 = vld [vmem:[%s9147_s2 + $0x8a8] sm:$0xff]   ;;  %v7182_v18 = vld [vmem:[%s9147_s2 + $0x980] sm:$0xff]   ;;  %v7184_v22 = vld [vmem:[%s9147_s2 + $0xa10] sm:$0xff]  }
 0x11d   :  { %v8320_v8 = vadd.f32 %v6219_v40, %v4401_v4  ;;  %v6263_v32 = vadd.f32 %v6262_v30, %v6261_v28  ;;  %v7171_v4 = vld [vmem:[%s9148_s0 + $0x94] ss:$248 sps:$4 sm:$0xff]   ;;  %v7187_v25 = vld [vmem:[%s9147_s2 + $0xa58] sm:$0xff]   ;;  %v7211_v58 = vld [vmem:[%s9147_s2 + $0xb00] sm:$0xff]  }
 0x11e   :  { %5092 = vmatprep.mubr.bf16.mxu0 %v7171_v4  ;;  %v7180_v13 = vld [vmem:[%s9147_s2 + $0xa08] sm:$0xff]   ;;  %v7189_v28 = vld [vmem:[%s9147_s2 + $0x9d0] sm:$0xff]   ;;  %v7204_v52 = vld [vmem:[%s9147_s2 + $0xa38] sm:$0xff]  }
 0x11f   :  { %6499 = vmatpush3.bf16.msra.mxu1 %v7137_v19  ;;  %6563 = vmatpush3.bf16.msra.mxu0 %v7162_v59  ;;  %v7190_v30 = vld [vmem:[%s9147_s2 + $0x990] sm:$0xff]   ;;  %v7212_v59 = vld [vmem:[%s9147_s2 + $0x9f8] sm:$0xff]  }
 0x120   :  { %6528 = vmatprep.subr.bf16.mxu1 %v7143_v26  ;;  %6564 = vmatprep.subr.bf16.mxu0 %v7165_v62  ;;  %v7188_v26 = vld [vmem:[%s9147_s2 + $0xa18] sm:$0xff]  }
 0x121   :  { %v7215_v62 = vld [vmem:[%s9148_s0 + $0x98] ss:$248 sps:$4 sm:$0xff]  }
 0x122   :  { %4970 = vmatmul.mubr.bf16.vlgmr.msra.gmra.mrb[32].mxu1 %v7139_v21 }
 0x123   :  { %6529 = vmatpush3.bf16.msra.mxu1 %v7144_v29  ;;  %6565 = vmatpush3.bf16.msra.mxu0 %v7166_v63  ;;  %v7217_v63 = vld [vmem:[%s9148_s0 + $0x9c] ss:$248 sps:$4 sm:$0xff]  }
 0x124   :  { %6530 = vmatprep.subr.bf16.mxu1 %v7147_v34  ;;  %5051 = vmatprep.mubr.bf16.mxu1 %v7179_v11 }
 0x126   :  { %5093 = vmatmul.mubr.bf16.vlgmr.msra.gmra.mrb[32].mxu0 %v7169_v3  ;;  %v7219_v3 = vld [vmem:[%s9147_s2 + $0xac0] sm:$0xff]  }
 0x127   :  { %6531 = vmatpush3.bf16.msra.mxu1 %v7148_v35  ;;  %v7192_v35 = vld [vmem:[%s9147_s2 + $0xa20] sm:$0xff]  }
 0x128   :  { %6532 = vmatprep.subr.bf16.mxu1 %v7151_v38  ;;  %v7193_v38 = vld [vmem:[%s9147_s2 + $0x9d8] sm:$0xff]  }
 0x12b   :  { %6533 = vmatpush3.bf16.msra.mxu1 %v7152_v39  ;;  %v7194_v39 = vld [vmem:[%s9147_s2 + $0x998] sm:$0xff]  }
 0x12c   :  { %6534 = vmatprep.subr.bf16.mxu1 %v7155_v46  ;;  %v7198_v46 = vld [vmem:[%s9147_s2 + $0x9a0] sm:$0xff]  }
 0x12f   :  { %6535 = vmatpush3.bf16.msra.mxu1 %v7156_v48  ;;  %v7200_v48 = vld [vmem:[%s9147_s2 + $0xa30] sm:$0xff]  }
 0x130   :  { %6536 = vmatprep.subr.bf16.mxu1 %v7159_v55  ;;  %v7207_v55 = vld [vmem:[%s9148_s0 + $0xa0] ss:$248 sps:$4 sm:$0xff]  }
 0x133   :  { %6537 = vmatpush3.bf16.msra.mxu1 %v7160_v56  ;;  %v7209_v56 = vld [vmem:[%s9148_s0 + $0xa4] ss:$248 sps:$4 sm:$0xff]  }
 0x134   :  { %6538 = vmatprep.subr.bf16.mxu1 %v7163_v60  ;;  %5174 = vmatprep.mubr.bf16.mxu0 %v7209_v56  ;;  %v7213_v60 = vld [vmem:[%s9147_s2 + $0x9b8] sm:$0xff]   ;;  %v7257_v56 = vld [vmem:[%s9147_s2 + $0xbc0] sm:$0xff]  }
 0x135   :  { %v6236_v40 = vpop.f32.mrb[8].mxu1 }
 0x136   :  { %v6237_v42 = vpop.f32.mrb[9].mxu1 }
 0x137   :  { %v6238_v44 = vadd.f32 %v6237_v42, %v6236_v40  ;;  %v6239_v45 = vpop.f32.mrb[10].mxu1  ;;  %6539 = vmatpush3.bf16.msra.mxu1 %v7164_v61  ;;  %v7195_v42 = vld [vmem:[%s9147_s2 + $0xa68] sm:$0xff]  }
 0x138   :  { %v6240_v47 = vpop.f32.mrb[11].mxu1  ;;  %6540 = vmatprep.subr.bf16.mxu1 %v7167_v0  ;;  %v7214_v61 = vld [vmem:[%s9147_s2 + $0xb48] sm:$0xff]  }
 0x139   :  { %v4480_v49 = vadd.f32 %v6238_v44, %v8312_v5  ;;  %v6241_v50 = vadd.f32 %v6240_v47, %v6239_v45  ;;  %v7172_v5 = vld [vmem:[%s9147_s2 + $0xa40] sm:$0xff]   ;;  %v6302_v12 = vpop.f32.mrb[8].mxu0  ;;  %v7199_v47 = vld [vmem:[%s9147_s2 + $0xa70] sm:$0xff]   ;;  %v7218_v0 = vld [vmem:[%s9147_s2 + $0xb08] sm:$0xff]  }
 0x13a   :  { %6594 = vmatprep.subr.bf16.mxu0 %v7172_v5  ;;  %v6303_v14 = vpop.f32.mrb[9].mxu0  ;;  %v7197_v45 = vld [vmem:[%s9147_s2 + $0x9e0] sm:$0xff]  }
 0x13b   :  { %v4483_v53 = vadd.f32 %v6241_v50, %v8320_v8  ;;  %v8417_v54 = vadd.f32 %v6260_v27, %v4480_v49  ;;  %6541 = vmatpush3.bf16.msra.mxu1 %v7168_v2  ;;  %6595 = vmatpush3.bf16.msra.mxu0 %v7173_v6  ;;  %v7175_v8 = vld [vmem:[%s9147_s2 + $0x8b8] sm:$0xff]   ;;  %v6304_v16 = vadd.f32 %v6303_v14, %v6302_v12  ;;  %v6305_v17 = vpop.f32.mrb[10].mxu0  ;;  %v7201_v49 = vld [vmem:[%s9147_s2 + $0x9e8] sm:$0xff]   ;;  %v7220_v5 = vld [vmem:[%s9147_s2 + $0xa80] sm:$0xff]  }
 0x13c   :  { %6542 = vmatprep.subr.bf16.mxu1 %v7174_v7  ;;  %6596 = vmatprep.subr.bf16.mxu0 %v7176_v9  ;;  %v6306_v19 = vpop.f32.mrb[11].mxu0  ;;  %v7202_v50 = vld [vmem:[%s9147_s2 + $0x9a8] sm:$0xff]  }
 0x13d   :  { %v8425_v57 = vadd.f32 %v6263_v32, %v4483_v53  ;;  %v6307_v21 = vadd.f32 %v6306_v19, %v6305_v17  ;;  %v7205_v53 = vld [vmem:[%s9147_s2 + $0x9f0] sm:$0xff]   ;;  %v7223_v12 = vld [vmem:[%s9147_s2 + $0xac8] sm:$0xff]   ;;  %v7226_v19 = vld [vmem:[%s9147_s2 + $0xb18] sm:$0xff]  }
 0x13e   :  { %v7224_v14 = vld [vmem:[%s9147_s2 + $0xa88] sm:$0xff]  }
 0x13f   :  { %6543 = vmatpush3.bf16.msra.mxu1 %v7175_v8  ;;  %6597 = vmatpush3.bf16.msra.mxu0 %v7180_v13  ;;  %v7221_v8 = vld [vmem:[%s9147_s2 + $0xb50] sm:$0xff]  }
 0x140   :  { %6572 = vmatprep.subr.bf16.mxu1 %v7181_v15  ;;  %6598 = vmatprep.subr.bf16.mxu0 %v7183_v20 }
 0x142   :  { %5052 = vmatmul.mubr.bf16.vlgmr.msra.gmra.mrb[36].mxu1 %v7177_v10  ;;  %v7222_v10 = vld [vmem:[%s9147_s2 + $0xb10] sm:$0xff]  }
 0x143   :  { %6573 = vmatpush3.bf16.msra.mxu1 %v7182_v18  ;;  %6599 = vmatpush3.bf16.msra.mxu0 %v7184_v22 }
 0x144   :  { %6574 = vmatprep.subr.bf16.mxu1 %v7185_v23  ;;  %6600 = vmatprep.subr.bf16.mxu0 %v7187_v25  ;;  %v7229_v25 = vld [vmem:[%s9147_s2 + $0xb60] sm:$0xff]  }
 0x145   :  { %5133 = vmatprep.mubr.bf16.mxu1 %v7217_v63  ;;  %v7260_v63 = vld [vmem:[%s9147_s2 + $0xc10] sm:$0xff]  }
 0x147   :  { %6575 = vmatpush3.bf16.msra.mxu1 %v7186_v24  ;;  %6601 = vmatpush3.bf16.msra.mxu0 %v7188_v26  ;;  %v7228_v24 = vld [vmem:[%s9147_s2 + $0xa90] sm:$0xff]  }
 0x148   :  { %6576 = vmatprep.subr.bf16.mxu1 %v7189_v28  ;;  %6602 = vmatprep.subr.bf16.mxu0 %v7191_v33  ;;  %v7230_v28 = vld [vmem:[%s9147_s2 + $0xb20] sm:$0xff]   ;;  %v7234_v33 = vld [vmem:[%s9147_s2 + $0xb28] sm:$0xff]  }
 0x14b   :  { %6577 = vmatpush3.bf16.msra.mxu1 %v7190_v30  ;;  %6603 = vmatpush3.bf16.msra.mxu0 %v7192_v35  ;;  %v7236_v35 = vld [vmem:[%s9147_s2 + $0xaa0] sm:$0xff]  }
 0x14c   :  { %6578 = vmatprep.subr.bf16.mxu1 %v7193_v38  ;;  %6604 = vmatprep.subr.bf16.mxu0 %v7195_v42  ;;  %v7239_v38 = vld [vmem:[%s9147_s2 + $0xae8] sm:$0xff]   ;;  %v7243_v42 = vld [vmem:[%s9147_s2 + $0xaf0] sm:$0xff]  }
 0x14f   :  { %6579 = vmatpush3.bf16.msra.mxu1 %v7194_v39  ;;  %6605 = vmatpush3.bf16.msra.mxu0 %v7196_v43  ;;  %v7240_v39 = vld [vmem:[%s9147_s2 + $0xaa8] sm:$0xff]   ;;  %v7244_v43 = vld [vmem:[%s9147_s2 + $0xab0] sm:$0xff]  }
 0x150   :  { %6580 = vmatprep.subr.bf16.mxu1 %v7197_v45  ;;  %6606 = vmatprep.subr.bf16.mxu0 %v7199_v47  ;;  %v7247_v45 = vld [vmem:[%s9148_s0 + $0xb4] ss:$248 sps:$4 sm:$0xff]   ;;  %v7249_v47 = vld [vmem:[%s9147_s2 + $0xc00] sm:$0xff]  }
 0x153   :  { %6581 = vmatpush3.bf16.msra.mxu1 %v7198_v46  ;;  %6607 = vmatpush3.bf16.msra.mxu0 %v7200_v48  ;;  %v7248_v46 = vld [vmem:[%s9147_s2 + $0xc40] sm:$0xff]   ;;  %v7250_v48 = vld [vmem:[%s9147_s2 + $0xaf8] sm:$0xff]  }
 0x154   :  { %6582 = vmatprep.subr.bf16.mxu1 %v7201_v49  ;;  %6608 = vmatprep.subr.bf16.mxu0 %v7203_v51  ;;  %v7251_v49 = vld [vmem:[%s9147_s2 + $0xab8] sm:$0xff]   ;;  %v7253_v51 = vld [vmem:[%s9148_s0 + $0xa8] ss:$248 sps:$4 sm:$0xff]  }
 0x155   :  { %v6280_v27 = vpop.f32.mrb[12].mxu1 }
 0x156   :  { %v6281_v29 = vpop.f32.mrb[13].mxu1 }
 0x157   :  { %v6282_v31 = vadd.f32 %v6281_v29, %v6280_v27  ;;  %v6283_v32 = vpop.f32.mrb[14].mxu1  ;;  %6583 = vmatpush3.bf16.msra.mxu1 %v7202_v50  ;;  %6609 = vmatpush3.bf16.msra.mxu0 %v7204_v52  ;;  %v7231_v29 = vld [vmem:[%s9147_s2 + $0xad8] sm:$0xff]   ;;  %v7252_v50 = vld [vmem:[%s9147_s2 + $0xc48] sm:$0xff]  }
 0x158   :  { %v6284_v34 = vpop.f32.mrb[15].mxu1  ;;  %6584 = vmatprep.subr.bf16.mxu1 %v7205_v53  ;;  %v7255_v53 = vld [vmem:[%s9148_s0 + $0xac] ss:$248 sps:$4 sm:$0xff]  }
 0x159   :  { %v4562_v36 = vadd.f32 %v6282_v31, %v8417_v54  ;;  %v6285_v37 = vadd.f32 %v6284_v34, %v6283_v32  ;;  %v7206_v54 = vld [vmem:[%s9147_s2 + $0x9b0] sm:$0xff]   ;;  %v6346_v2 = vpop.f32.mrb[12].mxu0  ;;  %v7232_v31 = vld [vmem:[%s9147_s2 + $0xa98] sm:$0xff]   ;;  %v7233_v32 = vld [vmem:[%s9147_s2 + $0xb68] sm:$0xff]  }
 0x15a   :  { %5175 = vmatmul.mubr.bf16.vlgmr.msra.gmra.mrb[36].mxu0 %v7207_v55  ;;  %v6347_v4 = vpop.f32.mrb[13].mxu0  ;;  %v7235_v34 = vld [vmem:[%s9147_s2 + $0xae0] sm:$0xff]  }
 0x15b   :  { %v4565_v40 = vadd.f32 %v6285_v37, %v8425_v57  ;;  %v8525_v41 = vadd.f32 %v6304_v16, %v4562_v36  ;;  %6585 = vmatpush3.bf16.msra.mxu1 %v7206_v54  ;;  %v7210_v57 = vld [vmem:[%s9147_s2 + $0xb40] sm:$0xff]   ;;  %v6348_v6 = vadd.f32 %v6347_v4, %v6346_v2  ;;  %v6349_v7 = vpop.f32.mrb[14].mxu0  ;;  %v7225_v16 = vld [vmem:[%s9147_s2 + $0xb58] sm:$0xff]   ;;  %v7237_v36 = vld [vmem:[%s9147_s2 + $0xb70] sm:$0xff]   ;;  %5256 = vmatprep.mubr.bf16.mxu0 %v7247_v45 }
 0x15c   :  { %6638 = vmatprep.subr.bf16.mxu0 %v7210_v57  ;;  %6586 = vmatprep.subr.bf16.mxu1 %v7212_v59  ;;  %v6350_v9 = vpop.f32.mrb[15].mxu0  ;;  %v7238_v37 = vld [vmem:[%s9147_s2 + $0xb30] sm:$0xff]   ;;  %v7256_v54 = vld [vmem:[%s9147_s2 + $0xc08] sm:$0xff]   ;;  %v7258_v59 = vld [vmem:[%s9147_s2 + $0xb80] sm:$0xff]  }
 0x15d   :  { %v8533_v44 = vadd.f32 %v6307_v21, %v4565_v40  ;;  %6639 = vmatpush3.bf16.msra.mxu0 %v7211_v58  ;;  %v6351_v11 = vadd.f32 %v6350_v9, %v6349_v7  ;;  %v7227_v21 = vld [vmem:[%s9147_s2 + $0xad0] sm:$0xff]   ;;  %v7241_v40 = vld [vmem:[%s9147_s2 + $0xb78] sm:$0xff]   ;;  %v7295_v45 = vld [vmem:[%s9147_s2 + $0xcc0] sm:$0xff]  }
 0x15e   :  { %6640 = vmatprep.subr.bf16.mxu0 %v7214_v61  ;;  %v7259_v61 = vld [vmem:[%s9147_s2 + $0xc50] sm:$0xff]  }
 0x15f   :  { %6587 = vmatpush3.bf16.msra.mxu1 %v7213_v60 }
 0x160   :  { %6616 = vmatprep.subr.bf16.mxu1 %v7219_v3  ;;  %v7262_v3 = vld [vmem:[%s9147_s2 + $0xb88] sm:$0xff]  }
 0x161   :  { %6641 = vmatpush3.bf16.msra.mxu0 %v7218_v0  ;;  %v7261_v0 = vld [vmem:[%s9147_s2 + $0xbc8] sm:$0xff]  }
 0x162   :  { %5134 = vmatmul.mubr.bf16.vlgmr.msra.gmra.mrb[40].mxu1 %v7215_v62  ;;  %6642 = vmatprep.subr.bf16.mxu0 %v7221_v8  ;;  %v7264_v8 = vld [vmem:[%s9147_s2 + $0xc18] sm:$0xff]  }
 0x163   :  { %6617 = vmatpush3.bf16.msra.mxu1 %v7220_v5  ;;  %5215 = vmatprep.mubr.bf16.mxu1 %v7255_v53  ;;  %v7263_v5 = vld [vmem:[%s9147_s2 + $0xc58] sm:$0xff]   ;;  %v7299_v53 = vld [vmem:[%s9147_s2 + $0xcc8] sm:$0xff]  }
 0x164   :  { %6618 = vmatprep.subr.bf16.mxu1 %v7223_v12 }
 0x165   :  { %6643 = vmatpush3.bf16.msra.mxu0 %v7222_v10  ;;  %v7265_v10 = vld [vmem:[%s9147_s2 + $0xbd0] sm:$0xff]  }
 0x166   :  { %6644 = vmatprep.subr.bf16.mxu0 %v7225_v16 }
 0x167   :  { %6619 = vmatpush3.bf16.msra.mxu1 %v7224_v14  ;;  %v7267_v14 = vld [vmem:[%s9147_s2 + $0xc60] sm:$0xff]  }
 0x168   :  { %6620 = vmatprep.subr.bf16.mxu1 %v7227_v21  ;;  %v7271_v21 = vld [vmem:[%s9147_s2 + $0xc68] sm:$0xff]  }
 0x169   :  { %6645 = vmatpush3.bf16.msra.mxu0 %v7226_v19 }
 0x16a   :  { %6646 = vmatprep.subr.bf16.mxu0 %v7229_v25  ;;  %v7275_v25 = vld [vmem:[%s9147_s2 + $0xc70] sm:$0xff]  }
 0x16b   :  { %6621 = vmatpush3.bf16.msra.mxu1 %v7228_v24  ;;  %v7274_v24 = vld [vmem:[%s9147_s2 + $0xba0] sm:$0xff]  }
 0x16c   :  { %6622 = vmatprep.subr.bf16.mxu1 %v7231_v29  ;;  %v7279_v29 = vld [vmem:[%s9147_s2 + $0xc78] sm:$0xff]  }
 0x16d   :  { %6647 = vmatpush3.bf16.msra.mxu0 %v7230_v28  ;;  %v7278_v28 = vld [vmem:[%s9147_s2 + $0xba8] sm:$0xff]  }
 0x16e   :  { %6648 = vmatprep.subr.bf16.mxu0 %v7233_v32  ;;  %v7282_v32 = vld [vmem:[%s9147_s2 + $0xbb0] sm:$0xff]  }
 0x16f   :  { %6623 = vmatpush3.bf16.msra.mxu1 %v7232_v31  ;;  %v7281_v31 = vld [vmem:[%s9147_s2 + $0xbf0] sm:$0xff]  }
 0x170   :  { %6624 = vmatprep.subr.bf16.mxu1 %v7235_v34  ;;  %v7285_v34 = vld [vmem:[%s9148_s0 + $0xc4] ss:$248 sps:$4 sm:$0xff]  }
 0x171   :  { %6649 = vmatpush3.bf16.msra.mxu0 %v7234_v33  ;;  %v7283_v33 = vld [vmem:[%s9148_s0 + $0xc0] ss:$248 sps:$4 sm:$0xff]  }
 0x172   :  { %6650 = vmatprep.subr.bf16.mxu0 %v7237_v36  ;;  %v7287_v36 = vld [vmem:[%s9147_s2 + $0xd00] sm:$0xff]  }
 0x173   :  { %6625 = vmatpush3.bf16.msra.mxu1 %v7236_v35  ;;  %v7286_v35 = vld [vmem:[%s9147_s2 + $0xd40] sm:$0xff]  }
 0x174   :  { %6626 = vmatprep.subr.bf16.mxu1 %v7239_v38  ;;  %v7289_v38 = vld [vmem:[%s9147_s2 + $0xbb8] sm:$0xff]  }
 0x175   :  { %v6324_v13 = vpop.f32.mrb[16].mxu1  ;;  %6651 = vmatpush3.bf16.msra.mxu0 %v7238_v37  ;;  %v7288_v37 = vld [vmem:[%s9147_s2 + $0xbf8] sm:$0xff]  }
 0x176   :  { %v6325_v15 = vpop.f32.mrb[17].mxu1  ;;  %6652 = vmatprep.subr.bf16.mxu0 %v7241_v40  ;;  %v7291_v40 = vld [vmem:[%s9148_s0 + $0xb8] ss:$248 sps:$4 sm:$0xff]  }
 0x177   :  { %v6326_v17 = vadd.f32 %v6325_v15, %v6324_v13  ;;  %v6327_v18 = vpop.f32.mrb[18].mxu1  ;;  %6627 = vmatpush3.bf16.msra.mxu1 %v7240_v39  ;;  %v7266_v13 = vld [vmem:[%s9147_s2 + $0xb90] sm:$0xff]   ;;  %v7290_v39 = vld [vmem:[%s9147_s2 + $0xd48] sm:$0xff]  }
 0x178   :  { %v6328_v20 = vpop.f32.mrb[19].mxu1  ;;  %6628 = vmatprep.subr.bf16.mxu1 %v7243_v42 }
 0x179   :  { %v4644_v22 = vadd.f32 %v6326_v17, %v8525_v41  ;;  %v6329_v23 = vadd.f32 %v6328_v20, %v6327_v18  ;;  %v7242_v41 = vld [vmem:[%s9147_s2 + $0xb38] sm:$0xff]   ;;  %v6390_v52 = vpop.f32.mrb[16].mxu0  ;;  %v7268_v17 = vld [vmem:[%s9147_s2 + $0xc20] sm:$0xff]  }
 0x17a   :  { %6653 = vmatpush3.bf16.msra.mxu0 %v7242_v41  ;;  %v6391_v55 = vpop.f32.mrb[17].mxu0  ;;  %v7269_v18 = vld [vmem:[%s9147_s2 + $0xbd8] sm:$0xff]  }
 0x17b   :  { %v4647_v26 = vadd.f32 %v6329_v23, %v8533_v44  ;;  %v8630_v27 = vadd.f32 %v6348_v6, %v4644_v22  ;;  %v7245_v44 = vld [vmem:[%s9148_s0 + $0xb0] ss:$248 sps:$4 sm:$0xff]   ;;  %6629 = vmatpush3.bf16.msra.mxu1 %v7244_v43  ;;  %6682 = vmatprep.subr.bf16.mxu0 %v7248_v46  ;;  %v6392_v57 = vadd.f32 %v6391_v55, %v6390_v52  ;;  %v6393_v58 = vpop.f32.mrb[18].mxu0  ;;  %v7270_v20 = vld [vmem:[%s9147_s2 + $0xb98] sm:$0xff]   ;;  %v7273_v23 = vld [vmem:[%s9147_s2 + $0xbe0] sm:$0xff]  }
 0x17c   :  { %6630 = vmatprep.subr.bf16.mxu1 %v7250_v48  ;;  %v6394_v60 = vpop.f32.mrb[19].mxu0  ;;  %v7272_v22 = vld [vmem:[%s9147_s2 + $0xc28] sm:$0xff]   ;;  %v7293_v41 = vld [vmem:[%s9148_s0 + $0xbc] ss:$248 sps:$4 sm:$0xff]   ;;  %v7296_v48 = vld [vmem:[%s9147_s2 + $0xc80] sm:$0xff]  }
 0x17d   :  { %v8638_v30 = vadd.f32 %v6351_v11, %v4647_v26  ;;  %5257 = vmatmul.mubr.bf16.vlgmr.msra.gmra.mrb[40].mxu0 %v7245_v44  ;;  %v6395_v62 = vadd.f32 %v6394_v60, %v6393_v58  ;;  %v7276_v26 = vld [vmem:[%s9147_s2 + $0xc30] sm:$0xff]   ;;  %v7294_v43 = vld [vmem:[%s9147_s2 + $0xd08] sm:$0xff]   ;;  %v7302_v60 = vld [vmem:[%s9147_s2 + $0xd18] sm:$0xff]  }
 0x17e   :  { %6683 = vmatpush3.bf16.msra.mxu0 %v7249_v47  ;;  %5338 = vmatprep.mubr.bf16.mxu0 %v7285_v34  ;;  %v7298_v52 = vld [vmem:[%s9147_s2 + $0xd10] sm:$0xff]   ;;  %v7300_v55 = vld [vmem:[%s9147_s2 + $0xc88] sm:$0xff]  }
 0x17f   :  { %6631 = vmatpush3.bf16.msra.mxu1 %v7251_v49  ;;  %6684 = vmatprep.subr.bf16.mxu0 %v7252_v50  ;;  %v7297_v50 = vld [vmem:[%s9147_s2 + $0xd50] sm:$0xff]  }
 0x180   :  { %6660 = vmatprep.subr.bf16.mxu1 %v7257_v56 }
 0x182   :  { %6685 = vmatpush3.bf16.msra.mxu0 %v7256_v54  ;;  %5216 = vmatmul.mubr.bf16.vlgmr.msra.gmra.mrb[44].mxu1 %v7253_v51 }
 0x183   :  { %6661 = vmatpush3.bf16.msra.mxu1 %v7258_v59  ;;  %6686 = vmatprep.subr.bf16.mxu0 %v7259_v61 }
 0x184   :  { %6662 = vmatprep.subr.bf16.mxu1 %v7261_v0  ;;  %5297 = vmatprep.mubr.bf16.mxu1 %v7293_v41 }
 0x186   :  { %6687 = vmatpush3.bf16.msra.mxu0 %v7260_v63 }
 0x187   :  { %6663 = vmatpush3.bf16.msra.mxu1 %v7262_v3  ;;  %6688 = vmatprep.subr.bf16.mxu0 %v7263_v5  ;;  %v7305_v3 = vld [vmem:[%s9147_s2 + $0xd60] sm:$0xff]  }
 0x188   :  { %6664 = vmatprep.subr.bf16.mxu1 %v7265_v10  ;;  %v7309_v10 = vld [vmem:[%s9147_s2 + $0xd68] sm:$0xff]  }
 0x18a   :  { %6689 = vmatpush3.bf16.msra.mxu0 %v7264_v8 }
 0x18b   :  { %6665 = vmatpush3.bf16.msra.mxu1 %v7266_v13  ;;  %6690 = vmatprep.subr.bf16.mxu0 %v7267_v14  ;;  %v7312_v13 = vld [vmem:[%s9147_s2 + $0xca0] sm:$0xff]   ;;  %v7313_v14 = vld [vmem:[%s9147_s2 + $0xd70] sm:$0xff]  }
 0x18c   :  { %6666 = vmatprep.subr.bf16.mxu1 %v7269_v18  ;;  %v7317_v18 = vld [vmem:[%s9147_s2 + $0xd78] sm:$0xff]  }
 0x18e   :  { %6691 = vmatpush3.bf16.msra.mxu0 %v7268_v17  ;;  %v7316_v17 = vld [vmem:[%s9147_s2 + $0xca8] sm:$0xff]  }
 0x18f   :  { %6667 = vmatpush3.bf16.msra.mxu1 %v7270_v20  ;;  %6692 = vmatprep.subr.bf16.mxu0 %v7271_v21  ;;  %v7319_v20 = vld [vmem:[%s9147_s2 + $0xcf0] sm:$0xff]  }
 0x190   :  { %6668 = vmatprep.subr.bf16.mxu1 %v7273_v23  ;;  %v7320_v21 = vld [vmem:[%s9147_s2 + $0xcb0] sm:$0xff]  }
 0x191   :  { %v7323_v23 = vld [vmem:[%s9148_s0 + $0xd4] ss:$248 sps:$4 sm:$0xff]  }
 0x192   :  { %6693 = vmatpush3.bf16.msra.mxu0 %v7272_v22  ;;  %v7321_v22 = vld [vmem:[%s9148_s0 + $0xd0] ss:$248 sps:$4 sm:$0xff]  }
 0x193   :  { %6669 = vmatpush3.bf16.msra.mxu1 %v7274_v24  ;;  %6694 = vmatprep.subr.bf16.mxu0 %v7275_v25  ;;  %v7324_v24 = vld [vmem:[%s9147_s2 + $0xe40] sm:$0xff]  }
 0x194   :  { %v7325_v25 = vld [vmem:[%s9147_s2 + $0xe00] sm:$0xff]  }
 0x195   :  { %v6368_v2 = vpop.f32.mrb[20].mxu1 }
 0x196   :  { %v6369_v4 = vpop.f32.mrb[21].mxu1  ;;  %6695 = vmatpush3.bf16.msra.mxu0 %v7276_v26  ;;  %v7326_v26 = vld [vmem:[%s9147_s2 + $0xcf8] sm:$0xff]  }
 0x197   :  { %v6370_v6 = vadd.f32 %v6369_v4, %v6368_v2  ;;  %v6371_v7 = vpop.f32.mrb[22].mxu1  ;;  %6696 = vmatprep.subr.bf16.mxu0 %v7279_v29  ;;  %v7304_v2 = vld [vmem:[%s9147_s2 + $0xc90] sm:$0xff]   ;;  %v7329_v29 = vld [vmem:[%s9148_s0 + $0xc8] ss:$248 sps:$4 sm:$0xff]  }
 0x198   :  { %v6372_v9 = vpop.f32.mrb[23].mxu1 }
 0x199   :  { %v4726_v11 = vadd.f32 %v6370_v6, %v8630_v27  ;;  %v6373_v12 = vadd.f32 %v6372_v9, %v6371_v7  ;;  %v7277_v27 = vld [vmem:[%s9147_s2 + $0xbe8] sm:$0xff]   ;;  %v6434_v42 = vpop.f32.mrb[20].mxu0  ;;  %v7306_v6 = vld [vmem:[%s9147_s2 + $0xd20] sm:$0xff]   ;;  %v7307_v7 = vld [vmem:[%s9147_s2 + $0xcd8] sm:$0xff]  }
 0x19a   :  { %6670 = vmatprep.subr.bf16.mxu1 %v7277_v27  ;;  %v6435_v44 = vpop.f32.mrb[21].mxu0  ;;  %v7308_v9 = vld [vmem:[%s9147_s2 + $0xc98] sm:$0xff]  }
 0x19b   :  { %v4729_v15 = vadd.f32 %v6373_v12, %v8638_v30  ;;  %v8744_v16 = vadd.f32 %v6392_v57, %v4726_v11  ;;  %6671 = vmatpush3.bf16.msra.mxu1 %v7278_v28  ;;  %v7280_v30 = vld [vmem:[%s9147_s2 + $0xc38] sm:$0xff]   ;;  %v6436_v46 = vadd.f32 %v6435_v44, %v6434_v42  ;;  %v6437_v47 = vpop.f32.mrb[22].mxu0  ;;  %v7310_v11 = vld [vmem:[%s9147_s2 + $0xd28] sm:$0xff]   ;;  %v7311_v12 = vld [vmem:[%s9147_s2 + $0xce0] sm:$0xff]  }
 0x19c   :  { %6697 = vmatpush3.bf16.msra.mxu0 %v7280_v30  ;;  %6672 = vmatprep.subr.bf16.mxu1 %v7281_v31  ;;  %v6438_v49 = vpop.f32.mrb[23].mxu0  ;;  %v7301_v57 = vld [vmem:[%s9147_s2 + $0xd58] sm:$0xff]   ;;  %v7328_v28 = vld [vmem:[%s9147_s2 + $0xe48] sm:$0xff]  }
 0x19d   :  { %v8752_v19 = vadd.f32 %v6395_v62, %v4729_v15  ;;  %6726 = vmatprep.subr.bf16.mxu0 %v7286_v35  ;;  %v6439_v51 = vadd.f32 %v6438_v49, %v6437_v47  ;;  %v7303_v62 = vld [vmem:[%s9147_s2 + $0xcd0] sm:$0xff]   ;;  %v7327_v27 = vld [vmem:[%s9147_s2 + $0xcb8] sm:$0xff]   ;;  %v7331_v30 = vld [vmem:[%s9148_s0 + $0xcc] ss:$248 sps:$4 sm:$0xff]  }
 0x19e   :  { %v7314_v15 = vld [vmem:[%s9147_s2 + $0xd30] sm:$0xff]   ;;  %v7332_v31 = vld [vmem:[%s9147_s2 + $0xe08] sm:$0xff]   ;;  %v7334_v35 = vld [vmem:[%s9147_s2 + $0xd80] sm:$0xff]  }
 0x19f   :  { %6673 = vmatpush3.bf16.msra.mxu1 %v7282_v32  ;;  %5339 = vmatmul.mubr.bf16.vlgmr.msra.gmra.mrb[44].mxu0 %v7283_v33  ;;  %v7333_v33 = vld [vmem:[%s9147_s2 + $0xdc0] sm:$0xff]   ;;  %v7337_v42 = vld [vmem:[%s9147_s2 + $0xdc8] sm:$0xff]   ;;  %v7340_v49 = vld [vmem:[%s9147_s2 + $0xe18] sm:$0xff]  }
 0x1a0   :  { %6727 = vmatpush3.bf16.msra.mxu0 %v7287_v36  ;;  %6674 = vmatprep.subr.bf16.mxu1 %v7288_v37  ;;  %v7338_v44 = vld [vmem:[%s9147_s2 + $0xd88] sm:$0xff]  }
 0x1a1   :  { %6728 = vmatprep.subr.bf16.mxu0 %v7290_v39  ;;  %5420 = vmatprep.mubr.bf16.mxu0 %v7323_v23 }
 0x1a3   :  { %6675 = vmatpush3.bf16.msra.mxu1 %v7289_v38  ;;  %v7335_v38 = vld [vmem:[%s9147_s2 + $0xe50] sm:$0xff]  }
 0x1a4   :  { %6729 = vmatpush3.bf16.msra.mxu0 %v7294_v43  ;;  %6704 = vmatprep.subr.bf16.mxu1 %v7295_v45 }
 0x1a5   :  { %6730 = vmatprep.subr.bf16.mxu0 %v7297_v50 }
 0x1a6   :  { %5298 = vmatmul.mubr.bf16.vlgmr.msra.gmra.mrb[48].mxu1 %v7291_v40  ;;  %v7336_v40 = vld [vmem:[%s9147_s2 + $0xe10] sm:$0xff]  }
 0x1a7   :  { %6705 = vmatpush3.bf16.msra.mxu1 %v7296_v48  ;;  %5379 = vmatprep.mubr.bf16.mxu1 %v7331_v30  ;;  %v7374_v30 = vld [vmem:[%s9147_s2 + $0xf18] sm:$0xff]  }
 0x1a8   :  { %6731 = vmatpush3.bf16.msra.mxu0 %v7298_v52  ;;  %6706 = vmatprep.subr.bf16.mxu1 %v7299_v53 }
 0x1a9   :  { %6732 = vmatprep.subr.bf16.mxu0 %v7301_v57 }
 0x1ab   :  { %6707 = vmatpush3.bf16.msra.mxu1 %v7300_v55  ;;  %v7343_v55 = vld [vmem:[%s9147_s2 + $0xe60] sm:$0xff]  }
 0x1ac   :  { %6733 = vmatpush3.bf16.msra.mxu0 %v7302_v60  ;;  %6708 = vmatprep.subr.bf16.mxu1 %v7303_v62  ;;  %v7347_v62 = vld [vmem:[%s9147_s2 + $0xe68] sm:$0xff]  }
 0x1ad   :  { %6734 = vmatprep.subr.bf16.mxu0 %v7305_v3  ;;  %v7351_v3 = vld [vmem:[%s9147_s2 + $0xe70] sm:$0xff]  }
 0x1af   :  { %6709 = vmatpush3.bf16.msra.mxu1 %v7304_v2  ;;  %v7350_v2 = vld [vmem:[%s9147_s2 + $0xda0] sm:$0xff]  }
 0x1b0   :  { %6735 = vmatpush3.bf16.msra.mxu0 %v7306_v6  ;;  %6710 = vmatprep.subr.bf16.mxu1 %v7307_v7  ;;  %v7354_v6 = vld [vmem:[%s9147_s2 + $0xda8] sm:$0xff]   ;;  %v7355_v7 = vld [vmem:[%s9147_s2 + $0xe78] sm:$0xff]  }
 0x1b1   :  { %6736 = vmatprep.subr.bf16.mxu0 %v7309_v10  ;;  %v7358_v10 = vld [vmem:[%s9147_s2 + $0xdb0] sm:$0xff]  }
 0x1b3   :  { %6711 = vmatpush3.bf16.msra.mxu1 %v7308_v9  ;;  %v7357_v9 = vld [vmem:[%s9147_s2 + $0xdf0] sm:$0xff]  }
 0x1b4   :  { %6737 = vmatpush3.bf16.msra.mxu0 %v7310_v11  ;;  %6712 = vmatprep.subr.bf16.mxu1 %v7311_v12  ;;  %v7359_v11 = vld [vmem:[%s9148_s0 + $0xe0] ss:$248 sps:$4 sm:$0xff]   ;;  %v7361_v12 = vld [vmem:[%s9148_s0 + $0xe4] ss:$248 sps:$4 sm:$0xff]  }
 0x1b5   :  { %v6412_v54 = vpop.f32.mrb[24].mxu1  ;;  %6738 = vmatprep.subr.bf16.mxu0 %v7313_v14  ;;  %v7363_v14 = vld [vmem:[%s9147_s2 + $0xdf8] sm:$0xff]  }
 0x1b6   :  { %v6413_v56 = vpop.f32.mrb[25].mxu1 }
 0x1b7   :  { %v6414_v58 = vadd.f32 %v6413_v56, %v6412_v54  ;;  %v6415_v59 = vpop.f32.mrb[26].mxu1  ;;  %6713 = vmatpush3.bf16.msra.mxu1 %v7312_v13  ;;  %v7342_v54 = vld [vmem:[%s9147_s2 + $0xd90] sm:$0xff]   ;;  %v7362_v13 = vld [vmem:[%s9147_s2 + $0xf00] sm:$0xff]  }
 0x1b8   :  { %v6416_v61 = vpop.f32.mrb[27].mxu1  ;;  %6739 = vmatpush3.bf16.msra.mxu0 %v7314_v15  ;;  %v7364_v15 = vld [vmem:[%s9147_s2 + $0xdb8] sm:$0xff]  }
 0x1b9   :  { %v4808_v63 = vadd.f32 %v6414_v58, %v8744_v16  ;;  %v6417_v0 = vadd.f32 %v6416_v61, %v6415_v59  ;;  %v7315_v16 = vld [vmem:[%s9147_s2 + $0xce8] sm:$0xff]   ;;  %6740 = vmatprep.subr.bf16.mxu0 %v7317_v18  ;;  %v6478_v32 = vpop.f32.mrb[24].mxu0  ;;  %v7344_v58 = vld [vmem:[%s9147_s2 + $0xe20] sm:$0xff]   ;;  %v7345_v59 = vld [vmem:[%s9147_s2 + $0xdd8] sm:$0xff]  }
 0x1ba   :  { %6714 = vmatprep.subr.bf16.mxu1 %v7315_v16  ;;  %v6479_v34 = vpop.f32.mrb[25].mxu0  ;;  %v7346_v61 = vld [vmem:[%s9147_s2 + $0xd98] sm:$0xff]   ;;  %v7368_v18 = vld [vmem:[%s9147_s2 + $0xf08] sm:$0xff]  }
 0x1bb   :  { %v4811_v4 = vadd.f32 %v6417_v0, %v8752_v19  ;;  %v8858_v5 = vadd.f32 %v6436_v46, %v4808_v63  ;;  %6715 = vmatpush3.bf16.msra.mxu1 %v7316_v17  ;;  %v7318_v19 = vld [vmem:[%s9147_s2 + $0xd38] sm:$0xff]   ;;  %v6480_v36 = vadd.f32 %v6479_v34, %v6478_v32  ;;  %v6481_v37 = vpop.f32.mrb[26].mxu0  ;;  %v7348_v63 = vld [vmem:[%s9147_s2 + $0xe28] sm:$0xff]   ;;  %v7349_v0 = vld [vmem:[%s9147_s2 + $0xde0] sm:$0xff]  }
 0x1bc   :  { %6741 = vmatpush3.bf16.msra.mxu0 %v7318_v19  ;;  %6716 = vmatprep.subr.bf16.mxu1 %v7319_v20  ;;  %v6482_v39 = vpop.f32.mrb[27].mxu0  ;;  %v7339_v46 = vld [vmem:[%s9147_s2 + $0xe58] sm:$0xff]   ;;  %v7369_v20 = vld [vmem:[%s9147_s2 + $0xec0] sm:$0xff]  }
 0x1bd   :  { %v8866_v8 = vadd.f32 %v6439_v51, %v4811_v4  ;;  %6770 = vmatprep.subr.bf16.mxu0 %v7324_v24  ;;  %v6483_v41 = vadd.f32 %v6482_v39, %v6481_v37  ;;  %v7341_v51 = vld [vmem:[%s9147_s2 + $0xdd0] sm:$0xff]  }
 0x1be   :  { %v7352_v4 = vld [vmem:[%s9147_s2 + $0xe30] sm:$0xff]  }
 0x1bf   :  { %6717 = vmatpush3.bf16.msra.mxu1 %v7320_v21  ;;  %5421 = vmatmul.mubr.bf16.vlgmr.msra.gmra.mrb[48].mxu0 %v7321_v22  ;;  %v7365_v16 = vld [vmem:[%s9148_s0 + $0xd8] ss:$248 sps:$4 sm:$0xff]   ;;  %v7367_v17 = vld [vmem:[%s9148_s0 + $0xdc] ss:$248 sps:$4 sm:$0xff]   ;;  %v7370_v22 = vld [vmem:[%s9147_s2 + $0xe80] sm:$0xff]  }
 0x1c0   :  { %6771 = vmatpush3.bf16.msra.mxu0 %v7325_v25  ;;  %6718 = vmatprep.subr.bf16.mxu1 %v7326_v26  ;;  %v7371_v25 = vld [vmem:[%s9147_s2 + $0xf10] sm:$0xff]  }
 0x1c1   :  { %6772 = vmatprep.subr.bf16.mxu0 %v7328_v28  ;;  %5502 = vmatprep.mubr.bf16.mxu0 %v7361_v12 }
 0x1c3   :  { %6719 = vmatpush3.bf16.msra.mxu1 %v7327_v27  ;;  %v7372_v27 = vld [vmem:[%s9147_s2 + $0xec8] sm:$0xff]  }
 0x1c4   :  { %6773 = vmatpush3.bf16.msra.mxu0 %v7332_v31  ;;  %6748 = vmatprep.subr.bf16.mxu1 %v7333_v33  ;;  %v7375_v31 = vld [vmem:[%s9147_s2 + $0xed0] sm:$0xff]  }
 0x1c5   :  { %6774 = vmatprep.subr.bf16.mxu0 %v7335_v38  ;;  %v7376_v33 = vld [vmem:[%s9147_s2 + $0xe90] sm:$0xff]   ;;  %v7378_v38 = vld [vmem:[%s9147_s2 + $0xed8] sm:$0xff]  }
 0x1c6   :  { %5380 = vmatmul.mubr.bf16.vlgmr.msra.gmra.mrb[52].mxu1 %v7329_v29  ;;  %v7373_v29 = vld [vmem:[%s9147_s2 + $0xe88] sm:$0xff]  }
 0x1c7   :  { %6749 = vmatpush3.bf16.msra.mxu1 %v7334_v35  ;;  %5461 = vmatprep.mubr.bf16.mxu1 %v7367_v17  ;;  %v7377_v35 = vld [vmem:[%s9147_s2 + $0xf20] sm:$0xff]  }
 0x1c8   :  { %6775 = vmatpush3.bf16.msra.mxu0 %v7336_v40  ;;  %6750 = vmatprep.subr.bf16.mxu1 %v7337_v42  ;;  %v7379_v42 = vld [vmem:[%s9147_s2 + $0xe98] sm:$0xff]  }
 0x1c9   :  { %6776 = vmatprep.subr.bf16.mxu0 %v7339_v46  ;;  %v7380_v46 = vld [vmem:[%s9147_s2 + $0xf28] sm:$0xff]  }
 0x1cb   :  { %6751 = vmatpush3.bf16.msra.mxu1 %v7338_v44 }
 0x1cc   :  { %6777 = vmatpush3.bf16.msra.mxu0 %v7340_v49  ;;  %6752 = vmatprep.subr.bf16.mxu1 %v7341_v51  ;;  %v7384_v49 = vld [vmem:[%s9147_s2 + $0xee8] sm:$0xff]  }
 0x1cd   :  { %6778 = vmatprep.subr.bf16.mxu0 %v7343_v55  ;;  %v7385_v51 = vld [vmem:[%s9147_s2 + $0xea8] sm:$0xff]  }
 0x1ce   :  { %v7394_v55 = vld [vmem:[%s9148_s0 + $0xec] ss:$248 sps:$4 sm:$0xff]  }
 0x1cf   :  { %6753 = vmatpush3.bf16.msra.mxu1 %v7342_v54  ;;  %v7388_v54 = vld [vmem:[%s9147_s2 + $0xeb0] sm:$0xff]  }
 0x1d0   :  { %6779 = vmatpush3.bf16.msra.mxu0 %v7344_v58  ;;  %6754 = vmatprep.subr.bf16.mxu1 %v7345_v59  ;;  %v7396_v58 = vld [vmem:[%s9148_s0 + $0xf4] ss:$248 sps:$4 sm:$0xff]   ;;  %v7391_v59 = vld [vmem:[%s9147_s2 + $0xeb8] sm:$0xff]  }
 0x1d1   :  { %6780 = vmatprep.subr.bf16.mxu0 %v7347_v62  ;;  %v7398_v62 = vld [vmem:[%s9148_s0 + $0xf0] ss:$248 sps:$4 sm:$0xff]  }
 0x1d3   :  { %6755 = vmatpush3.bf16.msra.mxu1 %v7346_v61  ;;  %v7392_v61 = vld [vmem:[%s9148_s0 + $0xe8] ss:$248 sps:$4 sm:$0xff]  }
 0x1d4   :  { %6781 = vmatpush3.bf16.msra.mxu0 %v7348_v63  ;;  %6756 = vmatprep.subr.bf16.mxu1 %v7349_v0 }
 0x1d5   :  { %v6456_v43 = vpop.f32.mrb[28].mxu1  ;;  %6782 = vmatprep.subr.bf16.mxu0 %v7351_v3 }
 0x1d6   :  { %v6457_v45 = vpop.f32.mrb[29].mxu1 }
 0x1d7   :  { %v6458_v47 = vadd.f32 %v6457_v45, %v6456_v43  ;;  %v6459_v48 = vpop.f32.mrb[30].mxu1  ;;  %6757 = vmatpush3.bf16.msra.mxu1 %v7350_v2  ;;  %v7381_v43 = vld [vmem:[%s9147_s2 + $0xee0] sm:$0xff]  }
 0x1d8   :  { %v6460_v50 = vpop.f32.mrb[31].mxu1  ;;  %6783 = vmatpush3.bf16.msra.mxu0 %v7352_v4 }
 0x1d9   :  { %v4890_v52 = vadd.f32 %v6458_v47, %v8858_v5  ;;  %v6461_v53 = vadd.f32 %v6460_v50, %v6459_v48  ;;  %v7353_v5 = vld [vmem:[%s9147_s2 + $0xde8] sm:$0xff]   ;;  %6784 = vmatprep.subr.bf16.mxu0 %v7355_v7  ;;  %v6522_v19 = vpop.f32.mrb[28].mxu0  ;;  %v7382_v48 = vld [vmem:[%s9147_s2 + $0xea0] sm:$0xff]   ;;  %v7383_v50 = vld [vmem:[%s9147_s2 + $0xf30] sm:$0xff]  }
 0x1da   :  { %6758 = vmatprep.subr.bf16.mxu1 %v7353_v5  ;;  %v6523_v21 = vpop.f32.mrb[29].mxu0 }
 0x1db   :  { %v4893_v56 = vadd.f32 %v6461_v53, %v8866_v8  ;;  %v8972_v57 = vadd.f32 %v6480_v36, %v4890_v52  ;;  %6759 = vmatpush3.bf16.msra.mxu1 %v7354_v6  ;;  %v7356_v8 = vld [vmem:[%s9147_s2 + $0xe38] sm:$0xff]   ;;  %v6524_v23 = vadd.f32 %v6523_v21, %v6522_v19  ;;  %v6525_v24 = vpop.f32.mrb[30].mxu0  ;;  %v7387_v52 = vld [vmem:[%s9147_s2 + $0xef0] sm:$0xff]  }
 0x1dc   :  { %6785 = vmatpush3.bf16.msra.mxu0 %v7356_v8  ;;  %6760 = vmatprep.subr.bf16.mxu1 %v7357_v9  ;;  %v6526_v26 = vpop.f32.mrb[31].mxu0  ;;  %v7386_v53 = vld [vmem:[%s9147_s2 + $0xf38] sm:$0xff]  }
 0x1dd   :  { %v8980_v60 = vadd.f32 %v6483_v41, %v4893_v56  ;;  %5552 = vmatprep.subr.bf16.mxu0 %v7399_v1  ;;  %v6527_v28 = vadd.f32 %v6526_v26, %v6525_v24  ;;  %v7390_v56 = vld [vmem:[%s9147_s2 + $0xef8] sm:$0xff]  }
 0x1df   :  { %6761 = vmatpush3.bf16.msra.mxu1 %v7358_v10  ;;  %5503 = vmatmul.mubr.bf16.vlgmr.msra.gmra.mrb[52].mxu0 %v7359_v11 }
 0x1e0   :  { %5553 = vmatpush1.bf16.msra.mxu0 %v7362_v13  ;;  %6762 = vmatprep.subr.bf16.mxu1 %v7363_v14 }
 0x1e1   :  { %5554 = vmatprep.subr.bf16.mxu0 %v7399_v1  ;;  %6153 = vmatprep.mubr.msk.bf16.mxu0 %vm4318_vm0, %v7396_v58 }
 0x1e3   :  { %6763 = vmatpush3.bf16.msra.mxu1 %v7364_v15 }
 0x1e4   :  { %5555 = vmatpush1.bf16.msra.mxu0 %v7368_v18  ;;  %6792 = vmatprep.subr.bf16.mxu1 %v7369_v20 }
 0x1e5   :  { %5556 = vmatprep.subr.bf16.mxu0 %v7399_v1 }
 0x1e6   :  { %5462 = vmatmul.mubr.bf16.vlgmr.msra.gmra.mrb[56].mxu1 %v7365_v16 }
 0x1e7   :  { %6793 = vmatpush3.bf16.msra.mxu1 %v7370_v22  ;;  %5543 = vmatprep.mubr.bf16.mxu1 %v7394_v55 }
 0x1e8   :  { %5557 = vmatpush1.bf16.msra.mxu0 %v7371_v25  ;;  %6794 = vmatprep.subr.bf16.mxu1 %v7372_v27 }
 0x1e9   :  { %5558 = vmatprep.subr.bf16.mxu0 %v7399_v1 }
 0x1eb   :  { %6795 = vmatpush3.bf16.msra.mxu1 %v7373_v29 }
 0x1ec   :  { %6796 = vmatprep.subr.bf16.mxu1 %v7375_v31  ;;  %5559 = vmatpush1.bf16.msra.mxu0 %v7374_v30 }
 0x1ed   :  { %5560 = vmatprep.subr.bf16.mxu0 %v7399_v1 }
 0x1ef   :  { %6797 = vmatpush3.bf16.msra.mxu1 %v7376_v33 }
 0x1f0   :  { %6798 = vmatprep.subr.bf16.mxu1 %v7378_v38  ;;  %5561 = vmatpush1.bf16.msra.mxu0 %v7377_v35 }
 0x1f1   :  { %5562 = vmatprep.subr.bf16.mxu0 %v7399_v1 }
 0x1f3   :  { %6799 = vmatpush3.bf16.msra.mxu1 %v7379_v42 }
 0x1f4   :  { %6800 = vmatprep.subr.bf16.mxu1 %v7381_v43  ;;  %5563 = vmatpush1.bf16.msra.mxu0 %v7380_v46 }
 0x1f5   :  { %v6500_v32 = vpop.f32.mrb[32].mxu1  ;;  %5564 = vmatprep.subr.bf16.mxu0 %v7399_v1 }
 0x1f6   :  { %v6501_v34 = vpop.f32.mrb[33].mxu1 }
 0x1f7   :  { %v6502_v36 = vadd.f32 %v6501_v34, %v6500_v32  ;;  %v6503_v37 = vpop.f32.mrb[34].mxu1  ;;  %6801 = vmatpush3.bf16.msra.mxu1 %v7382_v48 }
 0x1f8   :  { %v6504_v39 = vpop.f32.mrb[35].mxu1  ;;  %6802 = vmatprep.subr.bf16.mxu1 %v7384_v49  ;;  %5565 = vmatpush1.bf16.msra.mxu0 %v7383_v50 }
 0x1f9   :  { %v4972_v40 = vadd.f32 %v6502_v36, %v8972_v57  ;;  %v6505_v41 = vadd.f32 %v6504_v39, %v6503_v37  ;;  %5566 = vmatprep.subr.bf16.mxu0 %v7399_v1  ;;  %v7389_v57 = vld [vmem:[%s9147_s2 + $0xf40] sm:$0xff]   ;;  %v6566_v63 = vpop.f32.mrb[32].mxu0 }
 0x1fa   :  { %v6567_v0 = vpop.f32.mrb[33].mxu0 }
 0x1fb   :  { %v4975_v44 = vadd.f32 %v6505_v41, %v8980_v60  ;;  %v5013_v45 = vadd.f32 %v6524_v23, %v4972_v40  ;;  %6803 = vmatpush3.bf16.msra.mxu1 %v7385_v51  ;;  %v7395_v60 = vld [vmem:[%s9147_s2 + $0xf48] sm:$0xff]   ;;  %v6568_v2 = vadd.f32 %v6567_v0, %v6566_v63  ;;  %v6569_v3 = vpop.f32.mrb[34].mxu0 }
 0x1fc   :  { %6804 = vmatprep.subr.bf16.mxu1 %v7387_v52  ;;  %5567 = vmatpush1.bf16.msra.mxu0 %v7386_v53  ;;  %v6570_v4 = vpop.f32.mrb[35].mxu0 }
 0x1fd   :  { %v5016_v47 = vadd.f32 %v6527_v28, %v4975_v44  ;;  %5568 = vmatprep.subr.bf16.mxu0 %v7399_v1  ;;  %v6571_v5 = vadd.f32 %v6570_v4, %v6569_v3 }
 0x1ff   :  { %6805 = vmatpush3.bf16.msra.mxu1 %v7388_v54 }
 0x200   :  { %6806 = vmatprep.subr.bf16.mxu1 %v7390_v56  ;;  %5569 = vmatpush1.bf16.msra.mxu0 %v7389_v57 }
 0x201   :  { %5570 = vmatprep.subr.bf16.mxu0 %v7399_v1 }
 0x203   :  { %6807 = vmatpush3.bf16.msra.mxu1 %v7391_v59 }
 0x204   :  { %5571 = vmatpush1.bf16.msra.mxu0 %v7395_v60 }
 0x206   :  { %5544 = vmatmul.mubr.bf16.vlgmr.msra.gmra.mrb[60].mxu1 %v7392_v61 }
 0x207   :  { %5585 = vmatmul.mubr.bf16.vlgmr.msra.gmra.mrb[56].mxu0 %v7398_v62 }
 0x215   :  { %v6544_v6 = vpop.f32.mrb[36].mxu1 }
 0x216   :  { %v6545_v1 = vpop.f32.mrb[37].mxu1 }
 0x217   :  { %v6546_v7 = vadd.f32 %v6545_v1, %v6544_v6  ;;  %v6547_v8 = vpop.f32.mrb[38].mxu1 }
 0x218   :  { %v6548_v9 = vpop.f32.mrb[39].mxu1 }
 0x219   :  { %v5054_v10 = vadd.f32 %v6546_v7, %v5013_v45  ;;  %v6549_v11 = vadd.f32 %v6548_v9, %v6547_v8 }
 0x21b   :  { %v5057_v12 = vadd.f32 %v6549_v11, %v5016_v47  ;;  %v5095_v13 = vadd.f32 %v6568_v2, %v5054_v10 }
 0x21d   :  { %v5098_v14 = vadd.f32 %v6571_v5, %v5057_v12 }
 0x22d   :  { %v6610_v15 = vpop.f32.mrb[36].mxu0 }
 0x22e   :  { %v6611_v16 = vpop.f32.mrb[37].mxu0 }
 0x22f   :  { %v6612_v17 = vadd.f32 %v6611_v16, %v6610_v15  ;;  %v6613_v18 = vpop.f32.mrb[38].mxu0 }
 0x230   :  { %v6614_v19 = vpop.f32.mrb[39].mxu0 }
 0x231   :  { %v6615_v20 = vadd.f32 %v6614_v19, %v6613_v18 }
 0x235   :  { %v6588_v21 = vpop.f32.mrb[40].mxu1 }
 0x236   :  { %v6589_v22 = vpop.f32.mrb[41].mxu1 }
 0x237   :  { %v6590_v23 = vadd.f32 %v6589_v22, %v6588_v21  ;;  %v6591_v24 = vpop.f32.mrb[42].mxu1 }
 0x238   :  { %v6592_v25 = vpop.f32.mrb[43].mxu1 }
 0x239   :  { %v5136_v26 = vadd.f32 %v6590_v23, %v5095_v13  ;;  %v6593_v27 = vadd.f32 %v6592_v25, %v6591_v24 }
 0x23b   :  { %v5139_v28 = vadd.f32 %v6593_v27, %v5098_v14  ;;  %v5177_v29 = vadd.f32 %v6612_v17, %v5136_v26 }
 0x23d   :  { %v5180_v30 = vadd.f32 %v6615_v20, %v5139_v28 }
 0x250   :  { %v6654_v31 = vpop.f32.mrb[40].mxu0 }
 0x251   :  { %v6655_v32 = vpop.f32.mrb[41].mxu0 }
 0x252   :  { %v6656_v33 = vadd.f32 %v6655_v32, %v6654_v31  ;;  %v6657_v34 = vpop.f32.mrb[42].mxu0 }
 0x253   :  { %v6658_v35 = vpop.f32.mrb[43].mxu0 }
 0x254   :  { %v6659_v36 = vadd.f32 %v6658_v35, %v6657_v34 }
 0x255   :  { %v6632_v37 = vpop.f32.mrb[44].mxu1 }
 0x256   :  { %v6633_v38 = vpop.f32.mrb[45].mxu1 }
 0x257   :  { %v6634_v39 = vadd.f32 %v6633_v38, %v6632_v37  ;;  %v6635_v40 = vpop.f32.mrb[46].mxu1 }
 0x258   :  { %v6636_v41 = vpop.f32.mrb[47].mxu1 }
 0x259   :  { %v5218_v42 = vadd.f32 %v6634_v39, %v5177_v29  ;;  %v6637_v43 = vadd.f32 %v6636_v41, %v6635_v40 }
 0x25b   :  { %v5221_v44 = vadd.f32 %v6637_v43, %v5180_v30  ;;  %v5259_v45 = vadd.f32 %v6656_v33, %v5218_v42 }
 0x25d   :  { %v5262_v46 = vadd.f32 %v6659_v36, %v5221_v44 }
 0x272   :  { %v6698_v47 = vpop.f32.mrb[44].mxu0 }
 0x273   :  { %v6699_v48 = vpop.f32.mrb[45].mxu0 }
 0x274   :  { %v6700_v49 = vadd.f32 %v6699_v48, %v6698_v47  ;;  %v6701_v50 = vpop.f32.mrb[46].mxu0 }
 0x275   :  { %v6702_v51 = vpop.f32.mrb[47].mxu0 }
 0x276   :  { %v6703_v52 = vadd.f32 %v6702_v51, %v6701_v50 }
 0x279   :  { %v6676_v53 = vpop.f32.mrb[48].mxu1 }
 0x27a   :  { %v6677_v54 = vpop.f32.mrb[49].mxu1 }
 0x27b   :  { %v6678_v55 = vadd.f32 %v6677_v54, %v6676_v53  ;;  %v6679_v56 = vpop.f32.mrb[50].mxu1 }
 0x27c   :  { %v6680_v57 = vpop.f32.mrb[51].mxu1 }
 0x27d   :  { %v5300_v58 = vadd.f32 %v6678_v55, %v5259_v45  ;;  %v6681_v59 = vadd.f32 %v6680_v57, %v6679_v56 }
 0x27f   :  { %v5303_v60 = vadd.f32 %v6681_v59, %v5262_v46  ;;  %v5341_v61 = vadd.f32 %v6700_v49, %v5300_v58 }
 0x281   :  { %v5344_v62 = vadd.f32 %v6703_v52, %v5303_v60 }
 0x292   :  { %v6742_v63 = vpop.f32.mrb[48].mxu0 }
 0x293   :  { %v6743_v0 = vpop.f32.mrb[49].mxu0 }
 0x294   :  { %v6744_v2 = vadd.f32 %v6743_v0, %v6742_v63  ;;  %v6745_v3 = vpop.f32.mrb[50].mxu0 }
 0x295   :  { %v6746_v4 = vpop.f32.mrb[51].mxu0 }
 0x296   :  { %v6747_v5 = vadd.f32 %v6746_v4, %v6745_v3 }
 0x299   :  { %v6720_v6 = vpop.f32.mrb[52].mxu1 }
 0x29a   :  { %v6721_v1 = vpop.f32.mrb[53].mxu1 }
 0x29b   :  { %v6722_v7 = vadd.f32 %v6721_v1, %v6720_v6  ;;  %v6723_v8 = vpop.f32.mrb[54].mxu1 }
 0x29c   :  { %v6724_v9 = vpop.f32.mrb[55].mxu1 }
 0x29d   :  { %v5382_v10 = vadd.f32 %v6722_v7, %v5341_v61  ;;  %v6725_v11 = vadd.f32 %v6724_v9, %v6723_v8 }
 0x29f   :  { %v5385_v12 = vadd.f32 %v6725_v11, %v5344_v62  ;;  %v5423_v13 = vadd.f32 %v6744_v2, %v5382_v10 }
 0x2a1   :  { %v5426_v14 = vadd.f32 %v6747_v5, %v5385_v12 }
 0x2b2   :  { %v6786_v15 = vpop.f32.mrb[52].mxu0 }
 0x2b3   :  { %v6787_v16 = vpop.f32.mrb[53].mxu0 }
 0x2b4   :  { %v6788_v17 = vadd.f32 %v6787_v16, %v6786_v15  ;;  %v6789_v18 = vpop.f32.mrb[54].mxu0 }
 0x2b5   :  { %v6790_v19 = vpop.f32.mrb[55].mxu0 }
 0x2b6   :  { %v6791_v20 = vadd.f32 %v6790_v19, %v6789_v18 }
 0x2b9   :  { %v6764_v21 = vpop.f32.mrb[56].mxu1 }
 0x2ba   :  { %v6765_v22 = vpop.f32.mrb[57].mxu1 }
 0x2bb   :  { %v6766_v23 = vadd.f32 %v6765_v22, %v6764_v21  ;;  %v6767_v24 = vpop.f32.mrb[58].mxu1 }
 0x2bc   :  { %v6768_v25 = vpop.f32.mrb[59].mxu1 }
 0x2bd   :  { %v5464_v26 = vadd.f32 %v6766_v23, %v5423_v13  ;;  %v6769_v27 = vadd.f32 %v6768_v25, %v6767_v24 }
 0x2bf   :  { %v5467_v28 = vadd.f32 %v6769_v27, %v5426_v14  ;;  %v5505_v29 = vadd.f32 %v6788_v17, %v5464_v26 }
 0x2c1   :  { %v5508_v30 = vadd.f32 %v6791_v20, %v5467_v28 }
 0x2d9   :  { %v6808_v31 = vpop.f32.mrb[60].mxu1 }
 0x2da   :  { %v6809_v32 = vpop.f32.mrb[61].mxu1  ;;  %v5586_v35 = vpop.f32.mrb[56].mxu0 }
 0x2db   :  { %v6810_v33 = vadd.f32 %v6809_v32, %v6808_v31  ;;  %v6811_v34 = vpop.f32.mrb[62].mxu1  ;;  %v5588_v37 = vpop.f32.mrb[57].mxu0 }
 0x2dc   :  { %v6812_v36 = vpop.f32.mrb[63].mxu1  ;;  %v5589_v40 = vpop.f32.mrb[58].mxu0 }
 0x2dd   :  { %v5546_v38 = vadd.f32 %v6810_v33, %v5505_v29  ;;  %v6813_v39 = vadd.f32 %v6812_v36, %v6811_v34  ;;  %v5591_v41 = vpop.f32.mrb[59].mxu0 }
 0x2df   :  { %v5587_v42 = vadd.f32 %v5586_v35, %v5546_v38  ;;  %v5549_v43 = vadd.f32 %v6813_v39, %v5508_v30 }
 0x2e1   :  { %5594 = vst.msk [vmem:[%s9150_s3] sm:$0xff] %vm5593_vm1, %v5587_v42  ;;  %v5590_v44 = vadd.f32 %v5589_v40, %v5549_v43 }
 0x2e3   :  { %5596 = vst.msk [vmem:[%s9150_s3 + $0x8] sm:$0x7f] %vm5595_vm2, %v5590_v44 }

</bundles_post_ra>
